<compile_context>
chip_gen: v5e
topology: v5e:2x2
jax: 0.10.0
libtpu: 0.0.40
codegen_flags: <defaults>
</compile_context>

<pallas_src>
import functools

import jax
import jax.numpy as jnp
from jax.experimental import pallas as pl
from jax.experimental.pallas import tpu as pltpu

LN_EPS = 1e-5


def _ffn_kernel(x_ref, gamma_ref, beta_ref, w1_ref, b1_ref, w2_ref, b2_ref,
                o_ref, *, hidden_chunk):
    """One (TM, D) row tile; weights/biases fully VMEM-resident."""
    H = w1_ref.shape[-1]

    # ---- LayerNorm in f32 (biased variance, eps=1e-5, like nn.LayerNorm). ----
    x = x_ref[...].astype(jnp.float32)
    mean = jnp.mean(x, axis=-1, keepdims=True)
    centered = x - mean
    var = jnp.mean(centered * centered, axis=-1, keepdims=True)
    xn = centered * jax.lax.rsqrt(var + LN_EPS)
    xn = xn * gamma_ref[...] + beta_ref[...]            # gamma/beta are f32
    xn_bf = xn.astype(jnp.bfloat16)                     # MXU operand

    def h_chunk(start, hc):
        # Linear1 chunk on the MXU (bf16 operands, f32 acc) + bias + Swish.
        h = jnp.dot(xn_bf, w1_ref[:, pl.ds(start, hc)],
                    preferred_element_type=jnp.float32)
        h = h + b1_ref[:, pl.ds(start, hc)]
        h = h * jax.nn.sigmoid(h)                       # Swish (EUP sigmoid)
        # (Dropout = identity in eval mode.)
        # Linear2 partial product on the MXU (bf16 operands, f32 acc).
        return jnp.dot(h.astype(jnp.bfloat16), w2_ref[pl.ds(start, hc), :],
                       preferred_element_type=jnp.float32)

    n_chunks = H // hidden_chunk
    if n_chunks <= 1:
        y = h_chunk(0, H)
    else:
        # H-chunked path: bounds the (tm, hc) f32/bf16 Swish intermediates so
        # large row tiles still fit v7x's 64 MiB VMEM at real conformer sizes.
        def body(c, acc):
            start = pl.multiple_of(c * hidden_chunk, hidden_chunk)
            return acc + h_chunk(start, hidden_chunk)

        y = jax.lax.fori_loop(0, n_chunks, body,
                              jnp.zeros(o_ref.shape, jnp.float32),
                              unroll=True)

    y = y + b2_ref[...]
    o_ref[...] = y.astype(o_ref.dtype)


def _round_up(n, m):
    return (n + m - 1) // m * m


def _pick_hidden_chunk(H, hidden_chunk):
    """Largest multiple-of-128 divisor of H that is <= hidden_chunk (else H)."""
    if H <= hidden_chunk:
        return H
    c = (hidden_chunk // 128) * 128
    while c >= 128:
        if H % c == 0:
            return c
        c -= 128
    return H


def _vmem_bytes_estimate(tm, D, H, hc, in_bytes, out_bytes, weight_buffers):
    """Conservative per-call VMEM footprint (bytes)."""
    weights = weight_buffers * 2 * D * H * 2                 # bf16 w1 + w2
    params = weight_buffers * (3 * D + H) * 4                # gamma/beta/b1/b2
    io = 2 * tm * D * in_bytes + 2 * tm * D * out_bytes      # dbl-buffered x/y
    # Live intermediates: x/centered/xn/acc f32, xn bf16, per-chunk h f32+bf16.
    inter = 4 * tm * D * 4 + tm * D * 2 + tm * hc * (4 + 2)
    return weights + params + io + inter


def _vmem_limit_bytes():
    """~75% of per-core VMEM (capped at 100 MiB); 48 MiB safe fallback."""
    try:
        cap = pltpu.get_tpu_info().vmem_capacity_bytes
        return min((cap * 3) // 4, 100 * 1024 * 1024)
    except Exception:  # hardware query only; any failure -> safe default
        return 48 * 1024 * 1024


def _build_call(N, D, H, tm, out_dtype, hidden_chunk, single_buffer_weights,
                vmem_limit, cost_estimate):
    def const_spec(shape):
        if single_buffer_weights:
            # Constant index_map => second pipeline buffer is pure VMEM waste.
            return pl.BlockSpec(shape, lambda i: (0, 0),
                                pipeline_mode=pl.Buffered(1))
        return pl.BlockSpec(shape, lambda i: (0, 0))

    kernel = functools.partial(_ffn_kernel, hidden_chunk=hidden_chunk)
    return pl.pallas_call(
        kernel,
        out_shape=jax.ShapeDtypeStruct((N, D), out_dtype),
        grid_spec=pltpu.PrefetchScalarGridSpec(
            num_scalar_prefetch=0,
            grid=(pl.cdiv(N, tm),),      # partial tail block handled by Pallas
            in_specs=[
                pl.BlockSpec((tm, D), lambda i: (i, 0)),   # x row tile
                const_spec((1, D)),                        # gamma
                const_spec((1, D)),                        # beta
                const_spec((D, H)),                        # w1 (bf16)
                const_spec((1, H)),                        # b1
                const_spec((H, D)),                        # w2 (bf16)
                const_spec((1, D)),                        # b2
            ],
            out_specs=pl.BlockSpec((tm, D), lambda i: (i, 0)),
        ),
        compiler_params=pltpu.CompilerParams(
            dimension_semantics=("parallel",),
            vmem_limit_bytes=vmem_limit,
        ),
        cost_estimate=cost_estimate,
    )


def feed_forward_net(x, gamma, beta, w1, b1, w2, b2, *, tm=1024,
                     hidden_chunk=2048):
    """x: (B, T, D) -> (B, T, D). w1: (D, H), w2: (H, D). Eval-mode forward."""
    B, T, D = x.shape
    H = w1.shape[1]
    N = B * T

    in_bytes = jnp.dtype(x.dtype).itemsize
    out_bytes = in_bytes
    hc = _pick_hidden_chunk(H, hidden_chunk)

    vmem_limit = _vmem_limit_bytes()
    budget = vmem_limit - 2 * 1024 * 1024       # headroom for compiler scratch

    single_buffer = hasattr(pl, "Buffered")
    wbuf = 1 if single_buffer else 2

    # Row tile: large (grid-step overhead amortized, HBM-roofline friendly),
    # clamped only to the problem size and the per-generation VMEM budget.
    # No host-side padding: the partial tail block's output rows are masked
    # on store, and every output row depends only on its own input row.
    tm = min(tm, _round_up(N, 8))
    tm = max(_round_up(tm, 8), 8)
    while tm > 128 and _vmem_bytes_estimate(tm, D, H, hc, in_bytes, out_bytes,
                                            wbuf) > budget:
        tm //= 2
    tm = max(_round_up(tm, 8), 8)

    x2 = x.reshape(N, D)

    # Cast weights to bf16 once per call (cache these at model-init time in a
    # real model to avoid the per-call XLA convert pass); LN params and biases
    # stay f32.
    gamma2 = gamma.reshape(1, D).astype(jnp.float32)
    beta2 = beta.reshape(1, D).astype(jnp.float32)
    w1_bf = w1.astype(jnp.bfloat16)
    b1_2 = b1.reshape(1, H).astype(jnp.float32)
    w2_bf = w2.astype(jnp.bfloat16)
    b2_2 = b2.reshape(1, D).astype(jnp.float32)
    args = (x2, gamma2, beta2, w1_bf, b1_2, w2_bf, b2_2)

    cost = pl.CostEstimate(
        flops=4 * N * D * H,
        transcendentals=N * H,
        bytes_accessed=N * D * (in_bytes + out_bytes)
        + 2 * D * H * 2 + (3 * D + H) * 4,
    )

    fallback_errors = (TypeError, NotImplementedError)
    lowering_exc = getattr(pltpu, "LoweringException", None)
    if lowering_exc is not None:
        fallback_errors = fallback_errors + (lowering_exc,)

    try:
        out = _build_call(N, D, H, tm, x.dtype, hc, single_buffer,
                          vmem_limit, cost)(*args)
    except fallback_errors:
        if not single_buffer:
            raise
        # Narrow fallback: only if pipeline_mode=pl.Buffered(1) is rejected.
        out = _build_call(N, D, H, tm, x.dtype, hc, False,
                          vmem_limit, cost)(*args)

    return out.reshape(B, T, D)


def _reference_f32(x, gamma, beta, w1, b1, w2, b2):
    """Pure f32 reference (matches the PyTorch module in eval mode)."""
    xf = x.astype(jnp.float32)
    mean = jnp.mean(xf, axis=-1, keepdims=True)
    var = jnp.mean((xf - mean) ** 2, axis=-1, keepdims=True)
    xn = (xf - mean) / jnp.sqrt(var + LN_EPS) * gamma + beta
    h = xn @ w1 + b1
    h = h * jax.nn.sigmoid(h)
    y = h @ w2 + b2
    return y.astype(x.dtype)


def _reference_bf16(x, gamma, beta, w1, b1, w2, b2):
    """Reference mirroring the kernel's compute dtypes (bf16 MXU, f32 acc)."""
    xf = x.astype(jnp.float32)
    mean = jnp.mean(xf, axis=-1, keepdims=True)
    var = jnp.mean((xf - mean) ** 2, axis=-1, keepdims=True)
    xn = (xf - mean) / jnp.sqrt(var + LN_EPS) * gamma + beta
    h = jnp.matmul(xn.astype(jnp.bfloat16), w1.astype(jnp.bfloat16),
                   preferred_element_type=jnp.float32) + b1
    h = h * jax.nn.sigmoid(h)
    y = jnp.matmul(h.astype(jnp.bfloat16), w2.astype(jnp.bfloat16),
                   preferred_element_type=jnp.float32) + b2
    return y.astype(x.dtype)


if __name__ == "__main__":
    # Small shapes consistent with the module (encoder_dim=128, expansion=4).
    # N = B*T = 400 is deliberately NOT a multiple of 128 so the no-pad
    # partial-block path is exercised.
    B, T, D = 2, 200, 128
    EXP = 4
    H = D * EXP

    key = jax.random.PRNGKey(0)
    kx, kw1, kb1, kw2, kb2 = jax.random.split(key, 5)

    x = jax.random.normal(kx, (B, T, D), dtype=jnp.float32)

    # Deterministic parameter init (uniform fan-in style like nn.Linear).
    gamma = jnp.ones((D,), dtype=jnp.float32)
    beta = jnp.zeros((D,), dtype=jnp.float32)
    lim1 = 1.0 / (D ** 0.5)
    w1 = jax.random.uniform(kw1, (D, H), jnp.float32, -lim1, lim1)
    b1 = jax.random.uniform(kb1, (H,), jnp.float32, -lim1, lim1)
    lim2 = 1.0 / (H ** 0.5)
    w2 = jax.random.uniform(kw2, (H, D), jnp.float32, -lim2, lim2)
    b2 = jax.random.uniform(kb2, (D,), jnp.float32, -lim2, lim2)

    y_ref_bf16 = _reference_bf16(x, gamma, beta, w1, b1, w2, b2)
    y_ref_f32 = _reference_f32(x, gamma, beta, w1, b1, w2, b2)

    # 1) Default config: single big row tile (tm clamps to 400).
    y = jax.block_until_ready(feed_forward_net(x, gamma, beta, w1, b1, w2, b2))
    assert y.shape == (B, T, D)
    assert jnp.allclose(y, y_ref_bf16, atol=5e-3, rtol=5e-3), \
        "default config: mismatch vs bf16-mirrored reference"
    assert jnp.allclose(y, y_ref_f32, atol=5e-2, rtol=5e-2), \
        "default config: mismatch vs f32 reference"

    # 2) Multi-step grid with a masked partial tail tile (400 rows, tm=128).
    y2 = jax.block_until_ready(
        feed_forward_net(x, gamma, beta, w1, b1, w2, b2, tm=128))
    assert jnp.allclose(y2, y_ref_bf16, atol=5e-3, rtol=5e-3), \
        "tm=128 config: mismatch vs bf16-mirrored reference"

    # 3) Hidden-dim chunked path (H=512 split into 2 x 256 chunks).
    y3 = jax.block_until_ready(
        feed_forward_net(x, gamma, beta, w1, b1, w2, b2, hidden_chunk=256))
    assert jnp.allclose(y3, y_ref_bf16, atol=5e-3, rtol=5e-3), \
        "hidden_chunk=256 config: mismatch vs bf16-mirrored reference"

    print("KERNEL_OK")
</pallas_src>

<mosaic_0001>
module attributes {stable_mosaic.version = 11 : i64} {
  func.func @_ffn_kernel(%arg0: i32, %arg1: memref<400x128xf32, #tpu.memory_space<vmem>>, %arg2: memref<1x128xf32, #tpu.memory_space<vmem>>, %arg3: memref<1x128xf32, #tpu.memory_space<vmem>>, %arg4: memref<128x512xbf16, #tpu.memory_space<vmem>>, %arg5: memref<1x512xf32, #tpu.memory_space<vmem>>, %arg6: memref<512x128xbf16, #tpu.memory_space<vmem>>, %arg7: memref<1x128xf32, #tpu.memory_space<vmem>>, %arg8: memref<400x128xf32, #tpu.memory_space<vmem>>) attributes {dimension_semantics = [#tpu.dimension_semantics<parallel>], iteration_bounds = array<i64: 1>, scalar_prefetch = 0 : i64, scratch_operands = 0 : i64, tpu.core_type = #tpu.core_type<tc>, window_params = [{transform_indices = @transform_0, window_bounds = array<i64: 400, 128>}, {pipeline_mode = #tpu.pipeline_mode<synchronous>, transform_indices = @transform_1, window_bounds = array<i64: 1, 128>}, {pipeline_mode = #tpu.pipeline_mode<synchronous>, transform_indices = @transform_2, window_bounds = array<i64: 1, 128>}, {pipeline_mode = #tpu.pipeline_mode<synchronous>, transform_indices = @transform_3, window_bounds = array<i64: 128, 512>}, {pipeline_mode = #tpu.pipeline_mode<synchronous>, transform_indices = @transform_4, window_bounds = array<i64: 1, 512>}, {pipeline_mode = #tpu.pipeline_mode<synchronous>, transform_indices = @transform_5, window_bounds = array<i64: 512, 128>}, {pipeline_mode = #tpu.pipeline_mode<synchronous>, transform_indices = @transform_6, window_bounds = array<i64: 1, 128>}, {transform_indices = @transform_7, window_bounds = array<i64: 400, 128>}]} {
    %c0 = arith.constant 0 : index
    %c0_0 = arith.constant 0 : index
    %0 = vector.load %arg1[%c0, %c0_0] : memref<400x128xf32, #tpu.memory_space<vmem>>, vector<400x128xf32>
    %cst = arith.constant dense<0.000000e+00> : vector<400xf32>
    %1 = vector.multi_reduction <add>, %0, %cst [1] : vector<400x128xf32> to vector<400xf32>
    %2 = vector.shape_cast %1 : vector<400xf32> to vector<400x1xf32>
    %cst_1 = arith.constant 1.280000e+02 : f32
    %3 = vector.broadcast %cst_1 : f32 to vector<400x1xf32>
    %4 = arith.divf %2, %3 : vector<400x1xf32>
    %5 = vector.broadcast %4 : vector<400x1xf32> to vector<400x128xf32>
    %6 = arith.subf %0, %5 : vector<400x128xf32>
    %7 = arith.mulf %6, %6 : vector<400x128xf32>
    %cst_2 = arith.constant dense<0.000000e+00> : vector<400xf32>
    %8 = vector.multi_reduction <add>, %7, %cst_2 [1] : vector<400x128xf32> to vector<400xf32>
    %9 = vector.shape_cast %8 : vector<400xf32> to vector<400x1xf32>
    %cst_3 = arith.constant 1.280000e+02 : f32
    %10 = vector.broadcast %cst_3 : f32 to vector<400x1xf32>
    %11 = arith.divf %9, %10 : vector<400x1xf32>
    %cst_4 = arith.constant 9.99999974E-6 : f32
    %12 = vector.broadcast %cst_4 : f32 to vector<400x1xf32>
    %13 = arith.addf %11, %12 : vector<400x1xf32>
    %14 = math.rsqrt %13 : vector<400x1xf32>
    %15 = vector.broadcast %14 : vector<400x1xf32> to vector<400x128xf32>
    %16 = arith.mulf %6, %15 : vector<400x128xf32>
    %c0_5 = arith.constant 0 : index
    %c0_6 = arith.constant 0 : index
    %17 = vector.load %arg2[%c0_5, %c0_6] : memref<1x128xf32, #tpu.memory_space<vmem>>, vector<1x128xf32>
    %18 = vector.broadcast %17 : vector<1x128xf32> to vector<400x128xf32>
    %19 = arith.mulf %16, %18 : vector<400x128xf32>
    %c0_7 = arith.constant 0 : index
    %c0_8 = arith.constant 0 : index
    %20 = vector.load %arg3[%c0_7, %c0_8] : memref<1x128xf32, #tpu.memory_space<vmem>>, vector<1x128xf32>
    %21 = vector.broadcast %20 : vector<1x128xf32> to vector<400x128xf32>
    %22 = arith.addf %19, %21 : vector<400x128xf32>
    %23 = arith.truncf %22 : vector<400x128xf32> to vector<400x128xbf16>
    %c0_9 = arith.constant 0 : index
    %c0_10 = arith.constant 0 : index
    %24 = vector.load %arg4[%c0_9, %c0_10] : memref<128x512xbf16, #tpu.memory_space<vmem>>, vector<128x512xbf16>
    %cst_11 = arith.constant dense<0.000000e+00> : vector<400x512xf32>
    %25 = tpu.matmul %23, %24, %cst_11 {dimension_numbers = #tpu.dot_dimension_numbers<[1], [0], [0], [1], [0, 0, 1, 1], [], []>} : vector<400x128xbf16>, vector<128x512xbf16>, vector<400x512xf32> -> vector<400x512xf32>
    %c0_12 = arith.constant 0 : index
    %c0_13 = arith.constant 0 : index
    %26 = vector.load %arg5[%c0_12, %c0_13] : memref<1x512xf32, #tpu.memory_space<vmem>>, vector<1x512xf32>
    %27 = vector.broadcast %26 : vector<1x512xf32> to vector<400x512xf32>
    %28 = arith.addf %25, %27 : vector<400x512xf32>
    %29 = arith.negf %28 : vector<400x512xf32>
    %30 = math.exp %29 : vector<400x512xf32>
    %cst_14 = arith.constant 1.000000e+00 : f32
    %31 = vector.broadcast %cst_14 : f32 to vector<400x512xf32>
    %32 = arith.addf %31, %30 : vector<400x512xf32>
    %33 = arith.divf %31, %32 : vector<400x512xf32>
    %34 = arith.mulf %28, %33 : vector<400x512xf32>
    %35 = arith.truncf %34 : vector<400x512xf32> to vector<400x512xbf16>
    %c0_15 = arith.constant 0 : index
    %c0_16 = arith.constant 0 : index
    %36 = vector.load %arg6[%c0_15, %c0_16] : memref<512x128xbf16, #tpu.memory_space<vmem>>, vector<512x128xbf16>
    %cst_17 = arith.constant dense<0.000000e+00> : vector<400x128xf32>
    %37 = tpu.matmul %35, %36, %cst_17 {dimension_numbers = #tpu.dot_dimension_numbers<[1], [0], [0], [1], [0, 0, 1, 1], [], []>} : vector<400x512xbf16>, vector<512x128xbf16>, vector<400x128xf32> -> vector<400x128xf32>
    %c0_18 = arith.constant 0 : index
    %c0_19 = arith.constant 0 : index
    %38 = vector.load %arg7[%c0_18, %c0_19] : memref<1x128xf32, #tpu.memory_space<vmem>>, vector<1x128xf32>
    %39 = vector.broadcast %38 : vector<1x128xf32> to vector<400x128xf32>
    %40 = arith.addf %37, %39 : vector<400x128xf32>
    %c0_20 = arith.constant 0 : index
    %c0_21 = arith.constant 0 : index
    %41 = vector.load %arg8[%c0_20, %c0_21] : memref<400x128xf32, #tpu.memory_space<vmem>>, vector<400x128xf32>
    tpu.vector_store %arg8[%c0_20, %c0_21], %40 {strides = array<i32>} : memref<400x128xf32, #tpu.memory_space<vmem>>, vector<400x128xf32>,
    return
  }
  func.func @transform_0(%arg0: i32) -> (i32, i32) {
    %c0_i32 = arith.constant 0 : i32
    %c0_i32_0 = arith.constant 0 : i32
    return %arg0, %c0_i32 : i32, i32
  }
  func.func @transform_1(%arg0: i32) -> (i32, i32) {
    %c0_i32 = arith.constant 0 : i32
    %c0_i32_0 = arith.constant 0 : i32
    %c0_i32_1 = arith.constant 0 : i32
    return %c0_i32, %c0_i32_0 : i32, i32
  }
  func.func @transform_2(%arg0: i32) -> (i32, i32) {
    %c0_i32 = arith.constant 0 : i32
    %c0_i32_0 = arith.constant 0 : i32
    %c0_i32_1 = arith.constant 0 : i32
    return %c0_i32, %c0_i32_0 : i32, i32
  }
  func.func @transform_3(%arg0: i32) -> (i32, i32) {
    %c0_i32 = arith.constant 0 : i32
    %c0_i32_0 = arith.constant 0 : i32
    %c0_i32_1 = arith.constant 0 : i32
    return %c0_i32, %c0_i32_0 : i32, i32
  }
  func.func @transform_4(%arg0: i32) -> (i32, i32) {
    %c0_i32 = arith.constant 0 : i32
    %c0_i32_0 = arith.constant 0 : i32
    %c0_i32_1 = arith.constant 0 : i32
    return %c0_i32, %c0_i32_0 : i32, i32
  }
  func.func @transform_5(%arg0: i32) -> (i32, i32) {
    %c0_i32 = arith.constant 0 : i32
    %c0_i32_0 = arith.constant 0 : i32
    %c0_i32_1 = arith.constant 0 : i32
    return %c0_i32, %c0_i32_0 : i32, i32
  }
  func.func @transform_6(%arg0: i32) -> (i32, i32) {
    %c0_i32 = arith.constant 0 : i32
    %c0_i32_0 = arith.constant 0 : i32
    %c0_i32_1 = arith.constant 0 : i32
    return %c0_i32, %c0_i32_0 : i32, i32
  }
  func.func @transform_7(%arg0: i32) -> (i32, i32) {
    %c0_i32 = arith.constant 0 : i32
    %c0_i32_0 = arith.constant 0 : i32
    return %arg0, %c0_i32 : i32, i32
  }
}

</mosaic_0001>

<bundles_post_ra>
// kernel: tpu_custom_call.1
= control target key start
LH: loop header
LB: loop body
LE: loop exit
PB: predicated region body
PF: predicated region fallthrough
CT: control target
= control target key end

     0   :  { %12 = vsyncpa [#allocation3], 0  ;;  %s18223_s0 = inlined_call_operand.hbm [shape: f32[400,128], index: 0, kind: input, shape index: {}]   ;;  %s18224_s1 = inlined_call_operand.hbm [shape: f32[1,128], index: 1, kind: input, shape index: {}]   ;;  %s18225_s2 = inlined_call_operand.vmem [shape: f32[1,128], index: 2, kind: input, shape index: {}]   ;;  %s18226_s3 = inlined_call_operand.hbm [shape: bf16[128,512], index: 3, kind: input, shape index: {}]   ;;  %s18227_s4 = inlined_call_operand.hbm [shape: f32[1,512], index: 4, kind: input, shape index: {}]   ;;  %s18228_s5 = inlined_call_operand.hbm [shape: bf16[512,128], index: 5, kind: input, shape index: {}]   ;;  %s18229_s6 = inlined_call_operand.vmem [shape: f32[1,128], index: 6, kind: input, shape index: {}]   ;;  %s18230_s7 = inlined_call_operand.hbm [shape: f32[400,128], index: 7, kind: output, shape index: {}]  }
   0x1   :  { %13 = vsyncpa [#allocation6], 0 }
   0x2   :  { %14 = vsyncpa [#allocation9], 0  ;;  %s34_s26 = sshll.u32 %s18224_s1, 4  ;;  %s35_s26 = int_to_ptr.hbm [resolvable:$true] %s34_s26 }
   0x3   :  { %15 = vsyncpa [#allocation4], 0  ;;  %s8614_s27 = smov [#allocation5]   ;;  %s60_s8 = sshll.u32 %s18227_s4, 4  ;;  %s61_s8 = int_to_ptr.hbm [resolvable:$true] %s60_s8 }
   0x4   :  { %s36_s28 = sshll.u32 %s8614_s27, 4  ;;  %s8615_s9 = smov [#allocation8]   ;;  %s37_s28 = int_to_ptr.vmem [resolvable:$true] %s36_s28 }
   0x5   :  { %39 = dma.hbm_to_vmem [thread:$0]  %s35_s26, 16, %s37_s28, [#allocation6]  }
   0x6   :  { %s62_s10 = sshll.u32 %s8615_s9, 4  ;;  %s20_s13 = sshll.u32 %s18223_s0, 4  ;;  %s63_s10 = int_to_ptr.vmem [resolvable:$true] %s62_s10  ;;  %s21_s13 = int_to_ptr.hbm [resolvable:$true] %s20_s13 }
   0x7   :  { %65 = dma.hbm_to_vmem [thread:$0]  %s61_s8, 64, %s63_s10, [#allocation9]  }
   0x8   :  { %s8616_s1 = smov [#allocation2]   ;;  %s46_s17 = sshll.u32 %s18226_s3, 4  ;;  %s47_s17 = int_to_ptr.hbm [resolvable:$true] %s46_s17 }
   0x9   :  { %s22_s14 = sshll.u32 %s8616_s1, 4  ;;  %s8617_s18 = smov 128   ;;  %s23_s14 = int_to_ptr.vmem [resolvable:$true] %s22_s14 }
   0xa   :  { %s8618_s4 = smov 8   ;;  %s8619_s19 = smov [#allocation7]  }
   0xb   :  { %28 = dma.hbm_to_vmem [thread:$0]  %s21_s13, 6400, %s23_s14, [#allocation3], %s8617_s18, %s8617_s18, %s8618_s4  }
   0xc   :  { %s48_s20 = sshll.u32 %s8619_s19, 4  ;;  %s8620_s0 = smov 256   ;;  %s49_s20 = int_to_ptr.vmem [resolvable:$true] %s48_s20 }
   0xd   :  { %s8621_s21 = smov 16   ;;  %s70_s24 = sshll.u32 %s18228_s5, 4  ;;  %s71_s24 = int_to_ptr.hbm [resolvable:$true] %s70_s24 }
   0xe   :  { %54 = dma.hbm_to_vmem [thread:$0]  %s47_s17, 4096, %s49_s20, [#allocation6], %s8620_s0, %s8620_s0, %s8621_s21  }
   0xf   :  { %s8622_s25 = smov [#allocation10]   ;;  %s8623_s26 = smov 64  }
  0x10   :  { %s72_s3 = sshll.u32 %s8622_s25, 4  ;;  %s8624_s27 = smov 4   ;;  %s73_s3 = int_to_ptr.vmem [resolvable:$true] %s72_s3 }
  0x11   :  { %78 = dma.hbm_to_vmem [thread:$0]  %s71_s24, 4096, %s73_s3, [#allocation9], %s8623_s26, %s8623_s26, %s8624_s27  }
  0x12   :  { %8606 = dma.done.wait [#allocation3], 6400  }
  0x13   :  { %8607 = vsyncadd [#allocation3], 4294960896 }
  0x14   :  { %8608 = dma.done.wait [#allocation6], 4112  }
  0x15   :  { %8609 = vsyncadd [#allocation6], 4294963184 }
  0x16   :  { %8610 = dma.done.wait [#allocation9], 4160  }
  0x17   :  { %8611 = vsyncadd [#allocation9], 4294963136  ;;  %v103_v0 = vld [vmem:[#allocation2 + $0x10] sm:$0xff]  ;;  %v101_v1 = vld [vmem:[#allocation2] sm:$0xff]  ;;  %v8625_v7 = vmov 128.0   ;;  %s6981_s25 = sshll.u32 %s18230_s7, 4  ;;  %s6982_s25 = int_to_ptr.hbm [resolvable:$true] %s6981_s25 }
  0x18   :  { %155 = vadd.xlane.f32.xlu1 %v103_v0  ;;  %151 = vadd.xlane.f32.xlu0 %v101_v1  ;;  %v105_v2 = vld [vmem:[#allocation2 + $0x20] sm:$0xff]  ;;  %v104_v3 = vld [vmem:[#allocation2 + $0x18] sm:$0xff]  ;;  %v102_v4 = vld [vmem:[#allocation2 + $0x8] sm:$0xff]  ;;  %7532 = vrcp.f32 %v8625_v7 }
  0x19   :  { %159 = vadd.xlane.f32.xlu2 %v105_v2  ;;  %v106_v5 = vld [vmem:[#allocation2 + $0x28] sm:$0xff]  ;;  %v107_v6 = vld [vmem:[#allocation2 + $0x30] sm:$0xff]  ;;  %v8700_v28 = vld [vmem:[#allocation2 + $0x38] sm:$0xff] }
  0x1a   :  { %v8714_v36 = vld [vmem:[#allocation2 + $0x40] sm:$0xff]  ;;  %v8724_v42 = vld [vmem:[#allocation2 + $0x58] sm:$0xff]  ;;  %v8726_v43 = vld [vmem:[#allocation2 + $0x48] sm:$0xff] }
  0x1b   :  { %v8734_v46 = vld [vmem:[#allocation2 + $0x60] sm:$0xff]  ;;  %v8736_v47 = vld [vmem:[#allocation2 + $0x50] sm:$0xff]  ;;  %v8740_v48 = vld [vmem:[#allocation2 + $0x68] sm:$0xff] }
  0x1c   :  { %v8743_v49 = vld [vmem:[#allocation2 + $0x70] sm:$0xff]  ;;  %v7482_v51 = vld [vmem:[#allocation7 + $0xec] sm:$0xf0]  ;;  %v7112_v54 = vld [vmem:[#allocation7 + $0xf0] sm:$0xf0] }
  0x1d   :  { %v7110_v50 = vld [vmem:[#allocation7 + $0xe0] sm:$0xf]  ;;  %v7480_v52 = vld [vmem:[#allocation7 + $0xe4] sm:$0xf]  ;;  %v7118_v55 = vld [vmem:[#allocation7 + $0xe8] sm:$0xf] }
  0x1e   :  { %v7533_v8 = vpop.eup %7532  ;;  %v7111_v53 = vor.u32 %v7482_v51, %v7110_v50  ;;  %v7483_v56 = vld [vmem:[#allocation7 + $0xf4] sm:$0xf0]  ;;  %v7115_v57 = vor.u32 %v7480_v52, %v7112_v54  ;;  %v7481_v59 = vld [vmem:[#allocation7 + $0xec] sm:$0xf]  ;;  %v7120_v60 = vld [vmem:[#allocation7 + $0xf8] sm:$0xf0] }
  0x1f   :  { %v252_v9 = vmul.f32 128.0, %v7533_v8  ;;  %vm256_vm0 = vweird.f32 %v7533_v8  ;;  %v7119_v58 = vor.u32 %v7483_v56, %v7118_v55  ;;  %v7123_v61 = vor.u32 %v7481_v59, %v7120_v60  ;;  %v7094_v62 = vld [vmem:[#allocation7 + $0xc0] sm:$0xf]  ;;  %v7478_v63 = vld [vmem:[#allocation7 + $0xcc] sm:$0xf0] }
  0x20   :  { %157 = vadd.xlane.f32.xlu1 %v104_v3  ;;  %153 = vadd.xlane.f32.xlu0 %v102_v4  ;;  %v7477_v7 = vld [vmem:[#allocation7 + $0xcc] sm:$0xf]  ;;  %v7046_v50 = vld [vmem:[#allocation7 + $0x60] sm:$0xf]  ;;  %v7466_v51 = vld [vmem:[#allocation7 + $0x6c] sm:$0xf0] }
  0x21   :  { %161 = vadd.xlane.f32.xlu2 %v106_v5  ;;  %v253_v10 = vsub.f32 1.0, %v252_v9  ;;  %1493 = vmatpush.bf16.msra.mxu0 %v7111_v53  ;;  %v7464_v52 = vld [vmem:[#allocation7 + $0x64] sm:$0xf]  ;;  %v7047_v53 = vor.u32 %v7466_v51, %v7046_v50  ;;  %v7048_v54 = vld [vmem:[#allocation7 + $0x70] sm:$0xf0] }
  0x22   :  { %1627 = vmatpush.bf16.msra.mxu1 %v7115_v57  ;;  %1761 = vmatpush.bf16.msra.mxu2 %v7119_v58  ;;  %v7054_v55 = vld [vmem:[#allocation7 + $0x68] sm:$0xf]  ;;  %v7467_v56 = vld [vmem:[#allocation7 + $0x74] sm:$0xf0]  ;;  %v7051_v57 = vor.u32 %v7464_v52, %v7048_v54  ;;  %v7465_v59 = vld [vmem:[#allocation7 + $0x6c] sm:$0xf] }
  0x23   :  { %v254_v11 = vmul.f32 %v7533_v8, %v253_v10  ;;  %1895 = vmatpush.bf16.msra.mxu3 %v7123_v61  ;;  %v7078_v10 = vld [vmem:[#allocation7 + $0xa0] sm:$0xf]  ;;  %v7055_v58 = vor.u32 %v7467_v56, %v7054_v55  ;;  %v7056_v60 = vld [vmem:[#allocation7 + $0x78] sm:$0xf0] }
  0x24   :  { %v7059_v61 = vor.u32 %v7465_v59, %v7056_v60  ;;  %v7008_v50 = vld [vmem:[#allocation7 + $0x18] sm:$0xf0] }
  0x25   :  { %v255_v12 = vadd.f32 %v7533_v8, %v254_v11  ;;  %v7474_v11 = vld [vmem:[#allocation7 + $0xac] sm:$0xf0] }
  0x27   :  { %v8685_v13 = vsel %vm256_vm0, %v7533_v8, %v255_v12  ;;  %v7104_v8 = vld [vmem:[#allocation7 + $0xd8] sm:$0xf0]  ;;  %v7472_v12 = vld [vmem:[#allocation7 + $0xa4] sm:$0xf] }
  0x28   :  { %v7107_v9 = vor.u32 %v7477_v7, %v7104_v8  ;;  %v7461_v7 = vld [vmem:[#allocation7 + $0x4c] sm:$0xf]  ;;  %v7040_v8 = vld [vmem:[#allocation7 + $0x58] sm:$0xf0] }
  0x29   :  { %163 = vadd.xlane.f32.xlu2 %v107_v6 }
  0x2a   :  { %1896 = vmatpush.bf16.msra.mxu3 %v7107_v9  ;;  %v7043_v9 = vor.u32 %v7461_v7, %v7040_v8 }
  0x8b   :  { %v156_v14 = vpop.xlane.xlu1 %155  ;;  %v152_v15 = vpop.xlane.xlu0 %151 }
  0x8c   :  { %v258_v16 = vmul.f32 %v8685_v13, %v152_v15  ;;  %v160_v18 = vpop.xlane.xlu2 %159  ;;  %v260_v27 = vmul.f32 %v8685_v13, %v156_v14  ;;  %v7079_v14 = vor.u32 %v7474_v11, %v7078_v10  ;;  %v7080_v15 = vld [vmem:[#allocation7 + $0xb0] sm:$0xf0]  ;;  %v7014_v10 = vld [vmem:[#allocation7 + $0x20] sm:$0xf]  ;;  %v7458_v11 = vld [vmem:[#allocation7 + $0x2c] sm:$0xf0] }
  0x8d   :  { %v262_v26 = vmul.f32 %v8685_v13, %v160_v18  ;;  %v7475_v18 = vld [vmem:[#allocation7 + $0xb4] sm:$0xf0] }
  0x8e   :  { %v8688_v17 = vsub.f32 %v101_v1, %v258_v16  ;;  %v8709_v33 = vsub.f32 %v103_v0, %v260_v27  ;;  %v7476_v0 = vld [vmem:[#allocation7 + $0xc4] sm:$0xf]  ;;  %v7095_v1 = vor.u32 %v7478_v63, %v7094_v62  ;;  %v7086_v16 = vld [vmem:[#allocation7 + $0xa8] sm:$0xf]  ;;  %v7470_v27 = vld [vmem:[#allocation7 + $0x8c] sm:$0xf0] }
  0x8f   :  { %v8707_v32 = vsub.f32 %v105_v2, %v262_v26  ;;  %v7096_v2 = vld [vmem:[#allocation7 + $0xd0] sm:$0xf0]  ;;  %v7062_v26 = vld [vmem:[#allocation7 + $0x80] sm:$0xf]  ;;  %v7462_v63 = vld [vmem:[#allocation7 + $0x4c] sm:$0xf0] }
  0x90   :  { %v358_v19 = vmul.f32 %v8688_v17, %v8688_v17  ;;  %v360_v37 = vmul.f32 %v8709_v33, %v8709_v33  ;;  %1494 = vmatpush.bf16.msra.mxu0 %v7095_v1  ;;  %v7030_v62 = vld [vmem:[#allocation7 + $0x40] sm:$0xf] }
  0x91   :  { %v362_v34 = vmul.f32 %v8707_v32, %v8707_v32  ;;  %v7031_v1 = vor.u32 %v7462_v63, %v7030_v62 }
  0x92   :  { %408 = vadd.xlane.f32.xlu0 %v358_v19  ;;  %v7083_v19 = vor.u32 %v7472_v12, %v7080_v15  ;;  %v7456_v12 = vld [vmem:[#allocation7 + $0x24] sm:$0xf]  ;;  %v7015_v15 = vor.u32 %v7458_v11, %v7014_v10 }
  0x93   :  { %v158_v20 = vpop.xlane.xlu1 %157  ;;  %v154_v21 = vpop.xlane.xlu0 %153 }
  0x94   :  { %v261_v22 = vmul.f32 %v8685_v13, %v158_v20  ;;  %v259_v23 = vmul.f32 %v8685_v13, %v154_v21  ;;  %v162_v31 = vpop.xlane.xlu2 %161  ;;  %v7087_v20 = vor.u32 %v7475_v18, %v7086_v16  ;;  %v7473_v21 = vld [vmem:[#allocation7 + $0xac] sm:$0xf]  ;;  %1495 = vmatpush.bf16.msra.mxu0 %v7079_v14  ;;  %v7016_v16 = vld [vmem:[#allocation7 + $0x30] sm:$0xf0]  ;;  %v7022_v18 = vld [vmem:[#allocation7 + $0x28] sm:$0xf] }
  0x95   :  { %v263_v35 = vmul.f32 %v8685_v13, %v162_v31  ;;  %v7064_v31 = vld [vmem:[#allocation7 + $0x90] sm:$0xf0] }
  0x96   :  { %v8694_v24 = vsub.f32 %v104_v3, %v261_v22  ;;  %v8696_v25 = vsub.f32 %v102_v4, %v259_v23  ;;  %v7102_v3 = vld [vmem:[#allocation7 + $0xc8] sm:$0xf]  ;;  %v7479_v4 = vld [vmem:[#allocation7 + $0xd4] sm:$0xf0]  ;;  %v7088_v22 = vld [vmem:[#allocation7 + $0xb8] sm:$0xf0] }
  0x97   :  { %v8719_v38 = vsub.f32 %v106_v5, %v263_v35  ;;  %v7099_v5 = vor.u32 %v7476_v0, %v7096_v2  ;;  %v7091_v23 = vor.u32 %v7473_v21, %v7088_v22  ;;  %v7471_v35 = vld [vmem:[#allocation7 + $0x94] sm:$0xf0]  ;;  %v7460_v0 = vld [vmem:[#allocation7 + $0x44] sm:$0xf]  ;;  %v7032_v2 = vld [vmem:[#allocation7 + $0x50] sm:$0xf0] }
  0x98   :  { %v361_v29 = vmul.f32 %v8694_v24, %v8694_v24  ;;  %v359_v30 = vmul.f32 %v8696_v25, %v8696_v25  ;;  %v7459_v21 = vld [vmem:[#allocation7 + $0x34] sm:$0xf0]  ;;  %v7457_v22 = vld [vmem:[#allocation7 + $0x2c] sm:$0xf] }
  0x99   :  { %v363_v40 = vmul.f32 %v8719_v38, %v8719_v38  ;;  %1628 = vmatpush.bf16.msra.mxu1 %v7099_v5  ;;  %1897 = vmatpush.bf16.msra.mxu3 %v7091_v23  ;;  %v7035_v5 = vor.u32 %v7460_v0, %v7032_v2  ;;  %v7024_v23 = vld [vmem:[#allocation7 + $0x38] sm:$0xf0] }
  0x9a   :  { %414 = vadd.xlane.f32.xlu2 %v361_v29  ;;  %165 = vadd.xlane.f32.xlu0 %v8700_v28  ;;  %v7468_v29 = vld [vmem:[#allocation7 + $0x84] sm:$0xf] }
  0x9b   :  { %410 = vadd.xlane.f32.xlu1 %v359_v30  ;;  %v7063_v30 = vor.u32 %v7470_v27, %v7062_v26  ;;  %v7023_v26 = vor.u32 %v7459_v21, %v7022_v18  ;;  %v7027_v27 = vor.u32 %v7457_v22, %v7024_v23 }
  0x9c   :  { %v164_v39 = vpop.xlane.xlu2 %163 }
  0x9d   :  { %v264_v41 = vmul.f32 %v8685_v13, %v164_v39  ;;  %1629 = vmatpush.bf16.msra.mxu1 %v7083_v19  ;;  %1496 = vmatpush.bf16.msra.mxu0 %v7063_v30  ;;  %v6998_v30 = vld [vmem:[#allocation7] sm:$0xf] }
  0x9f   :  { %v8729_v44 = vsub.f32 %v107_v6, %v264_v41  ;;  %v7103_v6 = vor.u32 %v7479_v4, %v7102_v3  ;;  %v7072_v41 = vld [vmem:[#allocation7 + $0x98] sm:$0xf0]  ;;  %v7038_v3 = vld [vmem:[#allocation7 + $0x48] sm:$0xf]  ;;  %v7463_v4 = vld [vmem:[#allocation7 + $0x54] sm:$0xf0] }
  0xa1   :  { %v364_v45 = vmul.f32 %v8729_v44, %v8729_v44  ;;  %1762 = vmatpush.bf16.msra.mxu2 %v7103_v6  ;;  %1497 = vmatpush.bf16.msra.mxu0 %v7047_v53  ;;  %v7039_v6 = vor.u32 %v7463_v4, %v7038_v3 }
  0xa2   :  { %416 = vadd.xlane.f32.xlu2 %v362_v34  ;;  %167 = vadd.xlane.f32.xlu0 %v8714_v36  ;;  %v7070_v34 = vld [vmem:[#allocation7 + $0x88] sm:$0xf] }
  0xa3   :  { %412 = vadd.xlane.f32.xlu1 %v360_v37  ;;  %v7067_v37 = vor.u32 %v7468_v29, %v7064_v31  ;;  %v7071_v39 = vor.u32 %v7471_v35, %v7070_v34  ;;  %v7454_v31 = vld [vmem:[#allocation7 + $0xc] sm:$0xf0]  ;;  %v7452_v35 = vld [vmem:[#allocation7 + $0x4] sm:$0xf] }
  0xa4   :  { %v6999_v34 = vor.u32 %v7454_v31, %v6998_v30 }
  0xa5   :  { %1763 = vmatpush.bf16.msra.mxu2 %v7087_v20  ;;  %1630 = vmatpush.bf16.msra.mxu1 %v7067_v37  ;;  %v7019_v20 = vor.u32 %v7456_v12, %v7016_v16  ;;  %v7000_v37 = vld [vmem:[#allocation7 + $0x10] sm:$0xf0] }
  0xa6   :  { %1498 = vmatpush.bf16.msra.mxu0 %v7031_v1 }
  0xa9   :  { %1764 = vmatpush.bf16.msra.mxu2 %v7071_v39  ;;  %1631 = vmatpush.bf16.msra.mxu1 %v7051_v57  ;;  %v7006_v39 = vld [vmem:[#allocation7 + $0x8] sm:$0xf] }
  0xaa   :  { %173 = vadd.xlane.f32.xlu2 %v8724_v42  ;;  %418 = vadd.xlane.f32.xlu0 %v363_v40  ;;  %v7469_v40 = vld [vmem:[#allocation7 + $0x8c] sm:$0xf] }
  0xab   :  { %169 = vadd.xlane.f32.xlu1 %v8726_v43  ;;  %1499 = vmatpush.bf16.msra.mxu0 %v7015_v15 }
  0xad   :  { %1765 = vmatpush.bf16.msra.mxu2 %v7055_v58  ;;  %1632 = vmatpush.bf16.msra.mxu1 %v7035_v5 }
  0xaf   :  { %1500 = vmatpush.bf16.msra.mxu0 %v6999_v34 }
  0xb1   :  { %1766 = vmatpush.bf16.msra.mxu2 %v7039_v6  ;;  %1633 = vmatpush.bf16.msra.mxu1 %v7019_v20 }
  0xb2   :  { %175 = vadd.xlane.f32.xlu2 %v8734_v46  ;;  %420 = vadd.xlane.f32.xlu0 %v364_v45  ;;  %v7075_v45 = vor.u32 %v7469_v40, %v7072_v41  ;;  %v7003_v40 = vor.u32 %v7452_v35, %v7000_v37  ;;  %v7455_v41 = vld [vmem:[#allocation7 + $0x14] sm:$0xf0] }
  0xb3   :  { %171 = vadd.xlane.f32.xlu1 %v8736_v47  ;;  %v7007_v51 = vor.u32 %v7455_v41, %v7006_v39 }
  0xb4   :  { %1898 = vmatpush.bf16.msra.mxu3 %v7075_v45  ;;  %v7453_v45 = vld [vmem:[#allocation7 + $0xc] sm:$0xf] }
  0xb5   :  { %1767 = vmatpush.bf16.msra.mxu2 %v7023_v26  ;;  %v7011_v52 = vor.u32 %v7453_v45, %v7008_v50  ;;  %1634 = vmatpush.bf16.msra.mxu1 %v7003_v40 }
  0xb8   :  { %1899 = vmatpush.bf16.msra.mxu3 %v7059_v61 }
  0xb9   :  { %1768 = vmatpush.bf16.msra.mxu2 %v7007_v51 }
  0xba   :  { %177 = vadd.xlane.f32.xlu0 %v8740_v48 }
  0xbc   :  { %1900 = vmatpush.bf16.msra.mxu3 %v7043_v9 }
  0xc0   :  { %1901 = vmatpush.bf16.msra.mxu3 %v7027_v27 }
  0xc2   :  { %179 = vadd.xlane.f32.xlu0 %v8743_v49 }
  0xc4   :  { %1902 = vmatpush.bf16.msra.mxu3 %v7011_v52  ;;  %v8802_v52 = vld [vmem:[#allocation2 + $0x78] sm:$0xff] }
 0x105   :  { %v409_v14 = vpop.xlane.xlu0 %408 }
 0x106   :  { %v508_v19 = vmul.f32 %v409_v14, %v8685_v13 }
 0x108   :  { %v558_v29 = vadd.f32 1e-05, %v508_v19 }
 0x10a   :  { %7534 = vrsqrt.f32 %v558_v29  ;;  %vm614_vm2 = vweird.f32 %v558_v29 }
 0x10d   :  { %v415_v53 = vpop.xlane.xlu2 %414  ;;  %v166_v54 = vpop.xlane.xlu0 %165 }
 0x10e   :  { %v511_v55 = vmul.f32 %v415_v53, %v8685_v13  ;;  %v411_v56 = vpop.xlane.xlu1 %410  ;;  %v265_v57 = vmul.f32 %v8685_v13, %v166_v54  ;;  %v8804_v53 = vld [vmem:[#allocation5] ss:$0 sm:$0xff] }
 0x10f   :  { %v509_v58 = vmul.f32 %v411_v56, %v8685_v13 }
 0x110   :  { %v7535_v59 = vpop.eup %7534  ;;  %v8750_v60 = vadd.f32 1e-05, %v511_v55  ;;  %v8753_v61 = vsub.f32 %v8700_v28, %v265_v57 }
 0x111   :  { %v609_v62 = vmul.f32 %v7535_v59, %v558_v29  ;;  %v559_v63 = vadd.f32 1e-05, %v509_v58  ;;  %vm615_vm1 = vweird.f32 %v7535_v59 }
 0x112   :  { %7536 = vrsqrt.f32 %v8750_v60  ;;  %v365_v0 = vmul.f32 %v8753_v61, %v8753_v61  ;;  %vm8773_vm3 = vmor %vm614_vm2, %vm615_vm1  ;;  %vm644_vm7 = vweird.f32 %v8750_v60 }
 0x113   :  { %v610_v1 = vmul.f32 %v7535_v59, %v609_v62  ;;  %7538 = vrsqrt.f32 %v559_v63  ;;  %vm624_vm5 = vweird.f32 %v559_v63 }
 0x114   :  { %422 = vadd.xlane.f32.xlu1 %v365_v0 }
 0x115   :  { %v611_v2 = vmul.f32 0.5, %v610_v1  ;;  %v417_v3 = vpop.xlane.xlu2 %416  ;;  %v168_v4 = vpop.xlane.xlu0 %167 }
 0x116   :  { %v413_v5 = vpop.xlane.xlu1 %412  ;;  %v266_v6 = vmul.f32 %v8685_v13, %v168_v4  ;;  %v512_v15 = vmul.f32 %v417_v3, %v8685_v13 }
 0x117   :  { %v612_v7 = vsub.f32 1.5, %v611_v2  ;;  %v510_v28 = vmul.f32 %v413_v5, %v8685_v13 }
 0x118   :  { %v8760_v8 = vpop.eup %7536  ;;  %v8763_v9 = vsub.f32 %v8714_v36, %v266_v6  ;;  %v8781_v31 = vadd.f32 1e-05, %v512_v15 }
 0x119   :  { %v7539_v10 = vpop.eup %7538  ;;  %v8765_v11 = vadd.f32 1e-05, %v510_v28  ;;  %v613_v14 = vmul.f32 %v7535_v59, %v612_v7  ;;  %v639_v16 = vmul.f32 %v8760_v8, %v8750_v60  ;;  %vm645_vm8 = vweird.f32 %v8760_v8 }
 0x11a   :  { %v619_v12 = vmul.f32 %v7539_v10, %v559_v63  ;;  %v366_v19 = vmul.f32 %v8763_v9, %v8763_v9  ;;  %vm625_vm4 = vweird.f32 %v7539_v10  ;;  %vm8847_vm10 = vmor %vm644_vm7, %vm645_vm8  ;;  %vm654_vm15 = vweird.f32 %v8781_v31 }
 0x11b   :  { %7540 = vrsqrt.f32 %v8765_v11  ;;  %v617_v30 = vsel %vm8773_vm3, %v7535_v59, %v613_v14  ;;  %v640_v34 = vmul.f32 %v8760_v8, %v639_v16  ;;  %vm626_vm6 = vmor %vm624_vm5, %vm625_vm4  ;;  %v8844_v16 = vld [vmem:[#allocation2 + $0x80] sm:$0xff]  ;;  %vm634_vm11 = vweird.f32 %v8765_v11 }
 0x11c   :  { %v620_v18 = vmul.f32 %v7539_v10, %v619_v12  ;;  %424 = vadd.xlane.f32.xlu1 %v366_v19  ;;  %v1108_v51 = vmul.f32 %v617_v30, %v8688_v17 }
 0x11d   :  { %v174_v36 = vpop.xlane.xlu2 %173  ;;  %v419_v20 = vpop.xlane.xlu0 %418 }
 0x11e   :  { %v621_v22 = vmul.f32 0.5, %v620_v18  ;;  %v269_v23 = vmul.f32 %v8685_v13, %v174_v36  ;;  %v170_v26 = vpop.xlane.xlu1 %169  ;;  %v513_v27 = vmul.f32 %v419_v20, %v8685_v13  ;;  %v1162_v1 = vmul.f32 %v8804_v53, %v1108_v51 }
 0x11f   :  { %v267_v29 = vmul.f32 %v8685_v13, %v170_v26 }
 0x120   :  { %v622_v35 = vsub.f32 1.5, %v621_v22  ;;  %v8786_v37 = vsub.f32 %v8724_v42, %v269_v23  ;;  %v8788_v39 = vadd.f32 1e-05, %v513_v27 }
 0x121   :  { %v8790_v40 = vpop.eup %7540  ;;  %v8793_v41 = vsub.f32 %v8726_v43, %v267_v29  ;;  %v641_v43 = vmul.f32 0.5, %v640_v34 }
 0x122   :  { %v623_v45 = vmul.f32 %v7539_v10, %v622_v35  ;;  %v629_v50 = vmul.f32 %v8790_v40, %v8765_v11  ;;  %7542 = vrsqrt.f32 %v8788_v39  ;;  %v369_v42 = vmul.f32 %v8786_v37, %v8786_v37  ;;  %v8872_v35 = vld [vmem:[#allocation2 + $0x98] sm:$0xff] }
 0x123   :  { %7544 = vrsqrt.f32 %v8781_v31  ;;  %v367_v56 = vmul.f32 %v8793_v41, %v8793_v41  ;;  %v642_v4 = vsub.f32 1.5, %v641_v43  ;;  %vm635_vm9 = vweird.f32 %v8790_v40 }
 0x124   :  { %v627_v54 = vsel %vm626_vm6, %v7539_v10, %v623_v45  ;;  %v630_v55 = vmul.f32 %v8790_v40, %v629_v50  ;;  %430 = vadd.xlane.f32.xlu0 %v369_v42  ;;  %181 = vadd.xlane.f32.xlu1 %v8802_v52  ;;  %vm8854_vm12 = vmor %vm634_vm11, %vm635_vm9  ;;  %v8877_v50 = vld [vmem:[#allocation2 + $0x88] sm:$0xff]  ;;  %vm664_vm13 = vweird.f32 %v8788_v39 }
 0x125   :  { %v1109_v57 = vmul.f32 %v627_v54, %v8696_v25  ;;  %v176_v17 = vpop.xlane.xlu2 %175  ;;  %v8810_v58 = vpop.xlane.xlu0 %420  ;;  %426 = vadd.xlane.f32.xlu2 %v367_v56  ;;  %v8820_v25 = vld [vmem:[%s18225_s2] ss:$0 sm:$0xff] }
 0x126   :  { %v631_v59 = vmul.f32 0.5, %v630_v55  ;;  %v270_v62 = vmul.f32 %v8685_v13, %v176_v17  ;;  %v172_v63 = vpop.xlane.xlu1 %171  ;;  %v1216_v60 = vadd.f32 %v8820_v25, %v1162_v1 }
 0x127   :  { %v268_v0 = vmul.f32 %v8685_v13, %v172_v63  ;;  %v1163_v2 = vmul.f32 %v8804_v53, %v1109_v57  ;;  %v8893_v57 = vld [vmem:[#allocation2 + $0xa0] sm:$0xff] }
 0x128   :  { %v8822_v3 = vpop.eup %7542  ;;  %v632_v5 = vsub.f32 1.5, %v631_v59  ;;  %v8825_v6 = vsub.f32 %v8734_v46, %v270_v62 }
 0x129   :  { %v8827_v7 = vpop.eup %7544  ;;  %v8832_v28 = vsub.f32 %v8736_v47, %v268_v0  ;;  %v659_v12 = vmul.f32 %v8822_v3, %v8788_v39  ;;  %v1217_v15 = vadd.f32 %v8820_v25, %v1163_v2  ;;  %v643_v47 = vmul.f32 %v8760_v8, %v642_v4  ;;  %v8897_v39 = vld [vmem:[#allocation2 + $0x90] sm:$0xff]  ;;  %v8907_v2 = vld [vmem:[#allocation2 + $0xa8] sm:$0xff] }
 0x12a   :  { %v633_v10 = vmul.f32 %v8790_v40, %v632_v5  ;;  %v370_v46 = vmul.f32 %v8825_v6, %v8825_v6  ;;  %v649_v19 = vmul.f32 %v8827_v7, %v8781_v31  ;;  %vm665_vm14 = vweird.f32 %v8822_v3 }
 0x12b   :  { %v368_v14 = vmul.f32 %v8832_v28, %v8832_v28  ;;  %v1266_v20 = vpack.c.bf16 %v1217_v15, %v1216_v60  ;;  %v660_v23 = vmul.f32 %v8822_v3, %v659_v12  ;;  %v647_v11 = vsel %vm8847_vm10, %v8760_v8, %v643_v47  ;;  %vm666_vm1 = vmor %vm664_vm13, %vm665_vm14  ;;  %v8914_v12 = vld [vmem:[#allocation2 + $0xb0] sm:$0xff] }
 0x12c   :  { %432 = vadd.xlane.f32.xlu0 %v370_v46  ;;  %v637_v22 = vsel %vm8854_vm12, %v8790_v40, %v633_v10  ;;  %183 = vadd.xlane.f32.xlu1 %v8844_v16  ;;  %v650_v27 = vmul.f32 %v8827_v7, %v649_v19  ;;  %v1111_v45 = vmul.f32 %v647_v11, %v8694_v24  ;;  %vm655_vm0 = vweird.f32 %v8827_v7 }
 0x12d   :  { %v178_v21 = vpop.xlane.xlu0 %177  ;;  %428 = vadd.xlane.f32.xlu2 %v368_v14  ;;  %1501 = vmatmul.bf16.vlgmr.msra.gmra.mxu0 %v1266_v20  ;;  %v1110_v29 = vmul.f32 %v637_v22, %v8709_v33  ;;  %v661_v34 = vmul.f32 0.5, %v660_v23  ;;  %vm656_vm2 = vmor %vm654_vm15, %vm655_vm0 }
 0x12e   :  { %v271_v26 = vmul.f32 %v8685_v13, %v178_v21  ;;  %1635 = vmatmul.bf16.vlgmr.msra.gmra.mxu1 %v1266_v20  ;;  %1769 = vmatmul.bf16.vlgmr.msra.gmra.mxu2 %v1266_v20  ;;  %v651_v8 = vmul.f32 0.5, %v650_v27  ;;  %v1165_v43 = vmul.f32 %v8804_v53, %v1111_v45 }
 0x12f   :  { %1903 = vmatmul.bf16.vlgmr.msra.gmra.mxu3 %v1266_v20  ;;  %v1164_v42 = vmul.f32 %v8804_v53, %v1110_v29 }
 0x130   :  { %v8869_v30 = vsub.f32 %v8740_v48, %v271_v26  ;;  %v662_v48 = vsub.f32 1.5, %v661_v34  ;;  %v652_v54 = vsub.f32 1.5, %v651_v8  ;;  %v1219_v59 = vadd.f32 %v8820_v25, %v1165_v43 }
 0x131   :  { %v1218_v55 = vadd.f32 %v8820_v25, %v1164_v42 }
 0x132   :  { %v371_v40 = vmul.f32 %v8869_v30, %v8869_v30  ;;  %v663_v56 = vmul.f32 %v8822_v3, %v662_v48 }
 0x133   :  { %v1267_v31 = vpack.c.bf16 %v1219_v59, %v1218_v55 }
 0x134   :  { %189 = vadd.xlane.f32.xlu0 %v8872_v35  ;;  %434 = vadd.xlane.f32.xlu1 %v371_v40  ;;  %v667_v62 = vsel %vm666_vm1, %v8822_v3, %v663_v56 }
 0x135   :  { %v180_v51 = vpop.xlane.xlu0 %179  ;;  %185 = vadd.xlane.f32.xlu2 %v8877_v50  ;;  %v1113_v0 = vmul.f32 %v667_v62, %v8719_v38 }
 0x136   :  { %v272_v33 = vmul.f32 %v8685_v13, %v180_v51 }
 0x137   :  { %v1167_v4 = vmul.f32 %v8804_v53, %v1113_v0 }
 0x138   :  { %v8887_v24 = vsub.f32 %v8743_v49, %v272_v33  ;;  %v653_v49 = vmul.f32 %v8827_v7, %v652_v54 }
 0x139   :  { %v1221_v5 = vadd.f32 %v8820_v25, %v1167_v4 }
 0x13a   :  { %v372_v17 = vmul.f32 %v8887_v24, %v8887_v24  ;;  %v657_v63 = vsel %vm656_vm2, %v8827_v7, %v653_v49 }
 0x13b   :  { %v1112_v1 = vmul.f32 %v657_v63, %v8707_v32  ;;  %v514_v32 = vmul.f32 %v8810_v58, %v8685_v13 }
 0x13c   :  { %191 = vadd.xlane.f32.xlu0 %v8893_v57  ;;  %436 = vadd.xlane.f32.xlu1 %v372_v17 }
 0x13d   :  { %187 = vadd.xlane.f32.xlu2 %v8897_v39  ;;  %1506 = vmatmul.bf16.gmra.mxu0 %v1267_v31  ;;  %v1166_v3 = vmul.f32 %v8804_v53, %v1112_v1  ;;  %v564_v38 = vadd.f32 1e-05, %v514_v32 }
 0x13e   :  { %1640 = vmatmul.bf16.gmra.mxu1 %v1267_v31  ;;  %1774 = vmatmul.bf16.gmra.mxu2 %v1267_v31 }
 0x13f   :  { %1908 = vmatmul.bf16.gmra.mxu3 %v1267_v31  ;;  %v1220_v10 = vadd.f32 %v8820_v25, %v1166_v3  ;;  %7546 = vrsqrt.f32 %v564_v38  ;;  %vm674_vm3 = vweird.f32 %v564_v38 }
 0x141   :  { %v1268_v7 = vpack.c.bf16 %v1221_v5, %v1220_v10 }
 0x144   :  { %193 = vadd.xlane.f32.xlu1 %v8907_v2 }
 0x145   :  { %v7547_v46 = vpop.eup %7546 }
 0x146   :  { %v669_v14 = vmul.f32 %v7547_v46, %v564_v38  ;;  %vm675_vm4 = vweird.f32 %v7547_v46 }
 0x147   :  { %vm8921_vm5 = vmor %vm674_vm3, %vm675_vm4 }
 0x148   :  { %v670_v47 = vmul.f32 %v7547_v46, %v669_v14 }
 0x14a   :  { %v671_v19 = vmul.f32 0.5, %v670_v47 }
 0x14c   :  { %195 = vadd.xlane.f32.xlu1 %v8914_v12  ;;  %v672_v21 = vsub.f32 1.5, %v671_v19 }
 0x14d   :  { %1511 = vmatmul.bf16.gmra.mxu0 %v1268_v7 }
 0x14e   :  { %1645 = vmatmul.bf16.gmra.mxu1 %v1268_v7  ;;  %1779 = vmatmul.bf16.gmra.mxu2 %v1268_v7  ;;  %v673_v26 = vmul.f32 %v7547_v46, %v672_v21 }
 0x14f   :  { %1913 = vmatmul.bf16.gmra.mxu3 %v1268_v7 }
 0x150   :  { %v677_v51 = vsel %vm8921_vm5, %v7547_v46, %v673_v26 }
 0x151   :  { %v1114_v55 = vmul.f32 %v677_v51, %v8729_v44 }
 0x187   :  { %v423_v60 = vpop.xlane.xlu1 %422 }
 0x188   :  { %v515_v15 = vmul.f32 %v423_v60, %v8685_v13 }
 0x18a   :  { %v565_v18 = vadd.f32 1e-05, %v515_v15 }
 0x18c   :  { %7548 = vrsqrt.f32 %v565_v18  ;;  %vm684_vm7 = vweird.f32 %v565_v18 }
 0x18f   :  { %v425_v36 = vpop.xlane.xlu1 %424 }
 0x190   :  { %v516_v23 = vmul.f32 %v425_v36, %v8685_v13 }
 0x192   :  { %v7549_v20 = vpop.eup %7548  ;;  %v8925_v29 = vadd.f32 1e-05, %v516_v23 }
 0x193   :  { %v679_v22 = vmul.f32 %v7549_v20, %v565_v18  ;;  %vm685_vm6 = vweird.f32 %v7549_v20 }
 0x194   :  { %vm686_vm8 = vmor %vm684_vm7, %vm685_vm6  ;;  %7550 = vrsqrt.f32 %v8925_v29  ;;  %vm694_vm13 = vweird.f32 %v8925_v29 }
 0x195   :  { %v680_v58 = vmul.f32 %v7549_v20, %v679_v22 }
 0x197   :  { %v681_v27 = vmul.f32 0.5, %v680_v58  ;;  %v8927_v34 = vpop.xlane.xlu0 %430  ;;  %v182_v8 = vpop.xlane.xlu1 %181 }
 0x198   :  { %v427_v45 = vpop.xlane.xlu2 %426  ;;  %v273_v48 = vmul.f32 %v8685_v13, %v182_v8  ;;  %v8975_v8 = vld [vmem:[#allocation2 + $0xc0] sm:$0xff] }
 0x199   :  { %v682_v40 = vsub.f32 1.5, %v681_v27  ;;  %v517_v42 = vmul.f32 %v427_v45, %v8685_v13 }
 0x19a   :  { %v8935_v54 = vsub.f32 %v8802_v52, %v273_v48  ;;  %v1168_v52 = vmul.f32 %v8804_v53, %v1114_v55  ;;  %v7551_v0 = vpop.eup %7550 }
 0x19b   :  { %v683_v33 = vmul.f32 %v7549_v20, %v682_v40  ;;  %v567_v43 = vadd.f32 1e-05, %v517_v42  ;;  %v689_v3 = vmul.f32 %v7551_v0, %v8925_v29  ;;  %vm695_vm10 = vweird.f32 %v7551_v0 }
 0x19c   :  { %v373_v59 = vmul.f32 %v8935_v54, %v8935_v54  ;;  %v1222_v10 = vadd.f32 %v8820_v25, %v1168_v52  ;;  %vm696_vm14 = vmor %vm694_vm13, %vm695_vm10 }
 0x19d   :  { %v687_v56 = vsel %vm686_vm8, %v7549_v20, %v683_v33  ;;  %7552 = vrsqrt.f32 %v567_v43  ;;  %v690_v14 = vmul.f32 %v7551_v0, %v689_v3  ;;  %v8964_v20 = vld [vmem:[#allocation2 + $0xb8] sm:$0xff]  ;;  %vm704_vm11 = vweird.f32 %v567_v43 }
 0x19e   :  { %v1115_v17 = vmul.f32 %v687_v56, %v8753_v61  ;;  %438 = vadd.xlane.f32.xlu2 %v373_v59 }
 0x19f   :  { %v8941_v49 = vpop.xlane.xlu0 %432  ;;  %v184_v63 = vpop.xlane.xlu1 %183  ;;  %v691_v18 = vmul.f32 0.5, %v690_v14 }
 0x1a0   :  { %v1169_v31 = vmul.f32 %v8804_v53, %v1115_v17  ;;  %v8944_v62 = vpop.xlane.xlu2 %428  ;;  %v274_v44 = vmul.f32 %v8685_v13, %v184_v63  ;;  %v519_v63 = vmul.f32 %v8927_v34, %v8685_v13 }
 0x1a1   :  { %v692_v22 = vsub.f32 1.5, %v691_v18 }
 0x1a2   :  { %v1223_v1 = vadd.f32 %v8820_v25, %v1169_v31  ;;  %v8950_v4 = vsub.f32 %v8844_v16, %v274_v44  ;;  %v8993_v31 = vld [vmem:[#allocation2 + $0xc8] sm:$0xff] }
 0x1a3   :  { %v7553_v61 = vpop.eup %7552  ;;  %v693_v27 = vmul.f32 %v7551_v0, %v692_v22 }
 0x1a4   :  { %v699_v5 = vmul.f32 %v7553_v61, %v567_v43  ;;  %v374_v32 = vmul.f32 %v8950_v4, %v8950_v4  ;;  %v1269_v38 = vpack.c.bf16 %v1223_v1, %v1222_v10  ;;  %vm705_vm9 = vweird.f32 %v7553_v61 }
 0x1a5   :  { %vm706_vm12 = vmor %vm704_vm11, %vm705_vm9  ;;  %v697_v48 = vsel %vm696_vm14, %v7551_v0, %v693_v27  ;;  %v9002_v0 = vld [vmem:[#allocation2 + $0xd8] sm:$0xff] }
 0x1a6   :  { %v700_v7 = vmul.f32 %v7553_v61, %v699_v5  ;;  %440 = vadd.xlane.f32.xlu2 %v374_v32  ;;  %1516 = vmatmul.bf16.gmra.mxu0 %v1269_v38  ;;  %v1116_v55 = vmul.f32 %v697_v48, %v8763_v9  ;;  %v518_v9 = vmul.f32 %v8944_v62, %v8685_v13  ;;  %v9005_v62 = vld [vmem:[#allocation2 + $0xd0] sm:$0xff]  ;;  %v9026_v48 = vld [vmem:[#allocation2 + $0xe8] sm:$0xff] }
 0x1a7   :  { %v190_v46 = vpop.xlane.xlu0 %189  ;;  %1650 = vmatmul.bf16.gmra.mxu1 %v1269_v38  ;;  %1784 = vmatmul.bf16.gmra.mxu2 %v1269_v38 }
 0x1a8   :  { %v186_v60 = vpop.xlane.xlu2 %185  ;;  %v277_v15 = vmul.f32 %v8685_v13, %v190_v46  ;;  %v701_v47 = vmul.f32 0.5, %v700_v7  ;;  %1918 = vmatmul.bf16.gmra.mxu3 %v1269_v38  ;;  %v1170_v17 = vmul.f32 %v8804_v53, %v1116_v55  ;;  %v568_v44 = vadd.f32 1e-05, %v518_v9 }
 0x1a9   :  { %v275_v16 = vmul.f32 %v8685_v13, %v186_v60  ;;  %v520_v60 = vmul.f32 %v8941_v49, %v8685_v13  ;;  %v9023_v49 = vld [vmem:[#allocation2 + $0xe0] sm:$0xff] }
 0x1aa   :  { %v8962_v36 = vsub.f32 %v8872_v35, %v277_v15  ;;  %v702_v21 = vsub.f32 1.5, %v701_v47  ;;  %v435_v35 = vpop.xlane.xlu1 %434  ;;  %7554 = vrsqrt.f32 %v568_v44  ;;  %vm714_vm3 = vweird.f32 %v568_v44 }
 0x1ab   :  { %v8959_v19 = vsub.f32 %v8877_v50, %v275_v16  ;;  %v521_v32 = vmul.f32 %v435_v35, %v8685_v13  ;;  %v570_v22 = vadd.f32 1e-05, %v520_v60 }
 0x1ac   :  { %v377_v58 = vmul.f32 %v8962_v36, %v8962_v36  ;;  %v703_v50 = vmul.f32 %v7553_v61, %v702_v21 }
 0x1ad   :  { %v375_v23 = vmul.f32 %v8959_v19, %v8959_v19  ;;  %v571_v47 = vadd.f32 1e-05, %v521_v32  ;;  %vm734_vm7 = vweird.f32 %v570_v22 }
 0x1ae   :  { %197 = vadd.xlane.f32.xlu2 %v8964_v20  ;;  %446 = vadd.xlane.f32.xlu1 %v377_v58  ;;  %v707_v51 = vsel %vm706_vm12, %v7553_v61, %v703_v50  ;;  %v569_v61 = vadd.f32 1e-05, %v519_v63 }
 0x1af   :  { %442 = vadd.xlane.f32.xlu0 %v375_v23  ;;  %v192_v40 = vpop.xlane.xlu0 %191  ;;  %v1117_v33 = vmul.f32 %v707_v51, %v8793_v41  ;;  %vm744_vm5 = vweird.f32 %v571_v47 }
 0x1b0   :  { %v188_v26 = vpop.xlane.xlu2 %187  ;;  %v278_v42 = vmul.f32 %v8685_v13, %v192_v40  ;;  %7556 = vrsqrt.f32 %v569_v61  ;;  %v7555_v3 = vpop.eup %7554  ;;  %vm724_vm15 = vweird.f32 %v569_v61 }
 0x1b1   :  { %v276_v11 = vmul.f32 %v8685_v13, %v188_v26  ;;  %v1171_v29 = vmul.f32 %v8804_v53, %v1117_v33  ;;  %v709_v7 = vmul.f32 %v7555_v3, %v568_v44  ;;  %7558 = vrsqrt.f32 %v571_v47 }
 0x1b2   :  { %v8987_v56 = vpop.xlane.xlu1 %436  ;;  %7560 = vrsqrt.f32 %v570_v22  ;;  %vm715_vm1 = vweird.f32 %v7555_v3 }
 0x1b3   :  { %v8973_v45 = vsub.f32 %v8897_v39, %v276_v11  ;;  %v8985_v39 = vsub.f32 %v8893_v57, %v278_v42  ;;  %v1225_v41 = vadd.f32 %v8820_v25, %v1171_v29  ;;  %v1224_v57 = vadd.f32 %v8820_v25, %v1170_v17  ;;  %vm716_vm4 = vmor %vm714_vm3, %vm715_vm1 }
 0x1b4   :  { %v710_v16 = vmul.f32 %v7555_v3, %v709_v7 }
 0x1b5   :  { %v376_v43 = vmul.f32 %v8973_v45, %v8973_v45  ;;  %v378_v59 = vmul.f32 %v8985_v39, %v8985_v39  ;;  %v1270_v52 = vpack.c.bf16 %v1225_v41, %v1224_v57 }
 0x1b6   :  { %199 = vadd.xlane.f32.xlu2 %v8975_v8  ;;  %v7557_v10 = vpop.eup %7556  ;;  %v711_v23 = vmul.f32 0.5, %v710_v16 }
 0x1b7   :  { %444 = vadd.xlane.f32.xlu0 %v376_v43  ;;  %448 = vadd.xlane.f32.xlu1 %v378_v59  ;;  %v719_v14 = vmul.f32 %v7557_v10, %v569_v61  ;;  %v7559_v11 = vpop.eup %7558  ;;  %vm725_vm0 = vweird.f32 %v7557_v10 }
 0x1b8   :  { %1521 = vmatmul.bf16.gmra.mxu0 %v1270_v52  ;;  %1655 = vmatmul.bf16.gmra.mxu1 %v1270_v52  ;;  %v712_v26 = vsub.f32 1.5, %v711_v23  ;;  %v739_v27 = vmul.f32 %v7559_v11, %v571_v47  ;;  %vm726_vm2 = vmor %vm724_vm15, %vm725_vm0  ;;  %vm745_vm6 = vweird.f32 %v7559_v11 }
 0x1b9   :  { %1789 = vmatmul.bf16.gmra.mxu2 %v1270_v52  ;;  %1923 = vmatmul.bf16.gmra.mxu3 %v1270_v52  ;;  %v720_v21 = vmul.f32 %v7557_v10, %v719_v14  ;;  %vm746_vm9 = vmor %vm744_vm5, %vm745_vm6 }
 0x1ba   :  { %v194_v1 = vpop.xlane.xlu1 %193  ;;  %v713_v35 = vmul.f32 %v7555_v3, %v712_v26  ;;  %v740_v33 = vmul.f32 %v7559_v11, %v739_v27 }
 0x1bb   :  { %v279_v5 = vmul.f32 %v8685_v13, %v194_v1  ;;  %v721_v58 = vmul.f32 0.5, %v720_v21  ;;  %v9034_v1 = vld [vmem:[#allocation2 + $0xf0] sm:$0xff] }
 0x1bc   :  { %v717_v42 = vsel %vm716_vm4, %v7555_v3, %v713_v35  ;;  %v741_v59 = vmul.f32 0.5, %v740_v33 }
 0x1bd   :  { %v9011_v38 = vsub.f32 %v8907_v2, %v279_v5  ;;  %v722_v50 = vsub.f32 1.5, %v721_v58  ;;  %v1118_v55 = vmul.f32 %v717_v42, %v8832_v28 }
 0x1be   :  { %v742_v57 = vsub.f32 1.5, %v741_v59 }
 0x1bf   :  { %201 = vadd.xlane.f32.xlu0 %v8993_v31  ;;  %205 = vadd.xlane.f32.xlu1 %v9002_v0  ;;  %v379_v15 = vmul.f32 %v9011_v38, %v9011_v38  ;;  %v723_v40 = vmul.f32 %v7557_v10, %v722_v50  ;;  %v1172_v9 = vmul.f32 %v8804_v53, %v1118_v55 }
 0x1c0   :  { %v743_v28 = vmul.f32 %v7559_v11, %v742_v57 }
 0x1c1   :  { %450 = vadd.xlane.f32.xlu2 %v379_v15  ;;  %v727_v43 = vsel %vm726_vm2, %v7557_v10, %v723_v40  ;;  %v1226_v44 = vadd.f32 %v8820_v25, %v1172_v9 }
 0x1c2   :  { %v196_v34 = vpop.xlane.xlu1 %195  ;;  %v1119_v17 = vmul.f32 %v727_v43, %v8786_v37 }
 0x1c3   :  { %v280_v46 = vmul.f32 %v8685_v13, %v196_v34  ;;  %v747_v34 = vsel %vm746_vm9, %v7559_v11, %v743_v28 }
 0x1c4   :  { %v1173_v63 = vmul.f32 %v8804_v53, %v1119_v17  ;;  %v1121_v10 = vmul.f32 %v747_v34, %v8869_v30  ;;  %v522_v30 = vmul.f32 %v8987_v56, %v8685_v13 }
 0x1c5   :  { %v9019_v18 = vsub.f32 %v8914_v12, %v280_v46  ;;  %v7561_v12 = vpop.eup %7560 }
 0x1c6   :  { %v729_v51 = vmul.f32 %v7561_v12, %v570_v22  ;;  %vm735_vm8 = vweird.f32 %v7561_v12  ;;  %v1227_v37 = vadd.f32 %v8820_v25, %v1173_v63  ;;  %v1175_v32 = vmul.f32 %v8804_v53, %v1121_v10 }
 0x1c7   :  { %203 = vadd.xlane.f32.xlu0 %v9005_v62  ;;  %v380_v2 = vmul.f32 %v9019_v18, %v9019_v18  ;;  %207 = vadd.xlane.f32.xlu1 %v9023_v49  ;;  %vm736_vm10 = vmor %vm734_vm7, %vm735_vm8  ;;  %v572_v23 = vadd.f32 1e-05, %v522_v30 }
 0x1c8   :  { %v730_v29 = vmul.f32 %v7561_v12, %v729_v51  ;;  %v1271_v3 = vpack.c.bf16 %v1227_v37, %v1226_v44  ;;  %v1229_v14 = vadd.f32 %v8820_v25, %v1175_v32 }
 0x1c9   :  { %452 = vadd.xlane.f32.xlu2 %v380_v2  ;;  %7562 = vrsqrt.f32 %v572_v23  ;;  %vm754_vm11 = vweird.f32 %v572_v23 }
 0x1ca   :  { %v731_v41 = vmul.f32 0.5, %v730_v29  ;;  %1526 = vmatmul.bf16.gmra.mxu0 %v1271_v3  ;;  %1660 = vmatmul.bf16.gmra.mxu1 %v1271_v3 }
 0x1cb   :  { %1794 = vmatmul.bf16.gmra.mxu2 %v1271_v3  ;;  %1928 = vmatmul.bf16.gmra.mxu3 %v1271_v3 }
 0x1cc   :  { %v732_v52 = vsub.f32 1.5, %v731_v41 }
 0x1ce   :  { %v733_v61 = vmul.f32 %v7561_v12, %v732_v52 }
 0x1cf   :  { %v7563_v11 = vpop.eup %7562 }
 0x1d0   :  { %v737_v5 = vsel %vm736_vm10, %v7561_v12, %v733_v61  ;;  %v749_v12 = vmul.f32 %v7563_v11, %v572_v23  ;;  %vm755_vm12 = vweird.f32 %v7563_v11 }
 0x1d1   :  { %209 = vadd.xlane.f32.xlu2 %v9026_v48  ;;  %v1120_v7 = vmul.f32 %v737_v5, %v8825_v6  ;;  %vm756_vm13 = vmor %vm754_vm11, %vm755_vm12 }
 0x1d2   :  { %v750_v35 = vmul.f32 %v7563_v11, %v749_v12 }
 0x1d3   :  { %v1174_v46 = vmul.f32 %v8804_v53, %v1120_v7 }
 0x1d4   :  { %v751_v40 = vmul.f32 0.5, %v750_v35 }
 0x1d5   :  { %v1228_v60 = vadd.f32 %v8820_v25, %v1174_v46 }
 0x1d6   :  { %v752_v33 = vsub.f32 1.5, %v751_v40 }
 0x1d7   :  { %v1272_v15 = vpack.c.bf16 %v1229_v14, %v1228_v60 }
 0x1d8   :  { %v753_v29 = vmul.f32 %v7563_v11, %v752_v33 }
 0x1d9   :  { %211 = vadd.xlane.f32.xlu2 %v9034_v1 }
 0x1da   :  { %1531 = vmatmul.bf16.gmra.mxu0 %v1272_v15  ;;  %1665 = vmatmul.bf16.gmra.mxu1 %v1272_v15  ;;  %v757_v41 = vsel %vm756_vm13, %v7563_v11, %v753_v29 }
 0x1db   :  { %1799 = vmatmul.bf16.gmra.mxu2 %v1272_v15  ;;  %1933 = vmatmul.bf16.gmra.mxu3 %v1272_v15  ;;  %v1122_v52 = vmul.f32 %v757_v41, %v8887_v24 }
 0x1dd   :  { %v1176_v3 = vmul.f32 %v8804_v53, %v1122_v52 }
 0x1df   :  { %v1230_v7 = vadd.f32 %v8820_v25, %v1176_v3 }
 0x211   :  { %v439_v16 = vpop.xlane.xlu2 %438 }
 0x212   :  { %v523_v6 = vmul.f32 %v439_v16, %v8685_v13 }
 0x214   :  { %v573_v2 = vadd.f32 1e-05, %v523_v6 }
 0x216   :  { %7564 = vrsqrt.f32 %v573_v2  ;;  %vm764_vm15 = vweird.f32 %v573_v2 }
 0x219   :  { %v441_v47 = vpop.xlane.xlu2 %440 }
 0x21a   :  { %v524_v37 = vmul.f32 %v441_v47, %v8685_v13  ;;  %v9079_v47 = vld [vmem:[#allocation2 + $0xf8] sm:$0xff] }
 0x21c   :  { %v7565_v50 = vpop.eup %7564  ;;  %v574_v10 = vadd.f32 1e-05, %v524_v37 }
 0x21d   :  { %v759_v56 = vmul.f32 %v7565_v50, %v573_v2  ;;  %vm765_vm14 = vweird.f32 %v7565_v50 }
 0x21e   :  { %vm766_vm0 = vmor %vm764_vm15, %vm765_vm14  ;;  %7566 = vrsqrt.f32 %v574_v10  ;;  %vm774_vm2 = vweird.f32 %v574_v10 }
 0x21f   :  { %v760_v27 = vmul.f32 %v7565_v50, %v759_v56 }
 0x221   :  { %v198_v21 = vpop.xlane.xlu2 %197  ;;  %v761_v51 = vmul.f32 0.5, %v760_v27  ;;  %v9053_v42 = vpop.xlane.xlu1 %446 }
 0x222   :  { %v281_v22 = vmul.f32 %v8685_v13, %v198_v21  ;;  %v443_v43 = vpop.xlane.xlu0 %442 }
 0x223   :  { %v525_v34 = vmul.f32 %v443_v43, %v8685_v13 }
 0x224   :  { %v9049_v58 = vsub.f32 %v8964_v20, %v281_v22  ;;  %v762_v20 = vsub.f32 1.5, %v761_v51  ;;  %v7567_v6 = vpop.eup %7566 }
 0x225   :  { %v575_v32 = vadd.f32 1e-05, %v525_v34  ;;  %v769_v22 = vmul.f32 %v7567_v6, %v574_v10  ;;  %vm775_vm1 = vweird.f32 %v7567_v6  ;;  %v9112_v10 = vld [vmem:[#allocation2 + $0x118] sm:$0xff] }
 0x226   :  { %v381_v26 = vmul.f32 %v9049_v58, %v9049_v58  ;;  %v763_v17 = vmul.f32 %v7565_v50, %v762_v20  ;;  %vm776_vm4 = vmor %vm774_vm2, %vm775_vm1 }
 0x227   :  { %7568 = vrsqrt.f32 %v575_v32  ;;  %v770_v2 = vmul.f32 %v7567_v6, %v769_v22  ;;  %vm784_vm5 = vweird.f32 %v575_v32 }
 0x228   :  { %454 = vadd.xlane.f32.xlu0 %v381_v26  ;;  %v767_v57 = vsel %vm766_vm0, %v7565_v50, %v763_v17  ;;  %v9095_v17 = vld [vmem:[#allocation2 + $0x100] sm:$0xff] }
 0x229   :  { %v200_v55 = vpop.xlane.xlu2 %199  ;;  %v1123_v28 = vmul.f32 %v767_v57, %v8935_v54 }
 0x22a   :  { %v282_v59 = vmul.f32 %v8685_v13, %v200_v55  ;;  %v9056_v9 = vpop.xlane.xlu1 %448  ;;  %v445_v44 = vpop.xlane.xlu0 %444 }
 0x22b   :  { %v1177_v5 = vmul.f32 %v8804_v53, %v1123_v28  ;;  %v526_v57 = vmul.f32 %v445_v44, %v8685_v13 }
 0x22c   :  { %v9059_v63 = vsub.f32 %v8975_v8, %v282_v59 }
 0x22d   :  { %v1231_v24 = vadd.f32 %v8820_v25, %v1177_v5  ;;  %v7569_v21 = vpop.eup %7568 }
 0x22e   :  { %18346 = vst [vmem:[#allocation16_spill] sm:$0xff] %v9059_v63  ;;  %v382_v61 = vmul.f32 %v9059_v63, %v9059_v63  ;;  %v779_v23 = vmul.f32 %v7569_v21, %v575_v32  ;;  %vm785_vm3 = vweird.f32 %v7569_v21 }
 0x22f   :  { %v1273_v54 = vpack.c.bf16 %v1231_v24, %v1230_v7  ;;  %vm786_vm6 = vmor %vm784_vm5, %vm785_vm3  ;;  %v9121_v24 = vld [vmem:[#allocation2 + $0x108] sm:$0xff] }
 0x230   :  { %456 = vadd.xlane.f32.xlu0 %v382_v61  ;;  %v780_v26 = vmul.f32 %v7569_v21, %v779_v23  ;;  %v576_v61 = vadd.f32 1e-05, %v526_v57 }
 0x231   :  { %1536 = vmatmul.bf16.gmra.mxu0 %v1273_v54  ;;  %1670 = vmatmul.bf16.gmra.mxu1 %v1273_v54 }
 0x232   :  { %v206_v8 = vpop.xlane.xlu1 %205  ;;  %v202_v14 = vpop.xlane.xlu0 %201  ;;  %1804 = vmatmul.bf16.gmra.mxu2 %v1273_v54  ;;  %1938 = vmatmul.bf16.gmra.mxu3 %v1273_v54  ;;  %v781_v50 = vmul.f32 0.5, %v780_v26  ;;  %7570 = vrsqrt.f32 %v576_v61  ;;  %vm794_vm11 = vweird.f32 %v576_v61 }
 0x233   :  { %v285_v46 = vmul.f32 %v8685_v13, %v206_v8  ;;  %v283_v15 = vmul.f32 %v8685_v13, %v202_v14 }
 0x234   :  { %v9086_v11 = vpop.xlane.xlu2 %450  ;;  %v782_v56 = vsub.f32 1.5, %v781_v50 }
 0x235   :  { %v9073_v60 = vsub.f32 %v9002_v0, %v285_v46  ;;  %v9077_v16 = vsub.f32 %v8993_v31, %v283_v15  ;;  %v771_v31 = vmul.f32 0.5, %v770_v2  ;;  %v137_v46 = vld [vmem:[#allocation2 + $0x120] sm:$0xff] }
 0x236   :  { %v783_v51 = vmul.f32 %v7569_v21, %v782_v56  ;;  %v135_v56 = vld [vmem:[#allocation2 + $0x110] sm:$0xff] }
 0x237   :  { %18347 = vst [vmem:[#allocation17_spill] sm:$0xff] %v9073_v60  ;;  %v385_v30 = vmul.f32 %v9073_v60, %v9073_v60  ;;  %v383_v0 = vmul.f32 %v9077_v16, %v9077_v16  ;;  %v772_v12 = vsub.f32 1.5, %v771_v31 }
 0x238   :  { %18348 = vst [vmem:[#allocation18_spill] sm:$0xff] %v9077_v16  ;;  %213 = vadd.xlane.f32.xlu0 %v9079_v47  ;;  %v787_v59 = vsel %vm786_vm6, %v7569_v21, %v783_v51  ;;  %v7571_v32 = vpop.eup %7570 }
 0x239   :  { %462 = vadd.xlane.f32.xlu2 %v385_v30  ;;  %458 = vadd.xlane.f32.xlu1 %v383_v0  ;;  %v773_v27 = vmul.f32 %v7567_v6, %v772_v12  ;;  %v1125_v28 = vmul.f32 %v787_v59, %v8959_v19  ;;  %v789_v14 = vmul.f32 %v7571_v32, %v576_v61  ;;  %vm795_vm9 = vweird.f32 %v7571_v32 }
 0x23a   :  { %v208_v35 = vpop.xlane.xlu1 %207  ;;  %v204_v33 = vpop.xlane.xlu0 %203  ;;  %vm796_vm12 = vmor %vm794_vm11, %vm795_vm9 }
 0x23b   :  { %v286_v40 = vmul.f32 %v8685_v13, %v208_v35  ;;  %v777_v55 = vsel %vm776_vm4, %v7567_v6, %v773_v27  ;;  %v284_v29 = vmul.f32 %v8685_v13, %v204_v33  ;;  %v790_v6 = vmul.f32 %v7571_v32, %v789_v14 }
 0x23c   :  { %v9089_v43 = vpop.xlane.xlu2 %452  ;;  %v1124_v41 = vmul.f32 %v777_v55, %v8950_v4  ;;  %v1179_v4 = vmul.f32 %v8804_v53, %v1125_v28  ;;  %v528_v33 = vmul.f32 %v9056_v9, %v8685_v13 }
 0x23d   :  { %v9092_v20 = vsub.f32 %v9023_v49, %v286_v40  ;;  %v527_v49 = vmul.f32 %v9053_v42, %v8685_v13  ;;  %v9106_v37 = vsub.f32 %v9005_v62, %v284_v29  ;;  %v791_v21 = vmul.f32 0.5, %v790_v6 }
 0x23e   :  { %v1178_v3 = vmul.f32 %v8804_v53, %v1124_v41  ;;  %v1233_v19 = vadd.f32 %v8820_v25, %v1179_v4  ;;  %v529_v40 = vmul.f32 %v9086_v11, %v8685_v13  ;;  %v578_v59 = vadd.f32 1e-05, %v528_v33 }
 0x23f   :  { %18349 = vst [vmem:[#allocation19_spill] sm:$0xff] %v9092_v20  ;;  %v386_v52 = vmul.f32 %v9092_v20, %v9092_v20  ;;  %v577_v34 = vadd.f32 1e-05, %v527_v49  ;;  %v384_v44 = vmul.f32 %v9106_v37, %v9106_v37  ;;  %v792_v23 = vsub.f32 1.5, %v791_v21 }
 0x240   :  { %215 = vadd.xlane.f32.xlu0 %v9095_v17  ;;  %18350 = vst [vmem:[#allocation20_spill] sm:$0xff] %v9106_v37  ;;  %v1232_v42 = vadd.f32 %v8820_v25, %v1178_v3  ;;  %vm814_vm15 = vweird.f32 %v578_v59 }
 0x241   :  { %464 = vadd.xlane.f32.xlu2 %v386_v52  ;;  %460 = vadd.xlane.f32.xlu1 %v384_v44  ;;  %7572 = vrsqrt.f32 %v577_v34  ;;  %vm804_vm7 = vweird.f32 %v577_v34  ;;  %v793_v31 = vmul.f32 %v7571_v32, %v792_v23  ;;  %v138_v52 = vld [vmem:[#allocation2 + $0x128] sm:$0xff]  ;;  %v1770_v23 = vpop.f32.mrf.mxu2 }
 0x242   :  { %v1274_v8 = vpack.c.bf16 %v1233_v19, %v1232_v42  ;;  %v1323_v42 = vld [vmem:[#allocation8] sm:$0xf] }
 0x243   :  { %v797_v35 = vsel %vm796_vm12, %v7571_v32, %v793_v31  ;;  %v9147_v14 = vperm.slane %v1323_v42, 1  ;;  %v9160_v31 = vperm.slane %v1323_v42, 3 }
 0x244   :  { %v210_v5 = vpop.xlane.xlu2 %209  ;;  %1541 = vmatmul.bf16.gmra.mxu0 %v1274_v8  ;;  %1675 = vmatmul.bf16.gmra.mxu1 %v1274_v8  ;;  %v1126_v55 = vmul.f32 %v797_v35, %v8973_v45  ;;  %v139_v45 = vld [vmem:[#allocation2 + $0x130] sm:$0xff] }
 0x245   :  { %v287_v62 = vmul.f32 %v8685_v13, %v210_v5  ;;  %1809 = vmatmul.bf16.gmra.mxu2 %v1274_v8  ;;  %1943 = vmatmul.bf16.gmra.mxu3 %v1274_v8  ;;  %v1502_v8 = vpop.f32.mrf.mxu0 }
 0x246   :  { %v1180_v41 = vmul.f32 %v8804_v53, %v1126_v55 }
 0x247   :  { %v9119_v7 = vsub.f32 %v9026_v48, %v287_v62  ;;  %v7573_v54 = vpop.eup %7572 }
 0x248   :  { %v799_v30 = vmul.f32 %v7573_v54, %v577_v34  ;;  %vm805_vm8 = vweird.f32 %v7573_v54  ;;  %v1234_v11 = vadd.f32 %v8820_v25, %v1180_v41 }
 0x249   :  { %221 = vadd.xlane.f32.xlu2 %v9112_v10  ;;  %18351 = vst [vmem:[#allocation21_spill] sm:$0xff] %v9119_v7  ;;  %217 = vadd.xlane.f32.xlu1 %v9121_v24  ;;  %v387_v15 = vmul.f32 %v9119_v7, %v9119_v7  ;;  %vm806_vm10 = vmor %vm804_vm7, %vm805_vm8 }
 0x24a   :  { %v800_v0 = vmul.f32 %v7573_v54, %v799_v30 }
 0x24b   :  { %466 = vadd.xlane.f32.xlu0 %v387_v15  ;;  %v1636_v15 = vpop.f32.mrf.mxu1 }
 0x24c   :  { %v801_v22 = vmul.f32 0.5, %v800_v0  ;;  %v212_v48 = vpop.xlane.xlu2 %211  ;;  %v9152_v21 = vadd.f32 %v1636_v15, %v9147_v14 }
 0x24d   :  { %v288_v26 = vmul.f32 %v8685_v13, %v212_v48  ;;  %v9155_v48 = vperm.slane %v1323_v42, 2 }
 0x24e   :  { %v802_v2 = vsub.f32 1.5, %v801_v22 }
 0x24f   :  { %v9128_v12 = vsub.f32 %v9034_v1, %v288_v26  ;;  %v579_v1 = vadd.f32 1e-05, %v529_v40  ;;  %v9173_v40 = vld [vmem:[%s18225_s2] ss:$0 sm:$0xff] }
 0x250   :  { %v803_v50 = vmul.f32 %v7573_v54, %v802_v2  ;;  %v9157_v2 = vld [vmem:[#allocation5] ss:$0 sm:$0xff] }
 0x251   :  { %223 = vadd.xlane.f32.xlu2 %v137_v46  ;;  %18352 = vst [vmem:[#allocation22_spill] sm:$0xff] %v9128_v12  ;;  %219 = vadd.xlane.f32.xlu1 %v135_v56  ;;  %v388_v51 = vmul.f32 %v9128_v12, %v9128_v12  ;;  %7574 = vrsqrt.f32 %v579_v1  ;;  %vm824_vm13 = vweird.f32 %v579_v1  ;;  %v1904_v56 = vpop.f32.mrf.mxu3 }
 0x252   :  { %v807_v27 = vsel %vm806_vm10, %v7573_v54, %v803_v50  ;;  %7576 = vrsqrt.f32 %v578_v59  ;;  %v1504_v50 = vpop.f32.mrf.mxu0  ;;  %v9177_v33 = vadd.f32 %v1904_v56, %v9160_v31 }
 0x253   :  { %v1127_v29 = vmul.f32 %v807_v27, %v8962_v36  ;;  %468 = vadd.xlane.f32.xlu0 %v388_v51  ;;  %v9165_v27 = vadd.f32 %v1770_v23, %v9155_v48 }
 0x255   :  { %v1181_v57 = vmul.f32 %v8804_v53, %v1127_v29 }
 0x257   :  { %v1235_v49 = vadd.f32 %v8820_v25, %v1181_v57  ;;  %v7575_v28 = vpop.eup %7574  ;;  %v9142_v25 = vperm.slane %v1323_v42, 0  ;;  %v1772_v42 = vpop.f32.mrf.mxu2 }
 0x258   :  { %v7577_v36 = vpop.eup %7576  ;;  %v819_v61 = vmul.f32 %v7575_v28, %v579_v1  ;;  %vm825_vm14 = vweird.f32 %v7575_v28  ;;  %v7126_v1 = vmul.f32 -1.442695, %v9165_v27  ;;  %v9215_v15 = vadd.f32 %v1772_v42, %v9155_v48 }
 0x259   :  { %v1275_v9 = vpack.c.bf16 %v1235_v49, %v1234_v11  ;;  %v809_v3 = vmul.f32 %v7577_v36, %v578_v59  ;;  %vm815_vm0 = vweird.f32 %v7577_v36  ;;  %vm826_vm1 = vmor %vm824_vm13, %vm825_vm14  ;;  %v9145_v54 = vadd.f32 %v1502_v8, %v9142_v25  ;;  %v1638_v59 = vpop.f32.mrf.mxu1 }
 0x25a   :  { %v820_v53 = vmul.f32 %v7575_v28, %v819_v61  ;;  %vm816_vm2 = vmor %vm814_vm15, %vm815_vm0  ;;  %v7127_v49 = vmul.f32 -1.442695, %v9177_v33  ;;  %v7130_v56 = vmul.f32 -1.442695, %v9215_v15 }
 0x25b   :  { %225 = vadd.xlane.f32.xlu0 %v138_v52  ;;  %1546 = vmatmul.bf16.gmra.mxu0 %v1275_v9  ;;  %v810_v34 = vmul.f32 %v7577_v36, %v809_v3  ;;  %v7124_v0 = vmul.f32 -1.442695, %v9145_v54  ;;  %v530_v52 = vmul.f32 %v9089_v43, %v8685_v13 }
 0x25c   :  { %1680 = vmatmul.bf16.gmra.mxu1 %v1275_v9  ;;  %1814 = vmatmul.bf16.gmra.mxu2 %v1275_v9  ;;  %v821_v4 = vmul.f32 0.5, %v820_v53 }
 0x25d   :  { %1948 = vmatmul.bf16.gmra.mxu3 %v1275_v9  ;;  %v811_v44 = vmul.f32 0.5, %v810_v34  ;;  %7578 = vpow2.f32 %v7124_v0  ;;  %v9193_v43 = vadd.f32 1e-05, %v530_v52 }
 0x25e   :  { %v822_v5 = vsub.f32 1.5, %v821_v4 }
 0x25f   :  { %v812_v19 = vsub.f32 1.5, %v811_v44  ;;  %vm834_vm9 = vweird.f32 %v9193_v43 }
 0x260   :  { %v823_v62 = vmul.f32 %v7575_v28, %v822_v5 }
 0x261   :  { %v813_v32 = vmul.f32 %v7577_v36, %v812_v19  ;;  %v1641_v12 = vpop.f32.mrf.mxu1 }
 0x262   :  { %v827_v46 = vsel %vm826_vm1, %v7575_v28, %v823_v62 }
 0x263   :  { %227 = vadd.xlane.f32.xlu0 %v139_v45  ;;  %v817_v30 = vsel %vm816_vm2, %v7577_v36, %v813_v32  ;;  %v1129_v6 = vmul.f32 %v827_v46, %v9011_v38  ;;  %v7125_v38 = vmul.f32 -1.442695, %v9152_v21  ;;  %v7579_v29 = vpop.eup %7578  ;;  %v9189_v36 = vadd.f32 %v1638_v59, %v9147_v14 }
 0x264   :  { %v1128_v22 = vmul.f32 %v817_v30, %v8985_v39  ;;  %v9168_v39 = vadd.f32 %v1504_v50, %v9142_v25  ;;  %v9186_v28 = vadd.f32 1.0, %v7579_v29  ;;  %v1906_v30 = vpop.f32.mrf.mxu3 }
 0x265   :  { %v1183_v26 = vmul.f32 %v9157_v2, %v1129_v6  ;;  %7580 = vpow2.f32 %v7125_v38  ;;  %v7129_v3 = vmul.f32 -1.442695, %v9189_v36  ;;  %v9228_v50 = vadd.f32 %v1906_v30, %v9160_v31 }
 0x266   :  { %v1182_v35 = vmul.f32 %v9157_v2, %v1128_v22  ;;  %v7128_v57 = vmul.f32 -1.442695, %v9168_v39  ;;  %7582 = vpow2.f32 %v7126_v1  ;;  %vm2834_vm3 = vweird.f32 %v9186_v28 }
 0x267   :  { %v1237_v51 = vadd.f32 %v9173_v40, %v1183_v26  ;;  %18353 = vst [vmem:[#allocation23_spill] sm:$0xff] %v9228_v50 }
 0x268   :  { %v1236_v55 = vadd.f32 %v9173_v40, %v1182_v35  ;;  %7584 = vpow2.f32 %v7128_v57  ;;  %v2840_v35 = vand.u32 2147483648, %v9186_v28  ;;  %v7131_v57 = vmul.f32 -1.442695, %v9228_v50 }
 0x269   :  { %7586 = vpow2.f32 %v7127_v49  ;;  %v2838_v49 = vand.u32 2147483647, %v9186_v28 }
 0x26a   :  { %v1276_v11 = vpack.c.bf16 %v1237_v51, %v1236_v55  ;;  %7588 = vrcp.f32 %v9186_v28 }
 0x26b   :  { %v7581_v61 = vpop.eup %7580  ;;  %vm9287_vm6 = vcmp.eq.f32.partialorder %v2838_v49, 8.507059e+37 }
 0x26c   :  { %1551 = vmatmul.bf16.gmra.mxu0 %v1276_v11  ;;  %1685 = vmatmul.bf16.gmra.mxu1 %v1276_v11  ;;  %v9197_v53 = vadd.f32 1.0, %v7581_v61  ;;  %v7583_v34 = vpop.eup %7582 }
 0x26d   :  { %1819 = vmatmul.bf16.gmra.mxu2 %v1276_v11  ;;  %1953 = vmatmul.bf16.gmra.mxu3 %v1276_v11  ;;  %v9206_v62 = vadd.f32 1.0, %v7583_v34 }
 0x26e   :  { %v7585_v4 = vpop.eup %7584  ;;  %v2855_v59 = vand.u32 2147483648, %v9197_v53  ;;  %vm2849_vm7 = vweird.f32 %v9197_v53 }
 0x26f   :  { %v7587_v5 = vpop.eup %7586  ;;  %v9210_v32 = vadd.f32 1.0, %v7585_v4  ;;  %v2870_v61 = vand.u32 2147483648, %v9206_v62  ;;  %v1507_v4 = vpop.f32.mrf.mxu0  ;;  %vm2864_vm13 = vweird.f32 %v9206_v62 }
 0x270   :  { %v9204_v19 = vpop.eup %7588  ;;  %v9220_v22 = vadd.f32 1.0, %v7587_v5 }
 0x271   :  { %v2830_v0 = vmul.f32 %v9204_v19, %v9186_v28  ;;  %vm2835_vm4 = vweird.f32 %v9204_v19  ;;  %vm2894_vm15 = vweird.f32 %v9210_v32 }
 0x272   :  { %v2885_v34 = vand.u32 2147483648, %v9220_v22  ;;  %vm9311_vm12 = vmor %vm2834_vm3, %vm2835_vm4  ;;  %vm2879_vm3 = vweird.f32 %v9220_v22 }
 0x273   :  { %v2831_v29 = vsub.f32 1.0, %v2830_v0 }
 0x275   :  { %v2832_v30 = vmul.f32 %v9204_v19, %v2831_v29  ;;  %v9270_v29 = vadd.f32 %v1507_v4, %v9142_v25  ;;  %v9283_v4 = vadd.f32 %v1641_v12, %v9147_v14 }
 0x277   :  { %18354 = vst [vmem:[#allocation24_spill] sm:$0xff] %v9270_v29 }
 0x278   :  { %18356 = vst [vmem:[#allocation26_spill] sm:$0xff] %v9283_v4 }
 0x29b   :  { %v455_v41 = vpop.xlane.xlu0 %454 }
 0x29c   :  { %v531_v9 = vmul.f32 %v455_v41, %v8685_v13 }
 0x29e   :  { %v9191_v45 = vadd.f32 1e-05, %v531_v9  ;;  %v2853_v9 = vand.u32 2147483647, %v9197_v53 }
 0x2a0   :  { %7590 = vrsqrt.f32 %v9191_v45  ;;  %vm9323_vm14 = vcmp.eq.f32.partialorder %v2853_v9, 8.507059e+37  ;;  %vm844_vm1 = vweird.f32 %v9191_v45 }
 0x2a1   :  { %7592 = vrsqrt.f32 %v9193_v43 }
 0x2a2   :  { %7594 = vpow2.f32 %v7129_v3 }
 0x2a3   :  { %v9201_v44 = vpop.xlane.xlu0 %456  ;;  %7596 = vrcp.f32 %v9197_v53 }
 0x2a4   :  { %7598 = vrcp.f32 %v9206_v62 }
 0x2a5   :  { %7600 = vrcp.f32 %v9210_v32 }
 0x2a6   :  { %v9208_v8 = vpop.eup %7590  ;;  %7602 = vrcp.f32 %v9220_v22 }
 0x2a7   :  { %v9212_v46 = vpop.eup %7592  ;;  %v839_v23 = vmul.f32 %v9208_v8, %v9191_v45  ;;  %7604 = vpow2.f32 %v7130_v56  ;;  %vm845_vm11 = vweird.f32 %v9208_v8 }
 0x2a8   :  { %v7595_v6 = vpop.eup %7594  ;;  %v829_v38 = vmul.f32 %v9212_v46, %v9193_v43  ;;  %vm835_vm10 = vweird.f32 %v9212_v46  ;;  %vm9347_vm2 = vmor %vm844_vm1, %vm845_vm11 }
 0x2a9   :  { %v9224_v26 = vpop.eup %7596  ;;  %v9234_v51 = vadd.f32 1.0, %v7595_v6  ;;  %v840_v55 = vmul.f32 %v9208_v8, %v839_v23  ;;  %v9255_v6 = vor.u32 1.1754944e-38, %v2840_v35  ;;  %v9257_v23 = vor.u32 1.1754944e-38, %v2855_v59  ;;  %vm9334_vm0 = vmor %vm834_vm9, %vm835_vm10 }
 0x2aa   :  { %v2845_v1 = vmul.f32 %v9224_v26, %v9197_v53  ;;  %v830_v52 = vmul.f32 %v9212_v46, %v829_v38  ;;  %v9243_v11 = vpop.eup %7598  ;;  %vm2850_vm5 = vweird.f32 %v9224_v26 }
 0x2ab   :  { %v214_v41 = vpop.xlane.xlu0 %213  ;;  %v9248_v3 = vpop.eup %7600  ;;  %7606 = vrcp.f32 %v9234_v51  ;;  %v841_v5 = vmul.f32 0.5, %v840_v55  ;;  %v2860_v38 = vmul.f32 %v9243_v11, %v9206_v62  ;;  %v9265_v55 = vor.u32 1.1754944e-38, %v2870_v61  ;;  %vm9376_vm4 = vmor %vm2849_vm7, %vm2850_vm5 }
 0x2ac   :  { %v289_v42 = vmul.f32 %v8685_v13, %v214_v41  ;;  %v2846_v0 = vsub.f32 1.0, %v2845_v1  ;;  %7608 = vpow2.f32 %v7131_v57  ;;  %v831_v7 = vmul.f32 0.5, %v830_v52  ;;  %v9262_v20 = vpop.eup %7602  ;;  %v1775_v1 = vpop.f32.mrf.mxu2 }
 0x2ad   :  { %v2890_v35 = vmul.f32 %v9248_v3, %v9210_v32  ;;  %v9274_v41 = vor.u32 1.1754944e-38, %v2885_v34  ;;  %v842_v57 = vsub.f32 1.5, %v841_v5  ;;  %v7605_v56 = vpop.eup %7604  ;;  %v2833_v61 = vadd.f32 %v9204_v19, %v2832_v30 }
 0x2ae   :  { %v9277_v52 = vsub.f32 %v9079_v47, %v289_v42  ;;  %v2847_v60 = vmul.f32 %v9224_v26, %v2846_v0  ;;  %v2861_v47 = vsub.f32 1.0, %v2860_v38  ;;  %v2875_v34 = vmul.f32 %v9262_v20, %v9220_v22  ;;  %v1909_v42 = vpop.f32.mrf.mxu3 }
 0x2af   :  { %v9295_v5 = vadd.f32 %v1775_v1, %v9155_v48  ;;  %v832_v30 = vsub.f32 1.5, %v831_v7  ;;  %vm2865_vm8 = vweird.f32 %v9243_v11  ;;  %v2891_v12 = vsub.f32 1.0, %v2890_v35 }
 0x2b0   :  { %18355 = vst [vmem:[#allocation25_spill] sm:$0xff] %v9277_v52  ;;  %v7132_v0 = vmul.f32 -1.442695, %v9270_v29  ;;  %v9301_v37 = vadd.f32 1.0, %v7605_v56  ;;  %v843_v38 = vmul.f32 %v9208_v8, %v842_v57  ;;  %v389_v1 = vmul.f32 %v9277_v52, %v9277_v52  ;;  %vm9419_vm11 = vmor %vm2864_vm13, %vm2865_vm8 }
 0x2b1   :  { %v9285_v16 = vpop.eup %7606  ;;  %18359 = vst [vmem:[#allocation27_spill] sm:$0xff] %v9295_v5  ;;  %v2848_v63 = vadd.f32 %v9224_v26, %v2847_v60  ;;  %v7133_v57 = vmul.f32 -1.442695, %v9283_v4  ;;  %v9321_v52 = vadd.f32 %v1909_v42, %v9160_v31  ;;  %v7134_v28 = vmul.f32 -1.442695, %v9295_v5 }
 0x2b2   :  { %v7609_v49 = vpop.eup %7608  ;;  %v2905_v56 = vmul.f32 %v9285_v16, %v9234_v51  ;;  %v833_v60 = vmul.f32 %v9212_v46, %v832_v30  ;;  %470 = vadd.xlane.f32.xlu1 %v389_v1  ;;  %v2837_v42 = vsel %vm9311_vm12, %v9204_v19, %v2833_v61  ;;  %v2876_v5 = vsub.f32 1.0, %v2875_v34  ;;  %v1509_v30 = vpop.f32.mrf.mxu0 }
 0x2b3   :  { %v216_v7 = vpop.xlane.xlu0 %215  ;;  %v9343_v4 = vadd.f32 1.0, %v7609_v49  ;;  %7610 = vpow2.f32 %v7132_v0  ;;  %v2862_v45 = vmul.f32 %v9243_v11, %v2861_v47  ;;  %v2892_v1 = vmul.f32 %v9248_v3, %v2891_v12 }
 0x2b4   :  { %v290_v9 = vmul.f32 %v8685_v13, %v216_v7  ;;  %7612 = vrcp.f32 %v9301_v37  ;;  %v847_v19 = vsel %vm9347_vm2, %v9208_v8, %v843_v38  ;;  %v2900_v61 = vand.u32 2147483648, %v9210_v32  ;;  %v1643_v38 = vpop.f32.mrf.mxu1 }
 0x2b5   :  { %v2906_v34 = vsub.f32 1.0, %v2905_v56  ;;  %7614 = vpow2.f32 %v7133_v57  ;;  %v7135_v0 = vmul.f32 -1.442695, %v9321_v52  ;;  %v9361_v49 = vadd.f32 %v1509_v30, %v9142_v25 }
 0x2b6   :  { %7616 = vpow2.f32 %v7134_v28  ;;  %v837_v47 = vsel %vm9334_vm0, %v9212_v46, %v833_v60  ;;  %v9367_v12 = vsub.f32 %v9095_v17, %v290_v9  ;;  %v2842_v8 = vsel %vm9287_vm6, %v9255_v6, %v2837_v42 }
 0x2b7   :  { %v18371_v7 = vand.u32 2147483647, %v9206_v62  ;;  %v2877_v17 = vmul.f32 %v9262_v20, %v2876_v5  ;;  %7618 = vrcp.f32 %v9343_v4  ;;  %v1131_v46 = vmul.f32 %v847_v19, %v9049_v58 }
 0x2b8   :  { %18368 = vst [vmem:[#allocation28_spill] sm:$0xff] %v9367_v12  ;;  %v2852_v53 = vsel %vm9376_vm4, %v9224_v26, %v2848_v63  ;;  %v2863_v6 = vadd.f32 %v9243_v11, %v2862_v45  ;;  %v2893_v59 = vadd.f32 %v9248_v3, %v2892_v1  ;;  %vm2895_vm5 = vweird.f32 %v9248_v3 }
 0x2b9   :  { %vm9382_vm9 = vcmp.eq.f32.partialorder %v18371_v7, 8.507059e+37  ;;  %v7611_v35 = vpop.eup %7610  ;;  %vm2880_vm6 = vweird.f32 %v9262_v20  ;;  %v18374_v56 = vand.u32 2147483647, %v9220_v22  ;;  %v18377_v58 = vand.u32 2147483647, %v9210_v32  ;;  %vm9434_vm8 = vmor %vm2894_vm15, %vm2895_vm5  ;;  %v9448_v32 = vpop.xlane.xlu2 %462 }
 0x2ba   :  { %v2907_v63 = vmul.f32 %v9285_v16, %v2906_v34  ;;  %v1130_v26 = vmul.f32 %v837_v47, %v9019_v18  ;;  %v9410_v28 = vpop.eup %7612  ;;  %v9413_v60 = vmul.f32 %v2842_v8, %v9145_v54  ;;  %7620 = vpow2.f32 %v7135_v0  ;;  %v9450_v47 = vpop.xlane.xlu1 %458  ;;  %vm9463_vm13 = vmor %vm2879_vm3, %vm2880_vm6 }
 0x2bb   :  { %vm9398_vm7 = vcmp.eq.f32.partialorder %v18374_v56, 8.507059e+37  ;;  %vm9404_vm10 = vcmp.eq.f32.partialorder %v18377_v58, 8.507059e+37  ;;  %v7136_v42 = vmul.f32 -1.442695, %v9361_v49  ;;  %v390_v30 = vmul.f32 %v9367_v12, %v9367_v12  ;;  %v7615_v18 = vpop.eup %7614 }
 0x2bc   :  { %18380 = vst [vmem:[#allocation29_spill] sm:$0xff] %v9413_v60  ;;  %v2857_v54 = vsel %vm9323_vm14, %v9257_v23, %v2852_v53  ;;  %v2878_v43 = vadd.f32 %v9262_v20, %v2877_v17  ;;  %v2901_v45 = vor.u32 1.1754944e-38, %v2900_v61  ;;  %v1185_v1 = vmul.f32 %v9157_v2, %v1131_v46  ;;  %v7617_v19 = vpop.eup %7616 }
 0x2bd   :  { %v2867_v34 = vsel %vm9419_vm11, %v9243_v11, %v2863_v6  ;;  %v2897_v23 = vsel %vm9434_vm8, %v9248_v3, %v2893_v59  ;;  %v2913_v29 = vand.u32 2147483647, %v9234_v51  ;;  %v9446_v0 = vadd.f32 1.0, %v7611_v35  ;;  %472 = vadd.xlane.f32.xlu1 %v390_v30  ;;  %v9452_v61 = vpop.eup %7618 }
 0x2be   :  { %v2908_v8 = vadd.f32 %v9285_v16, %v2907_v63  ;;  %vm2910_vm12 = vweird.f32 %v9285_v16  ;;  %v2920_v11 = vmul.f32 %v9410_v28, %v9301_v37  ;;  %v1184_v3 = vmul.f32 %v9157_v2, %v1130_v26 }
 0x2bf   :  { %vm2909_vm14 = vweird.f32 %v9234_v51  ;;  %v2915_v17 = vand.u32 2147483648, %v9234_v51  ;;  %v9469_v46 = vadd.f32 1.0, %v7615_v18  ;;  %7622 = vpow2.f32 %v7136_v42 }
 0x2c0   :  { %v2882_v53 = vsel %vm9463_vm13, %v9262_v20, %v2878_v43  ;;  %v2902_v6 = vsel %vm9404_vm10, %v2901_v45, %v2897_v23  ;;  %v9476_v59 = vadd.f32 1.0, %v7617_v19  ;;  %v1239_v22 = vadd.f32 %v9173_v40, %v1185_v1  ;;  %v7621_v35 = vpop.eup %7620  ;;  %vm9484_vm15 = vmor %vm2909_vm14, %vm2910_vm12 }
 0x2c1   :  { %v2872_v56 = vsel %vm9382_vm9, %v9265_v55, %v2867_v34  ;;  %v2935_v20 = vmul.f32 %v9452_v61, %v9343_v4  ;;  %7624 = vrcp.f32 %v9446_v0  ;;  %v9492_v58 = vadd.f32 %v1643_v38, %v9147_v14 }
 0x2c2   :  { %v2912_v57 = vsel %vm9484_vm15, %v9285_v16, %v2908_v8  ;;  %vm2914_vm0 = vcmp.eq.f32.partialorder %v2913_v29, 8.507059e+37  ;;  %v2921_v55 = vsub.f32 1.0, %v2920_v11  ;;  %v1238_v50 = vadd.f32 %v9173_v40, %v1184_v3  ;;  %v9526_v29 = vpop.xlane.xlu2 %464 }
 0x2c3   :  { %v2887_v63 = vsel %vm9398_vm7, %v9274_v41, %v2882_v53  ;;  %v9502_v26 = vmul.f32 %v2902_v6, %v9168_v39  ;;  %v2916_v9 = vor.u32 1.1754944e-38, %v2915_v17  ;;  %7626 = vrcp.f32 %v9469_v46 }
 0x2c4   :  { %v2928_v42 = vand.u32 2147483647, %v9301_v37  ;;  %7628 = vrcp.f32 %v9476_v59  ;;  %v9507_v30 = vadd.f32 1.0, %v7621_v35  ;;  %v1277_v16 = vpack.c.bf16 %v1239_v22, %v1238_v50 }
 0x2c5   :  { %18389 = vst [vmem:[#allocation30_spill] sm:$0xff] %v9502_v26  ;;  %v7623_v18 = vpop.eup %7622  ;;  %v2917_v43 = vsel %vm2914_vm0, %v2916_v9, %v2912_v57  ;;  %v2930_v62 = vand.u32 2147483648, %v9301_v37  ;;  %v2936_v45 = vsub.f32 1.0, %v2935_v20  ;;  %v7137_v41 = vmul.f32 -1.442695, %v9492_v58 }
 0x2c6   :  { %v9512_v39 = vmul.f32 %v2857_v54, %v9152_v21  ;;  %v2922_v5 = vmul.f32 %v9410_v28, %v2921_v55  ;;  %1556 = vmatmul.bf16.gmra.mxu0 %v1277_v16  ;;  %1690 = vmatmul.bf16.gmra.mxu1 %v1277_v16  ;;  %v9518_v19 = vmul.f32 %v2872_v56, %v9165_v27  ;;  %vm2924_vm1 = vweird.f32 %v9301_v37  ;;  %v9528_v21 = vpop.xlane.xlu1 %460 }
 0x2c7   :  { %v9515_v1 = vpop.eup %7624  ;;  %v9521_v34 = vmul.f32 %v2887_v63, %v9177_v33  ;;  %1824 = vmatmul.bf16.gmra.mxu2 %v1277_v16  ;;  %1958 = vmatmul.bf16.gmra.mxu3 %v1277_v16  ;;  %v9531_v54 = vmul.f32 %v2917_v43, %v9189_v36  ;;  %vm9533_vm2 = vcmp.eq.f32.partialorder %v2928_v42, 8.507059e+37  ;;  %v2943_v33 = vand.u32 2147483647, %v9343_v4 }
 0x2c8   :  { %18390 = vst [vmem:[#allocation31_spill] sm:$0xff] %v9512_v39  ;;  %7630 = vrcp.f32 %v9507_v30  ;;  %v9539_v8 = vadd.f32 1.0, %v7623_v18  ;;  %v2931_v38 = vor.u32 1.1754944e-38, %v2930_v62  ;;  %v2937_v3 = vmul.f32 %v9452_v61, %v2936_v45 }
 0x2c9   :  { %18391 = vst [vmem:[#allocation32_spill] sm:$0xff] %v9518_v19  ;;  %v9541_v11 = vpop.eup %7626  ;;  %v2945_v7 = vand.u32 2147483648, %v9343_v4  ;;  %7632 = vpow2.f32 %v7137_v41  ;;  %v2923_v17 = vadd.f32 %v9410_v28, %v2922_v5  ;;  %vm2925_vm3 = vweird.f32 %v9410_v28  ;;  %v1777_v41 = vpop.f32.mrf.mxu2 }
 0x2ca   :  { %18392 = vst [vmem:[#allocation33_spill] sm:$0xff] %v9521_v34  ;;  %v9545_v36 = vpop.eup %7628  ;;  %v2950_v53 = vmul.f32 %v9515_v1, %v9446_v0  ;;  %v533_v6 = vmul.f32 %v9450_v47, %v8685_v13  ;;  %vm2939_vm4 = vweird.f32 %v9343_v4  ;;  %v2960_v22 = vand.u32 2147483648, %v9446_v0  ;;  %vm9569_vm5 = vmor %vm2924_vm1, %vm2925_vm3 }
 0x2cb   :  { %18393 = vst [vmem:[#allocation34_spill] sm:$0xff] %v9531_v54  ;;  %v2975_v35 = vand.u32 2147483648, %v9469_v46  ;;  %v532_v56 = vmul.f32 %v9201_v44, %v8685_v13  ;;  %vm9560_vm9 = vcmp.eq.f32.partialorder %v2943_v33, 8.507059e+37  ;;  %v2965_v57 = vmul.f32 %v9541_v11, %v9469_v46 }
 0x2cc   :  { %7634 = vrcp.f32 %v9539_v8  ;;  %v2938_v44 = vadd.f32 %v9452_v61, %v2937_v3  ;;  %vm2940_vm6 = vweird.f32 %v9452_v61  ;;  %v2946_v55 = vor.u32 1.1754944e-38, %v2945_v7 }
 0x2cd   :  { %v2980_v50 = vmul.f32 %v9545_v36, %v9476_v59  ;;  %v2927_v9 = vsel %vm9569_vm5, %v9410_v28, %v2923_v17  ;;  %v2951_v42 = vsub.f32 1.0, %v2950_v53  ;;  %v2958_v37 = vand.u32 2147483647, %v9446_v0  ;;  %vm9594_vm7 = vmor %vm2939_vm4, %vm2940_vm6  ;;  %v1911_v17 = vpop.f32.mrf.mxu3 }
 0x2ce   :  { %v9577_v63 = vpop.eup %7630  ;;  %v9583_v16 = vadd.f32 1e-05, %v533_v6  ;;  %v9585_v43 = vor.u32 1.1754944e-38, %v2960_v22  ;;  %v2973_v62 = vand.u32 2147483647, %v9469_v46  ;;  %v9588_v45 = vor.u32 1.1754944e-38, %v2975_v35  ;;  %v222_v35 = vpop.xlane.xlu2 %221 }
 0x2cf   :  { %v7633_v18 = vpop.eup %7632  ;;  %v9590_v5 = vadd.f32 1e-05, %v532_v56  ;;  %vm2955_vm10 = vweird.f32 %v9515_v1  ;;  %v2966_v28 = vsub.f32 1.0, %v2965_v57  ;;  %v2988_v3 = vand.u32 2147483647, %v9476_v59  ;;  %v218_v56 = vpop.xlane.xlu1 %217 }
 0x2d0   :  { %v2990_v7 = vand.u32 2147483648, %v9476_v59  ;;  %v2932_v53 = vsel %vm9533_vm2, %v2931_v38, %v2927_v9  ;;  %v2942_v6 = vsel %vm9594_vm7, %v9452_v61, %v2938_v44  ;;  %vm2954_vm11 = vweird.f32 %v9446_v0  ;;  %v1512_v44 = vpop.f32.mrf.mxu0 }
 0x2d1   :  { %v2981_v4 = vsub.f32 1.0, %v2980_v50  ;;  %v2995_v22 = vmul.f32 %v9577_v63, %v9507_v30  ;;  %v2952_v47 = vmul.f32 %v9515_v1, %v2951_v42  ;;  %vm2969_vm8 = vweird.f32 %v9469_v46  ;;  %vm9682_vm3 = vmor %vm2954_vm11, %vm2955_vm10 }
 0x2d2   :  { %v9609_v57 = vpop.eup %7634  ;;  %v9613_v27 = vadd.f32 1.0, %v7633_v18  ;;  %v9616_v38 = vadd.f32 %v1777_v41, %v9155_v48  ;;  %7636 = vrsqrt.f32 %v9583_v16  ;;  %vm2984_vm12 = vweird.f32 %v9476_v59 }
 0x2d3   :  { %v9621_v61 = vadd.f32 %v1911_v17, %v9160_v31  ;;  %7638 = vrsqrt.f32 %v9590_v5  ;;  %v293_v50 = vmul.f32 %v8685_v13, %v222_v35  ;;  %v291_v9 = vmul.f32 %v8685_v13, %v218_v56 }
 0x2d4   :  { %v9627_v42 = vmul.f32 %v2932_v53, %v9215_v15  ;;  %v2947_v18 = vsel %vm9560_vm9, %v2946_v55, %v2942_v6  ;;  %v2967_v41 = vmul.f32 %v9541_v11, %v2966_v28  ;;  %v9632_v33 = vor.u32 1.1754944e-38, %v2990_v7  ;;  %v140_v7 = vld [vmem:[#allocation2 + $0x138] sm:$0xff] }
 0x2d5   :  { %vm9634_vm13 = vcmp.eq.f32.partialorder %v2958_v37, 8.507059e+37  ;;  %v2982_v51 = vmul.f32 %v9545_v36, %v2981_v4  ;;  %v2996_v23 = vsub.f32 1.0, %v2995_v22  ;;  %v3010_v35 = vmul.f32 %v9609_v57, %v9539_v8  ;;  %229 = vadd.xlane.f32.xlu1 %v140_v7  ;;  %v1646_v7 = vpop.f32.mrf.mxu1 }
 0x2d6   :  { %18402 = vst [vmem:[#allocation35_spill] sm:$0xff] %v9627_v42  ;;  %v9642_v15 = vsub.f32 %v9112_v10, %v293_v50  ;;  %vm9644_vm14 = vcmp.eq.f32.partialorder %v2973_v62, 8.507059e+37  ;;  %7640 = vrcp.f32 %v9613_v27  ;;  %v7138_v55 = vmul.f32 -1.442695, %v9616_v38 }
 0x2d7   :  { %v9651_v37 = vadd.f32 %v1512_v44, %v9142_v25  ;;  %v9654_v28 = vsub.f32 %v9121_v24, %v291_v9  ;;  %v2953_v53 = vadd.f32 %v9515_v1, %v2952_v47  ;;  %vm9657_vm15 = vcmp.eq.f32.partialorder %v2988_v3, 8.507059e+37  ;;  %v18411_v47 = vld [vmem:[#allocation23_spill] sm:$0xff] }
 0x2d8   :  { %18405 = vst [vmem:[#allocation36_spill] sm:$0xff] %v9642_v15  ;;  %v3005_v62 = vand.u32 2147483648, %v9507_v30  ;;  %v7139_v6 = vmul.f32 -1.442695, %v9621_v61  ;;  %v393_v4 = vmul.f32 %v9642_v15, %v9642_v15  ;;  %v9665_v22 = vpop.eup %7636  ;;  %v2968_v24 = vadd.f32 %v9541_v11, %v2967_v41 }
 0x2d9   :  { %18408 = vst [vmem:[#allocation37_spill] sm:$0xff] %v9654_v28  ;;  %vm2970_vm0 = vweird.f32 %v9541_v11  ;;  %vm2999_vm1 = vweird.f32 %v9507_v30  ;;  %v3003_v3 = vand.u32 2147483647, %v9507_v30  ;;  %v9671_v56 = vpop.eup %7638  ;;  %v9674_v44 = vmul.f32 %v2947_v18, %v18411_v47 }
 0x2da   :  { %v2983_v50 = vadd.f32 %v9545_v36, %v2982_v51  ;;  %vm2985_vm2 = vweird.f32 %v9545_v36  ;;  %v3011_v9 = vsub.f32 1.0, %v3010_v35  ;;  %478 = vadd.xlane.f32.xlu0 %v393_v4  ;;  %v2997_v39 = vmul.f32 %v9577_v63, %v2996_v23  ;;  %vm9699_vm4 = vmor %vm2969_vm8, %vm2970_vm0 }
 0x2db   :  { %18412 = vst [vmem:[#allocation23_spill] sm:$0xff] %v9674_v44  ;;  %7642 = vpow2.f32 %v7138_v55  ;;  %v7140_v18 = vmul.f32 -1.442695, %v9651_v37  ;;  %v391_v51 = vmul.f32 %v9654_v28, %v9654_v28  ;;  %v2957_v4 = vsel %vm9682_vm3, %v9515_v1, %v2953_v53  ;;  %v1780_v55 = vpop.f32.mrf.mxu2  ;;  %vm9712_vm9 = vmor %vm2984_vm12, %vm2985_vm2 }
 0x2dc   :  { %v3006_v23 = vor.u32 1.1754944e-38, %v3005_v62  ;;  %7644 = vpow2.f32 %v7139_v6  ;;  %v9703_v47 = vpop.eup %7640  ;;  %v2972_v35 = vsel %vm9699_vm4, %v9541_v11, %v2968_v24  ;;  %vm9716_vm5 = vcmp.eq.f32.partialorder %v3003_v3, 8.507059e+37 }
 0x2dd   :  { %v9721_v53 = vadd.f32 %v1646_v7, %v9147_v14  ;;  %v849_v62 = vmul.f32 %v9671_v56, %v9590_v5  ;;  %v859_v11 = vmul.f32 %v9665_v22, %v9583_v16  ;;  %474 = vadd.xlane.f32.xlu2 %v391_v51  ;;  %v2987_v6 = vsel %vm9712_vm9, %v9545_v36, %v2983_v50 }
 0x2de   :  { %vm3000_vm6 = vweird.f32 %v9577_v63  ;;  %v3012_v24 = vmul.f32 %v9609_v57, %v3011_v9  ;;  %v2962_v3 = vsel %vm9634_vm13, %v9585_v43, %v2957_v4  ;;  %v2998_v7 = vadd.f32 %v9577_v63, %v2997_v39  ;;  %v1914_v9 = vpop.f32.mrf.mxu3 }
 0x2df   :  { %7646 = vpow2.f32 %v7140_v18  ;;  %v9739_v41 = vadd.f32 %v1780_v55, %v9155_v48  ;;  %v2977_v51 = vsel %vm9644_vm14, %v9588_v45, %v2972_v35  ;;  %vm3014_vm7 = vweird.f32 %v9539_v8  ;;  %v18421_v35 = vld [vmem:[#allocation24_spill] sm:$0xff]  ;;  %vm9761_vm10 = vmor %vm2999_vm1, %vm3000_vm6  ;;  %v18425_v55 = vld [vmem:[#allocation26_spill] sm:$0xff] }
 0x2e0   :  { %v3018_v36 = vand.u32 2147483647, %v9539_v8  ;;  %v3025_v50 = vmul.f32 %v9703_v47, %v9613_v27  ;;  %v2992_v39 = vsel %vm9657_vm15, %v9632_v33, %v2987_v6  ;;  %v7141_v43 = vmul.f32 -1.442695, %v9721_v53  ;;  %v18427_v6 = vld [vmem:[#allocation27_spill] sm:$0xff] }
 0x2e1   :  { %v7643_v17 = vpop.eup %7642  ;;  %v850_v18 = vmul.f32 %v9671_v56, %v849_v62  ;;  %v860_v20 = vmul.f32 %v9665_v22, %v859_v11  ;;  %v9755_v4 = vmul.f32 %v2962_v3, %v18421_v35  ;;  %v3013_v33 = vadd.f32 %v9609_v57, %v3012_v24 }
 0x2e2   :  { %v7645_v45 = vpop.eup %7644  ;;  %vm3015_vm11 = vweird.f32 %v9609_v57  ;;  %v3020_v10 = vand.u32 2147483648, %v9539_v8  ;;  %v9769_v1 = vmul.f32 %v2977_v51, %v18425_v55  ;;  %v3002_v62 = vsel %vm9761_vm10, %v9577_v63, %v2998_v7  ;;  %v1514_v51 = vpop.f32.mrf.mxu0 }
 0x2e3   :  { %18422 = vst [vmem:[#allocation24_spill] sm:$0xff] %v9755_v4  ;;  %v7142_v11 = vmul.f32 -1.442695, %v9739_v41  ;;  %v9776_v30 = vadd.f32 %v1914_v9, %v9160_v31  ;;  %v9779_v3 = vmul.f32 %v2992_v39, %v18427_v6  ;;  %vm9781_vm8 = vcmp.eq.f32.partialorder %v3018_v36, 8.507059e+37  ;;  %v224_v55 = vpop.xlane.xlu2 %223  ;;  %vm9789_vm12 = vmor %vm3014_vm7, %vm3015_vm11  ;;  %v9795_v39 = vpop.xlane.xlu0 %466 }
 0x2e4   :  { %18426 = vst [vmem:[#allocation26_spill] sm:$0xff] %v9769_v1  ;;  %v3026_v35 = vsub.f32 1.0, %v3025_v50  ;;  %v9785_v59 = vadd.f32 1.0, %v7643_v17  ;;  %v9793_v7 = vadd.f32 1.0, %v7645_v45  ;;  %7648 = vpow2.f32 %v7141_v43 }
 0x2e5   :  { %18428 = vst [vmem:[#allocation27_spill] sm:$0xff] %v9779_v3  ;;  %v7647_v34 = vpop.eup %7646  ;;  %v851_v9 = vmul.f32 0.5, %v850_v18  ;;  %v861_v36 = vmul.f32 0.5, %v860_v20  ;;  %v3007_v50 = vsel %vm9716_vm5, %v3006_v23, %v3002_v62  ;;  %v3017_v17 = vsel %vm9789_vm12, %v9609_v57, %v3013_v33  ;;  %v1648_v18 = vpop.f32.mrf.mxu1 }
 0x2e6   :  { %v3033_v8 = vand.u32 2147483647, %v9613_v27  ;;  %v3035_v0 = vand.u32 2147483648, %v9613_v27  ;;  %7650 = vpow2.f32 %v7142_v11  ;;  %v7143_v45 = vmul.f32 -1.442695, %v9776_v30  ;;  %v1782_v57 = vpop.f32.mrf.mxu2 }
 0x2e7   :  { %v9806_v43 = vadd.f32 %v1514_v51, %v9142_v25  ;;  %v294_v20 = vmul.f32 %v8685_v13, %v224_v55  ;;  %v3021_v6 = vor.u32 1.1754944e-38, %v3020_v10  ;;  %v3027_v23 = vmul.f32 %v9703_v47, %v3026_v35 }
 0x2e8   :  { %7652 = vrcp.f32 %v9785_v59  ;;  %v9811_v46 = vadd.f32 1.0, %v7647_v34  ;;  %vm3029_vm13 = vweird.f32 %v9613_v27  ;;  %v852_v33 = vsub.f32 1.5, %v851_v9  ;;  %v1916_v9 = vpop.f32.mrf.mxu3  ;;  %v18445_v27 = vld [vmem:[#allocation16_spill] sm:$0xff] }
 0x2e9   :  { %7654 = vrcp.f32 %v9793_v7  ;;  %v862_v62 = vsub.f32 1.5, %v861_v36  ;;  %v9816_v11 = vmul.f32 %v3007_v50, %v9321_v52  ;;  %v3022_v51 = vsel %vm9781_vm8, %v3021_v6, %v3017_v17  ;;  %v8436_v52 = vld [vmem:[#allocation2 + $0x120] sm:$0xff]  ;;  %v220_v17 = vpop.xlane.xlu1 %219 }
 0x2ea   :  { %v3036_v10 = vor.u32 1.1754944e-38, %v3035_v0  ;;  %v9821_v35 = vadd.f32 %v1648_v18, %v9147_v14  ;;  %v7649_v55 = vpop.eup %7648  ;;  %vm3030_vm14 = vweird.f32 %v9703_v47  ;;  %vm9824_vm15 = vcmp.eq.f32.partialorder %v3033_v8, 8.507059e+37 }
 0x2eb   :  { %18433 = vst [vmem:[#allocation38_spill] sm:$0xff] %v9816_v11  ;;  %7656 = vpow2.f32 %v7143_v45  ;;  %v7144_v63 = vmul.f32 -1.442695, %v9806_v43  ;;  %v9829_v36 = vsub.f32 %v8436_v52, %v294_v20  ;;  %v3028_v24 = vadd.f32 %v9703_v47, %v3027_v23  ;;  %vm9851_vm2 = vmor %vm3029_vm13, %vm3030_vm14  ;;  %v18446_v52 = vld [vmem:[#allocation18_spill] sm:$0xff] }
 0x2ec   :  { %7658 = vrcp.f32 %v9811_v46  ;;  %v9834_v50 = vadd.f32 %v1782_v57, %v9155_v48  ;;  %vm865_vm0 = vweird.f32 %v9665_v22  ;;  %v7651_v8 = vpop.eup %7650  ;;  %v853_v0 = vmul.f32 %v9671_v56, %v852_v33 }
 0x2ed   :  { %18436 = vst [vmem:[#allocation39_spill] sm:$0xff] %v9829_v36  ;;  %vm855_vm1 = vweird.f32 %v9671_v56  ;;  %v863_v45 = vmul.f32 %v9665_v22, %v862_v62  ;;  %v534_v18 = vmul.f32 %v9528_v21, %v8685_v13  ;;  %v9845_v6 = vmul.f32 %v3022_v51, %v9361_v49  ;;  %v9873_v51 = vpop.xlane.xlu0 %468 }
 0x2ee   :  { %v9842_v20 = vpop.eup %7652  ;;  %v9855_v57 = vadd.f32 1.0, %v7649_v55  ;;  %v9858_v33 = vadd.f32 %v1916_v9, %v9160_v31  ;;  %vm864_vm3 = vweird.f32 %v9583_v16  ;;  %vm854_vm4 = vweird.f32 %v9590_v5  ;;  %v141_v55 = vld [vmem:[#allocation2 + $0x140] sm:$0xff] }
 0x2ef   :  { %18437 = vst [vmem:[#allocation40_spill] sm:$0xff] %v9845_v6  ;;  %v9861_v21 = vpop.eup %7654  ;;  %v535_v49 = vmul.f32 %v9448_v32, %v8685_v13  ;;  %vm9868_vm9 = vmor %vm864_vm3, %vm865_vm0  ;;  %v292_v62 = vmul.f32 %v8685_v13, %v220_v17  ;;  %v394_v16 = vmul.f32 %v9829_v36, %v9829_v36  ;;  %v3032_v5 = vsel %vm9851_vm2, %v9703_v47, %v3028_v24 }
 0x2f0   :  { %7660 = vpow2.f32 %v7144_v63  ;;  %v7145_v32 = vmul.f32 -1.442695, %v9821_v35  ;;  %v9882_v9 = vmul.f32 -1.442695, %v9834_v50  ;;  %vm9886_vm5 = vmor %vm854_vm4, %vm855_vm1  ;;  %231 = vadd.xlane.f32.xlu1 %v141_v55  ;;  %v3040_v44 = vmul.f32 %v9842_v20, %v9785_v59 }
 0x2f1   :  { %v7657_v17 = vpop.eup %7656  ;;  %v857_v47 = vsel %vm9886_vm5, %v9671_v56, %v853_v0  ;;  %v867_v63 = vsel %vm9868_vm9, %v9665_v22, %v863_v45  ;;  %v9898_v24 = vadd.f32 1e-05, %v534_v18  ;;  %480 = vadd.xlane.f32.xlu0 %v394_v16  ;;  %v3048_v19 = vand.u32 2147483647, %v9785_v59  ;;  %v8437_v22 = vld [vmem:[#allocation2 + $0x110] sm:$0xff] }
 0x2f2   :  { %v9900_v23 = vpop.eup %7658  ;;  %v3055_v55 = vmul.f32 %v9861_v21, %v9793_v7  ;;  %v9905_v42 = vadd.f32 1.0, %v7651_v8  ;;  %v7147_v54 = vmul.f32 -1.442695, %v9858_v33  ;;  %v3050_v56 = vand.u32 2147483648, %v9785_v59 }
 0x2f3   :  { %7662 = vrcp.f32 %v9855_v57  ;;  %v9910_v0 = vadd.f32 1e-05, %v535_v49  ;;  %v9912_v45 = vsub.f32 %v8437_v22, %v292_v62  ;;  %v3037_v18 = vsel %vm9824_vm15, %v3036_v10, %v3032_v5 }
 0x2f4   :  { %7664 = vpow2.f32 %v7145_v32  ;;  %v1132_v16 = vmul.f32 %v857_v47, %v18445_v27  ;;  %v1133_v8 = vmul.f32 %v867_v63, %v18446_v52  ;;  %v3041_v60 = vsub.f32 1.0, %v3040_v44  ;;  %v144_v32 = vld [vmem:[#allocation2 + $0x158] sm:$0xff] }
 0x2f5   :  { %18444 = vst [vmem:[#allocation41_spill] sm:$0xff] %v9912_v45  ;;  %v3065_v26 = vand.u32 2147483648, %v9793_v7  ;;  %v3070_v36 = vmul.f32 %v9900_v23, %v9811_v46  ;;  %7666 = vrsqrt.f32 %v9898_v24  ;;  %v3056_v15 = vsub.f32 1.0, %v3055_v55 }
 0x2f6   :  { %v7661_v49 = vpop.eup %7660  ;;  %v3063_v62 = vand.u32 2147483647, %v9793_v7  ;;  %7668 = vrcp.f32 %v9905_v42  ;;  %v9924_v10 = vadd.f32 1.0, %v7657_v17  ;;  %vm3044_vm6 = vweird.f32 %v9785_v59 }
 0x2f7   :  { %v3080_v34 = vand.u32 2147483648, %v9811_v46  ;;  %v3095_v44 = vand.u32 2147483648, %v9855_v57  ;;  %7670 = vrsqrt.f32 %v9910_v0  ;;  %v392_v5 = vmul.f32 %v9912_v45, %v9912_v45 }
 0x2f8   :  { %v9933_v47 = vmul.f32 %v3037_v18, %v9492_v58  ;;  %v9935_v63 = vor.u32 1.1754944e-38, %v3050_v56  ;;  %vm3059_vm7 = vweird.f32 %v9793_v7  ;;  %v1186_v17 = vmul.f32 %v9157_v2, %v1132_v16  ;;  %v226_v58 = vpop.xlane.xlu0 %225 }
 0x2f9   :  { %v1187_v55 = vmul.f32 %v9157_v2, %v1133_v8  ;;  %v9940_v22 = vpop.eup %7662  ;;  %v3042_v27 = vmul.f32 %v9842_v20, %v3041_v60  ;;  %v9943_v52 = vor.u32 1.1754944e-38, %v3065_v26  ;;  %v3071_v11 = vsub.f32 1.0, %v3070_v36  ;;  %476 = vadd.xlane.f32.xlu2 %v392_v5  ;;  %237 = vadd.xlane.f32.xlu0 %v144_v32 }
 0x2fa   :  { %18447 = vst [vmem:[#allocation16_spill] sm:$0xff] %v9933_v47  ;;  %v3078_v45 = vand.u32 2147483647, %v9811_v46  ;;  %v7665_v56 = vpop.eup %7664  ;;  %v3057_v18 = vmul.f32 %v9861_v21, %v3056_v15  ;;  %7672 = vrcp.f32 %v9924_v10  ;;  %vm3045_vm10 = vweird.f32 %v9842_v20 }
 0x2fb   :  { %v1241_v2 = vadd.f32 %v9173_v40, %v1187_v55  ;;  %v9950_v16 = vpop.eup %7666  ;;  %vm3060_vm11 = vweird.f32 %v9861_v21  ;;  %vm3074_vm8 = vweird.f32 %v9811_v46  ;;  %v9955_v60 = vor.u32 1.1754944e-38, %v3080_v34  ;;  %v9975_v34 = vld [vmem:[%s18225_s2] ss:$0 sm:$0xff]  ;;  %vm10002_vm14 = vmor %vm3044_vm6, %vm3045_vm10 }
 0x2fc   :  { %v9957_v26 = vor.u32 1.1754944e-38, %v3095_v44  ;;  %v9959_v36 = vpop.eup %7668  ;;  %vm9961_vm12 = vcmp.eq.f32.partialorder %v3048_v19, 8.507059e+37  ;;  %vm9965_vm13 = vcmp.eq.f32.partialorder %v3063_v62, 8.507059e+37  ;;  %v3085_v8 = vmul.f32 %v9940_v22, %v9855_v57  ;;  %vm10023_vm0 = vmor %vm3059_vm7, %vm3060_vm11 }
 0x2fd   :  { %7674 = vpow2.f32 %v9882_v9  ;;  %v1240_v44 = vadd.f32 %v9975_v34, %v1186_v17  ;;  %v295_v19 = vmul.f32 %v8685_v13, %v226_v58  ;;  %v9979_v5 = vpop.eup %7670  ;;  %v3043_v62 = vadd.f32 %v9842_v20, %v3042_v27  ;;  %v142_v27 = vld [vmem:[#allocation2 + $0x148] sm:$0xff] }
 0x2fe   :  { %v3072_v32 = vmul.f32 %v9900_v23, %v3071_v11  ;;  %v3110_v55 = vand.u32 2147483648, %v9905_v42  ;;  %7676 = vpow2.f32 %v7147_v54  ;;  %v3058_v9 = vadd.f32 %v9861_v21, %v3057_v18  ;;  %v145_v54 = vld [vmem:[#allocation2 + $0x160] sm:$0xff] }
 0x2ff   :  { %v869_v47 = vmul.f32 %v9950_v16, %v9898_v24  ;;  %v1278_v1 = vpack.c.bf16 %v1241_v2, %v1240_v44  ;;  %v3100_v17 = vmul.f32 %v9959_v36, %v9905_v42  ;;  %v9990_v58 = vadd.f32 1.0, %v7661_v49  ;;  %v8439_v44 = vld [vmem:[#allocation2 + $0x128] sm:$0xff] }
 0x300   :  { %v9992_v6 = vadd.f32 1.0, %v7665_v56  ;;  %v536_v11 = vmul.f32 %v9526_v29, %v8685_v13  ;;  %v9996_v4 = vpop.eup %7672  ;;  %vm10006_vm15 = vcmp.eq.f32.partialorder %v3078_v45, 8.507059e+37  ;;  %v3086_v56 = vsub.f32 1.0, %v3085_v8  ;;  %v1651_v45 = vpop.f32.mrf.mxu1 }
 0x301   :  { %v879_v29 = vmul.f32 %v9979_v5, %v9910_v0  ;;  %v537_v2 = vmul.f32 %v9795_v39, %v8685_v13  ;;  %1561 = vmatmul.bf16.gmra.mxu0 %v1278_v1  ;;  %1695 = vmatmul.bf16.gmra.mxu1 %v1278_v1  ;;  %v10014_v3 = vsub.f32 %v8439_v44, %v295_v19  ;;  %vm3075_vm1 = vweird.f32 %v9900_v23  ;;  %v1517_v44 = vpop.f32.mrf.mxu0 }
 0x302   :  { %v3047_v59 = vsel %vm10002_vm14, %v9842_v20, %v3043_v62  ;;  %v3073_v8 = vadd.f32 %v9900_v23, %v3072_v32  ;;  %v10029_v39 = vor.u32 1.1754944e-38, %v3110_v55  ;;  %1829 = vmatmul.bf16.gmra.mxu2 %v1278_v1  ;;  %1963 = vmatmul.bf16.gmra.mxu3 %v1278_v1  ;;  %v3062_v20 = vsel %vm10023_vm0, %v9861_v21, %v3058_v9  ;;  %vm10048_vm4 = vmor %vm3074_vm8, %vm3075_vm1 }
 0x303   :  { %18456 = vst [vmem:[#allocation18_spill] sm:$0xff] %v10014_v3  ;;  %v7675_v19 = vpop.eup %7674  ;;  %vm3089_vm2 = vweird.f32 %v9855_v57  ;;  %vm3090_vm3 = vweird.f32 %v9940_v22  ;;  %v870_v7 = vmul.f32 %v9950_v16, %v869_v47  ;;  %233 = vadd.xlane.f32.xlu2 %v142_v27  ;;  %v395_v62 = vmul.f32 %v10014_v3, %v10014_v3  ;;  %239 = vadd.xlane.f32.xlu0 %v145_v54 }
 0x304   :  { %v7677_v32 = vpop.eup %7676  ;;  %v3101_v55 = vsub.f32 1.0, %v3100_v17  ;;  %v3115_v1 = vmul.f32 %v9996_v4, %v9924_v10  ;;  %v3123_v18 = vand.u32 2147483647, %v9924_v10  ;;  %v10042_v21 = vadd.f32 1e-05, %v536_v11  ;;  %vm10115_vm11 = vmor %vm3089_vm2, %vm3090_vm3 }
 0x305   :  { %v3087_v9 = vmul.f32 %v9940_v22, %v3086_v56  ;;  %7678 = vrcp.f32 %v9990_v58  ;;  %v880_v17 = vmul.f32 %v9979_v5, %v879_v29  ;;  %v10055_v27 = vadd.f32 1e-05, %v537_v2  ;;  %482 = vadd.xlane.f32.xlu1 %v395_v62 }
 0x306   :  { %v3052_v11 = vsel %vm9961_vm12, %v9935_v63, %v3047_v59  ;;  %v3067_v46 = vsel %vm9965_vm13, %v9943_v52, %v3062_v20  ;;  %v3077_v54 = vsel %vm10048_vm4, %v9900_v23, %v3073_v8  ;;  %vm3104_vm9 = vweird.f32 %v9905_v42  ;;  %v143_v8 = vld [vmem:[#allocation2 + $0x150] sm:$0xff] }
 0x307   :  { %v10067_v56 = vadd.f32 1.0, %v7675_v19  ;;  %v18461_v29 = vand.u32 2147483647, %v9855_v57  ;;  %7680 = vrcp.f32 %v9992_v6  ;;  %v10076_v63 = vadd.f32 1.0, %v7677_v32 }
 0x308   :  { %v10079_v52 = vadd.f32 %v1517_v44, %v9142_v25  ;;  %v871_v15 = vmul.f32 0.5, %v870_v7  ;;  %v3102_v23 = vmul.f32 %v9959_v36, %v3101_v55  ;;  %v3116_v40 = vsub.f32 1.0, %v3115_v1 }
 0x309   :  { %vm10071_vm5 = vcmp.eq.f32.partialorder %v18461_v29, 8.507059e+37  ;;  %v3125_v59 = vand.u32 2147483648, %v9924_v10  ;;  %7682 = vrsqrt.f32 %v10042_v21  ;;  %v10085_v19 = vmul.f32 %v3052_v11, %v9616_v38 }
 0x30a   :  { %v3088_v20 = vadd.f32 %v9940_v22, %v3087_v9  ;;  %v881_v62 = vmul.f32 0.5, %v880_v17  ;;  %7684 = vrsqrt.f32 %v10055_v27  ;;  %v10090_v32 = vmul.f32 %v3067_v46, %v9621_v61 }
 0x30b   :  { %18464 = vst [vmem:[#allocation42_spill] sm:$0xff] %v10085_v19  ;;  %v3082_v7 = vsel %vm10006_vm15, %v9955_v60, %v3077_v54  ;;  %vm3105_vm6 = vweird.f32 %v9959_v36  ;;  %vm3119_vm7 = vweird.f32 %v9924_v10  ;;  %7686 = vrcp.f32 %v10067_v56  ;;  %v10098_v38 = vpop.eup %7678  ;;  %235 = vadd.xlane.f32.xlu2 %v143_v8 }
 0x30c   :  { %18465 = vst [vmem:[#allocation43_spill] sm:$0xff] %v10090_v32  ;;  %v18466_v55 = vand.u32 2147483647, %v9905_v42  ;;  %7688 = vrcp.f32 %v10076_v63  ;;  %v7148_v61 = vmul.f32 -1.442695, %v10079_v52  ;;  %v10109_v60 = vadd.f32 %v1651_v45, %v9147_v14  ;;  %vm10146_vm14 = vmor %vm3104_vm9, %vm3105_vm6 }
 0x30d   :  { %v872_v49 = vsub.f32 1.5, %v871_v15  ;;  %v3103_v47 = vadd.f32 %v9959_v36, %v3102_v23  ;;  %v3117_v9 = vmul.f32 %v9996_v4, %v3116_v40  ;;  %v10121_v17 = vor.u32 1.1754944e-38, %v3125_v59  ;;  %v10124_v46 = vpop.eup %7680  ;;  %v1785_v59 = vpop.f32.mrf.mxu2 }
 0x30e   :  { %vm10102_vm10 = vcmp.eq.f32.partialorder %v18466_v55, 8.507059e+37  ;;  %v3140_v11 = vand.u32 2147483648, %v9990_v58  ;;  %v3092_v54 = vsel %vm10115_vm11, %v9940_v22, %v3088_v20  ;;  %vm3120_vm8 = vweird.f32 %v9996_v4  ;;  %v1919_v20 = vpop.f32.mrf.mxu3 }
 0x30f   :  { %v882_v29 = vsub.f32 1.5, %v881_v62  ;;  %v10131_v15 = vpop.eup %7682  ;;  %v10134_v23 = vmul.f32 %v3082_v7, %v9651_v37  ;;  %v3130_v40 = vmul.f32 %v10098_v38, %v9990_v58  ;;  %vm884_vm12 = vweird.f32 %v9910_v0  ;;  %vm10203_vm4 = vmor %vm3119_vm7, %vm3120_vm8  ;;  %v10257_v37 = vld [vmem:[#allocation5] ss:$0 sm:$0xff] }
 0x310   :  { %vm885_vm13 = vweird.f32 %v9979_v5  ;;  %v10140_v45 = vpop.eup %7684  ;;  %vm10150_vm15 = vcmp.eq.f32.partialorder %v3123_v18, 8.507059e+37  ;;  %7690 = vpow2.f32 %v7148_v61  ;;  %v7149_v8 = vmul.f32 -1.442695, %v10109_v60 }
 0x311   :  { %18471 = vst [vmem:[#allocation44_spill] sm:$0xff] %v10134_v23  ;;  %v873_v62 = vmul.f32 %v9950_v16, %v872_v49  ;;  %vm875_vm0 = vweird.f32 %v9950_v16  ;;  %v10157_v7 = vpop.eup %7686  ;;  %v10162_v42 = vsel %vm10071_vm5, %v9957_v26, %v3092_v54  ;;  %v3107_v18 = vsel %vm10146_vm14, %v9959_v36, %v3103_v47  ;;  %vm10180_vm1 = vmor %vm884_vm12, %vm885_vm13 }
 0x312   :  { %v3118_v55 = vadd.f32 %v9996_v4, %v3117_v9  ;;  %v10168_v61 = vor.u32 1.1754944e-38, %v3140_v11  ;;  %v10170_v44 = vpop.eup %7688  ;;  %v10173_v49 = vadd.f32 %v1785_v59, %v9155_v48  ;;  %v883_v57 = vmul.f32 %v9979_v5, %v882_v29  ;;  %v1519_v11 = vpop.f32.mrf.mxu0 }
 0x313   :  { %v889_v36 = vmul.f32 %v10131_v15, %v10042_v21  ;;  %vm874_vm2 = vweird.f32 %v9898_v24  ;;  %v3131_v2 = vsub.f32 1.0, %v3130_v40  ;;  %v3155_v47 = vand.u32 2147483648, %v9992_v6 }
 0x314   :  { %v10189_v9 = vadd.f32 %v1919_v20, %v9160_v31  ;;  %vm10193_vm3 = vmor %vm874_vm2, %vm875_vm0  ;;  %v899_v54 = vmul.f32 %v10140_v45, %v10055_v27  ;;  %v3145_v29 = vmul.f32 %v10124_v46, %v9992_v6  ;;  %v3160_v40 = vmul.f32 %v10157_v7, %v10067_v56 }
 0x315   :  { %7692 = vpow2.f32 %v7149_v8  ;;  %v877_v59 = vsel %vm10193_vm3, %v9950_v16, %v873_v62  ;;  %v10217_v22 = vsel %vm10102_vm10, %v10029_v39, %v3107_v18  ;;  %v3122_v10 = vsel %vm10203_vm4, %v9996_v4, %v3118_v55  ;;  %v1653_v18 = vpop.f32.mrf.mxu1  ;;  %v18482_v55 = vld [vmem:[#allocation20_spill] sm:$0xff] }
 0x316   :  { %vm3135_vm9 = vweird.f32 %v10098_v38  ;;  %v3153_v20 = vand.u32 2147483647, %v9992_v6  ;;  %v3175_v8 = vmul.f32 %v10170_v44, %v10076_v63  ;;  %v7691_v3 = vpop.eup %7690  ;;  %v7150_v0 = vmul.f32 -1.442695, %v10173_v49 }
 0x317   :  { %v10228_v16 = vadd.f32 %v1519_v11, %v9142_v25  ;;  %v887_v39 = vsel %vm10180_vm1, %v9979_v5, %v883_v57  ;;  %v890_v1 = vmul.f32 %v10131_v15, %v889_v36  ;;  %v3132_v4 = vmul.f32 %v10098_v38, %v3131_v2  ;;  %v228_v57 = vpop.xlane.xlu0 %227 }
 0x318   :  { %vm3134_vm5 = vweird.f32 %v9990_v58  ;;  %v7151_v62 = vmul.f32 -1.442695, %v10189_v9  ;;  %v1134_v24 = vmul.f32 %v877_v59, %v18482_v55  ;;  %v900_v23 = vmul.f32 %v10140_v45, %v899_v54  ;;  %v18483_v54 = vld [vmem:[#allocation17_spill] sm:$0xff] }
 0x319   :  { %v3146_v32 = vsub.f32 1.0, %v3145_v29  ;;  %vm3149_vm6 = vweird.f32 %v9992_v6  ;;  %v10240_v11 = vor.u32 1.1754944e-38, %v3155_v47  ;;  %v3161_v26 = vsub.f32 1.0, %v3160_v40  ;;  %vm10287_vm12 = vmor %vm3134_vm5, %vm3135_vm9 }
 0x31a   :  { %v3168_v5 = vand.u32 2147483647, %v10067_v56  ;;  %v10246_v36 = vsel %vm10150_vm15, %v10121_v17, %v3122_v10  ;;  %vm3164_vm7 = vweird.f32 %v10067_v56  ;;  %v3176_v2 = vsub.f32 1.0, %v3175_v8 }
 0x31b   :  { %v10249_v59 = vadd.f32 1.0, %v7691_v3  ;;  %v1135_v29 = vmul.f32 %v887_v39, %v18483_v54  ;;  %v7693_v55 = vpop.eup %7692  ;;  %7694 = vpow2.f32 %v7150_v0  ;;  %v7152_v47 = vmul.f32 -1.442695, %v10228_v16 }
 0x31c   :  { %v10254_v40 = vadd.f32 %v1653_v18, %v9147_v14  ;;  %v891_v19 = vmul.f32 0.5, %v890_v1  ;;  %7696 = vpow2.f32 %v7151_v62  ;;  %v901_v28 = vmul.f32 0.5, %v900_v23 }
 0x31d   :  { %v296_v17 = vmul.f32 %v8685_v13, %v228_v57  ;;  %v1188_v10 = vmul.f32 %v10257_v37, %v1134_v24  ;;  %v10261_v3 = vadd.f32 %v10098_v38, %v3132_v4  ;;  %v3147_v8 = vmul.f32 %v10124_v46, %v3146_v32  ;;  %v8441_v57 = vld [vmem:[#allocation2 + $0x130] sm:$0xff] }
 0x31e   :  { %v3162_v0 = vmul.f32 %v10157_v7, %v3161_v26  ;;  %v3170_v39 = vand.u32 2147483648, %v10067_v56  ;;  %vm3150_vm10 = vweird.f32 %v10124_v46  ;;  %7698 = vrcp.f32 %v10249_v59 }
 0x31f   :  { %v10268_v23 = vadd.f32 1.0, %v7693_v55  ;;  %v1189_v1 = vmul.f32 %v10257_v37, %v1135_v29  ;;  %v3177_v62 = vmul.f32 %v10170_v44, %v3176_v2  ;;  %7700 = vpow2.f32 %v7152_v47  ;;  %vm10303_vm0 = vmor %vm3149_vm6, %vm3150_vm10 }
 0x320   :  { %v7153_v4 = vmul.f32 -1.442695, %v10254_v40  ;;  %v892_v18 = vsub.f32 1.5, %v891_v19  ;;  %v18484_v32 = vand.u32 2147483647, %v9990_v58  ;;  %vm3165_vm8 = vweird.f32 %v10157_v7 }
 0x321   :  { %v902_v26 = vsub.f32 1.5, %v901_v28  ;;  %v10280_v54 = vsub.f32 %v8441_v57, %v296_v17  ;;  %v1242_v29 = vadd.f32 %v9975_v34, %v1188_v10  ;;  %v7695_v55 = vpop.eup %7694  ;;  %v3148_v2 = vadd.f32 %v10124_v46, %v3147_v8  ;;  %vm10315_vm3 = vmor %vm3164_vm7, %vm3165_vm8 }
 0x322   :  { %vm10275_vm11 = vcmp.eq.f32.partialorder %v18484_v32, 8.507059e+37  ;;  %vm10292_vm13 = vcmp.eq.f32.partialorder %v3153_v20, 8.507059e+37  ;;  %v3163_v28 = vadd.f32 %v10157_v7, %v3162_v0  ;;  %vm894_vm14 = vweird.f32 %v10042_v21  ;;  %v7697_v17 = vpop.eup %7696 }
 0x323   :  { %18487 = vst [vmem:[#allocation20_spill] sm:$0xff] %v10280_v54  ;;  %vm895_vm15 = vweird.f32 %v10131_v15  ;;  %7702 = vrcp.f32 %v10268_v23  ;;  %vm904_vm1 = vweird.f32 %v10055_v27  ;;  %vm905_vm2 = vweird.f32 %v10140_v45 }
 0x324   :  { %v1243_v20 = vadd.f32 %v9975_v34, %v1189_v1  ;;  %v3178_v6 = vadd.f32 %v10170_v44, %v3177_v62  ;;  %vm3180_vm4 = vweird.f32 %v10170_v44  ;;  %7704 = vpow2.f32 %v7153_v4  ;;  %v10322_v0 = vpop.eup %7698  ;;  %v1787_v1 = vpop.f32.mrf.mxu2  ;;  %vm10330_vm9 = vmor %vm894_vm14, %vm895_vm15 }
 0x325   :  { %v893_v8 = vmul.f32 %v10131_v15, %v892_v18  ;;  %v10324_v32 = vadd.f32 1.0, %v7695_v55  ;;  %v903_v62 = vmul.f32 %v10140_v45, %v902_v26  ;;  %v396_v4 = vmul.f32 %v10280_v54, %v10280_v54  ;;  %v7701_v18 = vpop.eup %7700  ;;  %vm10349_vm7 = vmor %vm904_vm1, %vm905_vm2  ;;  %v1921_v54 = vpop.f32.mrf.mxu3  ;;  %v146_v26 = vld [vmem:[#allocation2 + $0x168] sm:$0xff] }
 0x326   :  { %v1279_v57 = vpack.c.bf16 %v1243_v20, %v1242_v29  ;;  %vm10337_vm5 = vcmp.eq.f32.partialorder %v3168_v5, 8.507059e+37  ;;  %vm3179_vm6 = vweird.f32 %v10076_v63  ;;  %v3185_v55 = vand.u32 2147483648, %v10076_v63 }
 0x327   :  { %v10343_v21 = vadd.f32 1.0, %v7697_v17  ;;  %v3137_v5 = vsel %vm10287_vm12, %v10098_v38, %v10261_v3  ;;  %v3152_v29 = vsel %vm10303_vm0, %v10124_v46, %v3148_v2  ;;  %v3167_v17 = vsel %vm10315_vm3, %v10157_v7, %v3163_v28  ;;  %vm10365_vm10 = vmor %vm3179_vm6, %vm3180_vm4  ;;  %v1522_v2 = vpop.f32.mrf.mxu0  ;;  %484 = vadd.xlane.f32.xlu1 %v396_v4 }
 0x328   :  { %v3183_v20 = vand.u32 2147483647, %v10076_v63  ;;  %1566 = vmatmul.bf16.gmra.mxu0 %v1279_v57  ;;  %1700 = vmatmul.bf16.gmra.mxu1 %v1279_v57  ;;  %v3171_v38 = vor.u32 1.1754944e-38, %v3170_v39  ;;  %v3182_v46 = vsel %vm10365_vm10, %v10170_v44, %v3178_v6  ;;  %v10374_v3 = vadd.f32 %v1787_v1, %v9155_v48 }
 0x329   :  { %v897_v7 = vsel %vm10330_vm9, %v10131_v15, %v893_v8  ;;  %1834 = vmatmul.bf16.gmra.mxu2 %v1279_v57  ;;  %1968 = vmatmul.bf16.gmra.mxu3 %v1279_v57  ;;  %v10379_v19 = vpop.eup %7702  ;;  %v3190_v63 = vmul.f32 %v10322_v0, %v10249_v59  ;;  %7706 = vrcp.f32 %v10324_v32  ;;  %v10384_v39 = vadd.f32 1.0, %v7701_v18 }
 0x32a   :  { %v907_v44 = vsel %vm10349_vm7, %v10140_v45, %v903_v62  ;;  %v7705_v28 = vpop.eup %7704  ;;  %v3142_v15 = vsel %vm10275_vm11, %v10168_v61, %v3137_v5  ;;  %v3186_v58 = vor.u32 1.1754944e-38, %v3185_v55  ;;  %7708 = vrcp.f32 %v10343_v21  ;;  %v18504_v45 = vld [vmem:[#allocation19_spill] sm:$0xff]  ;;  %v18505_v62 = vld [vmem:[#allocation21_spill] sm:$0xff] }
 0x32b   :  { %v10394_v10 = vadd.f32 %v1921_v54, %v9160_v31  ;;  %v3157_v6 = vsel %vm10292_vm13, %v10240_v11, %v3152_v29  ;;  %v3172_v8 = vsel %vm10337_vm5, %v3171_v38, %v3167_v17  ;;  %vm3184_vm8 = vcmp.eq.f32.partialorder %v3183_v20, 8.507059e+37 }
 0x32c   :  { %v1136_v1 = vmul.f32 %v897_v7, %v18504_v45  ;;  %v3187_v56 = vsel %vm3184_vm8, %v3186_v58, %v3182_v46  ;;  %v7154_v24 = vmul.f32 -1.442695, %v10374_v3  ;;  %v10404_v61 = vadd.f32 %v1522_v2, %v9142_v25  ;;  %v1790_v27 = vpop.f32.mrf.mxu2 }
 0x32d   :  { %v1137_v57 = vmul.f32 %v907_v44, %v18505_v62  ;;  %v3191_v54 = vsub.f32 1.0, %v3190_v63  ;;  %v3205_v4 = vmul.f32 %v10379_v19, %v10268_v23  ;;  %7710 = vrcp.f32 %v10384_v39 }
 0x32e   :  { %v10410_v11 = vadd.f32 1.0, %v7705_v28  ;;  %v10414_v12 = vmul.f32 %v10162_v42, %v9721_v53  ;;  %v10418_v47 = vmul.f32 %v10217_v22, %v9739_v41  ;;  %v10422_v18 = vmul.f32 %v10246_v36, %v9776_v30  ;;  %v1656_v41 = vpop.f32.mrf.mxu1 }
 0x32f   :  { %v7155_v55 = vmul.f32 -1.442695, %v10394_v10  ;;  %v10425_v5 = vpop.eup %7706  ;;  %v10428_v29 = vmul.f32 %v3142_v15, %v9806_v43  ;;  %v10431_v17 = vmul.f32 %v3157_v6, %v9821_v35  ;;  %v10434_v53 = vmul.f32 %v3172_v8, %v9834_v50  ;;  %241 = vadd.xlane.f32.xlu1 %v146_v26 }
 0x330   :  { %18506 = vst [vmem:[#allocation17_spill] sm:$0xff] %v10414_v12  ;;  %v1190_v42 = vmul.f32 %v10257_v37, %v1136_v1  ;;  %v10437_v22 = vpop.eup %7708  ;;  %v10440_v30 = vmul.f32 %v3187_v56, %v9858_v33  ;;  %7712 = vpow2.f32 %v7154_v24  ;;  %v7156_v36 = vmul.f32 -1.442695, %v10404_v61 }
 0x331   :  { %18507 = vst [vmem:[#allocation19_spill] sm:$0xff] %v10418_v47  ;;  %v1191_v43 = vmul.f32 %v10257_v37, %v1137_v57  ;;  %v3192_v35 = vmul.f32 %v10322_v0, %v3191_v54  ;;  %v3198_v20 = vand.u32 2147483647, %v10249_v59  ;;  %v3206_v50 = vsub.f32 1.0, %v3205_v4  ;;  %v147_v57 = vld [vmem:[#allocation2 + $0x170] sm:$0xff] }
 0x332   :  { %18508 = vst [vmem:[#allocation21_spill] sm:$0xff] %v10422_v18  ;;  %7714 = vrcp.f32 %v10410_v11  ;;  %v3220_v38 = vmul.f32 %v10425_v5, %v10324_v32  ;;  %v10450_v33 = vadd.f32 %v1656_v41, %v9147_v14  ;;  %v3200_v63 = vand.u32 2147483648, %v10249_v59 }
 0x333   :  { %18509 = vst [vmem:[#allocation45_spill] sm:$0xff] %v10428_v29  ;;  %7716 = vpow2.f32 %v7155_v55  ;;  %v1245_v46 = vadd.f32 %v9975_v34, %v1191_v43  ;;  %v10453_v7 = vpop.eup %7710  ;;  %v3235_v2 = vmul.f32 %v10437_v22, %v10343_v21  ;;  %v10459_v44 = vadd.f32 %v1790_v27, %v9155_v48 }
 0x334   :  { %18510 = vst [vmem:[#allocation46_spill] sm:$0xff] %v10431_v17  ;;  %v1244_v28 = vadd.f32 %v9975_v34, %v1190_v42  ;;  %vm3194_vm11 = vweird.f32 %v10249_v59  ;;  %v3213_v15 = vand.u32 2147483647, %v10268_v23  ;;  %v3215_v58 = vand.u32 2147483648, %v10268_v23 }
 0x335   :  { %18511 = vst [vmem:[#allocation47_spill] sm:$0xff] %v10434_v53  ;;  %7718 = vpow2.f32 %v7156_v36  ;;  %v3193_v6 = vadd.f32 %v10322_v0, %v3192_v35  ;;  %vm3195_vm12 = vweird.f32 %v10322_v0  ;;  %v3207_v8 = vmul.f32 %v10379_v19, %v3206_v50  ;;  %v1924_v50 = vpop.f32.mrf.mxu3 }
 0x336   :  { %18512 = vst [vmem:[#allocation48_spill] sm:$0xff] %v10440_v30  ;;  %v1280_v45 = vpack.c.bf16 %v1245_v46, %v1244_v28  ;;  %v7713_v1 = vpop.eup %7712  ;;  %vm10468_vm13 = vcmp.eq.f32.partialorder %v3198_v20, 8.507059e+37  ;;  %v3221_v34 = vsub.f32 1.0, %v3220_v38  ;;  %v3250_v24 = vmul.f32 %v10453_v7, %v10384_v39  ;;  %vm10483_vm15 = vmor %vm3194_vm11, %vm3195_vm12 }
 0x337   :  { %v7157_v62 = vmul.f32 -1.442695, %v10450_v33  ;;  %v3201_v4 = vor.u32 1.1754944e-38, %v3200_v63  ;;  %vm3209_vm14 = vweird.f32 %v10268_v23  ;;  %v3236_v55 = vsub.f32 1.0, %v3235_v2  ;;  %243 = vadd.xlane.f32.xlu1 %v147_v57 }
 0x338   :  { %v10475_v54 = vpop.eup %7714  ;;  %v7158_v26 = vmul.f32 -1.442695, %v10459_v44  ;;  %1571 = vmatmul.bf16.gmra.mxu0 %v1280_v45  ;;  %1705 = vmatmul.bf16.gmra.mxu1 %v1280_v45  ;;  %vm10487_vm0 = vcmp.eq.f32.partialorder %v3213_v15, 8.507059e+37  ;;  %v3216_v27 = vor.u32 1.1754944e-38, %v3215_v58  ;;  %vm3224_vm1 = vweird.f32 %v10324_v32 }
 0x339   :  { %v7717_v41 = vpop.eup %7716  ;;  %v3228_v43 = vand.u32 2147483647, %v10324_v32  ;;  %1839 = vmatmul.bf16.gmra.mxu2 %v1280_v45  ;;  %1973 = vmatmul.bf16.gmra.mxu3 %v1280_v45  ;;  %v3197_v35 = vsel %vm10483_vm15, %v10322_v0, %v3193_v6  ;;  %v3208_v59 = vadd.f32 %v10379_v19, %v3207_v8  ;;  %vm3210_vm2 = vweird.f32 %v10379_v19 }
 0x33a   :  { %v3230_v20 = vand.u32 2147483648, %v10324_v32  ;;  %v3222_v46 = vmul.f32 %v10425_v5, %v3221_v34  ;;  %v3251_v63 = vsub.f32 1.0, %v3250_v24  ;;  %v10500_v2 = vadd.f32 1.0, %v7713_v1  ;;  %vm10522_vm4 = vmor %vm3209_vm14, %vm3210_vm2 }
 0x33b   :  { %v7719_v38 = vpop.eup %7718  ;;  %7720 = vpow2.f32 %v7157_v62  ;;  %v3237_v28 = vmul.f32 %v10437_v22, %v3236_v55  ;;  %v3265_v0 = vmul.f32 %v10475_v54, %v10410_v11  ;;  %v10505_v15 = vadd.f32 1.0, %v7717_v41  ;;  %v7491_v41 = vld [vmem:[#allocation10 + $0x38] sm:$0xff] }
 0x33c   :  { %7722 = vpow2.f32 %v7158_v26  ;;  %vm10507_vm3 = vcmp.eq.f32.partialorder %v3228_v43, 8.507059e+37  ;;  %v3243_v6 = vand.u32 2147483647, %v10343_v21  ;;  %v3245_v8 = vand.u32 2147483648, %v10343_v21  ;;  %v7507_v26 = vld [vmem:[#allocation10 + $0xb8] sm:$0xff]  ;;  %6389 = vmatpush.bf16.msrb.mxu0 %v7491_v41 }
 0x33d   :  { %v10514_v45 = vadd.f32 %v1924_v50, %v9160_v31  ;;  %v3202_v1 = vsel %vm10468_vm13, %v3201_v4, %v3197_v35  ;;  %vm3225_vm9 = vweird.f32 %v10425_v5  ;;  %v3231_v24 = vor.u32 1.1754944e-38, %v3230_v20  ;;  %6657 = vmatpush.bf16.msrb.mxu2 %v7507_v26 }
 0x33e   :  { %v10527_v62 = vadd.f32 1.0, %v7719_v38  ;;  %v3212_v57 = vsel %vm10522_vm4, %v10379_v19, %v3208_v59  ;;  %v3223_v56 = vadd.f32 %v10425_v5, %v3222_v46  ;;  %v3252_v4 = vmul.f32 %v10453_v7, %v3251_v63  ;;  %v7515_v59 = vld [vmem:[#allocation10 + $0xf8] sm:$0xff]  ;;  %vm10550_vm10 = vmor %vm3224_vm1, %vm3225_vm9 }
 0x33f   :  { %7724 = vrcp.f32 %v10500_v2  ;;  %v3238_v23 = vadd.f32 %v10437_v22, %v3237_v28  ;;  %vm3240_vm5 = vweird.f32 %v10437_v22  ;;  %v3266_v55 = vsub.f32 1.0, %v3265_v0  ;;  %v1524_v28 = vpop.f32.mrf.mxu0  ;;  %6791 = vmatpush.bf16.msrb.mxu3 %v7515_v59 }
 0x340   :  { %7726 = vrcp.f32 %v10505_v15  ;;  %vm3239_vm6 = vweird.f32 %v10343_v21  ;;  %vm10539_vm7 = vcmp.eq.f32.partialorder %v3243_v6, 8.507059e+37  ;;  %v3246_v43 = vor.u32 1.1754944e-38, %v3245_v8  ;;  %v1658_v6 = vpop.f32.mrf.mxu1 }
 0x341   :  { %v7721_v42 = vpop.eup %7720  ;;  %v7159_v35 = vmul.f32 -1.442695, %v10514_v45  ;;  %v3217_v50 = vsel %vm10487_vm0, %v3216_v27, %v3212_v57  ;;  %v3258_v46 = vand.u32 2147483647, %v10384_v39  ;;  %v3260_v63 = vand.u32 2147483648, %v10384_v39  ;;  %vm10567_vm8 = vmor %vm3239_vm6, %vm3240_vm5 }
 0x342   :  { %v7723_v20 = vpop.eup %7722  ;;  %7728 = vrcp.f32 %v10527_v62  ;;  %v10558_v36 = vmul.f32 %v3202_v1, %v10079_v52  ;;  %v3227_v32 = vsel %vm10550_vm10, %v10425_v5, %v3223_v56  ;;  %v3253_v0 = vadd.f32 %v10453_v7, %v3252_v4 }
 0x343   :  { %vm3255_vm11 = vweird.f32 %v10453_v7  ;;  %v3242_v52 = vsel %vm10567_vm8, %v10437_v22, %v3238_v23  ;;  %vm3254_vm12 = vweird.f32 %v10384_v39  ;;  %v3267_v5 = vmul.f32 %v10475_v54, %v3266_v55  ;;  %v1926_v22 = vpop.f32.mrf.mxu3 }
 0x344   :  { %18527 = vst [vmem:[#allocation49_spill] sm:$0xff] %v10558_v36  ;;  %v10578_v8 = vadd.f32 1.0, %v7721_v42  ;;  %v10583_v1 = vmul.f32 %v3217_v50, %v10109_v60  ;;  %v10585_v34 = vadd.f32 1.0, %v7723_v20  ;;  %7730 = vpow2.f32 %v7159_v35  ;;  %vm10594_vm13 = vmor %vm3254_vm12, %vm3255_vm11 }
 0x345   :  { %v10580_v21 = vpop.eup %7724  ;;  %v10588_v57 = vadd.f32 %v1524_v28, %v9142_v25  ;;  %v3232_v39 = vsel %vm10507_vm3, %v3231_v24, %v3227_v32  ;;  %vm10598_vm14 = vcmp.eq.f32.partialorder %v3258_v46, 8.507059e+37  ;;  %v3261_v60 = vor.u32 1.1754944e-38, %v3260_v63  ;;  %v7498_v46 = vld [vmem:[#allocation10 + $0x70] sm:$0xff] }
 0x346   :  { %18530 = vst [vmem:[#allocation50_spill] sm:$0xff] %v10583_v1  ;;  %v10590_v56 = vpop.eup %7726  ;;  %v10603_v23 = vadd.f32 %v1658_v6, %v9147_v14  ;;  %v3247_v55 = vsel %vm10539_vm7, %v3246_v43, %v3242_v52  ;;  %v3257_v58 = vsel %vm10594_vm13, %v10453_v7, %v3253_v0  ;;  %v3273_v24 = vand.u32 2147483647, %v10410_v11  ;;  %v1792_v0 = vpop.f32.mrf.mxu2 }
 0x347   :  { %v3275_v26 = vand.u32 2147483648, %v10410_v11  ;;  %v3268_v42 = vadd.f32 %v10475_v54, %v3267_v5  ;;  %vm3270_vm15 = vweird.f32 %v10475_v54  ;;  %v3280_v35 = vmul.f32 %v10580_v21, %v10500_v2 }
 0x348   :  { %v10612_v41 = vpop.eup %7728  ;;  %7732 = vrcp.f32 %v10578_v8  ;;  %v10620_v19 = vmul.f32 %v3232_v39, %v10173_v49  ;;  %v3295_v7 = vmul.f32 %v10590_v56, %v10505_v15  ;;  %v7160_v43 = vmul.f32 -1.442695, %v10588_v57 }
 0x349   :  { %7734 = vrcp.f32 %v10585_v34  ;;  %v3262_v59 = vsel %vm10598_vm14, %v3261_v60, %v3257_v58  ;;  %vm3269_vm0 = vweird.f32 %v10410_v11  ;;  %v3290_v20 = vand.u32 2147483648, %v10500_v2  ;;  %v7506_v58 = vld [vmem:[#allocation10 + $0xb0] sm:$0xff] }
 0x34a   :  { %18535 = vst [vmem:[#allocation51_spill] sm:$0xff] %v10620_v19  ;;  %v7161_v50 = vmul.f32 -1.442695, %v10603_v23  ;;  %v7731_v38 = vpop.eup %7730  ;;  %v10632_v49 = vmul.f32 %v3247_v55, %v10189_v9  ;;  %vm10634_vm1 = vmor %vm3269_vm0, %vm3270_vm15  ;;  %vm10638_vm2 = vcmp.eq.f32.partialorder %v3273_v24, 8.507059e+37  ;;  %v3305_v28 = vand.u32 2147483648, %v10505_v15  ;;  %6658 = vmatpush.bf16.msrb.mxu2 %v7506_v58 }
 0x34b   :  { %v3310_v11 = vmul.f32 %v10612_v41, %v10527_v62  ;;  %v3272_v32 = vsel %vm10634_vm1, %v10475_v54, %v3268_v42  ;;  %v3276_v27 = vor.u32 1.1754944e-38, %v3275_v26  ;;  %v3281_v9 = vsub.f32 1.0, %v3280_v35 }
 0x34c   :  { %18536 = vst [vmem:[#allocation52_spill] sm:$0xff] %v10632_v49  ;;  %v538_v6 = vmul.f32 %v9873_v51, %v8685_v13  ;;  %v10651_v52 = vmul.f32 %v3262_v59, %v10228_v16  ;;  %v3288_v5 = vand.u32 2147483647, %v10500_v2  ;;  %v3296_v39 = vsub.f32 1.0, %v3295_v7  ;;  %v7499_v51 = vld [vmem:[#allocation10 + $0x78] sm:$0xff]  ;;  %v471_v16 = vpop.xlane.xlu1 %470  ;;  %v7514_v59 = vld [vmem:[#allocation10 + $0xf0] sm:$0xff] }
 0x34d   :  { %7736 = vpow2.f32 %v7160_v43  ;;  %vm3284_vm3 = vweird.f32 %v10500_v2  ;;  %v10657_v60 = vor.u32 1.1754944e-38, %v3290_v20  ;;  %v3303_v54 = vand.u32 2147483647, %v10505_v15  ;;  %v7490_v43 = vld [vmem:[#allocation10 + $0x30] sm:$0xff]  ;;  %6523 = vmatpush.bf16.msrb.mxu1 %v7499_v51  ;;  %6792 = vmatpush.bf16.msrb.mxu3 %v7514_v59 }
 0x34e   :  { %18541 = vst [vmem:[#allocation53_spill] sm:$0xff] %v10651_v52  ;;  %v10654_v4 = vpop.eup %7732  ;;  %v10660_v55 = vadd.f32 1.0, %v7731_v38  ;;  %7738 = vpow2.f32 %v7161_v50  ;;  %v3277_v26 = vsel %vm10638_vm2, %v3276_v27, %v3272_v32  ;;  %vm3299_vm4 = vweird.f32 %v10505_v15  ;;  %6390 = vmatpush.bf16.msrb.mxu0 %v7490_v43 }
 0x34f   :  { %v10662_v24 = vpop.eup %7734  ;;  %v10667_v42 = vor.u32 1.1754944e-38, %v3305_v28  ;;  %v3311_v35 = vsub.f32 1.0, %v3310_v11  ;;  %v10670_v7 = vadd.f32 %v1792_v0, %v9155_v48  ;;  %v3282_v20 = vmul.f32 %v10580_v21, %v3281_v9  ;;  %v1527_v0 = vpop.f32.mrf.mxu0 }
 0x350   :  { %vm3285_vm9 = vweird.f32 %v10580_v21  ;;  %v10675_v50 = vadd.f32 %v1926_v22, %v9160_v31  ;;  %v10677_v38 = vadd.f32 1e-05, %v538_v6  ;;  %v3297_v63 = vmul.f32 %v10590_v56, %v3296_v39 }
 0x351   :  { %vm3314_vm5 = vweird.f32 %v10527_v62  ;;  %v3325_v28 = vmul.f32 %v10654_v4, %v10578_v8  ;;  %v539_v11 = vmul.f32 %v471_v16, %v8685_v13  ;;  %v10685_v32 = vmul.f32 %v3277_v26, %v10254_v40  ;;  %6524 = vmatpush.bf16.msrb.mxu1 %v7498_v46  ;;  %vm10724_vm11 = vmor %vm3284_vm3, %vm3285_vm9 }
 0x352   :  { %v3318_v27 = vand.u32 2147483647, %v10527_v62  ;;  %v3340_v9 = vmul.f32 %v10662_v24, %v10585_v34  ;;  %7740 = vrcp.f32 %v10660_v55  ;;  %vm10691_vm6 = vcmp.eq.f32.partialorder %v3288_v5, 8.507059e+37 }
 0x353   :  { %18542 = vst [vmem:[#allocation54_spill] sm:$0xff] %v10685_v32  ;;  %v7737_v6 = vpop.eup %7736  ;;  %vm10695_vm7 = vcmp.eq.f32.partialorder %v3303_v54, 8.507059e+37  ;;  %v3312_v40 = vmul.f32 %v10612_v41, %v3311_v35  ;;  %v3320_v51 = vand.u32 2147483648, %v10527_v62  ;;  %v7162_v58 = vmul.f32 -1.442695, %v10670_v7 }
 0x354   :  { %v10702_v16 = vadd.f32 1e-05, %v539_v11  ;;  %v7739_v26 = vpop.eup %7738  ;;  %v3283_v43 = vadd.f32 %v10580_v21, %v3282_v20  ;;  %vm3300_vm10 = vweird.f32 %v10590_v56  ;;  %v7163_v5 = vmul.f32 -1.442695, %v10675_v50  ;;  %v10752_v32 = vpop.xlane.xlu1 %472 }
 0x355   :  { %7742 = vrsqrt.f32 %v10677_v38  ;;  %v3298_v54 = vadd.f32 %v10590_v56, %v3297_v63  ;;  %v3326_v59 = vsub.f32 1.0, %v3325_v28  ;;  %v10710_v35 = vadd.f32 %v1527_v0, %v9142_v25  ;;  %vm10738_vm13 = vmor %vm3299_vm4, %vm3300_vm10 }
 0x356   :  { %7744 = vrsqrt.f32 %v10702_v16  ;;  %vm10713_vm8 = vcmp.eq.f32.partialorder %v3318_v27, 8.507059e+37  ;;  %v3333_v20 = vand.u32 2147483647, %v10578_v8  ;;  %v3341_v49 = vsub.f32 1.0, %v3340_v9 }
 0x357   :  { %v10718_v19 = vadd.f32 1.0, %v7737_v6  ;;  %v3313_v63 = vadd.f32 %v10612_v41, %v3312_v40  ;;  %vm3315_vm12 = vweird.f32 %v10612_v41  ;;  %v10730_v28 = vadd.f32 1.0, %v7739_v26  ;;  %v1661_v6 = vpop.f32.mrf.mxu1 }
 0x358   :  { %7746 = vpow2.f32 %v7162_v58  ;;  %v10732_v27 = vpop.eup %7740  ;;  %v3321_v2 = vor.u32 1.1754944e-38, %v3320_v51  ;;  %vm3329_vm14 = vweird.f32 %v10578_v8  ;;  %v3335_v0 = vand.u32 2147483648, %v10578_v8  ;;  %vm10760_vm15 = vmor %vm3314_vm5, %vm3315_vm12 }
 0x359   :  { %7748 = vpow2.f32 %v7163_v5  ;;  %v3287_v40 = vsel %vm10724_vm11, %v10580_v21, %v3283_v43  ;;  %v3302_v58 = vsel %vm10738_vm13, %v10590_v56, %v3298_v54  ;;  %v3327_v15 = vmul.f32 %v10654_v4, %v3326_v59 }
 0x35a   :  { %v7164_v26 = vmul.f32 -1.442695, %v10710_v35  ;;  %v3342_v21 = vmul.f32 %v10662_v24, %v3341_v49  ;;  %vm3344_vm0 = vweird.f32 %v10585_v34  ;;  %v3348_v56 = vand.u32 2147483647, %v10585_v34 }
 0x35b   :  { %v10754_v51 = vpop.eup %7742  ;;  %7750 = vrcp.f32 %v10718_v19  ;;  %v3317_v54 = vsel %vm10760_vm15, %v10612_v41, %v3313_v63  ;;  %vm10773_vm1 = vcmp.eq.f32.partialorder %v3333_v20, 8.507059e+37  ;;  %v3355_v59 = vmul.f32 %v10732_v27, %v10660_v55 }
 0x35c   :  { %v10768_v43 = vpop.eup %7744  ;;  %7752 = vrcp.f32 %v10730_v28  ;;  %v10781_v49 = vadd.f32 %v1661_v6, %v9147_v14  ;;  %v3292_v46 = vsel %vm10691_vm6, %v10657_v60, %v3287_v40  ;;  %v3307_v41 = vsel %vm10695_vm7, %v10667_v42, %v3302_v58 }
 0x35d   :  { %v3336_v20 = vor.u32 1.1754944e-38, %v3335_v0  ;;  %v3350_v63 = vand.u32 2147483648, %v10585_v34  ;;  %v3328_v5 = vadd.f32 %v10654_v4, %v3327_v15  ;;  %vm3330_vm2 = vweird.f32 %v10654_v4 }
 0x35e   :  { %v7747_v9 = vpop.eup %7746  ;;  %7754 = vpow2.f32 %v7164_v26  ;;  %v919_v6 = vmul.f32 %v10768_v43, %v10702_v16  ;;  %v3322_v60 = vsel %vm10713_vm8, %v3321_v2, %v3317_v54  ;;  %v3343_v39 = vadd.f32 %v10662_v24, %v3342_v21  ;;  %vm10815_vm9 = vmor %vm3329_vm14, %vm3330_vm2  ;;  %v230_v2 = vpop.xlane.xlu1 %229 }
 0x35f   :  { %v7749_v1 = vpop.eup %7748  ;;  %vm3345_vm3 = vweird.f32 %v10662_v24  ;;  %v909_v42 = vmul.f32 %v10754_v51, %v10677_v38  ;;  %v10801_v22 = vmul.f32 %v3292_v46, %v10374_v3  ;;  %vm10803_vm4 = vcmp.eq.f32.partialorder %v3348_v56, 8.507059e+37  ;;  %v1795_v56 = vpop.f32.mrf.mxu2 }
 0x360   :  { %v3356_v40 = vsub.f32 1.0, %v3355_v59  ;;  %v7165_v58 = vmul.f32 -1.442695, %v10781_v49  ;;  %v10811_v11 = vmul.f32 %v3307_v41, %v10394_v10  ;;  %v3351_v3 = vor.u32 1.1754944e-38, %v3350_v63  ;;  %vm10834_vm5 = vmor %vm3344_vm0, %vm3345_vm3  ;;  %v1929_v63 = vpop.f32.mrf.mxu3 }
 0x361   :  { %18557 = vst [vmem:[#allocation55_spill] sm:$0xff] %v10801_v22  ;;  %v10808_v15 = vpop.eup %7750  ;;  %v3365_v26 = vand.u32 2147483648, %v10660_v55  ;;  %v10820_v21 = vadd.f32 1.0, %v7747_v9  ;;  %v10825_v59 = vmul.f32 %v3322_v60, %v10404_v61  ;;  %v3332_v10 = vsel %vm10815_vm9, %v10654_v4, %v3328_v5  ;;  %v1529_v60 = vpop.f32.mrf.mxu0 }
 0x362   :  { %18560 = vst [vmem:[#allocation56_spill] sm:$0xff] %v10811_v11  ;;  %v10822_v54 = vpop.eup %7752  ;;  %v10838_v46 = vadd.f32 1.0, %v7749_v1  ;;  %v920_v41 = vmul.f32 %v10768_v43, %v919_v6  ;;  %v3347_v61 = vsel %vm10834_vm5, %v10662_v24, %v3343_v39  ;;  %vm3359_vm6 = vweird.f32 %v10660_v55 }
 0x363   :  { %18563 = vst [vmem:[#allocation57_spill] sm:$0xff] %v10825_v59  ;;  %v3363_v4 = vand.u32 2147483647, %v10660_v55  ;;  %v910_v9 = vmul.f32 %v10754_v51, %v909_v42  ;;  %v3357_v5 = vmul.f32 %v10732_v27, %v3356_v40  ;;  %v3370_v1 = vmul.f32 %v10808_v15, %v10718_v19 }
 0x364   :  { %v7755_v34 = vpop.eup %7754  ;;  %7756 = vpow2.f32 %v7165_v58  ;;  %v10851_v6 = vadd.f32 %v1795_v56, %v9155_v48  ;;  %v3337_v24 = vsel %vm10773_vm1, %v3336_v20, %v3332_v10  ;;  %v3366_v39 = vor.u32 1.1754944e-38, %v3365_v26 }
 0x365   :  { %v3385_v8 = vmul.f32 %v10822_v54, %v10730_v28  ;;  %7758 = vrcp.f32 %v10820_v21  ;;  %v3352_v42 = vsel %vm10803_vm4, %v3351_v3, %v3347_v61  ;;  %v10862_v40 = vadd.f32 %v1929_v63, %v9160_v31 }
 0x366   :  { %7760 = vrcp.f32 %v10838_v46  ;;  %v921_v58 = vmul.f32 0.5, %v920_v41  ;;  %v10864_v56 = vadd.f32 1.0, %v7755_v34  ;;  %v10867_v62 = vadd.f32 %v1529_v60, %v9142_v25  ;;  %v1663_v60 = vpop.f32.mrf.mxu1 }
 0x367   :  { %v911_v20 = vmul.f32 0.5, %v910_v9  ;;  %v297_v26 = vmul.f32 %v8685_v13, %v230_v2  ;;  %v3358_v10 = vadd.f32 %v10732_v27, %v3357_v5  ;;  %vm3360_vm7 = vweird.f32 %v10732_v27 }
 0x368   :  { %vm10872_vm10 = vcmp.eq.f32.partialorder %v3363_v4, 8.507059e+37  ;;  %v3371_v3 = vsub.f32 1.0, %v3370_v1  ;;  %v7166_v61 = vmul.f32 -1.442695, %v10851_v6  ;;  %v10878_v41 = vmul.f32 %v3337_v24, %v10450_v33  ;;  %vm10893_vm8 = vmor %vm3359_vm6, %vm3360_vm7 }
 0x369   :  { %v10881_v63 = vmul.f32 %v3352_v42, %v10459_v44  ;;  %v3378_v9 = vand.u32 2147483647, %v10718_v19  ;;  %v3386_v34 = vsub.f32 1.0, %v3385_v8  ;;  %v3380_v2 = vand.u32 2147483648, %v10718_v19  ;;  %v8442_v8 = vld [vmem:[#allocation2 + $0x138] sm:$0xff] }
 0x36a   :  { %18568 = vst [vmem:[#allocation58_spill] sm:$0xff] %v10878_v41  ;;  %v7757_v5 = vpop.eup %7756  ;;  %v3393_v4 = vand.u32 2147483647, %v10730_v28  ;;  %v7167_v59 = vmul.f32 -1.442695, %v10862_v40  ;;  %v922_v1 = vsub.f32 1.5, %v921_v58  ;;  %7762 = vrcp.f32 %v10864_v56 }
 0x36b   :  { %18569 = vst [vmem:[#allocation59_spill] sm:$0xff] %v10881_v63  ;;  %v10887_v11 = vpop.eup %7758  ;;  %v7168_v44 = vmul.f32 -1.442695, %v10867_v62  ;;  %v912_v24 = vsub.f32 1.5, %v911_v20  ;;  %v10899_v42 = vsub.f32 %v8442_v8, %v297_v26  ;;  %v3362_v58 = vsel %vm10893_vm8, %v10732_v27, %v3358_v10  ;;  %v232_v10 = vpop.xlane.xlu1 %231 }
 0x36c   :  { %v10901_v63 = vpop.eup %7760  ;;  %v3372_v55 = vmul.f32 %v10808_v15, %v3371_v3  ;;  %vm3374_vm11 = vweird.f32 %v10718_v19  ;;  %7764 = vpow2.f32 %v7166_v61  ;;  %v10909_v41 = vadd.f32 %v1663_v60, %v9147_v14 }
 0x36d   :  { %18572 = vst [vmem:[#allocation60_spill] sm:$0xff] %v10899_v42  ;;  %v3387_v22 = vmul.f32 %v10822_v54, %v3386_v34  ;;  %vm3389_vm12 = vweird.f32 %v10730_v28  ;;  %v10913_v20 = vadd.f32 1.0, %v7757_v5  ;;  %vm914_vm13 = vweird.f32 %v10677_v38 }
 0x36e   :  { %vm915_vm14 = vweird.f32 %v10754_v51  ;;  %v3400_v27 = vmul.f32 %v10887_v11, %v10820_v21  ;;  %7766 = vpow2.f32 %v7167_v59  ;;  %v923_v26 = vmul.f32 %v10768_v43, %v922_v1 }
 0x36f   :  { %vm925_vm15 = vweird.f32 %v10768_v43  ;;  %v3415_v3 = vmul.f32 %v10901_v63, %v10838_v46  ;;  %7768 = vpow2.f32 %v7168_v44  ;;  %v913_v61 = vmul.f32 %v10754_v51, %v912_v24  ;;  %vm10934_vm1 = vmor %vm914_vm13, %vm915_vm14 }
 0x370   :  { %v397_v34 = vmul.f32 %v10899_v42, %v10899_v42  ;;  %vm10926_vm0 = vcmp.eq.f32.partialorder %v3378_v9, 8.507059e+37  ;;  %v3381_v5 = vor.u32 1.1754944e-38, %v3380_v2  ;;  %v3395_v59 = vand.u32 2147483648, %v10730_v28  ;;  %v10939_v44 = vpop.eup %7762  ;;  %v10971_v42 = vpop.xlane.xlu2 %474 }
 0x371   :  { %v7169_v1 = vmul.f32 -1.442695, %v10909_v41  ;;  %vm924_vm2 = vweird.f32 %v10702_v16  ;;  %v3367_v9 = vsel %vm10872_vm10, %v3366_v39, %v3362_v58  ;;  %vm3375_vm3 = vweird.f32 %v10808_v15 }
 0x372   :  { %vm10944_vm4 = vcmp.eq.f32.partialorder %v3393_v4, 8.507059e+37  ;;  %v3410_v24 = vand.u32 2147483648, %v10820_v21  ;;  %vm10951_vm9 = vmor %vm924_vm2, %vm925_vm15  ;;  %486 = vadd.xlane.f32.xlu2 %v397_v34  ;;  %v298_v16 = vmul.f32 %v8685_v13, %v232_v10  ;;  %v7765_v8 = vpop.eup %7764  ;;  %v3373_v39 = vadd.f32 %v10808_v15, %v3372_v55 }
 0x373   :  { %v3388_v0 = vadd.f32 %v10822_v54, %v3387_v22  ;;  %vm3390_vm5 = vweird.f32 %v10822_v54  ;;  %v927_v4 = vsel %vm10951_vm9, %v10768_v43, %v923_v26  ;;  %v3401_v58 = vsub.f32 1.0, %v3400_v27  ;;  %vm10977_vm6 = vmor %vm3374_vm11, %vm3375_vm3  ;;  %v18584_v26 = vld [vmem:[#allocation25_spill] sm:$0xff] }
 0x374   :  { %v3416_v52 = vsub.f32 1.0, %v3415_v3  ;;  %7770 = vrcp.f32 %v10913_v20  ;;  %v917_v34 = vsel %vm10934_vm1, %v10754_v51, %v913_v61  ;;  %v7767_v10 = vpop.eup %7766  ;;  %v10967_v36 = vmul.f32 %v3367_v9, %v10514_v45  ;;  %v8443_v61 = vld [vmem:[#allocation2 + $0x140] sm:$0xff]  ;;  %vm10995_vm10 = vmor %vm3389_vm12, %vm3390_vm5 }
 0x375   :  { %v3396_v55 = vor.u32 1.1754944e-38, %v3395_v59  ;;  %v3430_v22 = vmul.f32 %v10939_v44, %v10864_v56  ;;  %7772 = vpow2.f32 %v7169_v1  ;;  %v7769_v43 = vpop.eup %7768  ;;  %vm3404_vm7 = vweird.f32 %v10820_v21 }
 0x376   :  { %18581 = vst [vmem:[#allocation61_spill] sm:$0xff] %v10967_v36  ;;  %v3408_v45 = vand.u32 2147483647, %v10820_v21  ;;  %v10983_v51 = vor.u32 1.1754944e-38, %v3410_v24  ;;  %v1139_v3 = vmul.f32 %v927_v4, %v18584_v26  ;;  %v10986_v59 = vsub.f32 %v8443_v61, %v298_v16  ;;  %v18588_v24 = vld [vmem:[#allocation22_spill] sm:$0xff] }
 0x377   :  { %v3377_v1 = vsel %vm10977_vm6, %v10808_v15, %v3373_v39  ;;  %v3423_v33 = vand.u32 2147483647, %v10838_v46  ;;  %v11000_v9 = vadd.f32 1.0, %v7765_v8  ;;  %v1138_v38 = vmul.f32 %v917_v34, %v18588_v24  ;;  %v1797_v8 = vpop.f32.mrf.mxu2 }
 0x378   :  { %18585 = vst [vmem:[#allocation25_spill] sm:$0xff] %v10986_v59  ;;  %v3392_v16 = vsel %vm10995_vm10, %v10822_v54, %v3388_v0  ;;  %v3402_v15 = vmul.f32 %v10887_v11, %v3401_v58  ;;  %v3417_v39 = vmul.f32 %v10901_v63, %v3416_v52  ;;  %v11008_v4 = vadd.f32 1.0, %v7767_v10  ;;  %v11023_v52 = vpop.xlane.xlu0 %478 }
 0x379   :  { %vm3419_vm8 = vweird.f32 %v10838_v46  ;;  %v3425_v28 = vand.u32 2147483648, %v10838_v46  ;;  %v3431_v27 = vsub.f32 1.0, %v3430_v22  ;;  %v11012_v26 = vadd.f32 1.0, %v7769_v43 }
 0x37a   :  { %v11014_v61 = vpop.eup %7770  ;;  %v3382_v34 = vsel %vm10926_vm0, %v3381_v5, %v3377_v1  ;;  %vm3405_vm11 = vweird.f32 %v10887_v11  ;;  %vm11019_vm12 = vcmp.eq.f32.partialorder %v3408_v45, 8.507059e+37  ;;  %v398_v0 = vmul.f32 %v10986_v59, %v10986_v59 }
 0x37b   :  { %v1193_v58 = vmul.f32 %v10257_v37, %v1139_v3  ;;  %v7773_v10 = vpop.eup %7772  ;;  %v3397_v22 = vsel %vm10944_vm4, %v3396_v55, %v3392_v16  ;;  %vm3420_vm13 = vweird.f32 %v10901_v63  ;;  %vm11031_vm14 = vcmp.eq.f32.partialorder %v3423_v33, 8.507059e+37  ;;  %vm11064_vm15 = vmor %vm3404_vm7, %vm3405_vm11 }
 0x37c   :  { %7774 = vrcp.f32 %v11000_v9  ;;  %v1192_v5 = vmul.f32 %v10257_v37, %v1138_v38  ;;  %v3403_v43 = vadd.f32 %v10887_v11, %v3402_v15  ;;  %v3418_v45 = vadd.f32 %v10901_v63, %v3417_v39  ;;  %488 = vadd.xlane.f32.xlu2 %v398_v0  ;;  %v11050_v37 = vld [vmem:[%s18225_s2] ss:$0 sm:$0xff]  ;;  %vm11083_vm1 = vmor %vm3419_vm8, %vm3420_vm13  ;;  %v1931_v0 = vpop.f32.mrf.mxu3 }
 0x37d   :  { %7776 = vrcp.f32 %v11008_v4  ;;  %v11041_v3 = vadd.f32 %v1797_v8, %v9155_v48  ;;  %v3432_v2 = vmul.f32 %v10939_v44, %v3431_v27  ;;  %v3445_v55 = vmul.f32 %v11014_v61, %v10913_v20 }
 0x37e   :  { %7778 = vrcp.f32 %v11012_v26  ;;  %v1247_v1 = vadd.f32 %v11050_v37, %v1193_v58  ;;  %v3426_v19 = vor.u32 1.1754944e-38, %v3425_v28  ;;  %v3438_v33 = vand.u32 2147483647, %v10864_v56  ;;  %v11070_v28 = vpop.xlane.xlu2 %476 }
 0x37f   :  { %v3440_v24 = vand.u32 2147483648, %v10864_v56  ;;  %v11055_v38 = vadd.f32 1.0, %v7773_v10  ;;  %v11058_v16 = vmul.f32 %v3382_v34, %v10588_v57  ;;  %vm3434_vm0 = vweird.f32 %v10864_v56 }
 0x380   :  { %v3455_v39 = vand.u32 2147483648, %v10913_v20  ;;  %v1246_v27 = vadd.f32 %v11050_v37, %v1192_v5  ;;  %v11074_v8 = vmul.f32 %v3397_v22, %v10603_v23  ;;  %v3407_v57 = vsel %vm11064_vm15, %v10887_v11, %v3403_v43  ;;  %v1532_v22 = vpop.f32.mrf.mxu0 }
 0x381   :  { %18593 = vst [vmem:[#allocation22_spill] sm:$0xff] %v11058_v16  ;;  %vm3435_vm2 = vweird.f32 %v10939_v44  ;;  %v7170_v34 = vmul.f32 -1.442695, %v11041_v3  ;;  %v3422_v23 = vsel %vm11083_vm1, %v10901_v63, %v3418_v45  ;;  %v3433_v11 = vadd.f32 %v10939_v44, %v3432_v2 }
 0x382   :  { %18596 = vst [vmem:[#allocation62_spill] sm:$0xff] %v11074_v8  ;;  %v11089_v58 = vpop.eup %7774  ;;  %v3446_v10 = vsub.f32 1.0, %v3445_v55  ;;  %v1281_v46 = vpack.c.bf16 %v1247_v1, %v1246_v27  ;;  %vm11097_vm3 = vcmp.eq.f32.partialorder %v3438_v33, 8.507059e+37  ;;  %v3441_v15 = vor.u32 1.1754944e-38, %v3440_v24  ;;  %vm11121_vm9 = vmor %vm3434_vm0, %vm3435_vm2  ;;  %v11130_v24 = vpop.xlane.xlu0 %480 }
 0x383   :  { %v11095_v5 = vpop.eup %7776  ;;  %v3453_v36 = vand.u32 2147483647, %v10913_v20  ;;  %7780 = vrcp.f32 %v11055_v38  ;;  %v3412_v63 = vsel %vm11019_vm12, %v10983_v51, %v3407_v57  ;;  %vm3449_vm4 = vweird.f32 %v10913_v20 }
 0x384   :  { %v11103_v8 = vpop.eup %7778  ;;  %v11109_v45 = vor.u32 1.1754944e-38, %v3455_v39  ;;  %v3470_v2 = vand.u32 2147483648, %v11000_v9  ;;  %v11113_v55 = vadd.f32 %v1931_v0, %v9160_v31  ;;  %1576 = vmatmul.bf16.gmra.mxu0 %v1281_v46  ;;  %1710 = vmatmul.bf16.gmra.mxu1 %v1281_v46  ;;  %v3427_v1 = vsel %vm11031_vm14, %v3426_v19, %v3422_v23  ;;  %v1666_v39 = vpop.f32.mrf.mxu1 }
 0x385   :  { %v3460_v54 = vmul.f32 %v11089_v58, %v11000_v9  ;;  %7782 = vpow2.f32 %v7170_v34  ;;  %v11128_v33 = vadd.f32 %v1532_v22, %v9142_v25  ;;  %1844 = vmatmul.bf16.gmra.mxu2 %v1281_v46  ;;  %1978 = vmatmul.bf16.gmra.mxu3 %v1281_v46  ;;  %v3437_v60 = vsel %vm11121_vm9, %v10939_v44, %v3433_v11  ;;  %v1800_v11 = vpop.f32.mrf.mxu2 }
 0x386   :  { %v3447_v56 = vmul.f32 %v11014_v61, %v3446_v10  ;;  %v3475_v19 = vmul.f32 %v11095_v5, %v11008_v4  ;;  %v540_v27 = vmul.f32 %v10752_v32, %v8685_v13  ;;  %v11141_v57 = vmul.f32 %v3412_v63, %v10670_v7 }
 0x387   :  { %v3468_v21 = vand.u32 2147483647, %v11000_v9  ;;  %v3490_v34 = vmul.f32 %v11103_v8, %v11012_v26  ;;  %v541_v44 = vmul.f32 %v10971_v42, %v8685_v13  ;;  %v11149_v0 = vmul.f32 %v3427_v1, %v10675_v50  ;;  %v234_v1 = vpop.xlane.xlu2 %233 }
 0x388   :  { %18603 = vst [vmem:[#allocation63_spill] sm:$0xff] %v11141_v57  ;;  %vm3450_vm5 = vweird.f32 %v11014_v61  ;;  %v11152_v23 = vor.u32 1.1754944e-38, %v3470_v2  ;;  %v7171_v32 = vmul.f32 -1.442695, %v11113_v55  ;;  %v3442_v10 = vsel %vm11097_vm3, %v3441_v15, %v3437_v60 }
 0x389   :  { %18604 = vst [vmem:[#allocation64_spill] sm:$0xff] %v11149_v0  ;;  %v11155_v7 = vpop.eup %7780  ;;  %v3461_v22 = vsub.f32 1.0, %v3460_v54  ;;  %v7172_v46 = vmul.f32 -1.442695, %v11128_v33  ;;  %v11161_v42 = vadd.f32 %v1666_v39, %v9147_v14  ;;  %v3448_v50 = vadd.f32 %v11014_v61, %v3447_v56  ;;  %v1934_v39 = vpop.f32.mrf.mxu3  ;;  %vm11189_vm11 = vmor %vm3449_vm4, %vm3450_vm5 }
 0x38a   :  { %vm3465_vm6 = vweird.f32 %v11089_v58  ;;  %v3476_v63 = vsub.f32 1.0, %v3475_v19  ;;  %v11165_v2 = vadd.f32 1e-05, %v540_v27  ;;  %vm11167_vm7 = vcmp.eq.f32.partialorder %v3453_v36, 8.507059e+37 }
 0x38b   :  { %v7783_v51 = vpop.eup %7782  ;;  %vm3464_vm10 = vweird.f32 %v11000_v9  ;;  %v3483_v43 = vand.u32 2147483647, %v11008_v4  ;;  %v3491_v15 = vsub.f32 1.0, %v3490_v34  ;;  %v11174_v54 = vadd.f32 %v1800_v11, %v9155_v48 }
 0x38c   :  { %v11176_v60 = vadd.f32 1e-05, %v541_v44  ;;  %v11179_v56 = vmul.f32 %v3442_v10, %v10710_v35  ;;  %vm3479_vm8 = vweird.f32 %v11008_v4  ;;  %v3485_v36 = vand.u32 2147483648, %v11008_v4  ;;  %v1534_v44 = vpop.f32.mrf.mxu0  ;;  %v1668_v59 = vpop.f32.mrf.mxu1  ;;  %vm11244_vm0 = vmor %vm3464_vm10, %vm3465_vm6 }
 0x38d   :  { %v3505_v19 = vmul.f32 %v11155_v7, %v11055_v38  ;;  %7784 = vpow2.f32 %v7171_v32  ;;  %v3462_v35 = vmul.f32 %v11089_v58, %v3461_v22  ;;  %v7173_v34 = vmul.f32 -1.442695, %v11161_v42 }
 0x38e   :  { %18607 = vst [vmem:[#allocation65_spill] sm:$0xff] %v11179_v56  ;;  %7786 = vpow2.f32 %v7172_v46  ;;  %v299_v11 = vmul.f32 %v8685_v13, %v234_v1  ;;  %v3452_v32 = vsel %vm11189_vm11, %v11014_v61, %v3448_v50  ;;  %v3477_v10 = vmul.f32 %v11095_v5, %v3476_v63  ;;  %v238_v1 = vpop.xlane.xlu0 %237 }
 0x38f   :  { %v11200_v56 = vadd.f32 1.0, %v7783_v51  ;;  %7788 = vrsqrt.f32 %v11165_v2  ;;  %v3492_v20 = vmul.f32 %v11103_v8, %v3491_v15  ;;  %v7174_v22 = vmul.f32 -1.442695, %v11174_v54  ;;  %v8445_v51 = vld [vmem:[#allocation2 + $0x148] sm:$0xff] }
 0x390   :  { %v11206_v46 = vadd.f32 %v1934_v39, %v9160_v31  ;;  %7790 = vrsqrt.f32 %v11176_v60  ;;  %vm11209_vm12 = vcmp.eq.f32.partialorder %v3468_v21, 8.507059e+37  ;;  %v11213_v61 = vor.u32 1.1754944e-38, %v3485_v36 }
 0x391   :  { %v3506_v50 = vsub.f32 1.0, %v3505_v19  ;;  %v11216_v63 = vadd.f32 %v1534_v44, %v9142_v25  ;;  %v11218_v15 = vsub.f32 %v8445_v51, %v299_v11  ;;  %v3463_v27 = vadd.f32 %v11089_v58, %v3462_v35  ;;  %v7505_v44 = vld [vmem:[#allocation10 + $0xa8] sm:$0xff] }
 0x392   :  { %vm3480_vm13 = vweird.f32 %v11095_v5  ;;  %v3498_v39 = vand.u32 2147483647, %v11012_v26  ;;  %7792 = vpow2.f32 %v7173_v34  ;;  %v3478_v16 = vadd.f32 %v11095_v5, %v3477_v10  ;;  %v148_v35 = vld [vmem:[#allocation2 + $0x178] sm:$0xff]  ;;  %6659 = vmatpush.bf16.msrb.mxu2 %v7505_v44 }
 0x393   :  { %18612 = vst [vmem:[#allocation66_spill] sm:$0xff] %v11218_v15  ;;  %v7785_v21 = vpop.eup %7784  ;;  %vm11224_vm14 = vcmp.eq.f32.partialorder %v3483_v43, 8.507059e+37  ;;  %vm3495_vm15 = vweird.f32 %v11103_v8  ;;  %7794 = vrcp.f32 %v11200_v56  ;;  %v301_v19 = vmul.f32 %v8685_v13, %v238_v1  ;;  %245 = vadd.xlane.f32.xlu2 %v148_v35  ;;  %vm11258_vm1 = vmor %vm3479_vm8, %vm3480_vm13 }
 0x394   :  { %v7787_v11 = vpop.eup %7786  ;;  %v3493_v51 = vadd.f32 %v11103_v8, %v3492_v20  ;;  %7796 = vpow2.f32 %v7174_v22  ;;  %v7175_v34 = vmul.f32 -1.442695, %v11206_v46  ;;  %v399_v43 = vmul.f32 %v11218_v15, %v11218_v15  ;;  %v8446_v15 = vld [vmem:[#allocation2 + $0x158] sm:$0xff] }
 0x395   :  { %v11235_v10 = vpop.eup %7788  ;;  %v3457_v30 = vsel %vm11167_vm7, %v11109_v45, %v3452_v32  ;;  %v3507_v22 = vmul.f32 %v11155_v7, %v3506_v50  ;;  %v7176_v1 = vmul.f32 -1.442695, %v11216_v63  ;;  %v11250_v35 = vsub.f32 %v8446_v15, %v301_v19 }
 0x396   :  { %v11252_v18 = vpop.eup %7790  ;;  %vm3494_vm2 = vweird.f32 %v11012_v26  ;;  %vm11263_vm3 = vcmp.eq.f32.partialorder %v3498_v39, 8.507059e+37  ;;  %v3500_v0 = vand.u32 2147483648, %v11012_v26  ;;  %v11268_v32 = vadd.f32 1.0, %v7785_v21  ;;  %490 = vadd.xlane.f32.xlu0 %v399_v43 }
 0x397   :  { %18617 = vst [vmem:[#allocation67_spill] sm:$0xff] %v11250_v35  ;;  %v3467_v50 = vsel %vm11244_vm0, %v11089_v58, %v3463_v27  ;;  %vm11275_vm4 = vmor %vm3494_vm2, %vm3495_vm15  ;;  %v11279_v15 = vadd.f32 1.0, %v7787_v11  ;;  %v11282_v39 = vadd.f32 %v1668_v59, %v9147_v14  ;;  %v401_v26 = vmul.f32 %v11250_v35, %v11250_v35 }
 0x398   :  { %v7793_v21 = vpop.eup %7792  ;;  %v3482_v19 = vsel %vm11258_vm1, %v11095_v5, %v3478_v16  ;;  %v3497_v58 = vsel %vm11275_vm4, %v11103_v8, %v3493_v51  ;;  %vm3510_vm9 = vweird.f32 %v11155_v7  ;;  %7798 = vpow2.f32 %v7175_v34 }
 0x399   :  { %v11293_v27 = vpop.eup %7794  ;;  %v3508_v59 = vadd.f32 %v11155_v7, %v3507_v22  ;;  %7800 = vpow2.f32 %v7176_v1  ;;  %v929_v44 = vmul.f32 %v11235_v10, %v11165_v2  ;;  %v939_v11 = vmul.f32 %v11252_v18, %v11176_v60  ;;  %494 = vadd.xlane.f32.xlu1 %v401_v26 }
 0x39a   :  { %v7797_v16 = vpop.eup %7796  ;;  %v3472_v8 = vsel %vm11209_vm12, %v11152_v23, %v3467_v50  ;;  %v3501_v5 = vor.u32 1.1754944e-38, %v3500_v0  ;;  %v3515_v51 = vand.u32 2147483648, %v11055_v38  ;;  %7802 = vrcp.f32 %v11268_v32 }
 0x39b   :  { %vm3509_vm5 = vweird.f32 %v11055_v38  ;;  %v3513_v34 = vand.u32 2147483647, %v11055_v38  ;;  %7804 = vrcp.f32 %v11279_v15  ;;  %v7177_v43 = vmul.f32 -1.442695, %v11282_v39 }
 0x39c   :  { %v3487_v20 = vsel %vm11224_vm14, %v11213_v61, %v3482_v19  ;;  %v3502_v57 = vsel %vm11263_vm3, %v3501_v5, %v3497_v58  ;;  %vm11316_vm6 = vmor %vm3509_vm5, %vm3510_vm9  ;;  %v3520_v38 = vmul.f32 %v11293_v27, %v11200_v56  ;;  %v11322_v22 = vadd.f32 1.0, %v7793_v21 }
 0x39d   :  { %v3512_v1 = vsel %vm11316_vm6, %v11155_v7, %v3508_v59  ;;  %v11327_v36 = vadd.f32 1.0, %v7797_v16  ;;  %v930_v61 = vmul.f32 %v11235_v10, %v929_v44  ;;  %v940_v9 = vmul.f32 %v11252_v18, %v939_v11 }
 0x39e   :  { %v7799_v45 = vpop.eup %7798  ;;  %v11332_v0 = vmul.f32 %v3457_v30, %v10781_v49  ;;  %v11335_v50 = vmul.f32 %v3472_v8, %v10851_v6  ;;  %v3516_v4 = vor.u32 1.1754944e-38, %v3515_v51  ;;  %v3530_v26 = vand.u32 2147483648, %v11200_v56 }
 0x39f   :  { %v7801_v21 = vpop.eup %7800  ;;  %v11339_v19 = vmul.f32 %v3487_v20, %v10862_v40  ;;  %v11342_v7 = vmul.f32 %v3502_v57, %v10867_v62  ;;  %vm3514_vm7 = vcmp.eq.f32.partialorder %v3513_v34, 8.507059e+37  ;;  %7806 = vpow2.f32 %v7177_v43  ;;  %v11353_v62 = vpop.xlane.xlu1 %482 }
 0x3a0   :  { %18626 = vst [vmem:[#allocation68_spill] sm:$0xff] %v11332_v0  ;;  %v11344_v58 = vpop.eup %7802  ;;  %v3517_v59 = vsel %vm3514_vm7, %v3516_v4, %v3512_v1  ;;  %v3521_v30 = vsub.f32 1.0, %v3520_v38  ;;  %v3545_v49 = vand.u32 2147483648, %v11268_v32  ;;  %7808 = vrcp.f32 %v11322_v22 }
 0x3a1   :  { %18627 = vst [vmem:[#allocation69_spill] sm:$0xff] %v11335_v50  ;;  %v11348_v6 = vpop.eup %7804  ;;  %7810 = vrcp.f32 %v11327_v36  ;;  %v11351_v44 = vadd.f32 1.0, %v7799_v45  ;;  %v931_v40 = vmul.f32 0.5, %v930_v61  ;;  %v941_v11 = vmul.f32 0.5, %v940_v9  ;;  %v1802_v9 = vpop.f32.mrf.mxu2  ;;  %v7489_v45 = vld [vmem:[#allocation10 + $0x28] sm:$0xff] }
 0x3a2   :  { %18628 = vst [vmem:[#allocation70_spill] sm:$0xff] %v11339_v19  ;;  %v3528_v16 = vand.u32 2147483647, %v11200_v56  ;;  %v11356_v8 = vor.u32 1.1754944e-38, %v3530_v26  ;;  %v3560_v5 = vand.u32 2147483648, %v11279_v15  ;;  %v11359_v51 = vadd.f32 1.0, %v7801_v21  ;;  %6391 = vmatpush.bf16.msrb.mxu0 %v7489_v45 }
 0x3a3   :  { %18629 = vst [vmem:[#allocation71_spill] sm:$0xff] %v11342_v7  ;;  %v11362_v34 = vmul.f32 %v3517_v59, %v10909_v41  ;;  %v3535_v43 = vmul.f32 %v11344_v58, %v11268_v32  ;;  %v3575_v57 = vand.u32 2147483648, %v11322_v22  ;;  %v3522_v23 = vmul.f32 %v11293_v27, %v3521_v30  ;;  %v7513_v41 = vld [vmem:[#allocation10 + $0xe8] sm:$0xff] }
 0x3a4   :  { %18630 = vst [vmem:[#allocation72_spill] sm:$0xff] %v11353_v62  ;;  %v3550_v38 = vmul.f32 %v11348_v6, %v11279_v15  ;;  %v3590_v61 = vand.u32 2147483648, %v11327_v36  ;;  %v11373_v26 = vor.u32 1.1754944e-38, %v3545_v49  ;;  %7812 = vrcp.f32 %v11351_v44  ;;  %6793 = vmatpush.bf16.msrb.mxu3 %v7513_v41  ;;  %v1537_v41 = vpop.f32.mrf.mxu0 }
 0x3a5   :  { %18631 = vst [vmem:[#allocation73_spill] sm:$0xff] %v11362_v34  ;;  %v7807_v4 = vpop.eup %7806  ;;  %v932_v21 = vsub.f32 1.5, %v931_v40  ;;  %v942_v59 = vsub.f32 1.5, %v941_v11  ;;  %vm3525_vm10 = vweird.f32 %v11293_v27  ;;  %v11379_v30 = vor.u32 1.1754944e-38, %v3560_v5  ;;  %v1936_v5 = vpop.f32.mrf.mxu3 }
 0x3a6   :  { %v11376_v20 = vpop.eup %7808  ;;  %7814 = vrcp.f32 %v11359_v51  ;;  %vm3524_vm8 = vweird.f32 %v11200_v56  ;;  %v3536_v49 = vsub.f32 1.0, %v3535_v43  ;;  %v11386_v50 = vor.u32 1.1754944e-38, %v3575_v57 }
 0x3a7   :  { %v11383_v19 = vpop.eup %7810  ;;  %v11390_v11 = vadd.f32 %v1802_v9, %v9155_v48  ;;  %v11393_v34 = vadd.f32 %v11293_v27, %v3522_v23  ;;  %v3551_v1 = vsub.f32 1.0, %v3550_v38  ;;  %v11395_v0 = vor.u32 1.1754944e-38, %v3590_v61  ;;  %v236_v9 = vpop.xlane.xlu2 %235  ;;  %vm11469_vm5 = vmor %vm3524_vm8, %vm3525_vm10 }
 0x3a8   :  { %vm935_vm11 = vweird.f32 %v11235_v10  ;;  %vm3540_vm12 = vweird.f32 %v11344_v58  ;;  %v3565_v43 = vmul.f32 %v11376_v20, %v11322_v22  ;;  %v933_v57 = vmul.f32 %v11235_v10, %v932_v21 }
 0x3a9   :  { %18632 = vst [vmem:[#allocation74_spill] sm:$0xff] %v11390_v11  ;;  %v943_v45 = vmul.f32 %v11252_v18, %v942_v59  ;;  %vm945_vm13 = vweird.f32 %v11252_v18  ;;  %vm3555_vm14 = vweird.f32 %v11348_v6  ;;  %v3580_v23 = vmul.f32 %v11383_v19, %v11327_v36 }
 0x3aa   :  { %v11407_v38 = vadd.f32 1.0, %v7807_v4  ;;  %v11410_v61 = vadd.f32 %v1936_v5, %v9160_v31  ;;  %vm934_vm15 = vweird.f32 %v11165_v2  ;;  %v11413_v40 = vpop.eup %7812  ;;  %v3537_v21 = vmul.f32 %v11344_v58, %v3536_v49  ;;  %v11427_v2 = vpop.xlane.xlu1 %484 }
 0x3ab   :  { %vm3539_vm0 = vweird.f32 %v11268_v32  ;;  %v7178_v59 = vmul.f32 -1.442695, %v11390_v11  ;;  %vm11420_vm1 = vmor %vm934_vm15, %vm935_vm11  ;;  %vm944_vm2 = vweird.f32 %v11176_v60  ;;  %v543_v4 = vmul.f32 %v11023_v52, %v8685_v13  ;;  %18636 = vst [vmem:[#allocation76_spill] sm:$0xff] %v11427_v2  ;;  %v240_v2 = vpop.xlane.xlu0 %239  ;;  %v149_v60 = vld [vmem:[#allocation2 + $0x180] sm:$0xff] }
 0x3ac   :  { %18633 = vst [vmem:[#allocation75_spill] sm:$0xff] %v11410_v61  ;;  %v11429_v5 = vpop.eup %7814  ;;  %vm11431_vm3 = vcmp.eq.f32.partialorder %v3528_v16, 8.507059e+37  ;;  %v3552_v7 = vmul.f32 %v11348_v6, %v3551_v1  ;;  %vm3554_vm4 = vweird.f32 %v11279_v15  ;;  %vm11440_vm9 = vmor %vm944_vm2, %vm945_vm13  ;;  %v542_v52 = vmul.f32 %v11070_v28, %v8685_v13  ;;  %247 = vadd.xlane.f32.xlu2 %v149_v60 }
 0x3ad   :  { %v300_v16 = vmul.f32 %v8685_v13, %v236_v9  ;;  %v3566_v47 = vsub.f32 1.0, %v3565_v43  ;;  %v11448_v17 = vadd.f32 %v1537_v41, %v9142_v25  ;;  %v937_v1 = vsel %vm11420_vm1, %v11235_v10, %v933_v57  ;;  %v18647_v41 = vld [vmem:[#allocation37_spill] sm:$0xff]  ;;  %vm11512_vm11 = vmor %vm3539_vm0, %vm3540_vm12 }
 0x3ae   :  { %v947_v53 = vsel %vm11440_vm9, %v11252_v18, %v943_v45  ;;  %v3581_v12 = vsub.f32 1.0, %v3580_v23  ;;  %v3595_v29 = vmul.f32 %v11413_v40, %v11351_v44  ;;  %7816 = vrcp.f32 %v11407_v38  ;;  %v18646_v45 = vld [vmem:[#allocation28_spill] sm:$0xff]  ;;  %vm11530_vm12 = vmor %vm3554_vm4, %vm3555_vm14 }
 0x3af   :  { %v7179_v28 = vmul.f32 -1.442695, %v11410_v61  ;;  %v3610_v43 = vmul.f32 %v11429_v5, %v11359_v51  ;;  %7818 = vpow2.f32 %v7178_v59  ;;  %v11462_v9 = vadd.f32 1e-05, %v543_v4  ;;  %v8448_v18 = vld [vmem:[#allocation2 + $0x160] sm:$0xff]  ;;  %v8450_v57 = vld [vmem:[#allocation2 + $0x168] sm:$0xff] }
 0x3b0   :  { %v302_v10 = vmul.f32 %v8685_v13, %v240_v2  ;;  %v18643_v35 = vand.u32 2147483647, %v11268_v32  ;;  %vm3569_vm7 = vweird.f32 %v11322_v22  ;;  %v1140_v23 = vmul.f32 %v937_v1, %v18646_v45  ;;  %v8447_v2 = vld [vmem:[#allocation2 + $0x150] sm:$0xff] }
 0x3b1   :  { %v1141_v59 = vmul.f32 %v947_v53, %v18647_v41  ;;  %v11482_v4 = vadd.f32 1e-05, %v542_v52  ;;  %v11484_v56 = vsub.f32 %v8447_v2, %v300_v16  ;;  %v3538_v61 = vadd.f32 %v11344_v58, %v3537_v21 }
 0x3b2   :  { %vm11475_vm6 = vcmp.eq.f32.partialorder %v18643_v35, 8.507059e+37  ;;  %v3527_v35 = vsel %vm11469_vm5, %v11293_v27, %v11393_v34  ;;  %v18648_v11 = vand.u32 2147483647, %v11279_v15  ;;  %vm3584_vm8 = vweird.f32 %v11327_v36  ;;  %v7497_v34 = vld [vmem:[#allocation10 + $0x68] sm:$0xff] }
 0x3b3   :  { %v3605_v53 = vand.u32 2147483648, %v11351_v44  ;;  %v7180_v52 = vmul.f32 -1.442695, %v11448_v17  ;;  %v3553_v16 = vadd.f32 %v11348_v6, %v3552_v7  ;;  %v3567_v1 = vmul.f32 %v11376_v20, %v3566_v47  ;;  %6525 = vmatpush.bf16.msrb.mxu1 %v7497_v34  ;;  %v11519_v47 = vld [vmem:[#allocation5] ss:$0 sm:$0xff] }
 0x3b4   :  { %vm11493_vm10 = vcmp.eq.f32.partialorder %v18648_v11, 8.507059e+37  ;;  %v3582_v27 = vmul.f32 %v11383_v19, %v3581_v12  ;;  %7820 = vpow2.f32 %v7179_v28  ;;  %v3596_v21 = vsub.f32 1.0, %v3595_v29  ;;  %v11506_v41 = vpop.eup %7816 }
 0x3b5   :  { %v3611_v11 = vsub.f32 1.0, %v3610_v43  ;;  %7822 = vrsqrt.f32 %v11462_v9  ;;  %v11504_v45 = vsub.f32 %v8448_v18, %v302_v10  ;;  %v400_v12 = vmul.f32 %v11484_v56, %v11484_v56  ;;  %v7819_v43 = vpop.eup %7818 }
 0x3b6   :  { %7824 = vrsqrt.f32 %v11482_v4  ;;  %v1194_v29 = vmul.f32 %v11519_v47, %v1140_v23  ;;  %v1195_v28 = vmul.f32 %v11519_v47, %v1141_v59  ;;  %v3532_v32 = vsel %vm11431_vm3, %v11356_v8, %v3527_v35  ;;  %v242_v23 = vpop.xlane.xlu1 %241 }
 0x3b7   :  { %18651 = vst [vmem:[#allocation28_spill] sm:$0xff] %v11504_v45  ;;  %vm3570_vm13 = vweird.f32 %v11376_v20  ;;  %vm3585_vm15 = vweird.f32 %v11383_v19  ;;  %7826 = vpow2.f32 %v7180_v52  ;;  %v3542_v59 = vsel %vm11512_vm11, %v11344_v58, %v3538_v61  ;;  %492 = vadd.xlane.f32.xlu0 %v400_v12 }
 0x3b8   :  { %v3557_v8 = vsel %vm11530_vm12, %v11348_v6, %v3553_v16  ;;  %v18656_v15 = vand.u32 2147483647, %v11322_v22  ;;  %vm3599_vm0 = vweird.f32 %v11351_v44  ;;  %v1248_v2 = vadd.f32 %v11050_v37, %v1194_v29  ;;  %vm11578_vm2 = vmor %vm3569_vm7, %vm3570_vm13  ;;  %v1939_v6 = vpop.f32.mrf.mxu3 }
 0x3b9   :  { %v1249_v60 = vadd.f32 %v11050_v37, %v1195_v28  ;;  %v3568_v35 = vadd.f32 %v11376_v20, %v3567_v1  ;;  %v3583_v58 = vadd.f32 %v11383_v19, %v3582_v27  ;;  %v18659_v61 = vand.u32 2147483647, %v11327_v36  ;;  %v1671_v1 = vpop.f32.mrf.mxu1  ;;  %vm11593_vm3 = vmor %vm3584_vm8, %vm3585_vm15 }
 0x3ba   :  { %vm11544_vm14 = vcmp.eq.f32.partialorder %v18656_v15, 8.507059e+37  ;;  %v3597_v52 = vmul.f32 %v11413_v40, %v3596_v21  ;;  %v402_v16 = vmul.f32 %v11504_v45, %v11504_v45  ;;  %v7821_v34 = vpop.eup %7820  ;;  %v3612_v18 = vmul.f32 %v11429_v5, %v3611_v11 }
 0x3bb   :  { %vm11555_vm1 = vcmp.eq.f32.partialorder %v18659_v61, 8.507059e+37  ;;  %v3625_v7 = vmul.f32 %v11506_v41, %v11407_v38  ;;  %v1282_v12 = vpack.c.bf16 %v1249_v60, %v1248_v2  ;;  %v303_v27 = vmul.f32 %v8685_v13, %v242_v23  ;;  %v11566_v29 = vpop.eup %7822 }
 0x3bc   :  { %v11569_v28 = vmul.f32 %v3532_v32, %v11041_v3  ;;  %v3547_v21 = vsel %vm11475_vm6, %v11373_v26, %v3542_v59  ;;  %v3606_v10 = vor.u32 1.1754944e-38, %v3605_v53  ;;  %v11582_v15 = vadd.f32 1.0, %v7819_v43  ;;  %496 = vadd.xlane.f32.xlu1 %v402_v16  ;;  %v11584_v23 = vpop.eup %7824 }
 0x3bd   :  { %v3562_v3 = vsel %vm11493_vm10, %v11379_v30, %v3557_v8  ;;  %vm3600_vm4 = vweird.f32 %v11413_v40  ;;  %v3618_v26 = vand.u32 2147483647, %v11359_v51  ;;  %1581 = vmatmul.bf16.gmra.mxu0 %v1282_v12  ;;  %1715 = vmatmul.bf16.gmra.mxu1 %v1282_v12  ;;  %v11599_v53 = vsub.f32 %v8450_v57, %v303_v27  ;;  %v7827_v43 = vpop.eup %7826  ;;  %v150_v8 = vld [vmem:[#allocation2 + $0x188] sm:$0xff] }
 0x3be   :  { %18662 = vst [vmem:[#allocation37_spill] sm:$0xff] %v11569_v28  ;;  %v3572_v62 = vsel %vm11578_vm2, %v11376_v20, %v3568_v35  ;;  %v3587_v36 = vsel %vm11593_vm3, %v11383_v19, %v3583_v58  ;;  %v18668_v30 = vand.u32 2147483647, %v11351_v44  ;;  %vm3615_vm5 = vweird.f32 %v11429_v5  ;;  %1849 = vmatmul.bf16.gmra.mxu2 %v1282_v12  ;;  %1983 = vmatmul.bf16.gmra.mxu3 %v1282_v12  ;;  %v1805_v35 = vpop.f32.mrf.mxu2  ;;  %vm11645_vm7 = vmor %vm3599_vm0, %vm3600_vm4 }
 0x3bf   :  { %18667 = vst [vmem:[#allocation77_spill] sm:$0xff] %v11599_v53  ;;  %v11615_v59 = vadd.f32 %v1671_v1, %v9147_v14  ;;  %v3598_v20 = vadd.f32 %v11413_v40, %v3597_v52  ;;  %v3613_v2 = vadd.f32 %v11429_v5, %v3612_v18  ;;  %v3626_v60 = vsub.f32 1.0, %v3625_v7  ;;  %249 = vadd.xlane.f32.xlu0 %v150_v8 }
 0x3c0   :  { %vm11609_vm9 = vcmp.eq.f32.partialorder %v18668_v30, 8.507059e+37  ;;  %v11619_v19 = vadd.f32 1.0, %v7821_v34  ;;  %7828 = vrcp.f32 %v11582_v15  ;;  %v959_v58 = vmul.f32 %v11566_v29, %v11462_v9 }
 0x3c1   :  { %v949_v61 = vmul.f32 %v11584_v23, %v11482_v4  ;;  %v403_v16 = vmul.f32 %v11599_v53, %v11599_v53  ;;  %v11629_v1 = vmul.f32 %v3547_v21, %v11113_v55  ;;  %vm3614_vm6 = vweird.f32 %v11359_v51  ;;  %v1673_v8 = vpop.f32.mrf.mxu1 }
 0x3c2   :  { %v3620_v52 = vand.u32 2147483648, %v11359_v51  ;;  %v11633_v34 = vadd.f32 1.0, %v7827_v43  ;;  %v11636_v18 = vmul.f32 %v3562_v3, %v11128_v33  ;;  %v3577_v7 = vsel %vm11544_vm14, %v11386_v50, %v3572_v62  ;;  %vm11662_vm8 = vmor %vm3614_vm6, %vm3615_vm5  ;;  %v1539_v43 = vpop.f32.mrf.mxu0 }
 0x3c3   :  { %18671 = vst [vmem:[#allocation78_spill] sm:$0xff] %v11629_v1  ;;  %vm11649_vm10 = vcmp.eq.f32.partialorder %v3618_v26, 8.507059e+37  ;;  %v7181_v12 = vmul.f32 -1.442695, %v11615_v59  ;;  %498 = vadd.xlane.f32.xlu2 %v403_v16  ;;  %v3592_v33 = vsel %vm11555_vm1, %v11395_v0, %v3587_v36  ;;  %v3602_v50 = vsel %vm11645_vm7, %v11413_v40, %v3598_v20 }
 0x3c4   :  { %18672 = vst [vmem:[#allocation79_spill] sm:$0xff] %v11636_v18  ;;  %v3633_v49 = vand.u32 2147483647, %v11407_v38  ;;  %7830 = vrcp.f32 %v11619_v19  ;;  %v3617_v27 = vsel %vm11662_vm8, %v11429_v5, %v3613_v2  ;;  %v3627_v0 = vmul.f32 %v11506_v41, %v3626_v60 }
 0x3c5   :  { %v960_v21 = vmul.f32 %v11566_v29, %v959_v58  ;;  %v950_v40 = vmul.f32 %v11584_v23, %v949_v61  ;;  %v3621_v11 = vor.u32 1.1754944e-38, %v3620_v52  ;;  %v3635_v3 = vand.u32 2147483648, %v11407_v38 }
 0x3c6   :  { %7832 = vrcp.f32 %v11633_v34  ;;  %v11677_v22 = vadd.f32 %v1805_v35, %v9155_v48  ;;  %v11679_v26 = vpop.eup %7828  ;;  %v11682_v57 = vmul.f32 %v3577_v7, %v11161_v42  ;;  %v11685_v5 = vmul.f32 %v3592_v33, %v11174_v54  ;;  %v1807_v7 = vpop.f32.mrf.mxu2 }
 0x3c7   :  { %vm3629_vm11 = vweird.f32 %v11407_v38  ;;  %7834 = vpow2.f32 %v7181_v12  ;;  %v3607_v62 = vsel %vm11609_vm9, %v3606_v10, %v3602_v50  ;;  %v3622_v36 = vsel %vm11649_vm10, %v3621_v11, %v3617_v27 }
 0x3c8   :  { %18679 = vst [vmem:[#allocation80_spill] sm:$0xff] %v11682_v57  ;;  %vm11692_vm12 = vcmp.eq.f32.partialorder %v3633_v49, 8.507059e+37  ;;  %v11697_v42 = vadd.f32 %v1939_v6, %v9160_v31  ;;  %v3628_v54 = vadd.f32 %v11506_v41, %v3627_v0  ;;  %vm3630_vm13 = vweird.f32 %v11506_v41 }
 0x3c9   :  { %18680 = vst [vmem:[#allocation81_spill] sm:$0xff] %v11685_v5  ;;  %v961_v20 = vmul.f32 0.5, %v960_v21  ;;  %v951_v2 = vmul.f32 0.5, %v950_v40  ;;  %v3636_v10 = vor.u32 1.1754944e-38, %v3635_v3  ;;  %v3640_v32 = vmul.f32 %v11679_v26, %v11582_v15  ;;  %vm11724_vm15 = vmor %vm3629_vm11, %vm3630_vm13 }
 0x3ca   :  { %v11701_v60 = vpop.eup %7830  ;;  %v7182_v35 = vmul.f32 -1.442695, %v11677_v22  ;;  %v11707_v58 = vadd.f32 %v1539_v43, %v9142_v25  ;;  %v11710_v61 = vmul.f32 %v3607_v62, %v11206_v46  ;;  %v11713_v16 = vmul.f32 %v3622_v36, %v11216_v63 }
 0x3cb   :  { %v11716_v52 = vadd.f32 %v1673_v8, %v9147_v14  ;;  %v7183_v46 = vmul.f32 -1.442695, %v11697_v42  ;;  %v3632_v38 = vsel %vm11724_vm15, %v11506_v41, %v3628_v54  ;;  %v3655_v43 = vmul.f32 %v11701_v60, %v11619_v19 }
 0x3cc   :  { %18683 = vst [vmem:[#allocation82_spill] sm:$0xff] %v11710_v61  ;;  %v11720_v33 = vpop.eup %7832  ;;  %v962_v62 = vsub.f32 1.5, %v961_v20  ;;  %v952_v36 = vsub.f32 1.5, %v951_v2  ;;  %v3641_v8 = vsub.f32 1.0, %v3640_v32  ;;  %7836 = vpow2.f32 %v7182_v35 }
 0x3cd   :  { %18684 = vst [vmem:[#allocation83_spill] sm:$0xff] %v11713_v16  ;;  %v7835_v3 = vpop.eup %7834  ;;  %v7184_v49 = vmul.f32 -1.442695, %v11707_v58  ;;  %v11742_v12 = vadd.f32 %v1807_v7, %v9155_v48  ;;  %v3648_v6 = vand.u32 2147483647, %v11582_v15  ;;  %vm964_vm14 = vweird.f32 %v11462_v9  ;;  %v18705_v9 = vld [vmem:[#allocation41_spill] sm:$0xff] }
 0x3ce   :  { %v7185_v11 = vmul.f32 -1.442695, %v11716_v52  ;;  %vm965_vm0 = vweird.f32 %v11566_v29  ;;  %v3637_v41 = vsel %vm11692_vm12, %v3636_v10, %v3632_v38  ;;  %vm3644_vm1 = vweird.f32 %v11582_v15 }
 0x3cf   :  { %v3670_v54 = vmul.f32 %v11720_v33, %v11633_v34  ;;  %v11753_v20 = vadd.f32 1.0, %v7835_v3  ;;  %7838 = vpow2.f32 %v7183_v46  ;;  %v3656_v2 = vsub.f32 1.0, %v3655_v43  ;;  %vm11763_vm3 = vmor %vm964_vm14, %vm965_vm0 }
 0x3d0   :  { %v963_v32 = vmul.f32 %v11566_v29, %v962_v62  ;;  %v953_v35 = vmul.f32 %v11584_v23, %v952_v36  ;;  %vm955_vm2 = vweird.f32 %v11584_v23  ;;  %v3642_v7 = vmul.f32 %v11679_v26, %v3641_v8  ;;  %v244_v62 = vpop.xlane.xlu1 %243 }
 0x3d1   :  { %v3650_v30 = vand.u32 2147483648, %v11582_v15  ;;  %7840 = vpow2.f32 %v7184_v49  ;;  %v7186_v10 = vmul.f32 -1.442695, %v11742_v12  ;;  %vm3659_vm4 = vweird.f32 %v11619_v19 }
 0x3d2   :  { %v3663_v46 = vand.u32 2147483647, %v11619_v19  ;;  %7842 = vpow2.f32 %v7185_v11  ;;  %vm954_vm9 = vweird.f32 %v11482_v4  ;;  %v7837_v3 = vpop.eup %7836  ;;  %v11771_v38 = vmul.f32 %v3637_v41, %v11282_v39 }
 0x3d3   :  { %v3665_v49 = vand.u32 2147483648, %v11619_v19  ;;  %v3671_v43 = vsub.f32 1.0, %v3670_v54  ;;  %7844 = vrcp.f32 %v11753_v20  ;;  %vm11777_vm5 = vmor %vm954_vm9, %vm955_vm2  ;;  %vm11781_vm6 = vcmp.eq.f32.partialorder %v3648_v6, 8.507059e+37  ;;  %v18716_v6 = vld [vmem:[#allocation74_spill] sm:$0xff] }
 0x3d4   :  { %18697 = vst [vmem:[#allocation84_spill] sm:$0xff] %v11771_v38  ;;  %v3657_v4 = vmul.f32 %v11701_v60, %v3656_v2  ;;  %v967_v39 = vsel %vm11763_vm3, %v11566_v29, %v963_v32  ;;  %v957_v36 = vsel %vm11777_vm5, %v11584_v23, %v953_v35  ;;  %v3643_v41 = vadd.f32 %v11679_v26, %v3642_v7  ;;  %v18704_v35 = vld [vmem:[#allocation36_spill] sm:$0xff] }
 0x3d5   :  { %v7839_v8 = vpop.eup %7838  ;;  %vm3645_vm7 = vweird.f32 %v11679_v26  ;;  %v3651_v54 = vor.u32 1.1754944e-38, %v3650_v30  ;;  %7846 = vpow2.f32 %v7186_v10  ;;  %vm11794_vm10 = vcmp.eq.f32.partialorder %v3663_v46, 8.507059e+37 }
 0x3d6   :  { %v3678_v2 = vand.u32 2147483647, %v11633_v34  ;;  %v11799_v61 = vadd.f32 1.0, %v7837_v3  ;;  %v304_v29 = vmul.f32 %v8685_v13, %v244_v62  ;;  %v3666_v50 = vor.u32 1.1754944e-38, %v3665_v49  ;;  %vm11807_vm8 = vmor %vm3644_vm1, %vm3645_vm7 }
 0x3d7   :  { %v7841_v32 = vpop.eup %7840  ;;  %v3672_v23 = vmul.f32 %v11720_v33, %v3671_v43  ;;  %v1143_v7 = vmul.f32 %v967_v39, %v18704_v35  ;;  %v1142_v21 = vmul.f32 %v957_v36, %v18705_v9  ;;  %v3658_v46 = vadd.f32 %v11701_v60, %v3657_v4  ;;  %v18708_v39 = vld [vmem:[#allocation72_spill] sm:$0xff]  ;;  %v8451_v35 = vld [vmem:[#allocation2 + $0x170] sm:$0xff] }
 0x3d8   :  { %v7843_v30 = vpop.eup %7842  ;;  %vm3660_vm11 = vweird.f32 %v11701_v60  ;;  %v11813_v3 = vadd.f32 1.0, %v7839_v8  ;;  %v544_v49 = vmul.f32 %v11130_v24, %v8685_v13  ;;  %v3647_v62 = vsel %vm11807_vm8, %v11679_v26, %v3643_v41  ;;  %v1941_v8 = vpop.f32.mrf.mxu3 }
 0x3d9   :  { %v11817_v43 = vpop.eup %7844  ;;  %vm3674_vm12 = vweird.f32 %v11633_v34  ;;  %v3680_v15 = vand.u32 2147483648, %v11633_v34  ;;  %v545_v4 = vmul.f32 %v18708_v39, %v8685_v13  ;;  %vm3675_vm13 = vweird.f32 %v11720_v33  ;;  %vm11840_vm14 = vmor %vm3659_vm4, %vm3660_vm11 }
 0x3da   :  { %vm11827_vm15 = vcmp.eq.f32.partialorder %v3678_v2, 8.507059e+37  ;;  %7848 = vrcp.f32 %v11799_v61  ;;  %v11832_v24 = vadd.f32 1.0, %v7841_v32  ;;  %v11834_v26 = vsub.f32 %v8451_v35, %v304_v29  ;;  %vm11870_vm0 = vmor %vm3674_vm12, %vm3675_vm13 }
 0x3db   :  { %v7847_v41 = vpop.eup %7846  ;;  %v3673_v2 = vadd.f32 %v11720_v33, %v3672_v23  ;;  %v11845_v10 = vadd.f32 1.0, %v7843_v30  ;;  %v1196_v32 = vmul.f32 %v11519_v47, %v1142_v21  ;;  %v1197_v39 = vmul.f32 %v11519_v47, %v1143_v7  ;;  %v1542_v21 = vpop.f32.mrf.mxu0 }
 0x3dc   :  { %18711 = vst [vmem:[#allocation36_spill] sm:$0xff] %v11834_v26  ;;  %v3662_v29 = vsel %vm11840_vm14, %v11701_v60, %v3658_v46  ;;  %v3685_v35 = vmul.f32 %v11817_v43, %v11753_v20  ;;  %7850 = vrcp.f32 %v11813_v3  ;;  %v11855_v19 = vadd.f32 1e-05, %v544_v49 }
 0x3dd   :  { %v3652_v23 = vsel %vm11781_vm6, %v3651_v54, %v3647_v62  ;;  %v11860_v30 = vadd.f32 %v1941_v8, %v9160_v31  ;;  %v11862_v40 = vadd.f32 1e-05, %v545_v4  ;;  %v404_v7 = vmul.f32 %v11834_v26, %v11834_v26  ;;  %v1676_v54 = vpop.f32.mrf.mxu1  ;;  %v1810_v8 = vpop.f32.mrf.mxu2 }
 0x3de   :  { %7852 = vrcp.f32 %v11832_v24  ;;  %v11875_v11 = vadd.f32 1.0, %v7847_v41  ;;  %v1250_v46 = vadd.f32 %v11050_v37, %v1196_v32  ;;  %v1251_v49 = vadd.f32 %v11050_v37, %v1197_v39 }
 0x3df   :  { %v3667_v62 = vsel %vm11794_vm10, %v3666_v50, %v3662_v29  ;;  %v3677_v34 = vsel %vm11870_vm0, %v11720_v33, %v3673_v2  ;;  %v3681_v4 = vor.u32 1.1754944e-38, %v3680_v15  ;;  %7854 = vrcp.f32 %v11845_v10  ;;  %500 = vadd.xlane.f32.xlu0 %v404_v7  ;;  %v18718_v2 = vld [vmem:[#allocation75_spill] sm:$0xff] }
 0x3e0   :  { %v11885_v9 = vpop.eup %7848  ;;  %v3686_v41 = vsub.f32 1.0, %v3685_v35  ;;  %v11888_v27 = vadd.f32 %v1542_v21, %v9142_v25  ;;  %7856 = vrsqrt.f32 %v11855_v19  ;;  %v1283_v37 = vpack.c.bf16 %v1251_v49, %v1250_v46  ;;  %v1944_v60 = vpop.f32.mrf.mxu3 }
 0x3e1   :  { %v11892_v50 = vmul.f32 %v3652_v23, %v18716_v6  ;;  %v7187_v32 = vmul.f32 -1.442695, %v11860_v30  ;;  %v11896_v33 = vadd.f32 %v1676_v54, %v9147_v14  ;;  %7858 = vrsqrt.f32 %v11862_v40 }
 0x3e2   :  { %v11899_v15 = vpop.eup %7850  ;;  %v11902_v39 = vmul.f32 %v3667_v62, %v18718_v2  ;;  %v3693_v29 = vand.u32 2147483647, %v11753_v20  ;;  %7860 = vrcp.f32 %v11875_v11  ;;  %v11907_v35 = vadd.f32 %v1810_v8, %v9155_v48  ;;  %1586 = vmatmul.bf16.gmra.mxu0 %v1283_v37  ;;  %1720 = vmatmul.bf16.gmra.mxu1 %v1283_v37 }
 0x3e3   :  { %18717 = vst [vmem:[#allocation41_spill] sm:$0xff] %v11892_v50  ;;  %v3682_v23 = vsel %vm11827_vm15, %v3681_v4, %v3677_v34  ;;  %v3695_v21 = vand.u32 2147483648, %v11753_v20  ;;  %v3700_v7 = vmul.f32 %v11885_v9, %v11799_v61  ;;  %1854 = vmatmul.bf16.gmra.mxu2 %v1283_v37  ;;  %1988 = vmatmul.bf16.gmra.mxu3 %v1283_v37  ;;  %v7188_v8 = vmul.f32 -1.442695, %v11888_v27  ;;  %v1544_v26 = vpop.f32.mrf.mxu0 }
 0x3e4   :  { %18719 = vst [vmem:[#allocation72_spill] sm:$0xff] %v11902_v39  ;;  %v11916_v49 = vpop.eup %7852  ;;  %v3687_v62 = vmul.f32 %v11817_v43, %v3686_v41  ;;  %v3715_v37 = vmul.f32 %v11899_v15, %v11813_v3  ;;  %7862 = vpow2.f32 %v7187_v32  ;;  %v7189_v46 = vmul.f32 -1.442695, %v11896_v33 }
 0x3e5   :  { %v11924_v0 = vpop.eup %7854  ;;  %v11934_v55 = vmul.f32 %v3682_v23, %v11448_v17  ;;  %vm3689_vm1 = vweird.f32 %v11753_v20  ;;  %vm11937_vm2 = vcmp.eq.f32.partialorder %v3693_v29, 8.507059e+37  ;;  %v7190_v36 = vmul.f32 -1.442695, %v11907_v35 }
 0x3e6   :  { %v11931_v63 = vpop.eup %7856  ;;  %v3696_v34 = vor.u32 1.1754944e-38, %v3695_v21  ;;  %v3701_v4 = vsub.f32 1.0, %v3700_v7  ;;  %v3710_v6 = vand.u32 2147483648, %v11799_v61  ;;  %v3725_v41 = vand.u32 2147483648, %v11813_v3 }
 0x3e7   :  { %18728 = vst [vmem:[#allocation74_spill] sm:$0xff] %v11934_v55  ;;  %v11942_v32 = vpop.eup %7858  ;;  %v3688_v17 = vadd.f32 %v11817_v43, %v3687_v62  ;;  %vm3690_vm3 = vweird.f32 %v11817_v43  ;;  %7864 = vpow2.f32 %v7188_v8  ;;  %v11951_v29 = vadd.f32 %v1944_v60, %v9160_v31 }
 0x3e8   :  { %v11946_v54 = vpop.eup %7860  ;;  %vm3704_vm4 = vweird.f32 %v11799_v61  ;;  %v3716_v23 = vsub.f32 1.0, %v3715_v37  ;;  %v3730_v21 = vmul.f32 %v11916_v49, %v11832_v24  ;;  %7866 = vpow2.f32 %v7189_v46  ;;  %vm11965_vm9 = vmor %vm3689_vm1, %vm3690_vm3 }
 0x3e9   :  { %v969_v7 = vmul.f32 %v11931_v63, %v11855_v19  ;;  %v3708_v55 = vand.u32 2147483647, %v11799_v61  ;;  %v3745_v62 = vmul.f32 %v11924_v0, %v11845_v10  ;;  %7868 = vpow2.f32 %v7190_v36 }
 0x3ea   :  { %v979_v60 = vmul.f32 %v11942_v32, %v11862_v40  ;;  %v7863_v8 = vpop.eup %7862  ;;  %v3702_v46 = vmul.f32 %v11885_v9, %v3701_v4  ;;  %v11970_v44 = vor.u32 1.1754944e-38, %v3710_v6  ;;  %v3723_v2 = vand.u32 2147483647, %v11813_v3 }
 0x3eb   :  { %v3760_v51 = vmul.f32 %v11946_v54, %v11875_v11  ;;  %v3692_v36 = vsel %vm11965_vm9, %v11817_v43, %v3688_v17  ;;  %vm3705_vm5 = vweird.f32 %v11885_v9  ;;  %v11979_v20 = vor.u32 1.1754944e-38, %v3725_v41 }
 0x3ec   :  { %v7191_v50 = vmul.f32 -1.442695, %v11951_v29  ;;  %v3717_v5 = vmul.f32 %v11899_v15, %v3716_v23  ;;  %vm3719_vm6 = vweird.f32 %v11813_v3  ;;  %v3731_v6 = vsub.f32 1.0, %v3730_v21  ;;  %vm12010_vm12 = vmor %vm3704_vm4, %vm3705_vm5 }
 0x3ed   :  { %v3738_v4 = vand.u32 2147483647, %v11832_v24  ;;  %v970_v53 = vmul.f32 %v11931_v63, %v969_v7  ;;  %v7865_v45 = vpop.eup %7864  ;;  %vm3720_vm7 = vweird.f32 %v11899_v15  ;;  %vm3734_vm10 = vweird.f32 %v11832_v24 }
 0x3ee   :  { %v3746_v43 = vsub.f32 1.0, %v3745_v62  ;;  %v11988_v41 = vadd.f32 1.0, %v7863_v8  ;;  %v980_v17 = vmul.f32 %v11942_v32, %v979_v60  ;;  %v7867_v37 = vpop.eup %7866  ;;  %v3697_v23 = vsel %vm11937_vm2, %v3696_v34, %v3692_v36  ;;  %v1678_v8 = vpop.f32.mrf.mxu1  ;;  %vm12051_vm2 = vmor %vm3719_vm6, %vm3720_vm7 }
 0x3ef   :  { %v11994_v21 = vadd.f32 %v11885_v9, %v3702_v46  ;;  %v3740_v38 = vand.u32 2147483648, %v11832_v24  ;;  %v3761_v7 = vsub.f32 1.0, %v3760_v51  ;;  %v7869_v57 = vpop.eup %7868  ;;  %vm3735_vm8 = vweird.f32 %v11916_v49 }
 0x3f0   :  { %vm3749_vm11 = vweird.f32 %v11845_v10  ;;  %7870 = vpow2.f32 %v7191_v50  ;;  %v12000_v62 = vadd.f32 %v1544_v26, %v9142_v25  ;;  %v3718_v60 = vadd.f32 %v11899_v15, %v3717_v5  ;;  %vm12062_vm4 = vmor %vm3734_vm10, %vm3735_vm8 }
 0x3f1   :  { %v3732_v39 = vmul.f32 %v11916_v49, %v3731_v6  ;;  %v12004_v34 = vadd.f32 1.0, %v7865_v45  ;;  %v971_v46 = vmul.f32 0.5, %v970_v53  ;;  %vm12014_vm13 = vcmp.eq.f32.partialorder %v3708_v55, 8.507059e+37 }
 0x3f2   :  { %v3747_v5 = vmul.f32 %v11924_v0, %v3746_v43  ;;  %7872 = vrcp.f32 %v11988_v41  ;;  %v12020_v45 = vadd.f32 1.0, %v7867_v37  ;;  %v981_v26 = vmul.f32 0.5, %v980_v17 }
 0x3f3   :  { %v3707_v53 = vsel %vm12010_vm12, %v11885_v9, %v11994_v21  ;;  %vm12026_vm15 = vcmp.eq.f32.partialorder %v3723_v2, 8.507059e+37  ;;  %v3753_v55 = vand.u32 2147483647, %v11845_v10  ;;  %v3762_v36 = vmul.f32 %v11946_v54, %v3761_v7 }
 0x3f4   :  { %v12032_v6 = vadd.f32 1.0, %v7869_v57  ;;  %vm3750_vm14 = vweird.f32 %v11924_v0  ;;  %v3755_v43 = vand.u32 2147483648, %v11845_v10  ;;  %v7192_v17 = vmul.f32 -1.442695, %v12000_v62 }
 0x3f5   :  { %v12038_v37 = vadd.f32 %v1678_v8, %v9147_v14  ;;  %v3733_v9 = vadd.f32 %v11916_v49, %v3732_v39  ;;  %vm12041_vm0 = vcmp.eq.f32.partialorder %v3738_v4, 8.507059e+37  ;;  %vm3764_vm1 = vweird.f32 %v11875_v11  ;;  %vm12076_vm6 = vmor %vm3749_vm11, %vm3750_vm14 }
 0x3f6   :  { %7874 = vrcp.f32 %v12004_v34  ;;  %v972_v57 = vsub.f32 1.5, %v971_v46  ;;  %v7871_v21 = vpop.eup %7870  ;;  %v3748_v39 = vadd.f32 %v11924_v0, %v3747_v5  ;;  %vm3765_vm3 = vweird.f32 %v11946_v54 }
 0x3f7   :  { %7876 = vrcp.f32 %v12020_v45  ;;  %v982_v4 = vsub.f32 1.5, %v981_v26  ;;  %v3763_v3 = vadd.f32 %v11946_v54, %v3762_v36  ;;  %vm974_vm9 = vweird.f32 %v11855_v19  ;;  %vm12090_vm8 = vmor %vm3764_vm1, %vm3765_vm3 }
 0x3f8   :  { %7878 = vrcp.f32 %v12032_v6  ;;  %vm975_vm5 = vweird.f32 %v11931_v63  ;;  %v12070_v46 = vpop.eup %7872  ;;  %v7193_v51 = vmul.f32 -1.442695, %v12038_v37  ;;  %vm984_vm7 = vweird.f32 %v11862_v40 }
 0x3f9   :  { %7880 = vpow2.f32 %v7192_v17  ;;  %vm985_vm10 = vweird.f32 %v11942_v32  ;;  %v3722_v5 = vsel %vm12051_vm2, %v11899_v15, %v3718_v60  ;;  %v3770_v26 = vand.u32 2147483648, %v11875_v11  ;;  %vm12106_vm11 = vmor %vm974_vm9, %vm975_vm5 }
 0x3fa   :  { %v12095_v36 = vadd.f32 1.0, %v7871_v21  ;;  %v973_v17 = vmul.f32 %v11931_v63, %v972_v57  ;;  %v12099_v16 = vmul.f32 %v3697_v23, %v11615_v59  ;;  %v3741_v18 = vor.u32 1.1754944e-38, %v3740_v38  ;;  %v1812_v23 = vpop.f32.mrf.mxu2  ;;  %vm12129_vm14 = vmor %vm984_vm7, %vm985_vm10 }
 0x3fb   :  { %v3768_v15 = vand.u32 2147483647, %v11875_v11  ;;  %v983_v7 = vmul.f32 %v11942_v32, %v982_v4  ;;  %v3712_v59 = vsel %vm12014_vm13, %v11970_v44, %v3707_v53  ;;  %v3737_v38 = vsel %vm12062_vm4, %v11916_v49, %v3733_v9 }
 0x3fc   :  { %18749 = vst [vmem:[#allocation75_spill] sm:$0xff] %v12099_v16  ;;  %v12111_v21 = vpop.eup %7874  ;;  %vm12119_vm12 = vcmp.eq.f32.partialorder %v3753_v55, 8.507059e+37  ;;  %v3775_v19 = vmul.f32 %v12070_v46, %v11988_v41  ;;  %v3727_v49 = vsel %vm12026_vm15, %v11979_v20, %v3722_v5  ;;  %v3752_v50 = vsel %vm12076_vm6, %v11924_v0, %v3748_v39 }
 0x3fd   :  { %v12133_v44 = vpop.eup %7876  ;;  %v3767_v53 = vsel %vm12090_vm8, %v11946_v54, %v3763_v3  ;;  %7882 = vpow2.f32 %v7193_v51  ;;  %v3756_v55 = vor.u32 1.1754944e-38, %v3755_v43  ;;  %v3771_v9 = vor.u32 1.1754944e-38, %v3770_v26  ;;  %v18756_v51 = vld [vmem:[#allocation39_spill] sm:$0xff] }
 0x3fe   :  { %v12144_v40 = vpop.eup %7878  ;;  %7884 = vrcp.f32 %v12095_v36  ;;  %v977_v61 = vsel %vm12106_vm11, %v11931_v63, %v973_v17  ;;  %v3742_v4 = vsel %vm12041_vm0, %v3741_v18, %v3737_v38  ;;  %vm3769_vm13 = vcmp.eq.f32.partialorder %v3768_v15, 8.507059e+37  ;;  %v1946_v63 = vpop.f32.mrf.mxu3  ;;  %v18759_v17 = vld [vmem:[#allocation18_spill] sm:$0xff] }
 0x3ff   :  { %v7881_v20 = vpop.eup %7880  ;;  %v12153_v0 = vadd.f32 %v1812_v23, %v9155_v48  ;;  %v987_v54 = vsel %vm12129_vm14, %v11942_v32, %v983_v7  ;;  %v3757_v43 = vsel %vm12119_vm12, %v3756_v55, %v3752_v50  ;;  %v3772_v39 = vsel %vm3769_vm13, %v3771_v9, %v3767_v53 }
 0x400   :  { %v3776_v8 = vsub.f32 1.0, %v3775_v19  ;;  %v3785_v3 = vand.u32 2147483648, %v11988_v41  ;;  %v3790_v2 = vmul.f32 %v12111_v21, %v12004_v34  ;;  %v3805_v18 = vmul.f32 %v12133_v44, %v12020_v45 }
 0x401   :  { %v3820_v24 = vmul.f32 %v12144_v40, %v12032_v6  ;;  %v1144_v5 = vmul.f32 %v977_v61, %v18756_v51  ;;  %v12169_v32 = vmul.f32 %v3712_v59, %v11677_v22  ;;  %v12172_v10 = vmul.f32 %v3727_v49, %v11697_v42  ;;  %v1547_v22 = vpop.f32.mrf.mxu0  ;;  %v12228_v51 = vld [vmem:[%s18225_s2] ss:$0 sm:$0xff] }
 0x402   :  { %v12174_v26 = vadd.f32 1.0, %v7881_v20  ;;  %v1145_v15 = vmul.f32 %v987_v54, %v18759_v17  ;;  %v12178_v7 = vmul.f32 %v3742_v4, %v11707_v58  ;;  %v12181_v38 = vmul.f32 %v3757_v43, %v11716_v52  ;;  %v1681_v52 = vpop.f32.mrf.mxu1 }
 0x403   :  { %18757 = vst [vmem:[#allocation39_spill] sm:$0xff] %v12169_v32  ;;  %v7883_v60 = vpop.eup %7882  ;;  %v7194_v11 = vmul.f32 -1.442695, %v12153_v0  ;;  %v12185_v19 = vadd.f32 %v1946_v63, %v9160_v31  ;;  %v12190_v42 = vmul.f32 %v3772_v39, %v11742_v12  ;;  %v3777_v23 = vmul.f32 %v12070_v46, %v3776_v8  ;;  %v7504_v8 = vld [vmem:[#allocation10 + $0xa0] sm:$0xff]  ;;  %v12215_v63 = vpop.xlane.xlu2 %486 }
 0x404   :  { %18758 = vst [vmem:[#allocation85_spill] sm:$0xff] %v12172_v10  ;;  %v12187_v59 = vpop.eup %7884  ;;  %vm3779_vm15 = vweird.f32 %v11988_v41  ;;  %v3783_v58 = vand.u32 2147483647, %v11988_v41  ;;  %v12195_v57 = vor.u32 1.1754944e-38, %v3785_v3  ;;  %v3791_v49 = vsub.f32 1.0, %v3790_v2  ;;  %v7488_v3 = vld [vmem:[#allocation10 + $0x20] sm:$0xff]  ;;  %6660 = vmatpush.bf16.msrb.mxu2 %v7504_v8 }
 0x405   :  { %18760 = vst [vmem:[#allocation18_spill] sm:$0xff] %v12178_v7  ;;  %v3806_v50 = vsub.f32 1.0, %v3805_v18  ;;  %v3821_v53 = vsub.f32 1.0, %v3820_v24  ;;  %v1198_v55 = vmul.f32 %v11519_v47, %v1144_v5  ;;  %7886 = vrcp.f32 %v12174_v26  ;;  %6392 = vmatpush.bf16.msrb.mxu0 %v7488_v3  ;;  %v7511_v3 = vld [vmem:[#allocation10 + $0xd8] sm:$0xff] }
 0x406   :  { %18761 = vst [vmem:[#allocation86_spill] sm:$0xff] %v12181_v38  ;;  %v12199_v9 = vadd.f32 1.0, %v7883_v60  ;;  %v12202_v12 = vadd.f32 %v1547_v22, %v9142_v25  ;;  %v1199_v61 = vmul.f32 %v11519_v47, %v1145_v15  ;;  %v3835_v20 = vmul.f32 %v12187_v59, %v12095_v36  ;;  %v7512_v47 = vld [vmem:[#allocation10 + $0xe0] sm:$0xff] }
 0x407   :  { %18762 = vst [vmem:[#allocation87_spill] sm:$0xff] %v12190_v42  ;;  %7888 = vpow2.f32 %v7194_v11  ;;  %v7195_v4 = vmul.f32 -1.442695, %v12185_v19  ;;  %v12209_v54 = vadd.f32 %v1681_v52, %v9147_v14  ;;  %vm3780_vm0 = vweird.f32 %v12070_v46  ;;  %v7496_v15 = vld [vmem:[#allocation10 + $0x60] sm:$0xff]  ;;  %6794 = vmatpush.bf16.msrb.mxu3 %v7512_v47 }
 0x408   :  { %vm3794_vm1 = vweird.f32 %v12004_v34  ;;  %v3798_v43 = vand.u32 2147483647, %v12004_v34  ;;  %v3800_v39 = vand.u32 2147483648, %v12004_v34  ;;  %v12218_v2 = vadd.f32 %v12070_v46, %v3777_v23  ;;  %6526 = vmatpush.bf16.msrb.mxu1 %v7496_v15  ;;  %vm12248_vm4 = vmor %vm3779_vm15, %vm3780_vm0 }
 0x409   :  { %vm12220_vm2 = vcmp.eq.f32.partialorder %v3783_v58, 8.507059e+37  ;;  %v3792_v24 = vmul.f32 %v12111_v21, %v3791_v49  ;;  %v1252_v5 = vadd.f32 %v12228_v51, %v1198_v55  ;;  %v1253_v17 = vadd.f32 %v12228_v51, %v1199_v61  ;;  %v7503_v49 = vld [vmem:[#allocation10 + $0x98] sm:$0xff] }
 0x40a   :  { %v3807_v60 = vmul.f32 %v12133_v44, %v3806_v50  ;;  %v3822_v11 = vmul.f32 %v12144_v40, %v3821_v53  ;;  %7890 = vrcp.f32 %v12199_v9  ;;  %v7196_v22 = vmul.f32 -1.442695, %v12202_v12  ;;  %v7487_v55 = vld [vmem:[#allocation10 + $0x18] sm:$0xff]  ;;  %6661 = vmatpush.bf16.msrb.mxu2 %v7503_v49 }
 0x40b   :  { %v3836_v23 = vsub.f32 1.0, %v3835_v20  ;;  %7892 = vpow2.f32 %v7195_v4  ;;  %v7197_v58 = vmul.f32 -1.442695, %v12209_v54  ;;  %v1284_v52 = vpack.c.bf16 %v1253_v17, %v1252_v5  ;;  %v12237_v61 = vpop.eup %7886  ;;  %v7495_v20 = vld [vmem:[#allocation10 + $0x58] sm:$0xff]  ;;  %6393 = vmatpush.bf16.msrb.mxu0 %v7487_v55  ;;  %6795 = vmatpush.bf16.msrb.mxu3 %v7511_v3  ;;  %v1949_v3 = vpop.f32.mrf.mxu3 }
 0x40c   :  { %v12239_v50 = vor.u32 1.1754944e-38, %v3800_v39  ;;  %vm3809_vm3 = vweird.f32 %v12020_v45  ;;  %v3813_v53 = vand.u32 2147483647, %v12020_v45  ;;  %v3815_v8 = vand.u32 2147483648, %v12020_v45  ;;  %6527 = vmatpush.bf16.msrb.mxu1 %v7495_v20 }
 0x40d   :  { %v7889_v4 = vpop.eup %7888  ;;  %vm3795_vm9 = vweird.f32 %v12111_v21  ;;  %vm12253_vm5 = vcmp.eq.f32.partialorder %v3798_v43, 8.507059e+37  ;;  %vm3810_vm6 = vweird.f32 %v12133_v44  ;;  %v3828_v5 = vand.u32 2147483647, %v12032_v6  ;;  %1591 = vmatmul.bf16.gmra.mxu0 %v1284_v52  ;;  %1725 = vmatmul.bf16.gmra.mxu1 %v1284_v52  ;;  %v1815_v43 = vpop.f32.mrf.mxu2 }
 0x40e   :  { %v3830_v17 = vand.u32 2147483648, %v12032_v6  ;;  %v3782_v41 = vsel %vm12248_vm4, %v12070_v46, %v12218_v2  ;;  %v3793_v15 = vadd.f32 %v12111_v21, %v3792_v24  ;;  %vm3825_vm7 = vweird.f32 %v12144_v40  ;;  %1859 = vmatmul.bf16.gmra.mxu2 %v1284_v52  ;;  %1993 = vmatmul.bf16.gmra.mxu3 %v1284_v52  ;;  %vm12275_vm10 = vmor %vm3794_vm1, %vm3795_vm9 }
 0x40f   :  { %7894 = vpow2.f32 %v7196_v22  ;;  %v3808_v10 = vadd.f32 %v12133_v44, %v3807_v60  ;;  %v3823_v42 = vadd.f32 %v12144_v40, %v3822_v11  ;;  %v3837_v32 = vmul.f32 %v12187_v59, %v3836_v23  ;;  %v12287_v22 = vpop.xlane.xlu2 %488  ;;  %vm12293_vm11 = vmor %vm3809_vm3, %vm3810_vm6 }
 0x410   :  { %7896 = vpow2.f32 %v7197_v58  ;;  %v12269_v38 = vpop.eup %7890  ;;  %vm12279_vm8 = vcmp.eq.f32.partialorder %v3813_v53, 8.507059e+37  ;;  %v3816_v24 = vor.u32 1.1754944e-38, %v3815_v8  ;;  %v3850_v60 = vmul.f32 %v12237_v61, %v12174_v26 }
 0x411   :  { %v12285_v11 = vadd.f32 1.0, %v7889_v4  ;;  %v7893_v23 = vpop.eup %7892  ;;  %vm3824_vm12 = vweird.f32 %v12032_v6  ;;  %vm12298_vm14 = vcmp.eq.f32.partialorder %v3828_v5, 8.507059e+37  ;;  %v3843_v52 = vand.u32 2147483647, %v12095_v36 }
 0x412   :  { %v12304_v49 = vadd.f32 %v1815_v43, %v9155_v48  ;;  %v3787_v55 = vsel %vm12220_vm2, %v12195_v57, %v3782_v41  ;;  %v3797_v45 = vsel %vm12275_vm10, %v12111_v21, %v3793_v15  ;;  %vm12314_vm13 = vmor %vm3824_vm12, %vm3825_vm7  ;;  %v3831_v53 = vor.u32 1.1754944e-38, %v3830_v17  ;;  %v1549_v17 = vpop.f32.mrf.mxu0 }
 0x413   :  { %v3845_v8 = vand.u32 2147483648, %v12095_v36  ;;  %v3812_v20 = vsel %vm12293_vm11, %v12133_v44, %v3808_v10  ;;  %v3827_v57 = vsel %vm12314_vm13, %v12144_v40, %v3823_v42  ;;  %v3838_v21 = vadd.f32 %v12187_v59, %v3837_v32 }
 0x414   :  { %vm3840_vm15 = vweird.f32 %v12187_v59  ;;  %v3851_v4 = vsub.f32 1.0, %v3850_v60  ;;  %v3865_v47 = vmul.f32 %v12269_v38, %v12199_v9  ;;  %7898 = vrcp.f32 %v12285_v11 }
 0x415   :  { %v7895_v18 = vpop.eup %7894  ;;  %v12330_v5 = vadd.f32 1.0, %v7893_v23  ;;  %vm3839_vm0 = vweird.f32 %v12095_v36  ;;  %vm12333_vm1 = vcmp.eq.f32.partialorder %v3843_v52, 8.507059e+37  ;;  %v7198_v40 = vmul.f32 -1.442695, %v12304_v49 }
 0x416   :  { %v7897_v41 = vpop.eup %7896  ;;  %v12339_v32 = vadd.f32 %v1949_v3, %v9160_v31  ;;  %v12342_v10 = vmul.f32 %v3787_v55, %v11860_v30  ;;  %v3802_v42 = vsel %vm12253_vm5, %v12239_v50, %v3797_v45  ;;  %v3817_v15 = vsel %vm12279_vm8, %v3816_v24, %v3812_v20  ;;  %vm12351_vm2 = vmor %vm3839_vm0, %vm3840_vm15 }
 0x417   :  { %v3846_v43 = vor.u32 1.1754944e-38, %v3845_v8  ;;  %v3832_v46 = vsel %vm12298_vm14, %v3831_v53, %v3827_v57  ;;  %v3842_v30 = vsel %vm12351_vm2, %v12187_v59, %v3838_v21  ;;  %v12360_v60 = vadd.f32 1.0, %v7895_v18  ;;  %v18785_v59 = vld [vmem:[#allocation76_spill] sm:$0xff]  ;;  %v246_v53 = vpop.xlane.xlu2 %245  ;;  %v1683_v57 = vpop.f32.mrf.mxu1 }
 0x418   :  { %18781 = vst [vmem:[#allocation88_spill] sm:$0xff] %v12342_v10  ;;  %v12363_v50 = vadd.f32 %v1549_v17, %v9142_v25  ;;  %v3852_v39 = vmul.f32 %v12237_v61, %v3851_v4  ;;  %v3866_v2 = vsub.f32 1.0, %v3865_v47  ;;  %7900 = vrcp.f32 %v12330_v5 }
 0x419   :  { %v12367_v24 = vadd.f32 1.0, %v7897_v41  ;;  %v12370_v23 = vmul.f32 %v3802_v42, %v11888_v27  ;;  %7902 = vpow2.f32 %v7198_v40  ;;  %v7199_v34 = vmul.f32 -1.442695, %v12339_v32 }
 0x41a   :  { %v546_v58 = vmul.f32 %v18785_v59, %v8685_v13  ;;  %v12375_v52 = vpop.eup %7898  ;;  %v12378_v55 = vmul.f32 %v3817_v15, %v11896_v33  ;;  %v12381_v45 = vmul.f32 %v3832_v46, %v11907_v35  ;;  %v3858_v6 = vand.u32 2147483647, %v12174_v26 }
 0x41b   :  { %18784 = vst [vmem:[#allocation89_spill] sm:$0xff] %v12370_v23  ;;  %v547_v27 = vmul.f32 %v12215_v63, %v8685_v13  ;;  %v3847_v8 = vsel %vm12333_vm1, %v3846_v43, %v3842_v30  ;;  %vm3855_vm3 = vweird.f32 %v12237_v61  ;;  %v3860_v3 = vand.u32 2147483648, %v12174_v26 }
 0x41c   :  { %18786 = vst [vmem:[#allocation76_spill] sm:$0xff] %v12378_v55  ;;  %7904 = vrcp.f32 %v12360_v60  ;;  %v3853_v33 = vadd.f32 %v12237_v61, %v3852_v39  ;;  %v3867_v35 = vmul.f32 %v12269_v38, %v3866_v2  ;;  %v7200_v20 = vmul.f32 -1.442695, %v12363_v50  ;;  %v8453_v2 = vld [vmem:[#allocation2 + $0x178] sm:$0xff] }
 0x41d   :  { %18787 = vst [vmem:[#allocation90_spill] sm:$0xff] %v12381_v45  ;;  %7906 = vrcp.f32 %v12367_v24  ;;  %v3880_v63 = vmul.f32 %v12375_v52, %v12285_v11  ;;  %v12397_v21 = vadd.f32 1e-05, %v546_v58  ;;  %v305_v18 = vmul.f32 %v8685_v13, %v246_v53 }
 0x41e   :  { %7908 = vpow2.f32 %v7199_v34  ;;  %v12400_v4 = vpop.eup %7900  ;;  %v12403_v47 = vmul.f32 %v3847_v8, %v11951_v29  ;;  %vm3854_vm4 = vweird.f32 %v12174_v26  ;;  %v3873_v17 = vand.u32 2147483647, %v12199_v9 }
 0x41f   :  { %v12407_v41 = vadd.f32 1e-05, %v547_v27  ;;  %v7903_v44 = vpop.eup %7902  ;;  %vm12411_vm9 = vmor %vm3854_vm4, %vm3855_vm3  ;;  %vm12415_vm5 = vcmp.eq.f32.partialorder %v3858_v6, 8.507059e+37  ;;  %v3861_v15 = vor.u32 1.1754944e-38, %v3860_v3  ;;  %v3875_v29 = vand.u32 2147483648, %v12199_v9 }
 0x420   :  { %18788 = vst [vmem:[#allocation91_spill] sm:$0xff] %v12403_v47  ;;  %v12421_v26 = vadd.f32 %v1683_v57, %v9147_v14  ;;  %v3857_v36 = vsel %vm12411_vm9, %v12237_v61, %v3853_v33  ;;  %v3868_v43 = vadd.f32 %v12269_v38, %v3867_v35  ;;  %vm3870_vm6 = vweird.f32 %v12269_v38 }
 0x421   :  { %7910 = vpow2.f32 %v7200_v20  ;;  %v3881_v30 = vsub.f32 1.0, %v3880_v63  ;;  %v3895_v39 = vmul.f32 %v12400_v4, %v12330_v5  ;;  %v12433_v34 = vsub.f32 %v8453_v2, %v305_v18 }
 0x422   :  { %v12428_v46 = vpop.eup %7904  ;;  %7912 = vrsqrt.f32 %v12397_v21  ;;  %vm3869_vm7 = vweird.f32 %v12199_v9  ;;  %vm12438_vm10 = vcmp.eq.f32.partialorder %v3873_v17, 8.507059e+37  ;;  %v12442_v58 = vadd.f32 1.0, %v7903_v44 }
 0x423   :  { %18793 = vst [vmem:[#allocation92_spill] sm:$0xff] %v12433_v34  ;;  %v12435_v59 = vpop.eup %7906  ;;  %7914 = vrsqrt.f32 %v12407_v41  ;;  %vm12445_vm8 = vmor %vm3869_vm7, %vm3870_vm6  ;;  %v3888_v53 = vand.u32 2147483647, %v12285_v11  ;;  %v3890_v8 = vand.u32 2147483648, %v12285_v11  ;;  %v3905_v3 = vand.u32 2147483648, %v12330_v5 }
 0x424   :  { %v7909_v6 = vpop.eup %7908  ;;  %v7201_v9 = vmul.f32 -1.442695, %v12421_v26  ;;  %v3862_v33 = vsel %vm12415_vm5, %v3861_v15, %v3857_v36  ;;  %v3872_v35 = vsel %vm12445_vm8, %v12269_v38, %v3868_v43  ;;  %v3876_v20 = vor.u32 1.1754944e-38, %v3875_v29 }
 0x425   :  { %v3910_v57 = vmul.f32 %v12428_v46, %v12360_v60  ;;  %v3882_v63 = vmul.f32 %v12375_v52, %v3881_v30  ;;  %v3896_v18 = vsub.f32 1.0, %v3895_v39  ;;  %v3925_v17 = vmul.f32 %v12435_v59, %v12367_v24 }
 0x426   :  { %v405_v44 = vmul.f32 %v12433_v34, %v12433_v34  ;;  %vm3884_vm11 = vweird.f32 %v12285_v11  ;;  %v3903_v42 = vand.u32 2147483647, %v12330_v5  ;;  %7916 = vrcp.f32 %v12442_v58 }
 0x427   :  { %v7911_v40 = vpop.eup %7910  ;;  %v12468_v38 = vadd.f32 1.0, %v7909_v6  ;;  %v12473_v29 = vmul.f32 %v3862_v33, %v12000_v62  ;;  %vm12475_vm12 = vcmp.eq.f32.partialorder %v3888_v53, 8.507059e+37  ;;  %v3891_v43 = vor.u32 1.1754944e-38, %v3890_v8  ;;  %v1817_v33 = vpop.f32.mrf.mxu2 }
 0x428   :  { %v12470_v15 = vpop.eup %7912  ;;  %vm3899_vm14 = vweird.f32 %v12330_v5  ;;  %v12480_v30 = vor.u32 1.1754944e-38, %v3905_v3  ;;  %7918 = vpow2.f32 %v7201_v9  ;;  %502 = vadd.xlane.f32.xlu1 %v405_v44  ;;  %v3877_v2 = vsel %vm12438_vm10, %v3876_v20, %v3872_v35 }
 0x429   :  { %18798 = vst [vmem:[#allocation93_spill] sm:$0xff] %v12473_v29  ;;  %v12482_v39 = vpop.eup %7914  ;;  %v3911_v6 = vsub.f32 1.0, %v3910_v57  ;;  %v3920_v62 = vand.u32 2147483648, %v12360_v60  ;;  %v3935_v27 = vand.u32 2147483648, %v12367_v24  ;;  %v3883_v53 = vadd.f32 %v12375_v52, %v3882_v63  ;;  %v1951_v63 = vpop.f32.mrf.mxu3 }
 0x42a   :  { %vm3885_vm13 = vweird.f32 %v12375_v52  ;;  %v3897_v8 = vmul.f32 %v12400_v4, %v3896_v18  ;;  %v3926_v3 = vsub.f32 1.0, %v3925_v17  ;;  %vm3914_vm15 = vweird.f32 %v12360_v60 }
 0x42b   :  { %v3918_v9 = vand.u32 2147483647, %v12360_v60  ;;  %7920 = vrcp.f32 %v12468_v38  ;;  %v989_v61 = vmul.f32 %v12470_v15, %v12397_v21  ;;  %v12497_v35 = vmul.f32 %v3877_v2, %v12038_v37  ;;  %vm12515_vm3 = vmor %vm3884_vm11, %vm3885_vm13  ;;  %v1552_v37 = vpop.f32.mrf.mxu0  ;;  %v248_v60 = vpop.xlane.xlu2 %247 }
 0x42c   :  { %vm3900_vm0 = vweird.f32 %v12400_v4  ;;  %vm12500_vm1 = vcmp.eq.f32.partialorder %v3903_v42, 8.507059e+37  ;;  %vm3929_vm2 = vweird.f32 %v12367_v24  ;;  %v12505_v57 = vadd.f32 1.0, %v7911_v40  ;;  %v12509_v17 = vpop.eup %7916 }
 0x42d   :  { %18801 = vst [vmem:[#allocation94_spill] sm:$0xff] %v12497_v35  ;;  %v999_v18 = vmul.f32 %v12482_v39, %v12407_v41  ;;  %v3912_v44 = vmul.f32 %v12428_v46, %v3911_v6  ;;  %v3921_v42 = vor.u32 1.1754944e-38, %v3920_v62  ;;  %v3933_v40 = vand.u32 2147483647, %v12367_v24  ;;  %vm12553_vm6 = vmor %vm3899_vm14, %vm3900_vm0 }
 0x42e   :  { %v12521_v2 = vor.u32 1.1754944e-38, %v3935_v27  ;;  %v7919_v47 = vpop.eup %7918  ;;  %v3887_v45 = vsel %vm12515_vm3, %v12375_v52, %v3883_v53  ;;  %v3898_v35 = vadd.f32 %v12400_v4, %v3897_v8  ;;  %v3927_v11 = vmul.f32 %v12435_v59, %v3926_v3  ;;  %v1686_v8 = vpop.f32.mrf.mxu1 }
 0x42f   :  { %v12529_v55 = vadd.f32 %v1817_v33, %v9155_v48  ;;  %vm3915_vm4 = vweird.f32 %v12428_v46  ;;  %vm12532_vm9 = vcmp.eq.f32.partialorder %v3918_v9, 8.507059e+37  ;;  %v3950_v62 = vand.u32 2147483648, %v12442_v58 }
 0x430   :  { %v12538_v27 = vadd.f32 %v1951_v63, %v9160_v31  ;;  %v990_v52 = vmul.f32 %v12470_v15, %v989_v61  ;;  %vm3930_vm5 = vweird.f32 %v12435_v59  ;;  %v3948_v53 = vand.u32 2147483647, %v12442_v58  ;;  %vm12587_vm10 = vmor %vm3914_vm15, %vm3915_vm4 }
 0x431   :  { %7922 = vrcp.f32 %v12505_v57  ;;  %v1000_v3 = vmul.f32 %v12482_v39, %v999_v18  ;;  %v12545_v33 = vpop.eup %7920  ;;  %v3892_v9 = vsel %vm12475_vm12, %v3891_v43, %v3887_v45  ;;  %v3913_v63 = vadd.f32 %v12428_v46, %v3912_v44  ;;  %vm12604_vm8 = vmor %vm3929_vm2, %vm3930_vm5  ;;  %v1954_v6 = vpop.f32.mrf.mxu3 }
 0x432   :  { %vm12558_vm7 = vcmp.eq.f32.partialorder %v3933_v40, 8.507059e+37  ;;  %v3940_v18 = vmul.f32 %v12509_v17, %v12442_v58  ;;  %v12564_v23 = vadd.f32 1.0, %v7919_v47  ;;  %v3902_v45 = vsel %vm12553_vm6, %v12400_v4, %v3898_v35 }
 0x433   :  { %v3928_v5 = vadd.f32 %v12435_v59, %v3927_v11  ;;  %v7202_v36 = vmul.f32 -1.442695, %v12529_v55  ;;  %v12572_v43 = vadd.f32 %v1552_v37, %v9142_v25  ;;  %v12574_v44 = vor.u32 1.1754944e-38, %v3950_v62  ;;  %v1820_v62 = vpop.f32.mrf.mxu2 }
 0x434   :  { %v7203_v40 = vmul.f32 -1.442695, %v12538_v27  ;;  %v12578_v10 = vadd.f32 %v1686_v8, %v9147_v14  ;;  %v991_v47 = vmul.f32 0.5, %v990_v52  ;;  %v12581_v16 = vmul.f32 %v3892_v9, %v12153_v0 }
 0x435   :  { %v3955_v35 = vmul.f32 %v12545_v33, %v12468_v38  ;;  %v3963_v11 = vand.u32 2147483647, %v12468_v38  ;;  %v1001_v37 = vmul.f32 0.5, %v1000_v3  ;;  %v3907_v0 = vsel %vm12500_vm1, %v12480_v30, %v3902_v45 }
 0x436   :  { %18812 = vst [vmem:[#allocation95_spill] sm:$0xff] %v12581_v16  ;;  %v3917_v52 = vsel %vm12587_vm10, %v12428_v46, %v3913_v63  ;;  %v3941_v8 = vsub.f32 1.0, %v3940_v18  ;;  %7924 = vrcp.f32 %v12564_v23  ;;  %v3932_v30 = vsel %vm12604_vm8, %v12435_v59, %v3928_v5  ;;  %v12626_v5 = vpop.xlane.xlu0 %490 }
 0x437   :  { %v12609_v3 = vpop.eup %7922  ;;  %v3965_v20 = vand.u32 2147483648, %v12468_v38  ;;  %7926 = vpow2.f32 %v7202_v36  ;;  %v7204_v46 = vmul.f32 -1.442695, %v12572_v43  ;;  %vm3944_vm11 = vweird.f32 %v12442_v58 }
 0x438   :  { %7928 = vpow2.f32 %v7203_v40  ;;  %v7205_v24 = vmul.f32 -1.442695, %v12578_v10  ;;  %v12619_v9 = vadd.f32 %v1820_v62, %v9155_v48  ;;  %v992_v61 = vsub.f32 1.5, %v991_v47 }
 0x439   :  { %v12622_v63 = vmul.f32 %v3907_v0, %v12185_v19  ;;  %v3922_v59 = vsel %vm12532_vm9, %v3921_v42, %v3917_v52  ;;  %v3956_v18 = vsub.f32 1.0, %v3955_v35  ;;  %v1002_v45 = vsub.f32 1.5, %v1001_v37 }
 0x43a   :  { %v3942_v36 = vmul.f32 %v12509_v17, %v3941_v8  ;;  %v3970_v40 = vmul.f32 %v12609_v3, %v12505_v57  ;;  %vm994_vm12 = vweird.f32 %v12397_v21  ;;  %vm995_vm14 = vweird.f32 %v12470_v15 }
 0x43b   :  { %18817 = vst [vmem:[#allocation96_spill] sm:$0xff] %v12622_v63  ;;  %v3937_v19 = vsel %vm12558_vm7, %v12521_v2, %v3932_v30  ;;  %vm3945_vm13 = vweird.f32 %v12509_v17  ;;  %vm3959_vm15 = vweird.f32 %v12468_v38  ;;  %v12638_v42 = vor.u32 1.1754944e-38, %v3965_v20  ;;  %v1554_v2 = vpop.f32.mrf.mxu0  ;;  %vm12657_vm2 = vmor %vm994_vm12, %vm995_vm14 }
 0x43c   :  { %7930 = vpow2.f32 %v7204_v46  ;;  %v12640_v47 = vpop.eup %7924  ;;  %vm12642_vm0 = vcmp.eq.f32.partialorder %v3948_v53, 8.507059e+37  ;;  %vm3960_vm1 = vweird.f32 %v12545_v33  ;;  %v7206_v29 = vmul.f32 -1.442695, %v12619_v9  ;;  %vm12693_vm5 = vmor %vm3944_vm11, %vm3945_vm13 }
 0x43d   :  { %7932 = vpow2.f32 %v7205_v24  ;;  %v993_v35 = vmul.f32 %v12470_v15, %v992_v61  ;;  %v7927_v62 = vpop.eup %7926  ;;  %v12650_v37 = vmul.f32 %v3922_v59, %v12202_v12  ;;  %v3957_v0 = vmul.f32 %v12545_v33, %v3956_v18  ;;  %vm12727_vm10 = vmor %vm3959_vm15, %vm3960_vm1 }
 0x43e   :  { %v1003_v52 = vmul.f32 %v12482_v39, %v1002_v45  ;;  %vm1005_vm3 = vweird.f32 %v12482_v39  ;;  %v7929_v8 = vpop.eup %7928  ;;  %v12664_v30 = vmul.f32 %v3937_v19, %v12209_v54  ;;  %v3943_v12 = vadd.f32 %v12509_v17, %v3942_v36  ;;  %v1688_v54 = vpop.f32.mrf.mxu1 }
 0x43f   :  { %18820 = vst [vmem:[#allocation97_spill] sm:$0xff] %v12650_v37  ;;  %v3971_v20 = vsub.f32 1.0, %v3970_v40  ;;  %v12668_v46 = vadd.f32 %v1954_v6, %v9160_v31  ;;  %v3978_v21 = vand.u32 2147483647, %v12505_v57  ;;  %v3985_v24 = vmul.f32 %v12640_v47, %v12564_v23 }
 0x440   :  { %18823 = vst [vmem:[#allocation98_spill] sm:$0xff] %v12664_v30  ;;  %v12674_v61 = vadd.f32 %v1554_v2, %v9142_v25  ;;  %vm1004_vm4 = vweird.f32 %v12407_v41  ;;  %v12677_v59 = vadd.f32 1.0, %v7927_v62  ;;  %7934 = vpow2.f32 %v7206_v29 }
 0x441   :  { %v997_v18 = vsel %vm12657_vm2, %v12470_v15, %v993_v35  ;;  %vm12684_vm9 = vmor %vm1004_vm4, %vm1005_vm3  ;;  %v306_v36 = vmul.f32 %v8685_v13, %v248_v60  ;;  %v3958_v19 = vadd.f32 %v12545_v33, %v3957_v0  ;;  %vm12700_vm6 = vcmp.eq.f32.partialorder %v3963_v11, 8.507059e+37 }
 0x442   :  { %v7931_v40 = vpop.eup %7930  ;;  %vm3974_vm7 = vweird.f32 %v12505_v57  ;;  %v12705_v6 = vadd.f32 1.0, %v7929_v8  ;;  %v1007_v58 = vsel %vm12684_vm9, %v12482_v39, %v1003_v52  ;;  %v3947_v2 = vsel %vm12693_vm5, %v12509_v17, %v3943_v12  ;;  %v18830_v8 = vld [vmem:[#allocation20_spill] sm:$0xff]  ;;  %v12721_v39 = vpop.xlane.xlu0 %492 }
 0x443   :  { %v7933_v29 = vpop.eup %7932  ;;  %v3972_v35 = vmul.f32 %v12609_v3, %v3971_v20  ;;  %v3980_v11 = vand.u32 2147483648, %v12505_v57  ;;  %v7207_v62 = vmul.f32 -1.442695, %v12668_v46  ;;  %v3986_v0 = vsub.f32 1.0, %v3985_v24  ;;  %v18835_v20 = vld [vmem:[#allocation60_spill] sm:$0xff] }
 0x444   :  { %v7208_v53 = vmul.f32 -1.442695, %v12674_v61  ;;  %v12718_v60 = vadd.f32 %v1688_v54, %v9147_v14  ;;  %v1146_v45 = vmul.f32 %v997_v18, %v18830_v8  ;;  %vm12731_vm8 = vcmp.eq.f32.partialorder %v3978_v21, 8.507059e+37  ;;  %v8454_v54 = vld [vmem:[#allocation2 + $0x180] sm:$0xff] }
 0x445   :  { %7936 = vrcp.f32 %v12677_v59  ;;  %v12736_v12 = vadd.f32 1.0, %v7931_v40  ;;  %v1147_v24 = vmul.f32 %v1007_v58, %v18835_v20  ;;  %v12739_v18 = vsub.f32 %v8454_v54, %v306_v36 }
 0x446   :  { %v3952_v38 = vsel %vm12642_vm0, %v12574_v44, %v3947_v2  ;;  %v3962_v21 = vsel %vm12727_vm10, %v12545_v33, %v3958_v19  ;;  %7938 = vrcp.f32 %v12705_v6  ;;  %v12748_v41 = vadd.f32 1.0, %v7933_v29  ;;  %v7935_v8 = vpop.eup %7934  ;;  %v12757_v33 = vld [vmem:[#allocation5] ss:$0 sm:$0xff] }
 0x447   :  { %18836 = vst [vmem:[#allocation20_spill] sm:$0xff] %v12739_v18  ;;  %v3973_v40 = vadd.f32 %v12609_v3, %v3972_v35  ;;  %vm3975_vm11 = vweird.f32 %v12609_v3  ;;  %7940 = vpow2.f32 %v7207_v62  ;;  %v548_v36 = vmul.f32 %v12287_v22, %v8685_v13 }
 0x448   :  { %7942 = vpow2.f32 %v7208_v53  ;;  %v7209_v44 = vmul.f32 -1.442695, %v12718_v60  ;;  %v549_v4 = vmul.f32 %v12626_v5, %v8685_v13  ;;  %v1200_v19 = vmul.f32 %v12757_v33, %v1146_v45  ;;  %vm12770_vm12 = vmor %vm3974_vm7, %vm3975_vm11 }
 0x449   :  { %v3987_v58 = vmul.f32 %v12640_v47, %v3986_v0  ;;  %7944 = vrcp.f32 %v12736_v12  ;;  %v406_v29 = vmul.f32 %v12739_v18, %v12739_v18  ;;  %v1201_v2 = vmul.f32 %v12757_v33, %v1147_v24 }
 0x44a   :  { %v12766_v22 = vmul.f32 %v3952_v38, %v12304_v49  ;;  %v3981_v35 = vor.u32 1.1754944e-38, %v3980_v11  ;;  %7946 = vrcp.f32 %v12748_v41  ;;  %v12775_v62 = vadd.f32 1.0, %v7935_v8 }
 0x44b   :  { %v12777_v0 = vpop.eup %7936  ;;  %v3967_v53 = vsel %vm12700_vm6, %v12638_v42, %v3962_v21  ;;  %v3977_v49 = vsel %vm12770_vm12, %v12609_v3, %v3973_v40  ;;  %v3993_v57 = vand.u32 2147483647, %v12564_v23  ;;  %v12786_v45 = vadd.f32 1e-05, %v548_v36  ;;  %504 = vadd.xlane.f32.xlu2 %v406_v29  ;;  %v1822_v3 = vpop.f32.mrf.mxu2 }
 0x44c   :  { %18837 = vst [vmem:[#allocation60_spill] sm:$0xff] %v12766_v22  ;;  %v12788_v11 = vpop.eup %7938  ;;  %v3995_v17 = vand.u32 2147483648, %v12564_v23  ;;  %v12791_v20 = vadd.f32 1e-05, %v549_v4  ;;  %v1254_v24 = vadd.f32 %v12228_v51, %v1200_v19  ;;  %v1255_v15 = vadd.f32 %v12228_v51, %v1201_v2  ;;  %v250_v51 = vpop.xlane.xlu0 %249 }
 0x44d   :  { %v7941_v42 = vpop.eup %7940  ;;  %v3988_v54 = vadd.f32 %v12640_v47, %v3987_v58  ;;  %vm3989_vm14 = vweird.f32 %v12564_v23  ;;  %vm3990_vm13 = vweird.f32 %v12640_v47  ;;  %7948 = vpow2.f32 %v7209_v44  ;;  %v1956_v44 = vpop.f32.mrf.mxu3 }
 0x44e   :  { %v7943_v38 = vpop.eup %7942  ;;  %v3982_v21 = vsel %vm12731_vm8, %v3981_v35, %v3977_v49  ;;  %v4000_v8 = vmul.f32 %v12777_v0, %v12677_v59  ;;  %7950 = vrcp.f32 %v12775_v62  ;;  %v1285_v40 = vpack.c.bf16 %v1255_v15, %v1254_v24  ;;  %vm12821_vm0 = vmor %vm3989_vm14, %vm3990_vm13 }
 0x44f   :  { %v12803_v36 = vpop.eup %7944  ;;  %v12806_v4 = vmul.f32 %v3967_v53, %v12339_v32  ;;  %vm12808_vm15 = vcmp.eq.f32.partialorder %v3993_v57, 8.507059e+37  ;;  %v4015_v52 = vmul.f32 %v12788_v11, %v12705_v6  ;;  %7952 = vrsqrt.f32 %v12786_v45  ;;  %v1557_v57 = vpop.f32.mrf.mxu0 }
 0x450   :  { %v12815_v58 = vpop.eup %7946  ;;  %v3996_v32 = vor.u32 1.1754944e-38, %v3995_v17  ;;  %v12826_v2 = vadd.f32 %v1822_v3, %v9155_v48  ;;  %7954 = vrsqrt.f32 %v12791_v20  ;;  %1596 = vmatmul.bf16.gmra.mxu0 %v1285_v40  ;;  %1730 = vmatmul.bf16.gmra.mxu1 %v1285_v40  ;;  %v307_v5 = vmul.f32 %v8685_v13, %v250_v51  ;;  %v8456_v3 = vld [vmem:[#allocation2 + $0x188] sm:$0xff] }
 0x451   :  { %18840 = vst [vmem:[#allocation99_spill] sm:$0xff] %v12806_v4  ;;  %v12831_v35 = vmul.f32 %v3982_v21, %v12363_v50  ;;  %v3992_v23 = vsel %vm12821_vm0, %v12640_v47, %v3988_v54  ;;  %v4010_v53 = vand.u32 2147483648, %v12677_v59  ;;  %v4025_v49 = vand.u32 2147483648, %v12705_v6  ;;  %1864 = vmatmul.bf16.gmra.mxu2 %v1285_v40  ;;  %1998 = vmatmul.bf16.gmra.mxu3 %v1285_v40 }
 0x452   :  { %v4001_v17 = vsub.f32 1.0, %v4000_v8  ;;  %v12838_v24 = vadd.f32 1.0, %v7941_v42  ;;  %v12841_v15 = vadd.f32 %v1956_v44, %v9160_v31  ;;  %v12843_v50 = vsub.f32 %v8456_v3, %v307_v5 }
 0x453   :  { %18845 = vst [vmem:[#allocation100_spill] sm:$0xff] %v12831_v35  ;;  %v12845_v21 = vpop.eup %7948  ;;  %v4016_v51 = vsub.f32 1.0, %v4015_v52  ;;  %v4030_v47 = vmul.f32 %v12803_v36, %v12736_v12  ;;  %v4045_v54 = vmul.f32 %v12815_v58, %v12748_v41  ;;  %v12851_v29 = vadd.f32 1.0, %v7943_v38 }
 0x454   :  { %18846 = vst [vmem:[#allocation101_spill] sm:$0xff] %v12843_v50  ;;  %v12853_v8 = vpop.eup %7950  ;;  %vm4004_vm1 = vweird.f32 %v12677_v59  ;;  %v4008_v42 = vand.u32 2147483647, %v12677_v59  ;;  %v7210_v40 = vmul.f32 -1.442695, %v12826_v2  ;;  %v12859_v44 = vadd.f32 %v1557_v57, %v9142_v25 }
 0x455   :  { %v407_v52 = vmul.f32 %v12843_v50, %v12843_v50  ;;  %v12863_v5 = vpop.eup %7952  ;;  %v3997_v38 = vsel %vm12808_vm15, %v3996_v32, %v3992_v23  ;;  %v12867_v3 = vor.u32 1.1754944e-38, %v4010_v53  ;;  %vm4019_vm2 = vweird.f32 %v12705_v6 }
 0x456   :  { %v4023_v4 = vand.u32 2147483647, %v12705_v6  ;;  %v12871_v22 = vor.u32 1.1754944e-38, %v4025_v49  ;;  %v12873_v30 = vpop.eup %7954  ;;  %v4002_v57 = vmul.f32 %v12777_v0, %v4001_v17  ;;  %v4038_v35 = vand.u32 2147483647, %v12736_v12 }
 0x457   :  { %7956 = vrcp.f32 %v12838_v24  ;;  %v7211_v37 = vmul.f32 -1.442695, %v12841_v15  ;;  %506 = vadd.xlane.f32.xlu0 %v407_v52  ;;  %v4017_v19 = vmul.f32 %v12788_v11, %v4016_v51  ;;  %v4031_v32 = vsub.f32 1.0, %v4030_v47 }
 0x458   :  { %v4046_v23 = vsub.f32 1.0, %v4045_v54  ;;  %7958 = vrcp.f32 %v12851_v29  ;;  %vm4034_vm3 = vweird.f32 %v12736_v12  ;;  %v4040_v53 = vand.u32 2147483648, %v12736_v12 }
 0x459   :  { %v4060_v49 = vmul.f32 %v12853_v8, %v12775_v62  ;;  %7960 = vpow2.f32 %v7210_v40  ;;  %v7212_v17 = vmul.f32 -1.442695, %v12859_v44  ;;  %v12887_v63 = vmul.f32 %v3997_v38, %v12421_v26 }
 0x45a   :  { %vm12889_vm4 = vcmp.eq.f32.partialorder %v4008_v42, 8.507059e+37  ;;  %vm12893_vm9 = vcmp.eq.f32.partialorder %v4023_v4, 8.507059e+37  ;;  %v4055_v47 = vand.u32 2147483648, %v12748_v41  ;;  %v1009_v54 = vmul.f32 %v12863_v5, %v12786_v45 }
 0x45b   :  { %18847 = vst [vmem:[#allocation102_spill] sm:$0xff] %v12887_v63  ;;  %v1019_v40 = vmul.f32 %v12873_v30, %v12791_v20  ;;  %vm4005_vm5 = vweird.f32 %v12777_v0  ;;  %vm4020_vm6 = vweird.f32 %v12788_v11  ;;  %v4053_v26 = vand.u32 2147483647, %v12748_v41 }
 0x45c   :  { %7962 = vpow2.f32 %v7211_v37  ;;  %v4003_v4 = vadd.f32 %v12777_v0, %v4002_v57  ;;  %v4018_v42 = vadd.f32 %v12788_v11, %v4017_v19  ;;  %v4032_v38 = vmul.f32 %v12803_v36, %v4031_v32  ;;  %vm12916_vm10 = vmor %vm4004_vm1, %vm4005_vm5 }
 0x45d   :  { %v4047_v63 = vmul.f32 %v12815_v58, %v4046_v23  ;;  %v12909_v16 = vpop.eup %7956  ;;  %v4041_v7 = vor.u32 1.1754944e-38, %v4040_v53  ;;  %vm4049_vm7 = vweird.f32 %v12748_v41  ;;  %v4061_v50 = vsub.f32 1.0, %v4060_v49  ;;  %vm12927_vm8 = vmor %vm4019_vm2, %vm4020_vm6 }
 0x45e   :  { %7964 = vpow2.f32 %v7212_v17  ;;  %v12912_v18 = vpop.eup %7958  ;;  %v4056_v57 = vor.u32 1.1754944e-38, %v4055_v47  ;;  %v4070_v19 = vand.u32 2147483648, %v12775_v62  ;;  %v1010_v32 = vmul.f32 %v12863_v5, %v1009_v54 }
 0x45f   :  { %v1020_v23 = vmul.f32 %v12873_v30, %v1019_v40  ;;  %v7961_v53 = vpop.eup %7960  ;;  %vm4035_vm11 = vweird.f32 %v12803_v36  ;;  %vm12932_vm12 = vcmp.eq.f32.partialorder %v4038_v35, 8.507059e+37  ;;  %vm4050_vm14 = vweird.f32 %v12815_v58 }
 0x460   :  { %vm12937_vm13 = vcmp.eq.f32.partialorder %v4053_v26, 8.507059e+37  ;;  %vm4064_vm15 = vweird.f32 %v12775_v62  ;;  %v4068_v6 = vand.u32 2147483647, %v12775_v62  ;;  %v4007_v47 = vsel %vm12916_vm10, %v12777_v0, %v4003_v4  ;;  %vm12963_vm0 = vmor %vm4034_vm3, %vm4035_vm11  ;;  %v1825_v62 = vpop.f32.mrf.mxu2 }
 0x461   :  { %v4022_v35 = vsel %vm12927_vm8, %v12788_v11, %v4018_v42  ;;  %v4033_v54 = vadd.f32 %v12803_v36, %v4032_v38  ;;  %v4048_v40 = vadd.f32 %v12815_v58, %v4047_v63  ;;  %v4062_v34 = vmul.f32 %v12853_v8, %v4061_v50  ;;  %vm12979_vm1 = vmor %vm4049_vm7, %vm4050_vm14 }
 0x462   :  { %v7963_v26 = vpop.eup %7962  ;;  %v4075_v1 = vmul.f32 %v12909_v16, %v12838_v24  ;;  %v4090_v28 = vmul.f32 %v12912_v18, %v12851_v29  ;;  %v12957_v37 = vadd.f32 1.0, %v12845_v21  ;;  %v4071_v63 = vor.u32 1.1754944e-38, %v4070_v19 }
 0x463   :  { %v12967_v11 = vadd.f32 1.0, %v7961_v53  ;;  %v1011_v50 = vmul.f32 0.5, %v1010_v32  ;;  %v1021_v4 = vmul.f32 0.5, %v1020_v23  ;;  %v4012_v38 = vsel %vm12889_vm4, %v12867_v3, %v4007_v47 }
 0x464   :  { %v7965_v42 = vpop.eup %7964  ;;  %v4027_v21 = vsel %vm12893_vm9, %v12871_v22, %v4022_v35  ;;  %v4083_v19 = vand.u32 2147483647, %v12838_v24  ;;  %v4085_v32 = vand.u32 2147483648, %v12838_v24  ;;  %v4037_v3 = vsel %vm12963_vm0, %v12803_v36, %v4033_v54 }
 0x465   :  { %v4052_v22 = vsel %vm12979_vm1, %v12815_v58, %v4048_v40  ;;  %vm4065_vm2 = vweird.f32 %v12853_v8  ;;  %vm12992_vm3 = vcmp.eq.f32.partialorder %v4068_v6, 8.507059e+37  ;;  %v12996_v52 = vadd.f32 1.0, %v7963_v26 }
 0x466   :  { %v4063_v51 = vadd.f32 %v12853_v8, %v4062_v34  ;;  %v4076_v23 = vsub.f32 1.0, %v4075_v1  ;;  %v4091_v53 = vsub.f32 1.0, %v4090_v28  ;;  %7966 = vrcp.f32 %v12957_v37  ;;  %v1691_v1 = vpop.f32.mrf.mxu1  ;;  %vm13021_vm9 = vmor %vm4064_vm15, %vm4065_vm2 }
 0x467   :  { %7968 = vrcp.f32 %v12967_v11  ;;  %v13001_v36 = vadd.f32 1.0, %v7965_v42  ;;  %v1012_v49 = vsub.f32 1.5, %v1011_v50  ;;  %v1022_v58 = vsub.f32 1.5, %v1021_v4  ;;  %v1959_v50 = vpop.f32.mrf.mxu3 }
 0x468   :  { %v13004_v47 = vmul.f32 %v4012_v38, %v12529_v55  ;;  %v13007_v6 = vmul.f32 %v4027_v21, %v12538_v27  ;;  %vm4079_vm4 = vweird.f32 %v12838_v24  ;;  %v13010_v35 = vor.u32 1.1754944e-38, %v4085_v32  ;;  %v495_v38 = vpop.xlane.xlu1 %494 }
 0x469   :  { %v4098_v28 = vand.u32 2147483647, %v12851_v29  ;;  %v4042_v34 = vsel %vm12932_vm12, %v4041_v7, %v4037_v3  ;;  %v4057_v54 = vsel %vm12937_vm13, %v4056_v57, %v4052_v22  ;;  %vm4094_vm5 = vweird.f32 %v12851_v29  ;;  %v1559_v22 = vpop.f32.mrf.mxu0 }
 0x46a   :  { %18866 = vst [vmem:[#allocation103_spill] sm:$0xff] %v13004_v47  ;;  %v4100_v27 = vand.u32 2147483648, %v12851_v29  ;;  %7970 = vrcp.f32 %v12996_v52  ;;  %v4067_v7 = vsel %vm13021_vm9, %v12853_v8, %v4063_v51  ;;  %v4077_v57 = vmul.f32 %v12909_v16, %v4076_v23 }
 0x46b   :  { %18867 = vst [vmem:[#allocation104_spill] sm:$0xff] %v13007_v6  ;;  %v4092_v59 = vmul.f32 %v12912_v18, %v4091_v53  ;;  %vm1015_vm6 = vweird.f32 %v12863_v5  ;;  %7972 = vrcp.f32 %v13001_v36  ;;  %v1013_v17 = vmul.f32 %v12863_v5, %v1012_v49 }
 0x46c   :  { %v1023_v40 = vmul.f32 %v12873_v30, %v1022_v58  ;;  %vm1025_vm7 = vweird.f32 %v12873_v30  ;;  %v13038_v26 = vpop.eup %7966  ;;  %v13041_v0 = vmul.f32 %v4042_v34, %v12572_v43  ;;  %vm4080_vm10 = vweird.f32 %v12909_v16 }
 0x46d   :  { %v13045_v8 = vadd.f32 %v1691_v1, %v9147_v14  ;;  %vm1014_vm8 = vweird.f32 %v12786_v45  ;;  %v13048_v4 = vpop.eup %7968  ;;  %v13051_v42 = vmul.f32 %v4057_v54, %v12578_v10  ;;  %vm4095_vm11 = vweird.f32 %v12912_v18  ;;  %vm13110_vm1 = vmor %vm4079_vm4, %vm4080_vm10 }
 0x46e   :  { %18870 = vst [vmem:[#allocation105_spill] sm:$0xff] %v13041_v0  ;;  %vm13056_vm12 = vmor %vm1014_vm8, %vm1015_vm6  ;;  %vm1024_vm14 = vweird.f32 %v12791_v20  ;;  %v550_v21 = vmul.f32 %v12721_v39, %v8685_v13  ;;  %v4072_v45 = vsel %vm12992_vm3, %v4071_v63, %v4067_v7  ;;  %v4078_v10 = vadd.f32 %v12909_v16, %v4077_v57  ;;  %v1693_v7 = vpop.f32.mrf.mxu1  ;;  %v18885_v57 = vld [vmem:[#allocation25_spill] sm:$0xff] }
 0x46f   :  { %18871 = vst [vmem:[#allocation106_spill] sm:$0xff] %v13051_v42  ;;  %vm13066_vm13 = vcmp.eq.f32.partialorder %v4083_v19, 8.507059e+37  ;;  %v4093_v32 = vadd.f32 %v12912_v18, %v4092_v59  ;;  %vm13071_vm15 = vcmp.eq.f32.partialorder %v4098_v28, 8.507059e+37  ;;  %v13076_v20 = vadd.f32 %v1825_v62, %v9155_v48  ;;  %vm13080_vm0 = vmor %vm1024_vm14, %vm1025_vm7  ;;  %v18886_v62 = vld [vmem:[#allocation66_spill] sm:$0xff] }
 0x470   :  { %v13084_v63 = vpop.eup %7970  ;;  %v4105_v19 = vmul.f32 %v13038_v26, %v12957_v37  ;;  %v13089_v41 = vadd.f32 %v1959_v50, %v9160_v31  ;;  %v1017_v51 = vsel %vm13056_vm12, %v12863_v5, %v1013_v17  ;;  %v1027_v23 = vsel %vm13080_vm0, %v12873_v30, %v1023_v40  ;;  %vm13124_vm2 = vmor %vm4094_vm5, %vm4095_vm11 }
 0x471   :  { %v4101_v53 = vor.u32 1.1754944e-38, %v4100_v27  ;;  %v4120_v49 = vmul.f32 %v13048_v4, %v12967_v11  ;;  %v7213_v58 = vmul.f32 -1.442695, %v13045_v8  ;;  %v551_v28 = vmul.f32 %v495_v38, %v8685_v13  ;;  %v13101_v1 = vpop.eup %7972 }
 0x472   :  { %v13104_v34 = vmul.f32 %v4072_v45, %v12619_v9  ;;  %v4113_v30 = vand.u32 2147483647, %v12957_v37  ;;  %v13116_v54 = vadd.f32 %v1559_v22, %v9142_v25  ;;  %v13118_v55 = vadd.f32 1e-05, %v550_v21 }
 0x473   :  { %v4135_v24 = vmul.f32 %v13084_v63, %v12996_v52  ;;  %v7214_v27 = vmul.f32 -1.442695, %v13076_v20  ;;  %v1148_v59 = vmul.f32 %v1017_v51, %v18885_v57  ;;  %v1149_v17 = vmul.f32 %v1027_v23, %v18886_v62 }
 0x474   :  { %18880 = vst [vmem:[#allocation107_spill] sm:$0xff] %v13104_v34  ;;  %v4082_v40 = vsel %vm13110_vm1, %v12909_v16, %v4078_v10  ;;  %v4097_v29 = vsel %vm13124_vm2, %v12912_v18, %v4093_v32  ;;  %v4106_v50 = vsub.f32 1.0, %v4105_v19  ;;  %v7215_v43 = vmul.f32 -1.442695, %v13089_v41 }
 0x475   :  { %v4121_v38 = vsub.f32 1.0, %v4120_v49  ;;  %v4150_v21 = vmul.f32 %v13101_v1, %v13001_v36  ;;  %7974 = vpow2.f32 %v7213_v58  ;;  %v13142_v45 = vadd.f32 1e-05, %v551_v28 }
 0x476   :  { %vm4109_vm3 = vweird.f32 %v12957_v37  ;;  %v4115_v22 = vand.u32 2147483648, %v12957_v37  ;;  %v7216_v16 = vmul.f32 -1.442695, %v13116_v54  ;;  %v13148_v10 = vadd.f32 %v1693_v7, %v9147_v14 }
 0x477   :  { %7976 = vrsqrt.f32 %v13118_v55  ;;  %v4136_v18 = vsub.f32 1.0, %v4135_v24  ;;  %v1202_v32 = vmul.f32 %v12757_v33, %v1148_v59  ;;  %v1203_v39 = vmul.f32 %v12757_v33, %v1149_v17 }
 0x478   :  { %7978 = vpow2.f32 %v7214_v27  ;;  %v4087_v19 = vsel %vm13066_vm13, %v13010_v35, %v4082_v40  ;;  %v4102_v51 = vsel %vm13071_vm15, %v4101_v53, %v4097_v29  ;;  %v4107_v23 = vmul.f32 %v13038_v26, %v4106_v50  ;;  %v13166_v35 = vld [vmem:[%s18225_s2] ss:$0 sm:$0xff] }
 0x479   :  { %7980 = vpow2.f32 %v7215_v43  ;;  %v4122_v49 = vmul.f32 %v13048_v4, %v4121_v38  ;;  %v4130_v58 = vand.u32 2147483648, %v12967_v11  ;;  %v4151_v28 = vsub.f32 1.0, %v4150_v21  ;;  %v7486_v38 = vld [vmem:[#allocation10 + $0x10] sm:$0xff] }
 0x47a   :  { %7982 = vrsqrt.f32 %v13142_v45  ;;  %v7217_v5 = vmul.f32 -1.442695, %v13148_v10  ;;  %v1256_v12 = vadd.f32 %v13166_v35, %v1202_v32  ;;  %v1257_v3 = vadd.f32 %v13166_v35, %v1203_v39  ;;  %v7510_v21 = vld [vmem:[#allocation10 + $0xd0] sm:$0xff]  ;;  %6394 = vmatpush.bf16.msrb.mxu0 %v7486_v38 }
 0x47b   :  { %7984 = vpow2.f32 %v7216_v16  ;;  %v7975_v53 = vpop.eup %7974  ;;  %v13171_v9 = vmul.f32 %v4087_v19, %v12668_v46  ;;  %vm13173_vm4 = vcmp.eq.f32.partialorder %v4113_v30, 8.507059e+37  ;;  %v4116_v27 = vor.u32 1.1754944e-38, %v4115_v22  ;;  %v7494_v19 = vld [vmem:[#allocation10 + $0x50] sm:$0xff]  ;;  %6796 = vmatpush.bf16.msrb.mxu3 %v7510_v21  ;;  %v1961_v16 = vpop.f32.mrf.mxu3 }
 0x47c   :  { %v4137_v7 = vmul.f32 %v13084_v63, %v4136_v18  ;;  %v13181_v59 = vmul.f32 %v4102_v51, %v12674_v61  ;;  %v4108_v62 = vadd.f32 %v13038_v26, %v4107_v23  ;;  %vm4110_vm9 = vweird.f32 %v13038_v26  ;;  %v7502_v61 = vld [vmem:[#allocation10 + $0x90] sm:$0xff]  ;;  %6528 = vmatpush.bf16.msrb.mxu1 %v7494_v19 }
 0x47d   :  { %18887 = vst [vmem:[#allocation25_spill] sm:$0xff] %v13171_v9  ;;  %v13178_v57 = vpop.eup %7976  ;;  %v1286_v17 = vpack.c.bf16 %v1257_v3, %v1256_v12  ;;  %vm4124_vm5 = vweird.f32 %v12967_v11  ;;  %v4128_v46 = vand.u32 2147483647, %v12967_v11  ;;  %v4131_v30 = vor.u32 1.1754944e-38, %v4130_v58  ;;  %vm13197_vm10 = vmor %vm4109_vm3, %vm4110_vm9  ;;  %6662 = vmatpush.bf16.msrb.mxu2 %v7502_v61 }
 0x47e   :  { %18890 = vst [vmem:[#allocation66_spill] sm:$0xff] %v13181_v59  ;;  %v7979_v40 = vpop.eup %7978  ;;  %v4152_v29 = vmul.f32 %v13101_v1, %v4151_v28  ;;  %v4123_v43 = vadd.f32 %v13048_v4, %v4122_v49  ;;  %vm4125_vm6 = vweird.f32 %v13048_v4  ;;  %vm4139_vm7 = vweird.f32 %v12996_v52 }
 0x47f   :  { %v7981_v50 = vpop.eup %7980  ;;  %7986 = vpow2.f32 %v7217_v5  ;;  %1601 = vmatmul.bf16.gmra.mxu0 %v1286_v17  ;;  %1735 = vmatmul.bf16.gmra.mxu1 %v1286_v17  ;;  %v4138_v18 = vadd.f32 %v13084_v63, %v4137_v7  ;;  %vm4140_vm8 = vweird.f32 %v13084_v63  ;;  %v13203_v32 = vadd.f32 1.0, %v7975_v53  ;;  %vm13218_vm11 = vmor %vm4124_vm5, %vm4125_vm6 }
 0x480   :  { %v13191_v22 = vpop.eup %7982  ;;  %v1029_v39 = vmul.f32 %v13178_v57, %v13118_v55  ;;  %1869 = vmatmul.bf16.gmra.mxu2 %v1286_v17  ;;  %2003 = vmatmul.bf16.gmra.mxu3 %v1286_v17  ;;  %v4112_v37 = vsel %vm13197_vm10, %v13038_v26, %v4108_v62  ;;  %v4143_v23 = vand.u32 2147483647, %v12996_v52  ;;  %v4145_v49 = vand.u32 2147483648, %v12996_v52  ;;  %vm13233_vm13 = vmor %vm4139_vm7, %vm4140_vm8  ;;  %v1827_v52 = vpop.f32.mrf.mxu2 }
 0x481   :  { %v7985_v51 = vpop.eup %7984  ;;  %v13212_v58 = vadd.f32 1.0, %v7979_v40  ;;  %v4153_v5 = vadd.f32 %v13101_v1, %v4152_v29  ;;  %vm4154_vm12 = vweird.f32 %v13001_v36  ;;  %vm4155_vm14 = vweird.f32 %v13101_v1 }
 0x482   :  { %v4160_v26 = vand.u32 2147483648, %v13001_v36  ;;  %v4127_v12 = vsel %vm13218_vm11, %v13048_v4, %v4123_v43  ;;  %v4158_v3 = vand.u32 2147483647, %v13001_v36  ;;  %v13238_v53 = vadd.f32 1.0, %v7981_v50  ;;  %vm4156_vm0 = vmor %vm4154_vm12, %vm4155_vm14 }
 0x483   :  { %v1039_v7 = vmul.f32 %v13191_v22, %v13142_v45  ;;  %v4142_v62 = vsel %vm13233_vm13, %v13084_v63, %v4138_v18  ;;  %7988 = vrcp.f32 %v13203_v32  ;;  %v13246_v4 = vadd.f32 1.0, %v7985_v51  ;;  %v18898_v18 = vld [vmem:[#allocation53_spill] sm:$0xff] }
 0x484   :  { %v1030_v17 = vmul.f32 %v13178_v57, %v1029_v39  ;;  %v4117_v29 = vsel %vm13173_vm4, %v4116_v27, %v4112_v37  ;;  %vm4129_vm15 = vcmp.eq.f32.partialorder %v4128_v46, 8.507059e+37  ;;  %v4146_v50 = vor.u32 1.1754944e-38, %v4145_v49 }
 0x485   :  { %v7987_v40 = vpop.eup %7986  ;;  %7990 = vrcp.f32 %v13212_v58  ;;  %v4132_v63 = vsel %vm4129_vm15, %v4131_v30, %v4127_v12  ;;  %vm4144_vm1 = vcmp.eq.f32.partialorder %v4143_v23, 8.507059e+37  ;;  %v4157_v43 = vsel %vm4156_vm0, %v13101_v1, %v4153_v5  ;;  %v501_v12 = vpop.xlane.xlu0 %500 }
 0x486   :  { %v4161_v61 = vor.u32 1.1754944e-38, %v4160_v26  ;;  %v4147_v38 = vsel %vm4144_vm1, %v4146_v50, %v4142_v62  ;;  %7992 = vrcp.f32 %v13238_v53  ;;  %v13259_v24 = vadd.f32 %v1827_v52, %v9155_v48 }
 0x487   :  { %v1040_v27 = vmul.f32 %v13191_v22, %v1039_v7  ;;  %vm4159_vm2 = vcmp.eq.f32.partialorder %v4158_v3, 8.507059e+37  ;;  %7994 = vrcp.f32 %v13246_v4  ;;  %v13263_v36 = vadd.f32 1.0, %v7987_v40  ;;  %v499_v40 = vpop.xlane.xlu2 %498 }
 0x488   :  { %v1031_v46 = vmul.f32 0.5, %v1030_v17  ;;  %v4162_v21 = vsel %vm4159_vm2, %v4161_v61, %v4157_v43  ;;  %v4175_v30 = vand.u32 2147483648, %v13203_v32  ;;  %v13273_v49 = vmul.f32 %v4117_v29, %v12718_v60  ;;  %v1830_v47 = vpop.f32.mrf.mxu2 }
 0x489   :  { %v13270_v23 = vpop.eup %7988  ;;  %v13276_v28 = vmul.f32 %v4132_v63, %v12826_v2  ;;  %v13279_v5 = vmul.f32 %v4147_v38, %v12841_v15  ;;  %v7218_v7 = vmul.f32 -1.442695, %v13259_v24  ;;  %v1041_v62 = vmul.f32 0.5, %v1040_v27  ;;  %v1562_v27 = vpop.f32.mrf.mxu0 }
 0x48a   :  { %18901 = vst [vmem:[#allocation53_spill] sm:$0xff] %v13273_v49  ;;  %v13291_v2 = vmul.f32 %v4162_v21, %v12859_v44  ;;  %7996 = vrcp.f32 %v13263_v36  ;;  %v1032_v63 = vsub.f32 1.5, %v1031_v46  ;;  %v4165_v61 = vmul.f32 %v13270_v23, %v13203_v32 }
 0x48b   :  { %18902 = vst [vmem:[#allocation108_spill] sm:$0xff] %v13276_v28  ;;  %v13283_v3 = vpop.eup %7990  ;;  %v13299_v38 = vor.u32 1.1754944e-38, %v4175_v30  ;;  %v13310_v46 = vadd.f32 %v1961_v16, %v9160_v31  ;;  %v4188_v49 = vand.u32 2147483647, %v13212_v58  ;;  %v4190_v37 = vand.u32 2147483648, %v13212_v58  ;;  %v1696_v16 = vpop.f32.mrf.mxu1 }
 0x48c   :  { %18903 = vst [vmem:[#allocation109_spill] sm:$0xff] %v13279_v5  ;;  %v13295_v43 = vpop.eup %7992  ;;  %v4180_v15 = vmul.f32 %v13283_v3, %v13212_v58  ;;  %7998 = vpow2.f32 %v7218_v7  ;;  %v1042_v44 = vsub.f32 1.5, %v1041_v62  ;;  %v13321_v59 = vadd.f32 %v1562_v27, %v9142_v25  ;;  %v1964_v30 = vpop.f32.mrf.mxu3 }
 0x48d   :  { %18910 = vst [vmem:[#allocation110_spill] sm:$0xff] %v13291_v2  ;;  %v13305_v21 = vpop.eup %7994  ;;  %v4195_v42 = vmul.f32 %v13295_v43, %v13238_v53  ;;  %v1033_v0 = vmul.f32 %v13178_v57, %v1032_v63  ;;  %vm1035_vm3 = vweird.f32 %v13178_v57  ;;  %v4166_v9 = vsub.f32 1.0, %v4165_v61 }
 0x48e   :  { %v4210_v34 = vmul.f32 %v13305_v21, %v13246_v4  ;;  %vm1044_vm4 = vweird.f32 %v13142_v45  ;;  %vm1045_vm9 = vweird.f32 %v13191_v22  ;;  %v4181_v62 = vsub.f32 1.0, %v4180_v15 }
 0x48f   :  { %v4205_v6 = vand.u32 2147483648, %v13238_v53  ;;  %v7219_v27 = vmul.f32 -1.442695, %v13310_v46  ;;  %vm1034_vm5 = vweird.f32 %v13118_v55  ;;  %vm4170_vm6 = vweird.f32 %v13270_v23  ;;  %vm13354_vm8 = vmor %vm1044_vm4, %vm1045_vm9 }
 0x490   :  { %v13329_v7 = vpop.eup %7996  ;;  %v13335_v63 = vor.u32 1.1754944e-38, %v4190_v37  ;;  %v13338_v61 = vadd.f32 %v1696_v16, %v9147_v14  ;;  %v1043_v28 = vmul.f32 %v13191_v22, %v1042_v44  ;;  %vm13343_vm7 = vmor %vm1034_vm5, %vm1035_vm3  ;;  %vm4169_vm10 = vweird.f32 %v13203_v32  ;;  %v497_v44 = vpop.xlane.xlu1 %496 }
 0x491   :  { %v4196_v2 = vsub.f32 1.0, %v4195_v42  ;;  %v7220_v37 = vmul.f32 -1.442695, %v13321_v59  ;;  %v1037_v5 = vsel %vm13343_vm7, %v13178_v57, %v1033_v0  ;;  %v4167_v42 = vmul.f32 %v13270_v23, %v4166_v9  ;;  %vm13415_vm2 = vmor %vm4169_vm10, %vm4170_vm6 }
 0x492   :  { %v7999_v29 = vpop.eup %7998  ;;  %vm4184_vm11 = vweird.f32 %v13212_v58  ;;  %v4211_v55 = vsub.f32 1.0, %v4210_v34  ;;  %v4225_v39 = vmul.f32 %v13329_v7, %v13263_v36  ;;  %v13366_v45 = vadd.f32 %v1830_v47, %v9155_v48 }
 0x493   :  { %v4182_v11 = vmul.f32 %v13283_v3, %v4181_v62  ;;  %vm4199_vm12 = vweird.f32 %v13238_v53  ;;  %v13370_v50 = vor.u32 1.1754944e-38, %v4205_v6  ;;  %8000 = vpow2.f32 %v7219_v27 }
 0x494   :  { %v13373_v0 = vadd.f32 %v1964_v30, %v9160_v31  ;;  %v7221_v9 = vmul.f32 -1.442695, %v13338_v61  ;;  %v1047_v34 = vsel %vm13354_vm8, %v13191_v22, %v1043_v28  ;;  %v552_v47 = vmul.f32 %v497_v44, %v8685_v13 }
 0x495   :  { %v1150_v57 = vmul.f32 %v1037_v5, %v11484_v56  ;;  %v4197_v62 = vmul.f32 %v13295_v43, %v4196_v2  ;;  %v13382_v15 = vadd.f32 1.0, %v7999_v29  ;;  %8002 = vpow2.f32 %v7220_v37 }
 0x496   :  { %v553_v6 = vmul.f32 %v499_v40, %v8685_v13  ;;  %v18923_v30 = vand.u32 2147483647, %v13203_v32  ;;  %v4212_v16 = vmul.f32 %v13305_v21, %v4211_v55  ;;  %vm4214_vm13 = vweird.f32 %v13246_v4  ;;  %v18926_v40 = vld [vmem:[#allocation67_spill] sm:$0xff] }
 0x497   :  { %v4226_v22 = vsub.f32 1.0, %v4225_v39  ;;  %v7222_v56 = vmul.f32 -1.442695, %v13366_v45  ;;  %v4168_v28 = vadd.f32 %v13270_v23, %v4167_v42  ;;  %vm4185_vm15 = vweird.f32 %v13283_v3 }
 0x498   :  { %vm13387_vm14 = vcmp.eq.f32.partialorder %v18923_v30, 8.507059e+37  ;;  %v7223_v5 = vmul.f32 -1.442695, %v13373_v0  ;;  %v1151_v29 = vmul.f32 %v1047_v34, %v18926_v40  ;;  %v4183_v2 = vadd.f32 %v13283_v3, %v4182_v11  ;;  %vm13426_vm4 = vmor %vm4184_vm11, %vm4185_vm15 }
 0x499   :  { %vm13399_vm0 = vcmp.eq.f32.partialorder %v4188_v49, 8.507059e+37  ;;  %8004 = vpow2.f32 %v7221_v9  ;;  %v13403_v55 = vadd.f32 1e-05, %v552_v47  ;;  %v1204_v39 = vmul.f32 %v12757_v33, %v1150_v57  ;;  %v8001_v44 = vpop.eup %8000  ;;  %v1564_v49 = vpop.f32.mrf.mxu0 }
 0x49a   :  { %v4198_v42 = vadd.f32 %v13295_v43, %v4197_v62  ;;  %vm4200_vm1 = vweird.f32 %v13295_v43  ;;  %8006 = vrcp.f32 %v13382_v15  ;;  %v13409_v30 = vadd.f32 1e-05, %v553_v6 }
 0x49b   :  { %v4213_v11 = vadd.f32 %v13305_v21, %v4212_v16  ;;  %vm4215_vm3 = vweird.f32 %v13305_v21  ;;  %v4227_v9 = vmul.f32 %v13329_v7, %v4226_v22  ;;  %8008 = vpow2.f32 %v7222_v56  ;;  %v8003_v34 = vpop.eup %8002  ;;  %vm13443_vm9 = vmor %vm4199_vm12, %vm4200_vm1 }
 0x49c   :  { %v4218_v32 = vand.u32 2147483647, %v13246_v4  ;;  %v4220_v57 = vand.u32 2147483648, %v13246_v4  ;;  %8010 = vpow2.f32 %v7223_v5  ;;  %v1205_v62 = vmul.f32 %v12757_v33, %v1151_v29  ;;  %vm13456_vm5 = vmor %vm4214_vm13, %vm4215_vm3 }
 0x49d   :  { %v4172_v6 = vsel %vm13415_vm2, %v13270_v23, %v4168_v28  ;;  %v4187_v16 = vsel %vm13426_vm4, %v13283_v3, %v4183_v2  ;;  %8012 = vrsqrt.f32 %v13403_v55  ;;  %v1258_v33 = vadd.f32 %v13166_v35, %v1204_v39 }
 0x49e   :  { %v4202_v23 = vsel %vm13443_vm9, %v13295_v43, %v4198_v42  ;;  %vm4230_vm6 = vweird.f32 %v13329_v7  ;;  %v13461_v22 = vadd.f32 1.0, %v8001_v44  ;;  %8014 = vrsqrt.f32 %v13409_v30 }
 0x49f   :  { %v8005_v56 = vpop.eup %8004  ;;  %v4217_v28 = vsel %vm13456_vm5, %v13305_v21, %v4213_v11  ;;  %v4228_v43 = vadd.f32 %v13329_v7, %v4227_v9  ;;  %v13468_v5 = vadd.f32 1.0, %v8003_v34  ;;  %v1259_v4 = vadd.f32 %v13166_v35, %v1205_v62 }
 0x4a0   :  { %v13471_v40 = vpop.eup %8006  ;;  %v4177_v29 = vsel %vm13387_vm14, %v13299_v38, %v4172_v6  ;;  %v4221_v2 = vor.u32 1.1754944e-38, %v4220_v57  ;;  %v4233_v39 = vand.u32 2147483647, %v13263_v36  ;;  %v4235_v44 = vand.u32 2147483648, %v13263_v36 }
 0x4a1   :  { %v8009_v42 = vpop.eup %8008  ;;  %v18937_v21 = vand.u32 2147483647, %v13238_v53  ;;  %vm4219_vm10 = vcmp.eq.f32.partialorder %v4218_v32, 8.507059e+37  ;;  %vm4229_vm8 = vweird.f32 %v13263_v36  ;;  %v1287_v11 = vpack.c.bf16 %v1259_v4, %v1258_v33 }
 0x4a2   :  { %v8011_v9 = vpop.eup %8010  ;;  %v4192_v27 = vsel %vm13399_vm0, %v13335_v63, %v4187_v16  ;;  %v4222_v34 = vsel %vm4219_vm10, %v4221_v2, %v4217_v28  ;;  %vm13487_vm11 = vmor %vm4229_vm8, %vm4230_vm6  ;;  %8016 = vrcp.f32 %v13461_v22  ;;  %v13495_v36 = vmul.f32 %v4177_v29, %v13045_v8  ;;  %v1698_v8 = vpop.f32.mrf.mxu1 }
 0x4a3   :  { %vm4204_vm7 = vcmp.eq.f32.partialorder %v18937_v21, 8.507059e+37  ;;  %v13492_v53 = vpop.eup %8012  ;;  %v4232_v63 = vsel %vm13487_vm11, %v13329_v7, %v4228_v43  ;;  %8018 = vrcp.f32 %v13468_v5  ;;  %1606 = vmatmul.bf16.gmra.mxu0 %v1287_v11  ;;  %1740 = vmatmul.bf16.gmra.mxu1 %v1287_v11  ;;  %vm4234_vm12 = vcmp.eq.f32.partialorder %v4233_v39, 8.507059e+37 }
 0x4a4   :  { %v4207_v38 = vsel %vm4204_vm7, %v13370_v50, %v4202_v23  ;;  %18940 = vst [vmem:[#allocation67_spill] sm:$0xff] %v13495_v36  ;;  %v13501_v50 = vadd.f32 1.0, %v8005_v56  ;;  %v13503_v37 = vpop.eup %8014  ;;  %v4236_v32 = vor.u32 1.1754944e-38, %v4235_v44  ;;  %v13505_v57 = vadd.f32 1.0, %v8009_v42  ;;  %1874 = vmatmul.bf16.gmra.mxu2 %v1287_v11  ;;  %2008 = vmatmul.bf16.gmra.mxu3 %v1287_v11 }
 0x4a5   :  { %v13508_v62 = vadd.f32 %v1564_v49, %v9142_v25  ;;  %v13511_v7 = vmul.f32 %v4192_v27, %v13076_v20  ;;  %v13514_v6 = vmul.f32 %v4207_v38, %v13089_v41  ;;  %v13517_v16 = vmul.f32 %v4222_v34, %v13116_v54  ;;  %v1832_v41 = vpop.f32.mrf.mxu2 }
 0x4a6   :  { %v4240_v58 = vmul.f32 %v13471_v40, %v13382_v15  ;;  %v4237_v33 = vsel %vm4234_vm12, %v4236_v32, %v4232_v63  ;;  %v4250_v23 = vand.u32 2147483648, %v13382_v15  ;;  %v13522_v3 = vadd.f32 1.0, %v8011_v9 }
 0x4a7   :  { %18941 = vst [vmem:[#allocation111_spill] sm:$0xff] %v13511_v7  ;;  %8020 = vrcp.f32 %v13501_v50  ;;  %v13528_v20 = vadd.f32 %v1698_v8, %v9147_v14  ;;  %v1049_v54 = vmul.f32 %v13492_v53, %v13403_v55  ;;  %v1059_v4 = vmul.f32 %v13503_v37, %v13409_v30 }
 0x4a8   :  { %18942 = vst [vmem:[#allocation112_spill] sm:$0xff] %v13514_v6  ;;  %v13534_v29 = vpop.eup %8016  ;;  %v4248_v2 = vand.u32 2147483647, %v13382_v15  ;;  %8022 = vrcp.f32 %v13505_v57  ;;  %v7224_v39 = vmul.f32 -1.442695, %v13508_v62  ;;  %v13544_v11 = vmul.f32 %v4237_v33, %v13148_v10 }
 0x4a9   :  { %18943 = vst [vmem:[#allocation113_spill] sm:$0xff] %v13517_v16  ;;  %v13541_v49 = vpop.eup %8018  ;;  %v4241_v9 = vsub.f32 1.0, %v4240_v58  ;;  %v4265_v27 = vand.u32 2147483648, %v13461_v22  ;;  %v13549_v63 = vor.u32 1.1754944e-38, %v4250_v23  ;;  %8024 = vrcp.f32 %v13522_v3  ;;  %v1966_v58 = vpop.f32.mrf.mxu3 }
 0x4aa   :  { %18948 = vst [vmem:[#allocation114_spill] sm:$0xff] %v13544_v11  ;;  %v13554_v8 = vadd.f32 %v1832_v41, %v9155_v48  ;;  %v4255_v21 = vmul.f32 %v13534_v29, %v13461_v22  ;;  %v7225_v10 = vmul.f32 -1.442695, %v13528_v20  ;;  %v1050_v33 = vmul.f32 %v13492_v53, %v1049_v54 }
 0x4ab   :  { %v1060_v43 = vmul.f32 %v13503_v37, %v1059_v4  ;;  %v4270_v23 = vmul.f32 %v13541_v49, %v13468_v5  ;;  %v4280_v47 = vand.u32 2147483648, %v13468_v5  ;;  %8026 = vpow2.f32 %v7224_v39 }
 0x4ac   :  { %v4242_v11 = vmul.f32 %v13471_v40, %v4241_v9  ;;  %vm4244_vm14 = vweird.f32 %v13382_v15  ;;  %v13570_v36 = vor.u32 1.1754944e-38, %v4265_v27  ;;  %v4295_v54 = vand.u32 2147483648, %v13501_v50  ;;  %v1567_v27 = vpop.f32.mrf.mxu0 }
 0x4ad   :  { %v13566_v7 = vpop.eup %8020  ;;  %vm4245_vm13 = vweird.f32 %v13471_v40  ;;  %v4278_v39 = vand.u32 2147483647, %v13468_v5  ;;  %v7226_v41 = vmul.f32 -1.442695, %v13554_v8  ;;  %v13581_v32 = vadd.f32 %v1966_v58, %v9160_v31  ;;  %v1835_v15 = vpop.f32.mrf.mxu2 }
 0x4ae   :  { %v13575_v34 = vpop.eup %8022  ;;  %v4256_v9 = vsub.f32 1.0, %v4255_v21  ;;  %8028 = vpow2.f32 %v7225_v10  ;;  %v1051_v6 = vmul.f32 0.5, %v1050_v33  ;;  %v1061_v44 = vmul.f32 0.5, %v1060_v43  ;;  %vm13621_vm6 = vmor %vm4244_vm14, %vm4245_vm13 }
 0x4af   :  { %v13583_v42 = vpop.eup %8024  ;;  %v4271_v56 = vsub.f32 1.0, %v4270_v23  ;;  %v13585_v38 = vor.u32 1.1754944e-38, %v4280_v47  ;;  %v4285_v4 = vmul.f32 %v13566_v7, %v13501_v50  ;;  %v4243_v28 = vadd.f32 %v13471_v40, %v4242_v11 }
 0x4b0   :  { %vm13591_vm15 = vcmp.eq.f32.partialorder %v4248_v2, 8.507059e+37  ;;  %vm4260_vm0 = vweird.f32 %v13534_v29  ;;  %v13596_v21 = vor.u32 1.1754944e-38, %v4295_v54  ;;  %v4300_v43 = vmul.f32 %v13575_v34, %v13505_v57  ;;  %v1701_v54 = vpop.f32.mrf.mxu1 }
 0x4b1   :  { %v8027_v47 = vpop.eup %8026  ;;  %vm4259_vm1 = vweird.f32 %v13461_v22  ;;  %v4308_v10 = vand.u32 2147483647, %v13505_v57  ;;  %8030 = vpow2.f32 %v7226_v41  ;;  %v7227_v33 = vmul.f32 -1.442695, %v13581_v32 }
 0x4b2   :  { %v13604_v2 = vadd.f32 %v1567_v27, %v9142_v25  ;;  %v4257_v11 = vmul.f32 %v13534_v29, %v4256_v9  ;;  %vm4274_vm2 = vweird.f32 %v13468_v5  ;;  %v4315_v23 = vmul.f32 %v13583_v42, %v13522_v3 }
 0x4b3   :  { %v1052_v16 = vsub.f32 1.5, %v1051_v6  ;;  %v1062_v60 = vsub.f32 1.5, %v1061_v44  ;;  %v4272_v52 = vmul.f32 %v13541_v49, %v4271_v56  ;;  %v4286_v17 = vsub.f32 1.0, %v4285_v4 }
 0x4b4   :  { %vm1054_vm3 = vweird.f32 %v13403_v55  ;;  %vm1055_vm4 = vweird.f32 %v13492_v53  ;;  %v8029_v41 = vpop.eup %8028  ;;  %v4301_v27 = vsub.f32 1.0, %v4300_v43  ;;  %v13613_v26 = vadd.f32 1.0, %v8027_v47 }
 0x4b5   :  { %vm1064_vm9 = vweird.f32 %v13409_v30  ;;  %vm1065_vm5 = vweird.f32 %v13503_v37  ;;  %vm4275_vm7 = vweird.f32 %v13541_v49  ;;  %8032 = vpow2.f32 %v7227_v33  ;;  %vm13639_vm8 = vmor %vm1054_vm3, %vm1055_vm4 }
 0x4b6   :  { %v7228_v56 = vmul.f32 -1.442695, %v13604_v2  ;;  %v13628_v44 = vadd.f32 %v1701_v54, %v9147_v14  ;;  %v4247_v4 = vsel %vm13621_vm6, %v13471_v40, %v4243_v28  ;;  %vm4289_vm10 = vweird.f32 %v13501_v50  ;;  %vm13664_vm3 = vmor %vm1064_vm9, %vm1065_vm5 }
 0x4b7   :  { %v4316_v9 = vsub.f32 1.0, %v4315_v23  ;;  %v1053_v43 = vmul.f32 %v13492_v53, %v1052_v16  ;;  %v1063_v33 = vmul.f32 %v13503_v37, %v1062_v60  ;;  %v8031_v54 = vpop.eup %8030  ;;  %v4258_v6 = vadd.f32 %v13534_v29, %v4257_v11  ;;  %vm13683_vm4 = vmor %vm4259_vm1, %vm4260_vm0 }
 0x4b8   :  { %v18961_v40 = vand.u32 2147483647, %v13461_v22  ;;  %vm13651_vm12 = vcmp.eq.f32.partialorder %v4278_v39, 8.507059e+37  ;;  %vm4290_vm14 = vweird.f32 %v13566_v7  ;;  %vm4304_vm13 = vweird.f32 %v13505_v57 }
 0x4b9   :  { %v4310_v55 = vand.u32 2147483648, %v13505_v57  ;;  %v13658_v60 = vadd.f32 1.0, %v8029_v41  ;;  %v4273_v39 = vadd.f32 %v13541_v49, %v4272_v52  ;;  %v4287_v23 = vmul.f32 %v13566_v7, %v4286_v17  ;;  %vm13742_vm5 = vmor %vm4289_vm10, %vm4290_vm14  ;;  %v13779_v57 = vld [vmem:[#allocation5] ss:$0 sm:$0xff] }
 0x4ba   :  { %vm13647_vm11 = vcmp.eq.f32.partialorder %v18961_v40, 8.507059e+37  ;;  %v4302_v40 = vmul.f32 %v13575_v34, %v4301_v27  ;;  %8034 = vrcp.f32 %v13613_v26  ;;  %v4252_v41 = vsel %vm13591_vm15, %v13549_v63, %v4247_v4  ;;  %vm13703_vm15 = vmor %vm4274_vm2, %vm4275_vm7 }
 0x4bb   :  { %8036 = vpow2.f32 %v7228_v56  ;;  %v7229_v30 = vmul.f32 -1.442695, %v13628_v44  ;;  %v13677_v19 = vadd.f32 %v1835_v15, %v9155_v48  ;;  %v4317_v17 = vmul.f32 %v13583_v42, %v4316_v9  ;;  %v8033_v56 = vpop.eup %8032 }
 0x4bc   :  { %v13688_v27 = vadd.f32 1.0, %v8031_v54  ;;  %v1057_v63 = vsel %vm13639_vm8, %v13492_v53, %v1053_v43  ;;  %v1067_v58 = vsel %vm13664_vm3, %v13503_v37, %v1063_v33  ;;  %v4262_v22 = vsel %vm13683_vm4, %v13534_v29, %v4258_v6  ;;  %v18977_v33 = vld [vmem:[#allocation28_spill] sm:$0xff]  ;;  %v18978_v6 = vld [vmem:[#allocation77_spill] sm:$0xff]  ;;  %v7501_v53 = vld [vmem:[#allocation10 + $0x88] sm:$0xff] }
 0x4bd   :  { %v18972_v9 = vand.u32 2147483647, %v13501_v50  ;;  %vm13713_vm1 = vcmp.eq.f32.partialorder %v4308_v10, 8.507059e+37  ;;  %v4311_v15 = vor.u32 1.1754944e-38, %v4310_v55  ;;  %8038 = vrcp.f32 %v13658_v60  ;;  %v7485_v37 = vld [vmem:[#allocation10 + $0x8] sm:$0xff]  ;;  %6663 = vmatpush.bf16.msrb.mxu2 %v7501_v53 }
 0x4be   :  { %v554_v29 = vmul.f32 %v501_v12, %v8685_v13  ;;  %v4277_v5 = vsel %vm13703_vm15, %v13541_v49, %v4273_v39  ;;  %v4288_v43 = vadd.f32 %v13566_v7, %v4287_v23  ;;  %v4303_v47 = vadd.f32 %v13575_v34, %v4302_v40  ;;  %6395 = vmatpush.bf16.msrb.mxu0 %v7485_v37 }
 0x4bf   :  { %vm13709_vm0 = vcmp.eq.f32.partialorder %v18972_v9, 8.507059e+37  ;;  %vm4305_vm2 = vweird.f32 %v13575_v34  ;;  %8040 = vpow2.f32 %v7229_v30  ;;  %v7230_v10 = vmul.f32 -1.442695, %v13677_v19  ;;  %v1969_v9 = vpop.f32.mrf.mxu3 }
 0x4c0   :  { %v1152_v54 = vmul.f32 %v1057_v63, %v18977_v33  ;;  %v1153_v55 = vmul.f32 %v1067_v58, %v18978_v6  ;;  %v13728_v11 = vpop.eup %8034  ;;  %v4318_v12 = vadd.f32 %v13583_v42, %v4317_v17  ;;  %vm4320_vm9 = vweird.f32 %v13583_v42  ;;  %vm13763_vm6 = vmor %vm4304_vm13, %vm4305_vm2 }
 0x4c1   :  { %8042 = vrcp.f32 %v13688_v27  ;;  %v13733_v49 = vadd.f32 1.0, %v8033_v56  ;;  %v8037_v39 = vpop.eup %8036  ;;  %v13736_v23 = vmul.f32 %v4252_v41, %v13259_v24  ;;  %v4323_v30 = vand.u32 2147483647, %v13522_v3 }
 0x4c2   :  { %v4325_v52 = vand.u32 2147483648, %v13522_v3  ;;  %v13748_v17 = vadd.f32 1e-05, %v554_v29  ;;  %v4267_v63 = vsel %vm13647_vm11, %v13570_v36, %v4262_v22  ;;  %v4282_v24 = vsel %vm13651_vm12, %v13585_v38, %v4277_v5 }
 0x4c3   :  { %18979 = vst [vmem:[#allocation28_spill] sm:$0xff] %v13736_v23  ;;  %v4292_v50 = vsel %vm13742_vm5, %v13566_v7, %v4288_v43  ;;  %vm4319_vm7 = vweird.f32 %v13522_v3  ;;  %v13768_v28 = vpop.eup %8038  ;;  %v4307_v36 = vsel %vm13763_vm6, %v13575_v34, %v4303_v47  ;;  %8044 = vpow2.f32 %v7230_v10  ;;  %v7500_v7 = vld [vmem:[#allocation10 + $0x80] sm:$0xff] }
 0x4c4   :  { %vm13775_vm10 = vmor %vm4319_vm7, %vm4320_vm9  ;;  %v1206_v38 = vmul.f32 %v13779_v57, %v1152_v54  ;;  %v1207_v16 = vmul.f32 %v13779_v57, %v1153_v55  ;;  %v4330_v34 = vmul.f32 %v13728_v11, %v13613_v26  ;;  %8046 = vrcp.f32 %v13733_v49  ;;  %6664 = vmatpush.bf16.msrb.mxu2 %v7500_v7  ;;  %v1837_v7 = vpop.f32.mrf.mxu2 }
 0x4c5   :  { %v4322_v3 = vsel %vm13775_vm10, %v13583_v42, %v4318_v12  ;;  %v13789_v58 = vadd.f32 1.0, %v8037_v39  ;;  %v8041_v56 = vpop.eup %8040  ;;  %v13792_v22 = vmul.f32 %v4267_v63, %v13310_v46  ;;  %vm4324_vm8 = vcmp.eq.f32.partialorder %v4323_v30, 8.507059e+37  ;;  %v7509_v30 = vld [vmem:[#allocation10 + $0xc8] sm:$0xff] }
 0x4c6   :  { %v4326_v4 = vor.u32 1.1754944e-38, %v4325_v52  ;;  %8048 = vrsqrt.f32 %v13748_v17  ;;  %v13798_v42 = vmul.f32 %v4282_v24, %v13321_v59  ;;  %v4297_v5 = vsel %vm13709_vm0, %v13596_v21, %v4292_v50  ;;  %6797 = vmatpush.bf16.msrb.mxu3 %v7509_v30 }
 0x4c7   :  { %18986 = vst [vmem:[#allocation77_spill] sm:$0xff] %v13792_v22  ;;  %v13795_v29 = vpop.eup %8042  ;;  %v4312_v43 = vsel %vm13713_vm1, %v4311_v15, %v4307_v36  ;;  %v4345_v46 = vmul.f32 %v13768_v28, %v13658_v60  ;;  %v4340_v10 = vand.u32 2147483648, %v13613_v26  ;;  %v1260_v33 = vadd.f32 %v13166_v35, %v1206_v38  ;;  %v503_v15 = vpop.xlane.xlu1 %502  ;;  %v7484_v38 = vld [vmem:[#allocation10] sm:$0xff] }
 0x4c8   :  { %18987 = vst [vmem:[#allocation115_spill] sm:$0xff] %v13798_v42  ;;  %v4327_v47 = vsel %vm4324_vm8, %v4326_v4, %v4322_v3  ;;  %v1261_v54 = vadd.f32 %v13166_v35, %v1207_v16  ;;  %v4331_v6 = vsub.f32 1.0, %v4330_v34  ;;  %v4355_v59 = vand.u32 2147483648, %v13658_v60  ;;  %v7493_v35 = vld [vmem:[#allocation10 + $0x48] sm:$0xff]  ;;  %6396 = vmatpush.bf16.msrb.mxu0 %v7484_v38 }
 0x4c9   :  { %8050 = vrcp.f32 %v13789_v58  ;;  %v13813_v21 = vadd.f32 %v1969_v9, %v9160_v31  ;;  %v8045_v55 = vpop.eup %8044  ;;  %v4360_v12 = vmul.f32 %v13795_v29, %v13688_v27  ;;  %v13817_v39 = vadd.f32 1.0, %v8041_v56  ;;  %6529 = vmatpush.bf16.msrb.mxu1 %v7493_v35 }
 0x4ca   :  { %v1288_v40 = vpack.c.bf16 %v1261_v54, %v1260_v33  ;;  %v555_v52 = vmul.f32 %v503_v15, %v8685_v13  ;;  %v13820_v63 = vpop.eup %8046  ;;  %v13823_v24 = vmul.f32 %v4297_v5, %v13338_v61  ;;  %v13826_v50 = vmul.f32 %v4312_v43, %v13366_v45  ;;  %v1569_v45 = vpop.f32.mrf.mxu0  ;;  %v7492_v33 = vld [vmem:[#allocation10 + $0x40] sm:$0xff] }
 0x4cb   :  { %v4338_v41 = vand.u32 2147483647, %v13613_v26  ;;  %v4346_v36 = vsub.f32 1.0, %v4345_v46  ;;  %v13832_v3 = vmul.f32 %v4327_v47, %v13373_v0  ;;  %vm4334_vm11 = vweird.f32 %v13613_v26  ;;  %v1703_v5 = vpop.f32.mrf.mxu1 }
 0x4cc   :  { %18988 = vst [vmem:[#allocation116_spill] sm:$0xff] %v13823_v24  ;;  %v13829_v16 = vpop.eup %8048  ;;  %v13835_v34 = vor.u32 1.1754944e-38, %v4340_v10  ;;  %v4353_v61 = vand.u32 2147483647, %v13658_v60  ;;  %1611 = vmatmul.bf16.gmra.mxu0 %v1288_v40  ;;  %1745 = vmatmul.bf16.gmra.mxu1 %v1288_v40  ;;  %v13838_v56 = vadd.f32 1e-05, %v555_v52  ;;  %vm4335_vm12 = vweird.f32 %v13728_v11 }
 0x4cd   :  { %18989 = vst [vmem:[#allocation117_spill] sm:$0xff] %v13826_v50  ;;  %vm4349_vm14 = vweird.f32 %v13658_v60  ;;  %v13842_v4 = vor.u32 1.1754944e-38, %v4355_v59  ;;  %v13844_v9 = vadd.f32 1.0, %v8045_v55  ;;  %v7231_v0 = vmul.f32 -1.442695, %v13813_v21  ;;  %1879 = vmatmul.bf16.gmra.mxu2 %v1288_v40  ;;  %2013 = vmatmul.bf16.gmra.mxu3 %v1288_v40  ;;  %v7508_v10 = vld [vmem:[#allocation10 + $0xc0] sm:$0xff]  ;;  %vm13898_vm1 = vmor %vm4334_vm11, %vm4335_vm12 }
 0x4ce   :  { %18990 = vst [vmem:[#allocation118_spill] sm:$0xff] %v13832_v3  ;;  %v4332_v43 = vmul.f32 %v13728_v11, %v4331_v6  ;;  %v4361_v46 = vsub.f32 1.0, %v4360_v12  ;;  %v4375_v47 = vmul.f32 %v13820_v63, %v13733_v49  ;;  %8052 = vrcp.f32 %v13817_v39  ;;  %6798 = vmatpush.bf16.msrb.mxu3 %v7508_v10  ;;  %6530 = vmatpush.bf16.msrb.mxu1 %v7492_v33 }
 0x4cf   :  { %v13851_v54 = vpop.eup %8050  ;;  %v4347_v59 = vmul.f32 %v13768_v28, %v4346_v36  ;;  %v13855_v53 = vadd.f32 %v1569_v45, %v9142_v25  ;;  %v1069_v6 = vmul.f32 %v13829_v16, %v13748_v17  ;;  %8054 = vrsqrt.f32 %v13838_v56 }
 0x4d0   :  { %vm13860_vm13 = vcmp.eq.f32.partialorder %v4338_v41, 8.507059e+37  ;;  %vm4364_vm3 = vweird.f32 %v13688_v27  ;;  %v4370_v15 = vand.u32 2147483648, %v13688_v27  ;;  %v4385_v55 = vand.u32 2147483648, %v13733_v49 }
 0x4d1   :  { %v13868_v12 = vadd.f32 %v1703_v5, %v9147_v14  ;;  %vm4350_vm4 = vweird.f32 %v13768_v28  ;;  %vm13871_vm15 = vcmp.eq.f32.partialorder %v4353_v61, 8.507059e+37  ;;  %v4368_v30 = vand.u32 2147483647, %v13688_v27 }
 0x4d2   :  { %v4400_v35 = vand.u32 2147483648, %v13789_v58  ;;  %8056 = vrcp.f32 %v13844_v9  ;;  %v4333_v52 = vadd.f32 %v13728_v11, %v4332_v43  ;;  %v4362_v41 = vmul.f32 %v13795_v29, %v4361_v46  ;;  %vm13920_vm5 = vmor %vm4349_vm14, %vm4350_vm4 }
 0x4d3   :  { %v4376_v36 = vsub.f32 1.0, %v4375_v47  ;;  %8058 = vpow2.f32 %v7231_v0  ;;  %v4348_v38 = vadd.f32 %v13768_v28, %v4347_v59  ;;  %v4390_v61 = vmul.f32 %v13851_v54, %v13789_v58 }
 0x4d4   :  { %v7232_v45 = vmul.f32 -1.442695, %v13855_v53  ;;  %v1070_v5 = vmul.f32 %v13829_v16, %v1069_v6  ;;  %v13885_v3 = vpop.eup %8052  ;;  %v4371_v50 = vor.u32 1.1754944e-38, %v4370_v15  ;;  %vm4379_vm0 = vweird.f32 %v13733_v49 }
 0x4d5   :  { %v4383_v43 = vand.u32 2147483647, %v13733_v49  ;;  %v13889_v0 = vor.u32 1.1754944e-38, %v4385_v55  ;;  %v7233_v46 = vmul.f32 -1.442695, %v13868_v12  ;;  %v13892_v47 = vpop.eup %8054  ;;  %vm4365_vm2 = vweird.f32 %v13795_v29 }
 0x4d6   :  { %vm13903_vm9 = vcmp.eq.f32.partialorder %v4368_v30, 8.507059e+37  ;;  %v4398_v59 = vand.u32 2147483647, %v13789_v58  ;;  %v13908_v6 = vor.u32 1.1754944e-38, %v4400_v35  ;;  %v13911_v15 = vadd.f32 %v1837_v7, %v9155_v48  ;;  %vm13944_vm7 = vmor %vm4364_vm3, %vm4365_vm2 }
 0x4d7   :  { %v4337_v26 = vsel %vm13898_vm1, %v13728_v11, %v4333_v52  ;;  %v4363_v30 = vadd.f32 %v13795_v29, %v4362_v41  ;;  %v4377_v35 = vmul.f32 %v13820_v63, %v4376_v36  ;;  %v1079_v7 = vmul.f32 %v13892_v47, %v13838_v56 }
 0x4d8   :  { %v13928_v24 = vpop.eup %8056  ;;  %v4352_v11 = vsel %vm13920_vm5, %v13768_v28, %v4348_v38  ;;  %v4391_v52 = vsub.f32 1.0, %v4390_v61  ;;  %8060 = vpow2.f32 %v7232_v45  ;;  %v1071_v60 = vmul.f32 0.5, %v1070_v5 }
 0x4d9   :  { %v8059_v10 = vpop.eup %8058  ;;  %vm4380_vm6 = vweird.f32 %v13820_v63  ;;  %v4405_v41 = vmul.f32 %v13885_v3, %v13817_v39  ;;  %v4415_v36 = vand.u32 2147483648, %v13817_v39  ;;  %8062 = vpow2.f32 %v7233_v46 }
 0x4da   :  { %v4342_v42 = vsel %vm13860_vm13, %v13835_v34, %v4337_v26  ;;  %vm4394_vm10 = vweird.f32 %v13789_v58  ;;  %v4413_v38 = vand.u32 2147483647, %v13817_v39  ;;  %v7234_v61 = vmul.f32 -1.442695, %v13911_v15  ;;  %vm13978_vm12 = vmor %vm4379_vm0, %vm4380_vm6 }
 0x4db   :  { %v1080_v45 = vmul.f32 %v13892_v47, %v1079_v7  ;;  %v4357_v34 = vsel %vm13871_vm15, %v13842_v4, %v4352_v11  ;;  %v4367_v27 = vsel %vm13944_vm7, %v13795_v29, %v4363_v30  ;;  %v4378_v37 = vadd.f32 %v13820_v63, %v4377_v35 }
 0x4dc   :  { %vm13959_vm8 = vcmp.eq.f32.partialorder %v4383_v43, 8.507059e+37  ;;  %v4420_v46 = vmul.f32 %v13928_v24, %v13844_v9  ;;  %v4392_v26 = vmul.f32 %v13851_v54, %v4391_v52  ;;  %v13966_v55 = vadd.f32 1.0, %v8059_v10  ;;  %v1971_v43 = vpop.f32.mrf.mxu3  ;;  %v1572_v52 = vpop.f32.mrf.mxu0 }
 0x4dd   :  { %v1072_v7 = vsub.f32 1.5, %v1071_v60  ;;  %v1081_v40 = vmul.f32 0.5, %v1080_v45  ;;  %v13969_v4 = vmul.f32 %v4342_v42, %v13508_v62  ;;  %vm4395_vm11 = vweird.f32 %v13851_v54 }
 0x4de   :  { %v4406_v29 = vsub.f32 1.0, %v4405_v41  ;;  %v13972_v30 = vor.u32 1.1754944e-38, %v4415_v36  ;;  %v8061_v35 = vpop.eup %8060  ;;  %8064 = vpow2.f32 %v7234_v61  ;;  %vm1074_vm14 = vweird.f32 %v13748_v17 }
 0x4df   :  { %19005 = vst [vmem:[#allocation119_spill] sm:$0xff] %v13969_v4  ;;  %vm1075_vm13 = vweird.f32 %v13829_v16  ;;  %v1082_v62 = vsub.f32 1.5, %v1081_v40  ;;  %v8063_v42 = vpop.eup %8062  ;;  %v13985_v60 = vmul.f32 %v4357_v34, %v13528_v20  ;;  %v4372_v10 = vsel %vm13903_vm9, %v4371_v50, %v4367_v27  ;;  %vm14031_vm9 = vmor %vm4394_vm10, %vm4395_vm11  ;;  %v1840_v40 = vpop.f32.mrf.mxu2 }
 0x4e0   :  { %v4382_v49 = vsel %vm13978_vm12, %v13820_v63, %v4378_v37  ;;  %v4421_v41 = vsub.f32 1.0, %v4420_v46  ;;  %v4393_v36 = vadd.f32 %v13851_v54, %v4392_v26  ;;  %vm13993_vm3 = vcmp.eq.f32.partialorder %v4398_v59, 8.507059e+37  ;;  %vm14013_vm0 = vmor %vm1074_vm14, %vm1075_vm13  ;;  %v1706_v37 = vpop.f32.mrf.mxu1  ;;  %v19023_v59 = vld [vmem:[#allocation92_spill] sm:$0xff] }
 0x4e1   :  { %19008 = vst [vmem:[#allocation120_spill] sm:$0xff] %v13985_v60  ;;  %vm4409_vm4 = vweird.f32 %v13817_v39  ;;  %8066 = vrcp.f32 %v13966_v55  ;;  %v14000_v20 = vadd.f32 %v1971_v43, %v9160_v31  ;;  %v1073_v50 = vmul.f32 %v13829_v16, %v1072_v7 }
 0x4e2   :  { %vm4424_vm15 = vweird.f32 %v13844_v9  ;;  %v14004_v33 = vadd.f32 1.0, %v8061_v35  ;;  %v14007_v63 = vadd.f32 %v1572_v52, %v9142_v25  ;;  %v1083_v61 = vmul.f32 %v13892_v47, %v1082_v62  ;;  %v507_v52 = vpop.xlane.xlu0 %506 }
 0x4e3   :  { %vm1085_vm1 = vweird.f32 %v13892_v47  ;;  %v4407_v45 = vmul.f32 %v13885_v3, %v4406_v29  ;;  %vm4410_vm2 = vweird.f32 %v13885_v3  ;;  %v4428_v34 = vand.u32 2147483647, %v13844_v9 }
 0x4e4   :  { %v14022_v27 = vadd.f32 1.0, %v8063_v42  ;;  %v14025_v46 = vmul.f32 %v4372_v10, %v13554_v8  ;;  %v4422_v26 = vmul.f32 %v13928_v24, %v4421_v41  ;;  %v4430_v7 = vand.u32 2147483648, %v13844_v9  ;;  %v8065_v29 = vpop.eup %8064  ;;  %v19020_v41 = vld [vmem:[#allocation36_spill] sm:$0xff]  ;;  %vm14092_vm11 = vmor %vm4409_vm4, %vm4410_vm2 }
 0x4e5   :  { %vm1084_vm5 = vweird.f32 %v13838_v56  ;;  %v4387_v8 = vsel %vm13959_vm8, %v13889_v0, %v4382_v49  ;;  %v4397_v58 = vsel %vm14031_vm9, %v13851_v54, %v4393_v36  ;;  %vm14044_vm6 = vcmp.eq.f32.partialorder %v4413_v38, 8.507059e+37  ;;  %v505_v0 = vpop.xlane.xlu2 %504 }
 0x4e6   :  { %19013 = vst [vmem:[#allocation121_spill] sm:$0xff] %v14025_v46  ;;  %v7235_v35 = vmul.f32 -1.442695, %v14000_v20  ;;  %v1077_v11 = vsel %vm14013_vm0, %v13829_v16, %v1073_v50  ;;  %vm14054_vm7 = vmor %vm1084_vm5, %vm1085_vm1  ;;  %8068 = vrcp.f32 %v14004_v33  ;;  %v7236_v54 = vmul.f32 -1.442695, %v14007_v63 }
 0x4e7   :  { %v14061_v38 = vadd.f32 %v1706_v37, %v9147_v14  ;;  %v1087_v5 = vsel %vm14054_vm7, %v13892_v47, %v1083_v61  ;;  %v14066_v16 = vpop.eup %8066  ;;  %v4408_v62 = vadd.f32 %v13885_v3, %v4407_v45  ;;  %vm4425_vm10 = vweird.f32 %v13928_v24 }
 0x4e8   :  { %8070 = vrcp.f32 %v14022_v27  ;;  %v14072_v42 = vadd.f32 %v1840_v40, %v9155_v48  ;;  %v4423_v10 = vadd.f32 %v13928_v24, %v4422_v26  ;;  %v14075_v49 = vadd.f32 1.0, %v8065_v29  ;;  %v1974_v40 = vpop.f32.mrf.mxu3  ;;  %vm14109_vm12 = vmor %vm4424_vm15, %vm4425_vm10 }
 0x4e9   :  { %v1154_v36 = vmul.f32 %v1077_v11, %v19020_v41  ;;  %v556_v47 = vmul.f32 %v505_v0, %v8685_v13  ;;  %vm14079_vm8 = vcmp.eq.f32.partialorder %v4428_v34, 8.507059e+37  ;;  %8072 = vpow2.f32 %v7235_v35 }
 0x4ea   :  { %v1155_v61 = vmul.f32 %v1087_v5, %v19023_v59  ;;  %v557_v45 = vmul.f32 %v507_v52, %v8685_v13  ;;  %v4402_v37 = vsel %vm13993_vm3, %v13908_v6, %v4397_v58  ;;  %v4435_v34 = vmul.f32 %v14066_v16, %v13966_v55 }
 0x4eb   :  { %8074 = vpow2.f32 %v7236_v54  ;;  %v7237_v26 = vmul.f32 -1.442695, %v14061_v38  ;;  %v14100_v13 = vmul.f32 %v4387_v8, %v13581_v32  ;;  %v4412_v6 = vsel %vm14092_vm11, %v13885_v3, %v4408_v62  ;;  %v14144_v62 = vld [vmem:[%s18225_s2] ss:$0 sm:$0xff] }
 0x4ec   :  { %v4431_v28 = vor.u32 1.1754944e-38, %v4430_v7  ;;  %v7238_v29 = vmul.f32 -1.442695, %v14072_v42  ;;  %v14114_v58 = vpop.eup %8068  ;;  %v4427_v32 = vsel %vm14109_vm12, %v13928_v24, %v4423_v10  ;;  %8076 = vrcp.f32 %v14075_v49 }
 0x4ed   :  { %19026 = vst [vmem:[#allocation36_spill] sm:$0xff] %v14100_v13  ;;  %v14120_v3 = vadd.f32 1e-05, %v556_v47  ;;  %v1208_v8 = vmul.f32 %v13779_v57, %v1154_v36  ;;  %v14126_v35 = vmul.f32 %v4402_v37, %v13604_v2  ;;  %v14129_v7 = vadd.f32 %v1974_v40, %v9160_v31  ;;  %v1574_v36 = vpop.f32.mrf.mxu0 }
 0x4ee   :  { %v14123_v9 = vpop.eup %8070  ;;  %v14131_v11 = vadd.f32 1e-05, %v557_v45  ;;  %v1209_v56 = vmul.f32 %v13779_v57, %v1155_v61  ;;  %v4417_v24 = vsel %vm14044_vm6, %v13972_v30, %v4412_v6  ;;  %v4436_v0 = vsub.f32 1.0, %v4435_v34  ;;  %v1708_v61 = vpop.f32.mrf.mxu1 }
 0x4ef   :  { %19029 = vst [vmem:[#allocation92_spill] sm:$0xff] %v14126_v35  ;;  %v4445_v54 = vand.u32 2147483648, %v13966_v55  ;;  %8078 = vpow2.f32 %v7237_v26  ;;  %v8073_v5 = vpop.eup %8072  ;;  %v4432_v2 = vsel %vm14079_vm8, %v4431_v28, %v4427_v32  ;;  %v4443_v52 = vand.u32 2147483647, %v13966_v55 }
 0x4f0   :  { %8080 = vpow2.f32 %v7238_v29  ;;  %v1263_v10 = vadd.f32 %v14144_v62, %v1209_v56  ;;  %v4450_v30 = vmul.f32 %v14114_v58, %v14004_v33  ;;  %v4465_v41 = vmul.f32 %v14123_v9, %v14022_v27 }
 0x4f1   :  { %v8075_v43 = vpop.eup %8074  ;;  %8082 = vrsqrt.f32 %v14120_v3  ;;  %v1262_v47 = vadd.f32 %v14144_v62, %v1208_v8  ;;  %v14154_v50 = vmul.f32 %v4417_v24, %v13628_v44  ;;  %vm4439_vm14 = vweird.f32 %v13966_v55 }
 0x4f2   :  { %v7239_v59 = vmul.f32 -1.442695, %v14129_v7  ;;  %8084 = vrsqrt.f32 %v14131_v11  ;;  %v14159_v45 = vpop.eup %8076  ;;  %v4437_v37 = vmul.f32 %v14066_v16, %v4436_v0  ;;  %v14162_v17 = vor.u32 1.1754944e-38, %v4445_v54 }
 0x4f3   :  { %19030 = vst [vmem:[#allocation122_spill] sm:$0xff] %v14154_v50  ;;  %v14164_v34 = vadd.f32 1.0, %v8073_v5  ;;  %v1289_v26 = vpack.c.bf16 %v1263_v10, %v1262_v47  ;;  %v14167_v40 = vmul.f32 %v4432_v2, %v13677_v19  ;;  %v4460_v44 = vand.u32 2147483648, %v14004_v33  ;;  %v1842_v10 = vpop.f32.mrf.mxu2 }
 0x4f4   :  { %v14170_v6 = vadd.f32 1.0, %v8075_v43  ;;  %v14173_v39 = vadd.f32 %v1574_v36, %v9142_v25  ;;  %vm14175_vm13 = vcmp.eq.f32.partialorder %v4443_v52, 8.507059e+37  ;;  %v4451_v32 = vsub.f32 1.0, %v4450_v30  ;;  %v1976_v36 = vpop.f32.mrf.mxu3 }
 0x4f5   :  { %19031 = vst [vmem:[#allocation123_spill] sm:$0xff] %v14167_v40  ;;  %v8079_v28 = vpop.eup %8078  ;;  %v4466_v8 = vsub.f32 1.0, %v4465_v41  ;;  %v4475_v56 = vand.u32 2147483648, %v14022_v27  ;;  %v14181_v24 = vadd.f32 %v1708_v61, %v9147_v14  ;;  %1616 = vmatmul.bf16.gmra.mxu0 %v1289_v26  ;;  %1750 = vmatmul.bf16.gmra.mxu1 %v1289_v26  ;;  %vm4440_vm3 = vweird.f32 %v14066_v16 }
 0x4f6   :  { %v8081_v19 = vpop.eup %8080  ;;  %vm4454_vm4 = vweird.f32 %v14004_v33  ;;  %v4480_v0 = vmul.f32 %v14159_v45, %v14075_v49  ;;  %8086 = vpow2.f32 %v7239_v59  ;;  %1884 = vmatmul.bf16.gmra.mxu2 %v1289_v26  ;;  %2018 = vmatmul.bf16.gmra.mxu3 %v1289_v26  ;;  %v4438_v5 = vadd.f32 %v14066_v16, %v4437_v37  ;;  %vm14209_vm0 = vmor %vm4439_vm14, %vm4440_vm3  ;;  %v14247_v26 = vpop.f32.mrf.mxu0 }
 0x4f7   :  { %v14187_v54 = vpop.eup %8082  ;;  %v4458_v2 = vand.u32 2147483647, %v14004_v33  ;;  %v4473_v52 = vand.u32 2147483647, %v14022_v27  ;;  %8088 = vrcp.f32 %v14164_v34  ;;  %v14195_v30 = vor.u32 1.1754944e-38, %v4460_v44  ;;  %v14249_v35 = vpop.f32.mrf.mxu1 }
 0x4f8   :  { %v14193_v43 = vpop.eup %8084  ;;  %vm4469_vm15 = vweird.f32 %v14022_v27  ;;  %8090 = vrcp.f32 %v14170_v6  ;;  %v14199_v41 = vadd.f32 1.0, %v8079_v28  ;;  %v4452_v47 = vmul.f32 %v14114_v58, %v4451_v32 }
 0x4f9   :  { %v4467_v59 = vmul.f32 %v14123_v9, %v4466_v8  ;;  %v4476_v61 = vor.u32 1.1754944e-38, %v4475_v56  ;;  %v14203_v37 = vadd.f32 1.0, %v8081_v19  ;;  %v4481_v44 = vsub.f32 1.0, %v4480_v0 }
 0x4fa   :  { %v4488_v28 = vand.u32 2147483647, %v14075_v49  ;;  %v4490_v40 = vand.u32 2147483648, %v14075_v49  ;;  %v14216_v32 = vadd.f32 %v1842_v10, %v9155_v48  ;;  %v4442_v8 = vsel %vm14209_vm0, %v14066_v16, %v4438_v5 }
 0x4fb   :  { %vm14221_vm1 = vcmp.eq.f32.partialorder %v4458_v2, 8.507059e+37  ;;  %vm14225_vm2 = vcmp.eq.f32.partialorder %v4473_v52, 8.507059e+37  ;;  %v14230_v19 = vadd.f32 %v1976_v36, %v9160_v31  ;;  %v1089_v0 = vmul.f32 %v14187_v54, %v14120_v3 }
 0x4fc   :  { %v1099_v10 = vmul.f32 %v14193_v43, %v14131_v11  ;;  %v8087_v50 = vpop.eup %8086  ;;  %vm4455_vm9 = vweird.f32 %v14114_v58  ;;  %vm4470_vm5 = vweird.f32 %v14123_v9  ;;  %vm4484_vm6 = vweird.f32 %v14075_v49  ;;  %v1979_v55 = vpop.f32.mrf.mxu3 }
 0x4fd   :  { %8092 = vrcp.f32 %v14199_v41  ;;  %v7240_v16 = vmul.f32 -1.442695, %v14173_v39  ;;  %v14241_v5 = vpop.eup %8088  ;;  %v4453_v2 = vadd.f32 %v14114_v58, %v4452_v47  ;;  %v4468_v52 = vadd.f32 %v14123_v9, %v4467_v59  ;;  %vm14262_vm7 = vmor %vm4454_vm4, %vm4455_vm9 }
 0x4fe   :  { %8094 = vrcp.f32 %v14203_v37  ;;  %v7241_v36 = vmul.f32 -1.442695, %v14181_v24  ;;  %v14251_v13 = vpop.eup %8090  ;;  %v4447_v46 = vsel %vm14175_vm13, %v14162_v17, %v4442_v8  ;;  %v4482_v60 = vmul.f32 %v14159_v45, %v4481_v44  ;;  %vm14274_vm10 = vmor %vm4469_vm15, %vm4470_vm5 }
 0x4ff   :  { %v4491_v4 = vor.u32 1.1754944e-38, %v4490_v40  ;;  %v7242_v47 = vmul.f32 -1.442695, %v14216_v32  ;;  %v7243_v23 = vmul.f32 -1.442695, %v14230_v19  ;;  %v1090_v29 = vmul.f32 %v14187_v54, %v1089_v0 }
 0x500   :  { %v1100_v17 = vmul.f32 %v14193_v43, %v1099_v10  ;;  %vm14278_vm8 = vcmp.eq.f32.partialorder %v4488_v28, 8.507059e+37  ;;  %v4495_v44 = vmul.f32 %v14241_v5, %v14164_v34  ;;  %v4505_v8 = vand.u32 2147483648, %v14164_v34 }
 0x501   :  { %v14285_v0 = vadd.f32 1.0, %v8087_v50  ;;  %8096 = vpow2.f32 %v7240_v16  ;;  %v4457_v27 = vsel %vm14262_vm7, %v14114_v58, %v4453_v2  ;;  %v4472_v10 = vsel %vm14274_vm10, %v14123_v9, %v4468_v52  ;;  %v14305_v9 = vpop.f32.mrf.mxu2 }
 0x502   :  { %v4510_v28 = vmul.f32 %v14251_v13, %v14170_v6  ;;  %8098 = vpow2.f32 %v7241_v36  ;;  %v4483_v51 = vadd.f32 %v14159_v45, %v4482_v60  ;;  %vm4485_vm11 = vweird.f32 %v14159_v45 }
 0x503   :  { %v14295_v22 = vpop.eup %8092  ;;  %v4520_v50 = vand.u32 2147483648, %v14170_v6  ;;  %8100 = vpow2.f32 %v7242_v47  ;;  %v14303_v58 = vmul.f32 %v4447_v46, %v13813_v21  ;;  %v1091_v2 = vmul.f32 0.5, %v1090_v29  ;;  %vm14315_vm12 = vmor %vm4484_vm6, %vm4485_vm11 }
 0x504   :  { %v14300_v16 = vpop.eup %8094  ;;  %8102 = vpow2.f32 %v7243_v23  ;;  %v1101_v52 = vmul.f32 0.5, %v1100_v17  ;;  %v4462_v36 = vsel %vm14221_vm1, %v14195_v30, %v4457_v27  ;;  %v4477_v60 = vsel %vm14225_vm2, %v4476_v61, %v4472_v10 }
 0x505   :  { %19046 = vst [vmem:[#allocation124_spill] sm:$0xff] %v14303_v58  ;;  %v4496_v59 = vsub.f32 1.0, %v4495_v44  ;;  %v4518_v47 = vand.u32 2147483647, %v14170_v6  ;;  %v14319_v23 = vor.u32 1.1754944e-38, %v4505_v8  ;;  %v4511_v46 = vsub.f32 1.0, %v4510_v28 }
 0x506   :  { %v4525_v29 = vmul.f32 %v14295_v22, %v14199_v41  ;;  %8104 = vrcp.f32 %v14285_v0  ;;  %v4487_v61 = vsel %vm14315_vm12, %v14159_v45, %v4483_v51  ;;  %vm4499_vm14 = vweird.f32 %v14164_v34  ;;  %v14340_v51 = vpop.f32.mrf.mxu0  ;;  %v14342_v45 = vpop.f32.mrf.mxu1 }
 0x507   :  { %v8097_v30 = vpop.eup %8096  ;;  %vm4500_vm13 = vweird.f32 %v14241_v5  ;;  %v14329_v49 = vor.u32 1.1754944e-38, %v4520_v50  ;;  %v4540_v56 = vmul.f32 %v14300_v16, %v14203_v37  ;;  %v14334_v40 = vmul.f32 %v4462_v36, %v13855_v53 }
 0x508   :  { %v8099_v17 = vpop.eup %8098  ;;  %v14337_v44 = vmul.f32 %v4477_v60, %v13868_v12  ;;  %vm4514_vm3 = vweird.f32 %v14170_v6  ;;  %v1092_v8 = vsub.f32 1.5, %v1091_v2  ;;  %v1102_v27 = vsub.f32 1.5, %v1101_v52  ;;  %vm14415_vm11 = vmor %vm4499_vm14, %vm4500_vm13 }
 0x509   :  { %19049 = vst [vmem:[#allocation125_spill] sm:$0xff] %v14334_v40  ;;  %v8101_v10 = vpop.eup %8100  ;;  %v4497_v28 = vmul.f32 %v14241_v5, %v4496_v59  ;;  %vm4515_vm4 = vweird.f32 %v14251_v13  ;;  %v4533_v50 = vand.u32 2147483647, %v14199_v41  ;;  %v4535_v53 = vand.u32 2147483648, %v14199_v41 }
 0x50a   :  { %19050 = vst [vmem:[#allocation126_spill] sm:$0xff] %v14337_v44  ;;  %v8103_v36 = vpop.eup %8102  ;;  %v4492_v12 = vsel %vm14278_vm8, %v4491_v4, %v4487_v61  ;;  %v4512_v60 = vmul.f32 %v14251_v13, %v4511_v46  ;;  %v4526_v21 = vsub.f32 1.0, %v4525_v29  ;;  %v14351_v58 = vadd.f32 1.0, %v8097_v30  ;;  %vm14434_vm12 = vmor %vm4514_vm3, %vm4515_vm4 }
 0x50b   :  { %v4541_v2 = vsub.f32 1.0, %v4540_v56  ;;  %v14353_v52 = vadd.f32 1.0, %v8099_v17  ;;  %vm1094_vm15 = vweird.f32 %v14120_v3  ;;  %vm1095_vm0 = vweird.f32 %v14187_v54 }
 0x50c   :  { %v14357_v59 = vpop.eup %8104  ;;  %v19051_v44 = vand.u32 2147483647, %v14164_v34  ;;  %v14365_v4 = vadd.f32 1.0, %v8101_v10  ;;  %v1093_v33 = vmul.f32 %v14187_v54, %v1092_v8  ;;  %v1103_v46 = vmul.f32 %v14193_v43, %v1102_v27  ;;  %vm14392_vm7 = vmor %vm1094_vm15, %vm1095_vm0 }
 0x50d   :  { %vm1105_vm2 = vweird.f32 %v14193_v43  ;;  %v14371_v29 = vmul.f32 %v4492_v12, %v13911_v15  ;;  %v4498_v30 = vadd.f32 %v14241_v5, %v4497_v28  ;;  %vm14374_vm9 = vcmp.eq.f32.partialorder %v4518_v47, 8.507059e+37  ;;  %v14386_v15 = vpop.f32.mrf.mxu2 }
 0x50e   :  { %vm14361_vm1 = vcmp.eq.f32.partialorder %v19051_v44, 8.507059e+37  ;;  %vm4529_vm5 = vweird.f32 %v14199_v41  ;;  %v4548_v56 = vand.u32 2147483647, %v14203_v37  ;;  %v14380_v17 = vadd.f32 1.0, %v8103_v36 }
 0x50f   :  { %19054 = vst [vmem:[#allocation127_spill] sm:$0xff] %v14371_v29  ;;  %v4513_v44 = vadd.f32 %v14251_v13, %v4512_v60  ;;  %v4527_v8 = vmul.f32 %v14295_v22, %v4526_v21  ;;  %vm4544_vm6 = vweird.f32 %v14203_v37  ;;  %8106 = vrcp.f32 %v14351_v58  ;;  %v14444_v21 = vpop.f32.mrf.mxu3 }
 0x510   :  { %vm1104_vm10 = vweird.f32 %v14131_v11  ;;  %v4542_v27 = vmul.f32 %v14300_v16, %v4541_v2  ;;  %v4555_v10 = vmul.f32 %v14357_v59, %v14285_v0  ;;  %8108 = vrcp.f32 %v14353_v52  ;;  %v14456_v2 = vpop.f32.mrf.mxu0 }
 0x511   :  { %v14403_v28 = vadd.f32 %v14247_v26, %v9142_v25  ;;  %vm14407_vm8 = vmor %vm1104_vm10, %vm1105_vm2  ;;  %8110 = vrcp.f32 %v14365_v4  ;;  %v14422_v26 = vadd.f32 %v14249_v35, %v9147_v14  ;;  %v1097_v36 = vsel %vm14392_vm7, %v14187_v54, %v1093_v33  ;;  %v14458_v33 = vpop.f32.mrf.mxu1 }
 0x512   :  { %v1107_v12 = vsel %vm14407_vm8, %v14193_v43, %v1103_v46  ;;  %v4536_v60 = vor.u32 1.1754944e-38, %v4535_v53  ;;  %v4550_v35 = vand.u32 2147483648, %v14203_v37  ;;  %8112 = vrcp.f32 %v14380_v17  ;;  %v19067_v46 = vld [vmem:[#allocation20_spill] sm:$0xff] }
 0x513   :  { %v14442_v54 = vadd.f32 %v14305_v9, %v9155_v48  ;;  %v4502_v43 = vsel %vm14415_vm11, %v14241_v5, %v4498_v30  ;;  %v4517_v6 = vsel %vm14434_vm12, %v14251_v13, %v4513_v44  ;;  %vm4530_vm14 = vweird.f32 %v14295_v22  ;;  %v19068_v13 = vld [vmem:[#allocation101_spill] sm:$0xff] }
 0x514   :  { %v14454_v53 = vadd.f32 %v1979_v55, %v9160_v31  ;;  %vm14460_vm13 = vcmp.eq.f32.partialorder %v4533_v50, 8.507059e+37  ;;  %vm4545_vm3 = vweird.f32 %v14300_v16  ;;  %v7244_v5 = vmul.f32 -1.442695, %v14403_v28  ;;  %vm14492_vm15 = vmor %vm4529_vm5, %vm4530_vm14 }
 0x515   :  { %v1156_v30 = vmul.f32 %v1097_v36, %v19067_v46  ;;  %v1157_v44 = vmul.f32 %v1107_v12, %v19068_v13  ;;  %v14468_v47 = vpop.eup %8106  ;;  %v4528_v55 = vadd.f32 %v14295_v22, %v4527_v8  ;;  %v4543_v3 = vadd.f32 %v14300_v16, %v4542_v27  ;;  %vm14508_vm0 = vmor %vm4544_vm6, %vm4545_vm3 }
 0x516   :  { %v4556_v11 = vsub.f32 1.0, %v4555_v10  ;;  %v7245_v50 = vmul.f32 -1.442695, %v14422_v26  ;;  %v14473_v34 = vpop.eup %8108  ;;  %v4507_v29 = vsel %vm14361_vm1, %v14319_v23, %v4502_v43  ;;  %vm14478_vm4 = vcmp.eq.f32.partialorder %v4548_v56, 8.507059e+37 }
 0x517   :  { %v4551_v36 = vor.u32 1.1754944e-38, %v4550_v35  ;;  %v7246_v12 = vmul.f32 -1.442695, %v14442_v54  ;;  %v14483_v46 = vpop.eup %8110  ;;  %v4522_v8 = vsel %vm14374_vm9, %v14329_v49, %v4517_v6  ;;  %v4565_v23 = vand.u32 2147483648, %v14285_v0  ;;  %v14526_v6 = vpop.f32.mrf.mxu2 }
 0x518   :  { %v7247_v56 = vmul.f32 -1.442695, %v14454_v53  ;;  %v14500_v27 = vadd.f32 %v14340_v51, %v9142_v25  ;;  %v14502_v10 = vpop.eup %8112  ;;  %8114 = vpow2.f32 %v7244_v5  ;;  %v14514_v49 = vadd.f32 %v14342_v45, %v9147_v14 }
 0x519   :  { %v1210_v61 = vmul.f32 %v13779_v57, %v1156_v30  ;;  %v1211_v51 = vmul.f32 %v13779_v57, %v1157_v44  ;;  %v4532_v35 = vsel %vm14492_vm15, %v14295_v22, %v4528_v55  ;;  %v4547_v37 = vsel %vm14508_vm0, %v14300_v16, %v4543_v3  ;;  %v14543_v3 = vpop.f32.mrf.mxu3 }
 0x51a   :  { %v4557_v43 = vmul.f32 %v14357_v59, %v4556_v11  ;;  %vm4559_vm1 = vweird.f32 %v14285_v0  ;;  %8116 = vpow2.f32 %v7245_v50  ;;  %v4570_v45 = vmul.f32 %v14468_v47, %v14351_v58 }
 0x51b   :  { %v4585_v57 = vmul.f32 %v14473_v34, %v14353_v52  ;;  %8118 = vpow2.f32 %v7246_v12  ;;  %v1265_v22 = vadd.f32 %v14144_v62, %v1211_v51  ;;  %v4600_v5 = vmul.f32 %v14483_v46, %v14365_v4 }
 0x51c   :  { %v4615_v16 = vmul.f32 %v14502_v10, %v14380_v17  ;;  %8120 = vpow2.f32 %v7247_v56  ;;  %v7248_v30 = vmul.f32 -1.442695, %v14500_v27  ;;  %v14539_v13 = vmul.f32 %v4507_v29, %v14000_v20  ;;  %v14554_v20 = vpop.f32.mrf.mxu0  ;;  %v14556_v29 = vpop.f32.mrf.mxu1 }
 0x51d   :  { %v4563_v44 = vand.u32 2147483647, %v14285_v0  ;;  %v7249_v55 = vmul.f32 -1.442695, %v14514_v49  ;;  %v1264_v11 = vadd.f32 %v14144_v62, %v1210_v61  ;;  %v14547_v50 = vmul.f32 %v4522_v8, %v14007_v63 }
 0x51e   :  { %19075 = vst [vmem:[#allocation20_spill] sm:$0xff] %v14539_v13  ;;  %v4537_v12 = vsel %vm14460_vm13, %v4536_v60, %v4532_v35  ;;  %vm4560_vm2 = vweird.f32 %v14357_v59  ;;  %v14552_v40 = vor.u32 1.1754944e-38, %v4565_v23  ;;  %v8115_v56 = vpop.eup %8114  ;;  %v4552_v41 = vsel %vm14478_vm4, %v4551_v36, %v4547_v37 }
 0x51f   :  { %19076 = vst [vmem:[#allocation101_spill] sm:$0xff] %v14547_v50  ;;  %v4571_v51 = vsub.f32 1.0, %v4570_v45  ;;  %v4586_v62 = vsub.f32 1.0, %v4585_v57  ;;  %v1290_v61 = vpack.c.bf16 %v1265_v22, %v1264_v11  ;;  %v14561_v8 = vadd.f32 %v14357_v59, %v4557_v43  ;;  %vm14584_vm6 = vmor %vm4559_vm1, %vm4560_vm2 }
 0x520   :  { %v8117_v63 = vpop.eup %8116  ;;  %v4601_v60 = vsub.f32 1.0, %v4600_v5  ;;  %v4616_v9 = vsub.f32 1.0, %v4615_v16  ;;  %8122 = vpow2.f32 %v7248_v30  ;;  %v14564_v35 = vmul.f32 %v4537_v12, %v14061_v38  ;;  %v14601_v12 = vpop.f32.mrf.mxu2 }
 0x521   :  { %v8119_v23 = vpop.eup %8118  ;;  %v4578_v50 = vand.u32 2147483647, %v14351_v58  ;;  %8124 = vpow2.f32 %v7249_v55  ;;  %1621 = vmatmul.bf16.gmra.mxu0 %v1290_v61  ;;  %1755 = vmatmul.bf16.gmra.mxu1 %v1290_v61  ;;  %v14570_v57 = vmul.f32 %v4552_v41, %v14072_v42  ;;  %vm14572_vm9 = vcmp.eq.f32.partialorder %v4563_v44, 8.507059e+37 }
 0x522   :  { %19077 = vst [vmem:[#allocation128_spill] sm:$0xff] %v14564_v35  ;;  %v8121_v45 = vpop.eup %8120  ;;  %vm4574_vm5 = vweird.f32 %v14351_v58  ;;  %v4580_v38 = vand.u32 2147483648, %v14351_v58  ;;  %v14578_v22 = vadd.f32 1.0, %v8115_v56  ;;  %1889 = vmatmul.bf16.gmra.mxu2 %v1290_v61  ;;  %2023 = vmatmul.bf16.gmra.mxu3 %v1290_v61  ;;  %v4572_v42 = vmul.f32 %v14468_v47, %v4571_v51 }
 0x523   :  { %19080 = vst [vmem:[#allocation129_spill] sm:$0xff] %v14570_v57  ;;  %v4587_v16 = vmul.f32 %v14473_v34, %v4586_v62  ;;  %vm4589_vm7 = vweird.f32 %v14353_v52  ;;  %v14591_v30 = vadd.f32 1.0, %v8117_v63  ;;  %v4562_v44 = vsel %vm14584_vm6, %v14357_v59, %v14561_v8 }
 0x524   :  { %v4602_v55 = vmul.f32 %v14483_v46, %v4601_v60  ;;  %v4617_v0 = vmul.f32 %v14502_v10, %v4616_v9  ;;  %v14599_v11 = vadd.f32 1.0, %v8119_v23  ;;  %vm4575_vm10 = vweird.f32 %v14468_v47  ;;  %v14620_v60 = vpop.f32.mrf.mxu3  ;;  %v14634_v5 = vpop.f32.mrf.mxu0 }
 0x525   :  { %vm14604_vm8 = vcmp.eq.f32.partialorder %v4578_v50, 8.507059e+37  ;;  %v4593_v41 = vand.u32 2147483647, %v14353_v52  ;;  %v4595_v51 = vand.u32 2147483648, %v14353_v52  ;;  %v14610_v62 = vadd.f32 1.0, %v8121_v45  ;;  %vm14626_vm13 = vmor %vm4574_vm5, %vm4575_vm10 }
 0x526   :  { %v8123_v59 = vpop.eup %8122  ;;  %vm4590_vm11 = vweird.f32 %v14473_v34  ;;  %vm4604_vm12 = vweird.f32 %v14365_v4  ;;  %v4608_v61 = vand.u32 2147483647, %v14365_v4  ;;  %8126 = vrcp.f32 %v14578_v22 }
 0x527   :  { %v8125_v63 = vpop.eup %8124  ;;  %v4573_v50 = vadd.f32 %v14468_v47, %v4572_v42  ;;  %v4588_v8 = vadd.f32 %v14473_v34, %v4587_v16  ;;  %vm4605_vm14 = vweird.f32 %v14483_v46  ;;  %8128 = vrcp.f32 %v14591_v30  ;;  %v14636_v42 = vpop.f32.mrf.mxu1  ;;  %vm14642_vm4 = vmor %vm4589_vm7, %vm4590_vm11 }
 0x528   :  { %v4603_v23 = vadd.f32 %v14483_v46, %v4602_v55  ;;  %v4618_v45 = vadd.f32 %v14502_v10, %v4617_v0  ;;  %vm4620_vm3 = vweird.f32 %v14502_v10  ;;  %8130 = vrcp.f32 %v14599_v11  ;;  %vm14655_vm15 = vmor %vm4604_vm12, %vm4605_vm14  ;;  %v14710_v1 = vpop.f32.mrf.mxu2 }
 0x529   :  { %v4610_v16 = vand.u32 2147483648, %v14365_v4  ;;  %v4625_v55 = vand.u32 2147483648, %v14380_v17  ;;  %8132 = vrcp.f32 %v14610_v62  ;;  %v14649_v0 = vadd.f32 1.0, %v8123_v59 }
 0x52a   :  { %v4581_v37 = vor.u32 1.1754944e-38, %v4580_v38  ;;  %vm4619_vm0 = vweird.f32 %v14380_v17  ;;  %v4623_v52 = vand.u32 2147483647, %v14380_v17  ;;  %v14661_v35 = vadd.f32 1.0, %v8125_v63 }
 0x52b   :  { %v4567_v59 = vsel %vm14572_vm9, %v14552_v40, %v4562_v44  ;;  %v4577_v38 = vsel %vm14626_vm13, %v14468_v47, %v4573_v50  ;;  %vm14669_vm1 = vcmp.eq.f32.partialorder %v4593_v41, 8.507059e+37  ;;  %v4596_v13 = vor.u32 1.1754944e-38, %v4595_v51  ;;  %vm14675_vm2 = vmor %vm4619_vm0, %vm4620_vm3 }
 0x52c   :  { %v14679_v17 = vpop.eup %8126  ;;  %v4592_v40 = vsel %vm14642_vm4, %v14473_v34, %v4588_v8  ;;  %v4607_v47 = vsel %vm14655_vm15, %v14483_v46, %v4603_v23  ;;  %vm14687_vm9 = vcmp.eq.f32.partialorder %v4608_v61, 8.507059e+37  ;;  %v4622_v44 = vsel %vm14675_vm2, %v14502_v10, %v4618_v45  ;;  %v14758_v43 = vpop.f32.mrf.mxu0 }
 0x52d   :  { %v14694_v41 = vpop.eup %8128  ;;  %v4611_v51 = vor.u32 1.1754944e-38, %v4610_v16  ;;  %v4626_v63 = vor.u32 1.1754944e-38, %v4625_v55  ;;  %8134 = vrcp.f32 %v14649_v0  ;;  %v14699_v34 = vadd.f32 %v14386_v15, %v9155_v48  ;;  %v14740_v16 = vpop.f32.mrf.mxu3  ;;  %v19101_v55 = vld [vmem:[#allocation30_spill] sm:$0xff] }
 0x52e   :  { %v14701_v57 = vpop.eup %8130  ;;  %v4582_v46 = vsel %vm14604_vm8, %v4581_v37, %v4577_v38  ;;  %vm4624_vm5 = vcmp.eq.f32.partialorder %v4623_v52, 8.507059e+37  ;;  %8136 = vrcp.f32 %v14661_v35  ;;  %v14708_v10 = vadd.f32 %v14444_v21, %v9160_v31  ;;  %v19102_v52 = vld [vmem:[#allocation29_spill] sm:$0xff]  ;;  %v19105_v38 = vld [vmem:[#allocation31_spill] sm:$0xff] }
 0x52f   :  { %v14712_v61 = vpop.eup %8132  ;;  %v14715_v50 = vmul.f32 %v4567_v59, %v14129_v7  ;;  %v4597_v15 = vsel %vm14669_vm1, %v4596_v13, %v4592_v40  ;;  %v4612_v37 = vsel %vm14687_vm9, %v4611_v51, %v4607_v47  ;;  %v4627_v56 = vsel %vm4624_vm5, %v4626_v63, %v4622_v44  ;;  %v14760_v44 = vpop.f32.mrf.mxu1  ;;  %v19110_v51 = vld [vmem:[#allocation35_spill] sm:$0xff]  ;;  %v19111_v63 = vld [vmem:[#allocation32_spill] sm:$0xff] }
 0x530   :  { %v4630_v8 = vmul.f32 %v14679_v17, %v14578_v22  ;;  %v4640_v21 = vand.u32 2147483648, %v14578_v22  ;;  %v4645_v9 = vmul.f32 %v14694_v41, %v14591_v30  ;;  %v14728_v23 = vadd.f32 %v14456_v2, %v9142_v25  ;;  %v19104_v2 = vld [vmem:[#allocation34_spill] sm:$0xff] }
 0x531   :  { %19099 = vst [vmem:[#allocation130_spill] sm:$0xff] %v14715_v50  ;;  %v14731_v7 = vmul.f32 %v4582_v46, %v14173_v39  ;;  %v4660_v13 = vmul.f32 %v14701_v57, %v14599_v11  ;;  %v7250_v45 = vmul.f32 -1.442695, %v14699_v34  ;;  %v14738_v58 = vadd.f32 %v14458_v33, %v9147_v14 }
 0x532   :  { %v19103_v59 = vpack.c.bf16 %v19101_v55, %v19102_v52  ;;  %v19106_v4 = vpack.c.bf16 %v19104_v2, %v19105_v38  ;;  %v14749_v39 = vmul.f32 %v4597_v15, %v14181_v24  ;;  %v4675_v40 = vmul.f32 %v14712_v61, %v14610_v62  ;;  %19109 = vst [vmem:[#allocation34_spill] sm:$0xff] %v14760_v44  ;;  %v19113_v55 = vld [vmem:[#allocation23_spill] sm:$0xff]  ;;  %v19114_v24 = vld [vmem:[#allocation33_spill] sm:$0xff] }
 0x533   :  { %19100 = vst [vmem:[#allocation131_spill] sm:$0xff] %v14731_v7  ;;  %v7251_v47 = vmul.f32 -1.442695, %v14708_v10  ;;  %v14756_v33 = vadd.f32 %v14526_v6, %v9155_v48  ;;  %v19112_v46 = vpack.c.bf16 %v19110_v51, %v19111_v63  ;;  %v19115_v15 = vpack.c.bf16 %v19113_v55, %v19114_v24  ;;  %v14768_v52 = vpop.eup %8134 }
 0x534   :  { %6397 = vmatmul.bf16.vlgmr.msrb.gmra.mxu0 %v19103_v59  ;;  %6531 = vmatmul.bf16.vlgmr.msrb.gmra.mxu1 %v19106_v4  ;;  %19107 = vst [vmem:[#allocation30_spill] sm:$0xff] %v14749_v39  ;;  %v14771_v59 = vmul.f32 %v4612_v37, %v14216_v32  ;;  %v14774_v6 = vmul.f32 %v4627_v56, %v14230_v19  ;;  %v4638_v2 = vand.u32 2147483647, %v14578_v22  ;;  %v14781_v4 = vpop.eup %8136  ;;  %v4631_v51 = vsub.f32 1.0, %v4630_v8 }
 0x535   :  { %19108 = vst [vmem:[#allocation29_spill] sm:$0xff] %v14756_v33  ;;  %6665 = vmatmul.bf16.vlgmr.msrb.gmra.mxu2 %v19112_v46  ;;  %6799 = vmatmul.bf16.vlgmr.msrb.gmra.mxu3 %v19115_v15  ;;  %v14779_v38 = vadd.f32 %v14543_v3, %v9160_v31  ;;  %v14783_v63 = vor.u32 1.1754944e-38, %v4640_v21  ;;  %v4646_v46 = vsub.f32 1.0, %v4645_v9  ;;  %v7252_v55 = vmul.f32 -1.442695, %v14728_v23  ;;  %v14801_v15 = vpop.f32.mrf.mxu2 }
 0x536   :  { %19116 = vst [vmem:[#allocation31_spill] sm:$0xff] %v14771_v59  ;;  %vm4634_vm6 = vweird.f32 %v14578_v22  ;;  %v4655_v32 = vand.u32 2147483648, %v14591_v30  ;;  %v4661_v19 = vsub.f32 1.0, %v4660_v13  ;;  %8138 = vpow2.f32 %v7250_v45 }
 0x537   :  { %19117 = vst [vmem:[#allocation35_spill] sm:$0xff] %v14774_v6  ;;  %v7253_v37 = vmul.f32 -1.442695, %v14738_v58  ;;  %vm4649_vm7 = vweird.f32 %v14591_v30  ;;  %v4676_v3 = vsub.f32 1.0, %v4675_v40  ;;  %v4690_v56 = vmul.f32 %v14768_v52, %v14649_v0 }
 0x538   :  { %19118 = vst [vmem:[#allocation32_spill] sm:$0xff] %v14779_v38  ;;  %8140 = vpow2.f32 %v7251_v47  ;;  %v7254_v8 = vmul.f32 -1.442695, %v14756_v33  ;;  %v4653_v21 = vand.u32 2147483647, %v14591_v30  ;;  %vm4664_vm10 = vweird.f32 %v14599_v11  ;;  %v19148_v33 = vld [vmem:[#allocation27_spill] sm:$0xff] }
 0x539   :  { %v4705_v9 = vmul.f32 %v14781_v4, %v14661_v35  ;;  %v7255_v13 = vmul.f32 -1.442695, %v14779_v38  ;;  %v4632_v45 = vmul.f32 %v14679_v17, %v4631_v51  ;;  %v4647_v24 = vmul.f32 %v14694_v41, %v4646_v46  ;;  %19119 = vst [vmem:[#allocation23_spill] sm:$0xff] %v14801_v15  ;;  %v19147_v38 = vld [vmem:[#allocation42_spill] sm:$0xff] }
 0x53a   :  { %v4668_v40 = vand.u32 2147483647, %v14599_v11  ;;  %8142 = vpow2.f32 %v7252_v55  ;;  %v14803_v47 = vor.u32 1.1754944e-38, %v4655_v32  ;;  %v4662_v6 = vmul.f32 %v14701_v57, %v4661_v19  ;;  %v14811_v32 = vpop.f32.mrf.mxu3 }
 0x53b   :  { %v4670_v50 = vand.u32 2147483648, %v14599_v11  ;;  %8144 = vpow2.f32 %v7253_v37  ;;  %vm4635_vm8 = vweird.f32 %v14679_v17  ;;  %v4677_v59 = vmul.f32 %v14712_v61, %v4676_v3  ;;  %19120 = vst [vmem:[#allocation33_spill] sm:$0xff] %v14811_v32 }
 0x53c   :  { %v4691_v39 = vsub.f32 1.0, %v4690_v56  ;;  %8146 = vpow2.f32 %v7254_v8  ;;  %v8139_v51 = vpop.eup %8138  ;;  %v4683_v46 = vand.u32 2147483647, %v14610_v62  ;;  %v4685_v55 = vand.u32 2147483648, %v14610_v62  ;;  %v14821_v56 = vpop.f32.mrf.mxu0  ;;  %vm14838_vm3 = vmor %vm4634_vm6, %vm4635_vm8 }
 0x53d   :  { %v4706_v7 = vsub.f32 1.0, %v4705_v9  ;;  %8148 = vpow2.f32 %v7255_v13  ;;  %v14814_v19 = vadd.f32 %v14679_v17, %v4632_v45  ;;  %v14817_v37 = vadd.f32 %v14694_v41, %v4647_v24  ;;  %19121 = vst [vmem:[#allocation132_spill] sm:$0xff] %v14821_v56  ;;  %v14823_v8 = vpop.f32.mrf.mxu1  ;;  %v19142_v56 = vld [vmem:[#allocation24_spill] sm:$0xff] }
 0x53e   :  { %v8141_v36 = vpop.eup %8140  ;;  %vm4650_vm11 = vweird.f32 %v14694_v41  ;;  %v4698_v3 = vand.u32 2147483647, %v14649_v0  ;;  %19122 = vst [vmem:[#allocation133_spill] sm:$0xff] %v14823_v8  ;;  %vm14825_vm12 = vcmp.eq.f32.partialorder %v4638_v2, 8.507059e+37  ;;  %v14830_v13 = vadd.f32 %v14701_v57, %v4662_v6 }
 0x53f   :  { %vm4665_vm14 = vweird.f32 %v14701_v57  ;;  %v4671_v45 = vor.u32 1.1754944e-38, %v4670_v50  ;;  %vm4679_vm13 = vweird.f32 %v14610_v62  ;;  %vm14842_vm4 = vcmp.eq.f32.partialorder %v4653_v21, 8.507059e+37  ;;  %vm14859_vm1 = vmor %vm4649_vm7, %vm4650_vm11 }
 0x540   :  { %v8143_v24 = vpop.eup %8142  ;;  %vm14846_vm15 = vcmp.eq.f32.partialorder %v4668_v40, 8.507059e+37  ;;  %v4678_v50 = vadd.f32 %v14712_v61, %v4677_v59  ;;  %vm4680_vm0 = vweird.f32 %v14712_v61  ;;  %v4692_v8 = vmul.f32 %v14768_v52, %v4691_v39  ;;  %vm14883_vm5 = vmor %vm4664_vm10, %vm4665_vm14 }
 0x541   :  { %v14853_v32 = vadd.f32 1.0, %v8139_v51  ;;  %v8145_v22 = vpop.eup %8144  ;;  %vm14863_vm2 = vcmp.eq.f32.partialorder %v4683_v46, 8.507059e+37  ;;  %v4686_v59 = vor.u32 1.1754944e-38, %v4685_v55  ;;  %vm4694_vm9 = vweird.f32 %v14649_v0  ;;  %vm14900_vm7 = vmor %vm4679_vm13, %vm4680_vm0 }
 0x542   :  { %v4707_v39 = vmul.f32 %v14781_v4, %v4706_v7  ;;  %v14869_v51 = vadd.f32 1.0, %v8141_v36  ;;  %v8147_v15 = vpop.eup %8146  ;;  %v4637_v30 = vsel %vm14838_vm3, %v14679_v17, %v14814_v19  ;;  %v4652_v46 = vsel %vm14859_vm1, %v14694_v41, %v14817_v37 }
 0x543   :  { %vm14887_vm6 = vcmp.eq.f32.partialorder %v4698_v3, 8.507059e+37  ;;  %v4700_v7 = vand.u32 2147483648, %v14649_v0  ;;  %v8149_v17 = vpop.eup %8148  ;;  %v4667_v41 = vsel %vm14883_vm5, %v14701_v57, %v14830_v13  ;;  %vm4695_vm10 = vweird.f32 %v14768_v52  ;;  %v19141_v3 = vld [vmem:[#allocation40_spill] sm:$0xff]  ;;  %v19145_v13 = vld [vmem:[#allocation26_spill] sm:$0xff] }
 0x544   :  { %v14905_v19 = vadd.f32 1.0, %v8143_v24  ;;  %v14909_v37 = vadd.f32 %v14554_v20, %v9142_v25  ;;  %v19143_v21 = vpack.c.bf16 %v19141_v3, %v19142_v56  ;;  %v19144_v57 = vld [vmem:[#allocation16_spill] sm:$0xff]  ;;  %v4682_v62 = vsel %vm14900_vm7, %v14712_v61, %v4678_v50  ;;  %v14924_v20 = vpop.f32.mrf.mxu2  ;;  %v19150_v56 = vld [vmem:[#allocation43_spill] sm:$0xff]  ;;  %vm14949_vm14 = vmor %vm4694_vm9, %vm4695_vm10 }
 0x545   :  { %v19146_v55 = vpack.c.bf16 %v19144_v57, %v19145_v13  ;;  %v4693_v44 = vadd.f32 %v14768_v52, %v4692_v8  ;;  %8150 = vrcp.f32 %v14853_v32  ;;  %v14922_v24 = vadd.f32 1.0, %v8145_v22 }
 0x546   :  { %6402 = vmatmul.bf16.gmra.mxu0 %v19143_v21  ;;  %v19149_v3 = vpack.c.bf16 %v19147_v38, %v19148_v33  ;;  %v19151_v21 = vld [vmem:[#allocation38_spill] sm:$0xff]  ;;  %v4708_v13 = vadd.f32 %v14781_v4, %v4707_v39  ;;  %vm4710_vm8 = vweird.f32 %v14781_v4  ;;  %8152 = vrcp.f32 %v14869_v51 }
 0x547   :  { %6536 = vmatmul.bf16.gmra.mxu1 %v19146_v55  ;;  %v19152_v57 = vpack.c.bf16 %v19150_v56, %v19151_v21  ;;  %v14935_v61 = vadd.f32 1.0, %v8147_v15  ;;  %vm4709_vm11 = vweird.f32 %v14661_v35  ;;  %v4715_v8 = vand.u32 2147483648, %v14661_v35  ;;  %v14977_v55 = vpop.f32.mrf.mxu1 }
 0x548   :  { %6670 = vmatmul.bf16.gmra.mxu2 %v19149_v3  ;;  %v14939_v50 = vadd.f32 1.0, %v8149_v17  ;;  %v14943_v33 = vadd.f32 %v14556_v29, %v9147_v14  ;;  %v4713_v15 = vand.u32 2147483647, %v14661_v35  ;;  %8154 = vrcp.f32 %v14905_v19  ;;  %v14960_v29 = vpop.f32.mrf.mxu3  ;;  %vm14970_vm13 = vmor %vm4709_vm11, %vm4710_vm8 }
 0x549   :  { %6804 = vmatmul.bf16.gmra.mxu3 %v19152_v57  ;;  %v7256_v22 = vmul.f32 -1.442695, %v14909_v37  ;;  %v14958_v39 = vadd.f32 %v14601_v12, %v9155_v48  ;;  %v4642_v0 = vsel %vm14825_vm12, %v14783_v63, %v4637_v30  ;;  %v4697_v17 = vsel %vm14949_vm14, %v14768_v52, %v4693_v44  ;;  %v14975_v12 = vpop.f32.mrf.mxu0 }
 0x54a   :  { %v4701_v11 = vor.u32 1.1754944e-38, %v4700_v7  ;;  %8156 = vrcp.f32 %v14922_v24  ;;  %v4657_v63 = vsel %vm14842_vm4, %v14803_v47, %v4652_v46  ;;  %v4672_v44 = vsel %vm14846_vm15, %v4671_v45, %v4667_v41  ;;  %v19175_v41 = vld [vmem:[#allocation19_spill] sm:$0xff] }
 0x54b   :  { %v4712_v52 = vsel %vm14970_vm13, %v14781_v4, %v4708_v13  ;;  %8158 = vrcp.f32 %v14935_v61  ;;  %v14988_v9 = vpop.eup %8150  ;;  %v4687_v30 = vsel %vm14863_vm2, %v4686_v59, %v4682_v62  ;;  %v4716_v7 = vor.u32 1.1754944e-38, %v4715_v8  ;;  %v19174_v59 = vld [vmem:[#allocation47_spill] sm:$0xff] }
 0x54c   :  { %8160 = vrcp.f32 %v14939_v50  ;;  %v7257_v2 = vmul.f32 -1.442695, %v14943_v33  ;;  %v14994_v47 = vpop.eup %8152  ;;  %v4702_v45 = vsel %vm14887_vm6, %v4701_v11, %v4697_v17  ;;  %vm4714_vm12 = vcmp.eq.f32.partialorder %v4713_v15, 8.507059e+37  ;;  %v15026_v38 = vpop.f32.mrf.mxu2 }
 0x54d   :  { %8162 = vpow2.f32 %v7256_v22  ;;  %v7258_v4 = vmul.f32 -1.442695, %v14958_v39  ;;  %v15000_v6 = vmul.f32 %v4642_v0, %v14403_v28  ;;  %v4717_v46 = vsel %vm4714_vm12, %v4716_v7, %v4712_v52 }
 0x54e   :  { %v4730_v40 = vand.u32 2147483648, %v14853_v32  ;;  %v15005_v3 = vpop.eup %8154  ;;  %v15008_v56 = vmul.f32 %v4657_v63, %v14422_v26  ;;  %v15011_v36 = vmul.f32 %v4672_v44, %v14442_v54  ;;  %v15014_v21 = vmul.f32 %v4687_v30, %v14454_v53 }
 0x54f   :  { %19157 = vst [vmem:[#allocation40_spill] sm:$0xff] %v15000_v6  ;;  %v4745_v28 = vand.u32 2147483648, %v14869_v51  ;;  %v15020_v13 = vmul.f32 %v4702_v45, %v14500_v27  ;;  %v4720_v8 = vmul.f32 %v14988_v9, %v14853_v32  ;;  %v4735_v26 = vmul.f32 %v14994_v47, %v14869_v51  ;;  %v15048_v63 = vpop.f32.mrf.mxu1 }
 0x550   :  { %19160 = vst [vmem:[#allocation24_spill] sm:$0xff] %v15008_v56  ;;  %v15017_v57 = vpop.eup %8156  ;;  %8164 = vpow2.f32 %v7257_v2  ;;  %v15031_v53 = vmul.f32 %v4717_v46, %v14514_v49  ;;  %v4728_v15 = vand.u32 2147483647, %v14853_v32  ;;  %v15036_v27 = vadd.f32 %v14620_v60, %v9160_v31  ;;  %v15059_v2 = vpop.f32.mrf.mxu3 }
 0x551   :  { %19161 = vst [vmem:[#allocation16_spill] sm:$0xff] %v15011_v36  ;;  %v15028_v54 = vpop.eup %8158  ;;  %8166 = vpow2.f32 %v7258_v4  ;;  %v15040_v0 = vor.u32 1.1754944e-38, %v4730_v40  ;;  %v4743_v17 = vand.u32 2147483647, %v14869_v51  ;;  %v4750_v11 = vmul.f32 %v15005_v3, %v14905_v19  ;;  %v15046_v49 = vpop.f32.mrf.mxu0  ;;  %v19171_v36 = vld [vmem:[#allocation46_spill] sm:$0xff] }
 0x552   :  { %19162 = vst [vmem:[#allocation26_spill] sm:$0xff] %v15014_v21  ;;  %v15038_v22 = vpop.eup %8160  ;;  %v4760_v35 = vand.u32 2147483648, %v14905_v19  ;;  %v15050_v52 = vor.u32 1.1754944e-38, %v4745_v28  ;;  %v4758_v60 = vand.u32 2147483647, %v14905_v19  ;;  %v4765_v30 = vmul.f32 %v15017_v57, %v14922_v24 }
 0x553   :  { %19163 = vst [vmem:[#allocation42_spill] sm:$0xff] %v15020_v13  ;;  %v8163_v44 = vpop.eup %8162  ;;  %v15057_v7 = vadd.f32 %v14634_v5, %v9142_v25  ;;  %v4721_v45 = vsub.f32 1.0, %v4720_v8  ;;  %v4736_v4 = vsub.f32 1.0, %v4735_v26  ;;  %v4780_v46 = vmul.f32 %v15028_v54, %v14935_v61  ;;  %v19168_v8 = vld [vmem:[#allocation45_spill] sm:$0xff]  ;;  %v19169_v26 = vld [vmem:[#allocation44_spill] sm:$0xff] }
 0x554   :  { %19164 = vst [vmem:[#allocation27_spill] sm:$0xff] %v15031_v53  ;;  %v15065_v40 = vadd.f32 %v14636_v42, %v9147_v14  ;;  %vm4724_vm3 = vweird.f32 %v14853_v32  ;;  %vm4725_vm4 = vweird.f32 %v14988_v9  ;;  %v4773_v28 = vand.u32 2147483647, %v14922_v24  ;;  %v19172_v53 = vld [vmem:[#allocation17_spill] sm:$0xff] }
 0x555   :  { %19165 = vst [vmem:[#allocation43_spill] sm:$0xff] %v15046_v49  ;;  %v4795_v5 = vmul.f32 %v15038_v22, %v14939_v50  ;;  %v7259_v62 = vmul.f32 -1.442695, %v15036_v27  ;;  %v19170_v21 = vpack.c.bf16 %v19168_v8, %v19169_v26  ;;  %v19173_v56 = vpack.c.bf16 %v19171_v36, %v19172_v53  ;;  %v19177_v8 = vld [vmem:[#allocation48_spill] sm:$0xff]  ;;  %vm15153_vm14 = vmor %vm4724_vm3, %vm4725_vm4 }
 0x556   :  { %19166 = vst [vmem:[#allocation38_spill] sm:$0xff] %v15048_v63  ;;  %v8165_v42 = vpop.eup %8164  ;;  %vm4739_vm15 = vweird.f32 %v14869_v51  ;;  %vm4740_vm0 = vweird.f32 %v14994_v47  ;;  %v4751_v13 = vsub.f32 1.0, %v4750_v11  ;;  %v15081_v6 = vor.u32 1.1754944e-38, %v4760_v35 }
 0x557   :  { %19167 = vst [vmem:[#allocation134_spill] sm:$0xff] %v15059_v2  ;;  %6407 = vmatmul.bf16.gmra.mxu0 %v19170_v21  ;;  %6541 = vmatmul.bf16.gmra.mxu1 %v19173_v56  ;;  %v15083_v63 = vadd.f32 1.0, %v8163_v44  ;;  %v19176_v49 = vpack.c.bf16 %v19174_v59, %v19175_v41  ;;  %v19178_v21 = vld [vmem:[#allocation21_spill] sm:$0xff]  ;;  %v8167_v36 = vpop.eup %8166  ;;  %v4766_v56 = vsub.f32 1.0, %v4765_v30  ;;  %v4775_v53 = vand.u32 2147483648, %v14922_v24  ;;  %vm15168_vm12 = vmor %vm4739_vm15, %vm4740_vm0 }
 0x558   :  { %v19179_v26 = vpack.c.bf16 %v19177_v8, %v19178_v21  ;;  %v4788_v2 = vand.u32 2147483647, %v14935_v61  ;;  %v7260_v11 = vmul.f32 -1.442695, %v15057_v7  ;;  %v4722_v35 = vmul.f32 %v14988_v9, %v4721_v45 }
 0x559   :  { %6675 = vmatmul.bf16.gmra.mxu2 %v19176_v49  ;;  %v4737_v44 = vmul.f32 %v14994_v47, %v4736_v4  ;;  %vm4754_vm1 = vweird.f32 %v14905_v19  ;;  %v4781_v59 = vsub.f32 1.0, %v4780_v46  ;;  %v7261_v41 = vmul.f32 -1.442695, %v15065_v40  ;;  %v15098_v49 = vpop.f32.mrf.mxu2  ;;  %v19220_v19 = vld [vmem:[#allocation52_spill] sm:$0xff] }
 0x55a   :  { %6809 = vmatmul.bf16.gmra.mxu3 %v19179_v26  ;;  %19180 = vst [vmem:[#allocation45_spill] sm:$0xff] %v15098_v49  ;;  %vm4769_vm2 = vweird.f32 %v14922_v24  ;;  %v4790_v30 = vand.u32 2147483648, %v14935_v61  ;;  %v4796_v8 = vsub.f32 1.0, %v4795_v5  ;;  %v15102_v21 = vadd.f32 1.0, %v8165_v42  ;;  %v19228_v46 = vld [vmem:[#allocation32_spill] sm:$0xff] }
 0x55b   :  { %8168 = vpow2.f32 %v7259_v62  ;;  %v4752_v26 = vmul.f32 %v15005_v3, %v4751_v13  ;;  %vm4784_vm9 = vweird.f32 %v14935_v61  ;;  %v15107_v45 = vadd.f32 1.0, %v8167_v36  ;;  %v15128_v36 = vpop.f32.mrf.mxu3 }
 0x55c   :  { %8170 = vrcp.f32 %v15083_v63  ;;  %v15111_v4 = vadd.f32 %v14710_v1, %v9155_v48  ;;  %vm15113_vm5 = vcmp.eq.f32.partialorder %v4728_v15, 8.507059e+37  ;;  %vm15117_vm6 = vcmp.eq.f32.partialorder %v4743_v17, 8.507059e+37  ;;  %19185 = vst [vmem:[#allocation44_spill] sm:$0xff] %v15128_v36 }
 0x55d   :  { %v4767_v62 = vmul.f32 %v15017_v57, %v4766_v56  ;;  %v15122_v13 = vor.u32 1.1754944e-38, %v4775_v53  ;;  %8172 = vpow2.f32 %v7260_v11  ;;  %v15126_v42 = vadd.f32 %v14740_v16, %v9160_v31  ;;  %v15137_v56 = vpop.f32.mrf.mxu0  ;;  %v15139_v53 = vpop.f32.mrf.mxu1 }
 0x55e   :  { %v4723_v1 = vadd.f32 %v14988_v9, %v4722_v35  ;;  %v4738_v15 = vadd.f32 %v14994_v47, %v4737_v44  ;;  %vm15132_vm7 = vcmp.eq.f32.partialorder %v4758_v60, 8.507059e+37  ;;  %v4782_v49 = vmul.f32 %v15028_v54, %v4781_v59  ;;  %19188 = vst [vmem:[#allocation46_spill] sm:$0xff] %v15137_v56 }
 0x55f   :  { %8174 = vpow2.f32 %v7261_v41  ;;  %19189 = vst [vmem:[#allocation17_spill] sm:$0xff] %v15139_v53  ;;  %vm4755_vm10 = vweird.f32 %v15005_v3  ;;  %vm4770_vm8 = vweird.f32 %v15017_v57  ;;  %vm15143_vm11 = vcmp.eq.f32.partialorder %v4773_v28, 8.507059e+37 }
 0x560   :  { %v4797_v60 = vmul.f32 %v15038_v22, %v4796_v8  ;;  %8176 = vrcp.f32 %v15102_v21  ;;  %v4753_v35 = vadd.f32 %v15005_v3, %v4752_v26  ;;  %vm15158_vm13 = vcmp.eq.f32.partialorder %v4788_v2, 8.507059e+37  ;;  %vm15192_vm4 = vmor %vm4754_vm1, %vm4755_vm10 }
 0x561   :  { %8178 = vrcp.f32 %v15107_v45  ;;  %v7262_v28 = vmul.f32 -1.442695, %v15111_v4  ;;  %v8169_v59 = vpop.eup %8168  ;;  %v4768_v41 = vadd.f32 %v15017_v57, %v4767_v62  ;;  %v4791_v8 = vor.u32 1.1754944e-38, %v4790_v30  ;;  %vm15207_vm0 = vmor %vm4769_vm2, %vm4770_vm8 }
 0x562   :  { %v7263_v2 = vmul.f32 -1.442695, %v15126_v42  ;;  %v15176_v26 = vadd.f32 %v14758_v43, %v9142_v25  ;;  %v15178_v53 = vpop.eup %8170  ;;  %v4727_v56 = vsel %vm15153_vm14, %v14988_v9, %v4723_v1  ;;  %v4742_v51 = vsel %vm15168_vm12, %v14994_v47, %v4738_v15 }
 0x563   :  { %v4783_v36 = vadd.f32 %v15028_v54, %v4782_v49  ;;  %vm4785_vm3 = vweird.f32 %v15028_v54  ;;  %v8173_v30 = vpop.eup %8172  ;;  %v4798_v62 = vadd.f32 %v15038_v22, %v4797_v60  ;;  %vm4800_vm15 = vweird.f32 %v15038_v22  ;;  %v15214_v60 = vpop.f32.mrf.mxu2 }
 0x564   :  { %v4803_v9 = vand.u32 2147483647, %v14939_v50  ;;  %v4805_v47 = vand.u32 2147483648, %v14939_v50  ;;  %v4757_v1 = vsel %vm15192_vm4, %v15005_v3, %v4753_v35  ;;  %vm4799_vm1 = vweird.f32 %v14939_v50  ;;  %vm15225_vm2 = vmor %vm4784_vm9, %vm4785_vm3  ;;  %v15261_v5 = vpop.f32.mrf.mxu3 }
 0x565   :  { %v8175_v49 = vpop.eup %8174  ;;  %v15212_v15 = vadd.f32 1.0, %v8169_v59  ;;  %8180 = vpow2.f32 %v7262_v28  ;;  %v4772_v3 = vsel %vm15207_vm0, %v15017_v57, %v4768_v41  ;;  %v4810_v50 = vmul.f32 %v15178_v53, %v15083_v63  ;;  %vm15245_vm9 = vmor %vm4799_vm1, %vm4800_vm15  ;;  %19208 = vst [vmem:[#allocation47_spill] sm:$0xff] %v15261_v5  ;;  %v15277_v43 = vpop.f32.mrf.mxu0 }
 0x566   :  { %v15216_v11 = vpop.eup %8176  ;;  %8182 = vpow2.f32 %v7263_v2  ;;  %v7264_v35 = vmul.f32 -1.442695, %v15176_v26  ;;  %v4732_v57 = vsel %vm15113_vm5, %v15040_v0, %v4727_v56  ;;  %v4747_v61 = vsel %vm15117_vm6, %v15050_v52, %v4742_v51  ;;  %v19211_v2 = vld [vmem:[#allocation54_spill] sm:$0xff]  ;;  %19214 = vst [vmem:[#allocation19_spill] sm:$0xff] %v15277_v43 }
 0x567   :  { %v15232_v28 = vpop.eup %8178  ;;  %v4787_v59 = vsel %vm15225_vm2, %v15028_v54, %v4783_v36  ;;  %v15249_v41 = vadd.f32 1.0, %v8173_v30  ;;  %v4762_v0 = vsel %vm15132_vm7, %v15081_v6, %v4757_v1  ;;  %v4802_v52 = vsel %vm15245_vm9, %v15038_v22, %v4798_v62  ;;  %v19209_v36 = vld [vmem:[#allocation49_spill] sm:$0xff]  ;;  %v19212_v51 = vld [vmem:[#allocation50_spill] sm:$0xff]  ;;  %v15279_v62 = vpop.f32.mrf.mxu1  ;;  %v19219_v1 = vld [vmem:[#allocation56_spill] sm:$0xff] }
 0x568   :  { %vm15257_vm5 = vcmp.eq.f32.partialorder %v4803_v9, 8.507059e+37  ;;  %v4806_v54 = vor.u32 1.1754944e-38, %v4805_v47  ;;  %v19210_v56 = vpack.c.bf16 %v18898_v18, %v19209_v36  ;;  %v19213_v30 = vpack.c.bf16 %v19211_v2, %v19212_v51  ;;  %19215 = vst [vmem:[#allocation48_spill] sm:$0xff] %v15279_v62  ;;  %v19216_v18 = vld [vmem:[#allocation55_spill] sm:$0xff]  ;;  %v19252_v62 = vld [vmem:[#allocation58_spill] sm:$0xff] }
 0x569   :  { %v4777_v6 = vsel %vm15143_vm11, %v15122_v13, %v4772_v3  ;;  %v4825_v22 = vmul.f32 %v15216_v11, %v15102_v21  ;;  %8184 = vrcp.f32 %v15212_v15  ;;  %v15275_v17 = vadd.f32 1.0, %v8175_v49  ;;  %v19217_v9 = vld [vmem:[#allocation51_spill] sm:$0xff] }
 0x56a   :  { %6412 = vmatmul.bf16.gmra.mxu0 %v19210_v56  ;;  %6546 = vmatmul.bf16.gmra.mxu1 %v19213_v30  ;;  %v19218_v47 = vpack.c.bf16 %v19216_v18, %v19217_v9  ;;  %v19221_v24 = vpack.c.bf16 %v19219_v1, %v19220_v19  ;;  %v4792_v13 = vsel %vm15158_vm13, %v4791_v8, %v4787_v59  ;;  %v4811_v16 = vsub.f32 1.0, %v4810_v50  ;;  %v19230_v30 = vld [vmem:[#allocation34_spill] sm:$0xff] }
 0x56b   :  { %v4840_v49 = vmul.f32 %v15232_v28, %v15107_v45  ;;  %8186 = vpow2.f32 %v7264_v35  ;;  %v8181_v3 = vpop.eup %8180  ;;  %v15292_v32 = vmul.f32 %v4732_v57, %v14699_v34  ;;  %v4807_v36 = vsel %vm15257_vm5, %v4806_v54, %v4802_v52  ;;  %v19226_v35 = vld [vmem:[#allocation29_spill] sm:$0xff] }
 0x56c   :  { %6680 = vmatmul.bf16.gmra.mxu2 %v19218_v47  ;;  %6814 = vmatmul.bf16.gmra.mxu3 %v19221_v24  ;;  %v4820_v56 = vand.u32 2147483648, %v15083_v63  ;;  %8188 = vrcp.f32 %v15249_v41  ;;  %v8183_v2 = vpop.eup %8182  ;;  %v15299_v44 = vmul.f32 %v4747_v61, %v14708_v10  ;;  %v15302_v8 = vmul.f32 %v4762_v0, %v14728_v23 }
 0x56d   :  { %19222 = vst [vmem:[#allocation21_spill] sm:$0xff] %v15292_v32  ;;  %v15305_v50 = vmul.f32 %v4777_v6, %v14738_v58  ;;  %v4818_v34 = vand.u32 2147483647, %v15083_v63  ;;  %v15309_v57 = vmul.f32 %v4792_v13, %v19226_v35  ;;  %v4826_v59 = vsub.f32 1.0, %v4825_v22  ;;  %v15328_v22 = vpop.f32.mrf.mxu2 }
 0x56e   :  { %19223 = vst [vmem:[#allocation49_spill] sm:$0xff] %v15299_v44  ;;  %v4835_v52 = vand.u32 2147483648, %v15102_v21  ;;  %8190 = vrcp.f32 %v15275_v17  ;;  %v15314_v54 = vmul.f32 %v4807_v36, %v19228_v46  ;;  %v4812_v10 = vmul.f32 %v15178_v53, %v4811_v16  ;;  %v15361_v46 = vpop.f32.mrf.mxu0 }
 0x56f   :  { %19224 = vst [vmem:[#allocation54_spill] sm:$0xff] %v15302_v8  ;;  %v4841_v23 = vsub.f32 1.0, %v4840_v49  ;;  %v15317_v61 = vadd.f32 1.0, %v8181_v3  ;;  %v15319_v58 = vpop.eup %8184  ;;  %vm4814_vm6 = vweird.f32 %v15083_v63  ;;  %v4821_v0 = vor.u32 1.1754944e-38, %v4820_v56  ;;  %v15350_v56 = vpop.f32.mrf.mxu3 }
 0x570   :  { %19225 = vst [vmem:[#allocation50_spill] sm:$0xff] %v15305_v50  ;;  %v15322_v51 = vadd.f32 1.0, %v8183_v2  ;;  %v15326_v6 = vadd.f32 %v19230_v30, %v9147_v14  ;;  %vm15330_vm7 = vcmp.eq.f32.partialorder %v4818_v34, 8.507059e+37  ;;  %vm4829_vm10 = vweird.f32 %v15102_v21 }
 0x571   :  { %19227 = vst [vmem:[#allocation55_spill] sm:$0xff] %v15309_v57  ;;  %v8187_v18 = vpop.eup %8186  ;;  %v4833_v47 = vand.u32 2147483647, %v15102_v21  ;;  %vm4844_vm8 = vweird.f32 %v15107_v45  ;;  %v4850_v1 = vand.u32 2147483648, %v15107_v45  ;;  %vm4815_vm11 = vweird.f32 %v15178_v53 }
 0x572   :  { %19229 = vst [vmem:[#allocation51_spill] sm:$0xff] %v15314_v54  ;;  %v15338_v19 = vpop.eup %8188  ;;  %v4827_v24 = vmul.f32 %v15216_v11, %v4826_v59  ;;  %v15342_v13 = vor.u32 1.1754944e-38, %v4835_v52  ;;  %v4848_v16 = vand.u32 2147483647, %v15107_v45  ;;  %v4813_v49 = vadd.f32 %v15178_v53, %v4812_v10  ;;  %v19235_v59 = vld [vmem:[#allocation23_spill] sm:$0xff]  ;;  %v15363_v10 = vpop.f32.mrf.mxu1  ;;  %vm15378_vm13 = vmor %vm4814_vm6, %vm4815_vm11 }
 0x573   :  { %19231 = vst [vmem:[#allocation56_spill] sm:$0xff] %v15328_v22  ;;  %v4842_v3 = vmul.f32 %v15232_v28, %v4841_v23  ;;  %v4855_v36 = vmul.f32 %v15319_v58, %v15212_v15  ;;  %8192 = vrcp.f32 %v15317_v61  ;;  %v4865_v34 = vand.u32 2147483648, %v15212_v15  ;;  %v19251_v22 = vld [vmem:[#allocation62_spill] sm:$0xff] }
 0x574   :  { %19234 = vst [vmem:[#allocation52_spill] sm:$0xff] %v15350_v56  ;;  %v15352_v2 = vpop.eup %8190  ;;  %8194 = vrcp.f32 %v15322_v51  ;;  %v7265_v35 = vmul.f32 -1.442695, %v15326_v6  ;;  %v15359_v52 = vadd.f32 %v19235_v59, %v9155_v48  ;;  %vm15365_vm14 = vcmp.eq.f32.partialorder %v4833_v47, 8.507059e+37 }
 0x575   :  { %19236 = vst [vmem:[#allocation29_spill] sm:$0xff] %v15361_v46  ;;  %v4851_v30 = vor.u32 1.1754944e-38, %v4850_v1  ;;  %v4863_v54 = vand.u32 2147483647, %v15212_v15  ;;  %v4870_v57 = vmul.f32 %v15338_v19, %v15249_v41  ;;  %v15372_v50 = vadd.f32 1.0, %v8187_v18  ;;  %v15441_v9 = vpop.f32.mrf.mxu2 }
 0x576   :  { %19237 = vst [vmem:[#allocation32_spill] sm:$0xff] %v15363_v10  ;;  %v4828_v47 = vadd.f32 %v15216_v11, %v4827_v24  ;;  %vm4830_vm12 = vweird.f32 %v15216_v11  ;;  %vm4845_vm3 = vweird.f32 %v15232_v28  ;;  %vm15385_vm4 = vcmp.eq.f32.partialorder %v4848_v16, 8.507059e+37  ;;  %v19244_v10 = vld [vmem:[#allocation33_spill] sm:$0xff] }
 0x577   :  { %v4878_v18 = vand.u32 2147483647, %v15249_v41  ;;  %v4817_v63 = vsel %vm15378_vm13, %v15178_v53, %v4813_v49  ;;  %v4843_v8 = vadd.f32 %v15232_v28, %v4842_v3  ;;  %v4856_v44 = vsub.f32 1.0, %v4855_v36  ;;  %vm15407_vm15 = vmor %vm4829_vm10, %vm4830_vm12  ;;  %v19247_v36 = vld [vmem:[#allocation132_spill] sm:$0xff]  ;;  %19256 = vst [vmem:[#allocation34_spill] sm:$0xff] %v15441_v9 }
 0x578   :  { %v4885_v24 = vmul.f32 %v15352_v2, %v15275_v17  ;;  %v15396_v32 = vor.u32 1.1754944e-38, %v4865_v34  ;;  %8196 = vpow2.f32 %v7265_v35  ;;  %v7266_v16 = vmul.f32 -1.442695, %v15359_v52  ;;  %v19248_v35 = vld [vmem:[#allocation22_spill] sm:$0xff]  ;;  %vm15434_vm0 = vmor %vm4844_vm8, %vm4845_vm3 }
 0x579   :  { %v15401_v46 = vadd.f32 %v19244_v10, %v9160_v31  ;;  %v15403_v56 = vpop.eup %8192  ;;  %v4871_v49 = vsub.f32 1.0, %v4870_v57  ;;  %v4880_v3 = vand.u32 2147483648, %v15249_v41  ;;  %8198 = vrcp.f32 %v15372_v50  ;;  %v19249_v10 = vld [vmem:[#allocation57_spill] sm:$0xff] }
 0x57a   :  { %v15415_v34 = vadd.f32 %v19247_v36, %v9142_v25  ;;  %v19250_v59 = vpack.c.bf16 %v19248_v35, %v19249_v10  ;;  %v19253_v21 = vpack.c.bf16 %v19251_v22, %v19252_v62  ;;  %v15423_v43 = vpop.eup %8194  ;;  %v4822_v57 = vsel %vm15330_vm7, %v4821_v0, %v4817_v63  ;;  %v19257_v0 = vld [vmem:[#allocation63_spill] sm:$0xff]  ;;  %v15469_v36 = vpop.f32.mrf.mxu3 }
 0x57b   :  { %v4832_v5 = vsel %vm15407_vm15, %v15216_v11, %v4828_v47  ;;  %vm4859_vm1 = vweird.f32 %v15212_v15  ;;  %v4893_v62 = vand.u32 2147483647, %v15275_v17  ;;  %v4895_v22 = vand.u32 2147483648, %v15275_v17  ;;  %v19258_v63 = vld [vmem:[#allocation59_spill] sm:$0xff]  ;;  %v19260_v11 = vld [vmem:[#allocation64_spill] sm:$0xff]  ;;  %v19261_v47 = vld [vmem:[#allocation61_spill] sm:$0xff] }
 0x57c   :  { %6417 = vmatmul.bf16.gmra.mxu0 %v19250_v59  ;;  %6551 = vmatmul.bf16.gmra.mxu1 %v19253_v21  ;;  %v19259_v53 = vpack.c.bf16 %v19257_v0, %v19258_v63  ;;  %v19262_v35 = vpack.c.bf16 %v19260_v11, %v19261_v47  ;;  %v4847_v45 = vsel %vm15434_vm0, %v15232_v28, %v4843_v8  ;;  %vm4874_vm2 = vweird.f32 %v15249_v41  ;;  %v19263_v21 = vld [vmem:[#allocation133_spill] sm:$0xff] }
 0x57d   :  { %v4857_v10 = vmul.f32 %v15319_v58, %v4856_v44  ;;  %v4886_v59 = vsub.f32 1.0, %v4885_v24  ;;  %v15456_v9 = vadd.f32 %v19263_v21, %v9147_v14  ;;  %v4900_v0 = vmul.f32 %v15403_v56, %v15317_v61 }
 0x57e   :  { %6685 = vmatmul.bf16.gmra.mxu2 %v19259_v53  ;;  %6819 = vmatmul.bf16.gmra.mxu3 %v19262_v35  ;;  %8200 = vpow2.f32 %v7266_v16  ;;  %v7267_v63 = vmul.f32 -1.442695, %v15401_v46  ;;  %v15463_v53 = vadd.f32 %v14924_v20, %v9155_v48  ;;  %v4872_v28 = vmul.f32 %v15338_v19, %v4871_v49  ;;  %v8197_v11 = vpop.eup %8196  ;;  %v15484_v49 = vpop.f32.mrf.mxu0 }
 0x57f   :  { %v4881_v44 = vor.u32 1.1754944e-38, %v4880_v3  ;;  %v4915_v8 = vmul.f32 %v15423_v43, %v15322_v51  ;;  %v7268_v24 = vmul.f32 -1.442695, %v15415_v34  ;;  %v15472_v47 = vmul.f32 %v4822_v57, %v14909_v37  ;;  %19267 = vst [vmem:[#allocation33_spill] sm:$0xff] %v15484_v49  ;;  %v15486_v3 = vpop.f32.mrf.mxu1  ;;  %v15488_v37 = vpop.eup %8198 }
 0x580   :  { %v4837_v16 = vsel %vm15365_vm14, %v15342_v13, %v4832_v5  ;;  %vm4860_vm9 = vweird.f32 %v15319_v58  ;;  %vm15478_vm5 = vcmp.eq.f32.partialorder %v4863_v54, 8.507059e+37  ;;  %vm4875_vm6 = vweird.f32 %v15338_v19  ;;  %19268 = vst [vmem:[#allocation132_spill] sm:$0xff] %v15486_v3  ;;  %v19285_v54 = vld [vmem:[#allocation71_spill] sm:$0xff] }
 0x581   :  { %19264 = vst [vmem:[#allocation23_spill] sm:$0xff] %v15472_v47  ;;  %vm4889_vm7 = vweird.f32 %v15275_v17  ;;  %v4852_v23 = vsel %vm15385_vm4, %v4851_v30, %v4847_v45  ;;  %v4858_v5 = vadd.f32 %v15319_v58, %v4857_v10  ;;  %vm15493_vm10 = vcmp.eq.f32.partialorder %v4878_v18, 8.507059e+37  ;;  %vm15520_vm11 = vmor %vm4859_vm1, %vm4860_vm9 }
 0x582   :  { %v7269_v13 = vmul.f32 -1.442695, %v15456_v9  ;;  %v15500_v57 = vadd.f32 %v14960_v29, %v9160_v31  ;;  %v4887_v35 = vmul.f32 %v15352_v2, %v4886_v59  ;;  %v4901_v21 = vsub.f32 1.0, %v4900_v0  ;;  %vm15537_vm12 = vmor %vm4874_vm2, %vm4875_vm6 }
 0x583   :  { %8202 = vpow2.f32 %v7267_v63  ;;  %v7270_v47 = vmul.f32 -1.442695, %v15463_v53  ;;  %v4873_v30 = vadd.f32 %v15338_v19, %v4872_v28  ;;  %v4916_v1 = vsub.f32 1.0, %v4915_v8  ;;  %v15543_v8 = vpop.f32.mrf.mxu2  ;;  %v19286_v63 = vld [vmem:[#allocation65_spill] sm:$0xff] }
 0x584   :  { %v15505_v45 = vadd.f32 1.0, %v8197_v11  ;;  %8204 = vpow2.f32 %v7268_v24  ;;  %v8201_v18 = vpop.eup %8200  ;;  %v15508_v10 = vmul.f32 %v4837_v16, %v14943_v33  ;;  %vm4890_vm8 = vweird.f32 %v15352_v2  ;;  %19279 = vst [vmem:[#allocation62_spill] sm:$0xff] %v15543_v8 }
 0x585   :  { %v4896_v29 = vor.u32 1.1754944e-38, %v4895_v22  ;;  %v4930_v59 = vmul.f32 %v15488_v37, %v15372_v50  ;;  %v15514_v0 = vmul.f32 %v4852_v23, %v14958_v39  ;;  %vm15524_vm14 = vcmp.eq.f32.partialorder %v4893_v62, 8.507059e+37  ;;  %vm15562_vm4 = vmor %vm4889_vm7, %vm4890_vm8 }
 0x586   :  { %19271 = vst [vmem:[#allocation22_spill] sm:$0xff] %v15508_v10  ;;  %vm4904_vm13 = vweird.f32 %v15317_v61  ;;  %8206 = vpow2.f32 %v7269_v13  ;;  %v7271_v22 = vmul.f32 -1.442695, %v15500_v57  ;;  %v4862_v39 = vsel %vm15520_vm11, %v15319_v58, %v4858_v5 }
 0x587   :  { %19272 = vst [vmem:[#allocation57_spill] sm:$0xff] %v15514_v0  ;;  %v4888_v62 = vadd.f32 %v15352_v2, %v4887_v35  ;;  %v4902_v28 = vmul.f32 %v15403_v56, %v4901_v21  ;;  %8208 = vpow2.f32 %v7270_v47  ;;  %v4877_v24 = vsel %vm15537_vm12, %v15338_v19, %v4873_v30  ;;  %v15571_v30 = vpop.f32.mrf.mxu3  ;;  %v19294_v0 = vld [vmem:[#allocation69_spill] sm:$0xff] }
 0x588   :  { %v4917_v58 = vmul.f32 %v15423_v43, %v4916_v1  ;;  %8210 = vrcp.f32 %v15505_v45  ;;  %v15550_v41 = vadd.f32 1.0, %v8201_v18  ;;  %v4908_v16 = vand.u32 2147483647, %v15317_v61  ;;  %19282 = vst [vmem:[#allocation58_spill] sm:$0xff] %v15571_v30  ;;  %v15580_v1 = vpop.f32.mrf.mxu0  ;;  %v15582_v18 = vpop.f32.mrf.mxu1 }
 0x589   :  { %v8203_v11 = vpop.eup %8202  ;;  %v4910_v23 = vand.u32 2147483648, %v15317_v61  ;;  %vm4919_vm3 = vweird.f32 %v15322_v51  ;;  %v4931_v47 = vsub.f32 1.0, %v4930_v59  ;;  %v4867_v13 = vsel %vm15478_vm5, %v15396_v32, %v4862_v39  ;;  %19283 = vst [vmem:[#allocation63_spill] sm:$0xff] %v15580_v1  ;;  %v19289_v39 = vld [vmem:[#allocation68_spill] sm:$0xff] }
 0x58a   :  { %v8205_v5 = vpop.eup %8204  ;;  %v4923_v35 = vand.u32 2147483647, %v15322_v51  ;;  %8212 = vpow2.f32 %v7271_v22  ;;  %v15569_v21 = vadd.f32 %v14975_v12, %v9142_v25  ;;  %v4882_v32 = vsel %vm15493_vm10, %v4881_v44, %v4877_v24  ;;  %19284 = vst [vmem:[#allocation59_spill] sm:$0xff] %v15582_v18  ;;  %v19288_v22 = vld [vmem:[#allocation73_spill] sm:$0xff] }
 0x58b   :  { %v4892_v17 = vsel %vm15562_vm4, %v15352_v2, %v4888_v62  ;;  %v4903_v20 = vadd.f32 %v15403_v56, %v4902_v28  ;;  %vm4905_vm15 = vweird.f32 %v15403_v56  ;;  %v4918_v12 = vadd.f32 %v15423_v43, %v4917_v58 }
 0x58c   :  { %v8207_v59 = vpop.eup %8206  ;;  %vm4920_vm0 = vweird.f32 %v15423_v43  ;;  %8214 = vrcp.f32 %v15550_v41  ;;  %v15587_v44 = vadd.f32 1.0, %v8203_v11  ;;  %v19287_v2 = vpack.c.bf16 %v19285_v54, %v19286_v63  ;;  %v19293_v11 = vld [vmem:[#allocation37_spill] sm:$0xff]  ;;  %v19296_v54 = vld [vmem:[#allocation78_spill] sm:$0xff]  ;;  %vm15620_vm2 = vmor %vm4904_vm13, %vm4905_vm15 }
 0x58d   :  { %v19290_v15 = vpack.c.bf16 %v19288_v22, %v19289_v39  ;;  %v8209_v62 = vpop.eup %8208  ;;  %vm15595_vm1 = vcmp.eq.f32.partialorder %v4908_v16, 8.507059e+37  ;;  %v4911_v24 = vor.u32 1.1754944e-38, %v4910_v23  ;;  %v4932_v58 = vmul.f32 %v15488_v37, %v4931_v47  ;;  %v19297_v63 = vld [vmem:[#allocation70_spill] sm:$0xff]  ;;  %vm15635_vm9 = vmor %vm4919_vm3, %vm4920_vm0 }
 0x58e   :  { %6422 = vmatmul.bf16.gmra.mxu0 %v19287_v2  ;;  %v15600_v19 = vadd.f32 1.0, %v8205_v5  ;;  %v19295_v10 = vpack.c.bf16 %v19293_v11, %v19294_v0  ;;  %v19298_v2 = vpack.c.bf16 %v19296_v54, %v19297_v63  ;;  %v15608_v22 = vpop.eup %8210  ;;  %v15611_v16 = vmul.f32 %v4867_v13, %v15036_v27 }
 0x58f   :  { %6556 = vmatmul.bf16.gmra.mxu1 %v19290_v15  ;;  %v15614_v39 = vmul.f32 %v4882_v32, %v15057_v7  ;;  %v7272_v0 = vmul.f32 -1.442695, %v15569_v21  ;;  %v4897_v47 = vsel %vm15524_vm14, %v4896_v29, %v4892_v17  ;;  %v4907_v27 = vsel %vm15620_vm2, %v15403_v56, %v4903_v20  ;;  %v15660_v32 = vpop.f32.mrf.mxu2  ;;  %v15688_v11 = vpop.f32.mrf.mxu3 }
 0x590   :  { %6690 = vmatmul.bf16.gmra.mxu2 %v19295_v10  ;;  %6824 = vmatmul.bf16.gmra.mxu3 %v19298_v2  ;;  %19299 = vst [vmem:[#allocation64_spill] sm:$0xff] %v15611_v16  ;;  %v4925_v10 = vand.u32 2147483648, %v15322_v51  ;;  %vm15639_vm5 = vcmp.eq.f32.partialorder %v4923_v35, 8.507059e+37  ;;  %v15643_v5 = vadd.f32 1.0, %v8207_v59  ;;  %v8213_v33 = vpop.eup %8212  ;;  %v4922_v29 = vsel %vm15635_vm9, %v15423_v43, %v4918_v12  ;;  %v15696_v63 = vpop.f32.mrf.mxu0 }
 0x591   :  { %19300 = vst [vmem:[#allocation61_spill] sm:$0xff] %v15614_v39  ;;  %vm4935_vm6 = vweird.f32 %v15488_v37  ;;  %8216 = vrcp.f32 %v15587_v44  ;;  %v15652_v51 = vadd.f32 %v14977_v55, %v9147_v14  ;;  %v4933_v56 = vadd.f32 %v15488_v37, %v4932_v58  ;;  %v15698_v2 = vpop.f32.mrf.mxu1  ;;  %v19317_v58 = vld [vmem:[#allocation43_spill] sm:$0xff]  ;;  %v19326_v39 = vld [vmem:[#allocation80_spill] sm:$0xff] }
 0x592   :  { %v4945_v13 = vmul.f32 %v15608_v22, %v15505_v45  ;;  %8218 = vrcp.f32 %v15600_v19  ;;  %v15658_v35 = vadd.f32 1.0, %v8209_v62  ;;  %19307 = vst [vmem:[#allocation133_spill] sm:$0xff] %v15660_v32  ;;  %v15662_v43 = vpop.eup %8214  ;;  %v4926_v17 = vor.u32 1.1754944e-38, %v4925_v10  ;;  %v19331_v32 = vld [vmem:[#allocation72_spill] sm:$0xff] }
 0x593   :  { %v4938_v20 = vand.u32 2147483647, %v15372_v50  ;;  %v4940_v59 = vand.u32 2147483648, %v15372_v50  ;;  %8220 = vpow2.f32 %v7272_v0  ;;  %v15667_v55 = vmul.f32 %v4897_v47, %v15065_v40  ;;  %19311 = vst [vmem:[#allocation65_spill] sm:$0xff] %v15688_v11  ;;  %v19314_v0 = vld [vmem:[#allocation134_spill] sm:$0xff]  ;;  %v19329_v11 = vld [vmem:[#allocation81_spill] sm:$0xff] }
 0x594   :  { %vm4934_vm7 = vweird.f32 %v15372_v50  ;;  %8222 = vrcp.f32 %v15643_v5  ;;  %v15671_v12 = vadd.f32 1.0, %v8213_v33  ;;  %v4912_v15 = vsel %vm15595_vm1, %v4911_v24, %v4907_v27  ;;  %19312 = vst [vmem:[#allocation73_spill] sm:$0xff] %v15696_v63 }
 0x595   :  { %19308 = vst [vmem:[#allocation71_spill] sm:$0xff] %v15667_v55  ;;  %v4927_v62 = vsel %vm15639_vm5, %v4926_v17, %v4922_v29  ;;  %vm15679_vm10 = vmor %vm4934_vm7, %vm4935_vm6  ;;  %v7273_v40 = vmul.f32 -1.442695, %v15652_v51  ;;  %v15686_v50 = vadd.f32 %v15026_v38, %v9155_v48  ;;  %v4946_v24 = vsub.f32 1.0, %v4945_v13 }
 0x596   :  { %v4937_v28 = vsel %vm15679_vm10, %v15488_v37, %v4933_v56  ;;  %v4960_v54 = vmul.f32 %v15662_v43, %v15550_v41  ;;  %8224 = vrcp.f32 %v15658_v35  ;;  %19313 = vst [vmem:[#allocation68_spill] sm:$0xff] %v15698_v2  ;;  %vm4939_vm8 = vcmp.eq.f32.partialorder %v4938_v20, 8.507059e+37 }
 0x597   :  { %v15700_v23 = vpop.eup %8216  ;;  %v4941_v38 = vor.u32 1.1754944e-38, %v4940_v59  ;;  %v4955_v10 = vand.u32 2147483648, %v15505_v45  ;;  %v15705_v47 = vadd.f32 %v19314_v0, %v9160_v31  ;;  %v15710_v27 = vmul.f32 %v4912_v15, %v15111_v4 }
 0x598   :  { %v15707_v37 = vpop.eup %8218  ;;  %v15713_v7 = vmul.f32 %v4927_v62, %v15126_v42  ;;  %v4953_v61 = vand.u32 2147483647, %v15505_v45  ;;  %8226 = vrcp.f32 %v15671_v12  ;;  %vm4949_vm11 = vweird.f32 %v15505_v45 }
 0x599   :  { %19315 = vst [vmem:[#allocation37_spill] sm:$0xff] %v15710_v27  ;;  %v8221_v33 = vpop.eup %8220  ;;  %v4942_v29 = vsel %vm4939_vm8, %v4941_v38, %v4937_v28  ;;  %v4970_v56 = vand.u32 2147483648, %v15550_v41  ;;  %v7274_v13 = vmul.f32 -1.442695, %v15686_v50  ;;  %v4947_v4 = vmul.f32 %v15608_v22, %v4946_v24  ;;  %v19323_v27 = vld [vmem:[#allocation79_spill] sm:$0xff] }
 0x59a   :  { %19316 = vst [vmem:[#allocation69_spill] sm:$0xff] %v15713_v7  ;;  %v15720_v17 = vpop.eup %8222  ;;  %v4961_v20 = vsub.f32 1.0, %v4960_v54  ;;  %v4975_v42 = vmul.f32 %v15700_v23, %v15587_v44  ;;  %8228 = vpow2.f32 %v7273_v40  ;;  %v4956_v59 = vor.u32 1.1754944e-38, %v4955_v10  ;;  %v15745_v7 = vpop.f32.mrf.mxu2 }
 0x59b   :  { %v4990_v15 = vmul.f32 %v15707_v37, %v15600_v19  ;;  %v7275_v62 = vmul.f32 -1.442695, %v15705_v47  ;;  %v15730_v28 = vadd.f32 %v19317_v58, %v9142_v25  ;;  %v15735_v0 = vmul.f32 %v4942_v29, %v15176_v26  ;;  %19321 = vst [vmem:[#allocation70_spill] sm:$0xff] %v15745_v7 }
 0x59c   :  { %v15732_v38 = vpop.eup %8224  ;;  %vm15737_vm14 = vcmp.eq.f32.partialorder %v4953_v61, 8.507059e+37  ;;  %vm4964_vm13 = vweird.f32 %v15550_v41  ;;  %v4968_v40 = vand.u32 2147483647, %v15550_v41  ;;  %v4983_v54 = vand.u32 2147483647, %v15587_v44  ;;  %v19322_v61 = vld [vmem:[#allocation83_spill] sm:$0xff] }
 0x59d   :  { %19318 = vst [vmem:[#allocation78_spill] sm:$0xff] %v15735_v0  ;;  %v4985_v10 = vand.u32 2147483648, %v15587_v44  ;;  %v15747_v58 = vor.u32 1.1754944e-38, %v4970_v56  ;;  %v5005_v26 = vmul.f32 %v15720_v17, %v15643_v5  ;;  %v15751_v29 = vadd.f32 1.0, %v8221_v33  ;;  %v19325_v0 = vld [vmem:[#allocation84_spill] sm:$0xff]  ;;  %v19328_v33 = vld [vmem:[#allocation41_spill] sm:$0xff] }
 0x59e   :  { %8230 = vpow2.f32 %v7274_v13  ;;  %v19324_v55 = vpack.c.bf16 %v19322_v61, %v19323_v27  ;;  %v19327_v16 = vpack.c.bf16 %v19325_v0, %v19326_v39  ;;  %v15759_v2 = vpop.eup %8226  ;;  %v4948_v7 = vadd.f32 %v15608_v22, %v4947_v4  ;;  %v19332_v27 = vld [vmem:[#allocation82_spill] sm:$0xff]  ;;  %v15773_v4 = vpop.f32.mrf.mxu3 }
 0x59f   :  { %vm4950_vm12 = vweird.f32 %v15608_v22  ;;  %v4962_v56 = vmul.f32 %v15662_v43, %v4961_v20  ;;  %v4976_v63 = vsub.f32 1.0, %v4975_v42  ;;  %v19330_v13 = vpack.c.bf16 %v19328_v33, %v19329_v11  ;;  %19334 = vst [vmem:[#allocation134_spill] sm:$0xff] %v15773_v4  ;;  %v15787_v33 = vpop.f32.mrf.mxu1 }
 0x5a0   :  { %6427 = vmatmul.bf16.gmra.mxu0 %v19324_v55  ;;  %6561 = vmatmul.bf16.gmra.mxu1 %v19327_v16  ;;  %v19333_v55 = vpack.c.bf16 %v19331_v32, %v19332_v27  ;;  %v4991_v61 = vsub.f32 1.0, %v4990_v15  ;;  %v5020_v16 = vmul.f32 %v15732_v38, %v15658_v35  ;;  %8232 = vpow2.f32 %v7275_v62  ;;  %v8229_v0 = vpop.eup %8228  ;;  %v15785_v62 = vpop.f32.mrf.mxu0  ;;  %19338 = vst [vmem:[#allocation83_spill] sm:$0xff] %v15787_v33  ;;  %vm15793_vm15 = vmor %vm4949_vm11, %vm4950_vm12 }
 0x5a1   :  { %6695 = vmatmul.bf16.gmra.mxu2 %v19330_v13  ;;  %v7276_v39 = vmul.f32 -1.442695, %v15730_v28  ;;  %vm15775_vm3 = vcmp.eq.f32.partialorder %v4968_v40, 8.507059e+37  ;;  %vm4979_vm4 = vweird.f32 %v15587_v44  ;;  %v15780_v11 = vor.u32 1.1754944e-38, %v4985_v10  ;;  %19337 = vst [vmem:[#allocation43_spill] sm:$0xff] %v15785_v62 }
 0x5a2   :  { %6829 = vmatmul.bf16.gmra.mxu3 %v19333_v55  ;;  %v4998_v32 = vand.u32 2147483647, %v15600_v19  ;;  %v5000_v42 = vand.u32 2147483648, %v15600_v19  ;;  %v5013_v15 = vand.u32 2147483647, %v15643_v5  ;;  %vm4965_vm0 = vweird.f32 %v15662_v43  ;;  %v15843_v40 = vpop.f32.mrf.mxu2 }
 0x5a3   :  { %vm4994_vm1 = vweird.f32 %v15600_v19  ;;  %v5006_v10 = vsub.f32 1.0, %v5005_v26  ;;  %v5035_v13 = vmul.f32 %v15759_v2, %v15671_v12  ;;  %8234 = vrcp.f32 %v15751_v29  ;;  %vm15822_vm5 = vmor %vm4964_vm13, %vm4965_vm0  ;;  %19347 = vst [vmem:[#allocation79_spill] sm:$0xff] %v15843_v40  ;;  %v19453_v40 = vld [vmem:[#allocation29_spill] sm:$0xff] }
 0x5a4   :  { %v4952_v27 = vsel %vm15793_vm15, %v15608_v22, %v4948_v7  ;;  %v4963_v45 = vadd.f32 %v15662_v43, %v4962_v56  ;;  %v4977_v55 = vmul.f32 %v15700_v23, %v4976_v63  ;;  %v5015_v33 = vand.u32 2147483648, %v15643_v5  ;;  %v8231_v62 = vpop.eup %8230 }
 0x5a5   :  { %v4992_v4 = vmul.f32 %v15707_v37, %v4991_v61  ;;  %v5021_v18 = vsub.f32 1.0, %v5020_v16  ;;  %v15809_v26 = vadd.f32 1.0, %v8229_v0  ;;  %8236 = vpow2.f32 %v7276_v39 }
 0x5a6   :  { %vm4980_vm2 = vweird.f32 %v15700_v23  ;;  %v15812_v1 = vor.u32 1.1754944e-38, %v5000_v42  ;;  %vm5009_vm9 = vweird.f32 %v15643_v5  ;;  %v5030_v22 = vand.u32 2147483648, %v15658_v35  ;;  %v8233_v7 = vpop.eup %8232  ;;  %v15884_v56 = vpop.f32.mrf.mxu3 }
 0x5a7   :  { %v4957_v63 = vsel %vm15737_vm14, %v4956_v59, %v4952_v27  ;;  %vm15826_vm6 = vcmp.eq.f32.partialorder %v4983_v54, 8.507059e+37  ;;  %v5007_v16 = vmul.f32 %v15720_v17, %v5006_v10  ;;  %v5028_v39 = vand.u32 2147483647, %v15658_v35  ;;  %vm15874_vm13 = vmor %vm4979_vm4, %vm4980_vm2  ;;  %19356 = vst [vmem:[#allocation81_spill] sm:$0xff] %v15884_v56  ;;  %v19452_v56 = vld [vmem:[#allocation52_spill] sm:$0xff] }
 0x5a8   :  { %v5036_v0 = vsub.f32 1.0, %v5035_v13  ;;  %v4967_v59 = vsel %vm15822_vm5, %v15662_v43, %v4963_v45  ;;  %v4978_v24 = vadd.f32 %v15700_v23, %v4977_v55  ;;  %vm15836_vm7 = vcmp.eq.f32.partialorder %v4998_v32, 8.507059e+37  ;;  %v15865_v45 = vpop.f32.mrf.mxu1 }
 0x5a9   :  { %v5016_v42 = vor.u32 1.1754944e-38, %v5015_v33  ;;  %vm5024_vm10 = vweird.f32 %v15658_v35  ;;  %v15841_v54 = vadd.f32 1.0, %v8231_v62  ;;  %v15845_v10 = vpop.eup %8234  ;;  %v4993_v13 = vadd.f32 %v15707_v37, %v4992_v4  ;;  %v15863_v4 = vpop.f32.mrf.mxu0  ;;  %19352 = vst [vmem:[#allocation41_spill] sm:$0xff] %v15865_v45  ;;  %v19369_v45 = vld [vmem:[#allocation85_spill] sm:$0xff] }
 0x5aa   :  { %vm4995_vm8 = vweird.f32 %v15707_v37  ;;  %vm15849_vm11 = vcmp.eq.f32.partialorder %v5013_v15, 8.507059e+37  ;;  %v5022_v32 = vmul.f32 %v15732_v38, %v5021_v18  ;;  %8238 = vrcp.f32 %v15809_v26  ;;  %19351 = vst [vmem:[#allocation80_spill] sm:$0xff] %v15863_v4  ;;  %v19390_v35 = vld [vmem:[#allocation17_spill] sm:$0xff] }
 0x5ab   :  { %v15856_v33 = vmul.f32 %v4957_v63, %v15326_v6  ;;  %vm5010_vm14 = vweird.f32 %v15720_v17  ;;  %v15859_v62 = vor.u32 1.1754944e-38, %v5030_v22  ;;  %v15861_v27 = vadd.f32 1.0, %v8233_v7  ;;  %v8237_v15 = vpop.eup %8236  ;;  %v19355_v7 = vld [vmem:[#allocation38_spill] sm:$0xff]  ;;  %vm15893_vm12 = vmor %vm4994_vm1, %vm4995_vm8  ;;  %v19363_v6 = vld [vmem:[#allocation75_spill] sm:$0xff] }
 0x5ac   :  { %v4972_v18 = vsel %vm15775_vm3, %v15747_v58, %v4967_v59  ;;  %v5008_v55 = vadd.f32 %v15720_v17, %v5007_v16  ;;  %v5037_v22 = vmul.f32 %v15759_v2, %v5036_v0  ;;  %v15882_v63 = vadd.f32 %v19355_v7, %v9147_v14  ;;  %v19361_v0 = vld [vmem:[#allocation74_spill] sm:$0xff]  ;;  %vm15917_vm15 = vmor %vm5009_vm9, %vm5010_vm14 }
 0x5ad   :  { %19350 = vst [vmem:[#allocation84_spill] sm:$0xff] %v15856_v33  ;;  %v4982_v58 = vsel %vm15874_vm13, %v15700_v23, %v4978_v24  ;;  %vm5025_vm3 = vweird.f32 %v15732_v38  ;;  %vm15898_vm4 = vcmp.eq.f32.partialorder %v5028_v39, 8.507059e+37  ;;  %v5050_v16 = vmul.f32 %v15845_v10, %v15751_v29  ;;  %v19362_v59 = vld [vmem:[#allocation18_spill] sm:$0xff]  ;;  %v15943_v33 = vpop.f32.mrf.mxu2 }
 0x5ae   :  { %8240 = vrcp.f32 %v15841_v54  ;;  %v4997_v23 = vsel %vm15893_vm12, %v15707_v37, %v4993_v13  ;;  %v5023_v19 = vadd.f32 %v15732_v38, %v5022_v32  ;;  %v6057_v24 = vpack.c.bf16 %v19362_v59, %v19361_v0  ;;  %v19364_v7 = vld [vmem:[#allocation86_spill] sm:$0xff]  ;;  %v19367_v37 = vld [vmem:[#allocation39_spill] sm:$0xff]  ;;  %v19370_v0 = vld [vmem:[#allocation88_spill] sm:$0xff]  ;;  %19372 = vst [vmem:[#allocation82_spill] sm:$0xff] %v15943_v33 }
 0x5af   :  { %v6058_v39 = vpack.c.bf16 %v19364_v7, %v19363_v6  ;;  %8242 = vrcp.f32 %v15861_v27  ;;  %v15922_v44 = vadd.f32 1.0, %v8237_v15  ;;  %v19368_v13 = vld [vmem:[#allocation87_spill] sm:$0xff]  ;;  %v6060_v59 = vpack.c.bf16 %v19370_v0, %v19369_v45  ;;  %vm15952_vm1 = vmor %vm5024_vm10, %vm5025_vm3 }
 0x5b0   :  { %v6059_v32 = vpack.c.bf16 %v19368_v13, %v19367_v37  ;;  %v15928_v4 = vpop.eup %8238  ;;  %v5012_v5 = vsel %vm15917_vm15, %v15720_v17, %v5008_v55  ;;  %v5038_v6 = vadd.f32 %v15759_v2, %v5037_v22  ;;  %vm5040_vm0 = vweird.f32 %v15759_v2  ;;  %6432 = vmatmul.bf16.gmra.mxu0 %v6057_v24  ;;  %v15983_v22 = vpop.f32.mrf.mxu3  ;;  %v19380_v24 = vld [vmem:[#allocation44_spill] sm:$0xff] }
 0x5b1   :  { %v7277_v7 = vmul.f32 -1.442695, %v15882_v63  ;;  %6566 = vmatmul.bf16.gmra.mxu1 %v6058_v39  ;;  %v15937_v15 = vmul.f32 %v4972_v18, %v15359_v52  ;;  %v4987_v45 = vsel %vm15826_vm6, %v15780_v11, %v4982_v58  ;;  %v5045_v37 = vand.u32 2147483648, %v15671_v12  ;;  %19378 = vst [vmem:[#allocation38_spill] sm:$0xff] %v15983_v22  ;;  %v15995_v39 = vpop.f32.mrf.mxu0 }
 0x5b2   :  { %v5051_v13 = vsub.f32 1.0, %v5050_v16  ;;  %6700 = vmatmul.bf16.gmra.mxu2 %v6059_v32  ;;  %6834 = vmatmul.bf16.gmra.mxu3 %v6060_v59  ;;  %v5002_v17 = vsel %vm15836_vm7, %v15812_v1, %v4997_v23  ;;  %vm5039_vm2 = vweird.f32 %v15671_v12  ;;  %v5043_v11 = vand.u32 2147483647, %v15671_v12  ;;  %19381 = vst [vmem:[#allocation18_spill] sm:$0xff] %v15995_v39  ;;  %v15997_v32 = vpop.f32.mrf.mxu1 }
 0x5b3   :  { %19371 = vst [vmem:[#allocation72_spill] sm:$0xff] %v15937_v15  ;;  %v5058_v61 = vand.u32 2147483647, %v15751_v29  ;;  %v5017_v41 = vsel %vm15849_vm11, %v5016_v42, %v5012_v5  ;;  %v5027_v1 = vsel %vm15952_vm1, %v15732_v38, %v5023_v19  ;;  %vm15968_vm9 = vmor %vm5039_vm2, %vm5040_vm0  ;;  %v5065_v12 = vmul.f32 %v15928_v4, %v15809_v26  ;;  %v19377_v38 = vld [vmem:[#allocation45_spill] sm:$0xff] }
 0x5b4   :  { %v15959_v18 = vpop.eup %8240  ;;  %8244 = vrcp.f32 %v15922_v44  ;;  %v5042_v43 = vsel %vm15968_vm9, %v15759_v2, %v5038_v6  ;;  %v5060_v42 = vand.u32 2147483648, %v15751_v29  ;;  %v15981_v55 = vadd.f32 %v19377_v38, %v9155_v48  ;;  %19382 = vst [vmem:[#allocation75_spill] sm:$0xff] %v15997_v32 }
 0x5b5   :  { %8246 = vpow2.f32 %v7277_v7  ;;  %v15985_v58 = vpop.eup %8242  ;;  %v15988_v16 = vmul.f32 %v4987_v45, %v15401_v46  ;;  %v5046_v23 = vor.u32 1.1754944e-38, %v5045_v37  ;;  %v5052_v19 = vmul.f32 %v15845_v10, %v5051_v13  ;;  %v19387_v13 = vld [vmem:[#allocation46_spill] sm:$0xff] }
 0x5b6   :  { %v15993_v2 = vadd.f32 %v19380_v24, %v9160_v31  ;;  %v5032_v0 = vsel %vm15898_vm4, %v15859_v62, %v5027_v1  ;;  %vm5044_vm5 = vcmp.eq.f32.partialorder %v5043_v11, 8.507059e+37  ;;  %vm5054_vm6 = vweird.f32 %v15751_v29 }
 0x5b7   :  { %19379 = vst [vmem:[#allocation74_spill] sm:$0xff] %v15988_v16  ;;  %v5080_v46 = vmul.f32 %v15959_v18, %v15841_v54  ;;  %v16006_v59 = vmul.f32 %v5002_v17, %v15415_v34  ;;  %v16009_v5 = vmul.f32 %v5017_v41, %v15456_v9  ;;  %v5047_v6 = vsel %vm5044_vm5, %v5046_v23, %v5042_v43  ;;  %v16045_v23 = vpop.f32.mrf.mxu2 }
 0x5b8   :  { %v5066_v7 = vsub.f32 1.0, %v5065_v12  ;;  %vm16011_vm7 = vcmp.eq.f32.partialorder %v5058_v61, 8.507059e+37  ;;  %v5061_v20 = vor.u32 1.1754944e-38, %v5060_v42  ;;  %v5095_v62 = vmul.f32 %v15985_v58, %v15861_v27  ;;  %19391 = vst [vmem:[#allocation88_spill] sm:$0xff] %v16045_v23  ;;  %v19398_v23 = vld [vmem:[#allocation76_spill] sm:$0xff] }
 0x5b9   :  { %19383 = vst [vmem:[#allocation86_spill] sm:$0xff] %v16006_v59  ;;  %v7278_v37 = vmul.f32 -1.442695, %v15981_v55  ;;  %v16020_v52 = vadd.f32 %v19387_v13, %v9142_v25  ;;  %v16025_v9 = vmul.f32 %v5032_v0, %v15463_v53  ;;  %v5053_v17 = vadd.f32 %v15845_v10, %v5052_v19  ;;  %v19394_v0 = vld [vmem:[#allocation47_spill] sm:$0xff]  ;;  %v19396_v13 = vld [vmem:[#allocation89_spill] sm:$0xff]  ;;  %v19405_v59 = vld [vmem:[#allocation96_spill] sm:$0xff] }
 0x5ba   :  { %19384 = vst [vmem:[#allocation39_spill] sm:$0xff] %v16009_v5  ;;  %v16022_v34 = vpop.eup %8244  ;;  %vm5055_vm10 = vweird.f32 %v15845_v10  ;;  %v7279_v11 = vmul.f32 -1.442695, %v15993_v2  ;;  %v16031_v41 = vmul.f32 %v5047_v6, %v15500_v57  ;;  %vm5069_vm8 = vweird.f32 %v15809_v26  ;;  %v19404_v5 = vld [vmem:[#allocation91_spill] sm:$0xff] }
 0x5bb   :  { %19388 = vst [vmem:[#allocation87_spill] sm:$0xff] %v16025_v9  ;;  %v8247_v61 = vpop.eup %8246  ;;  %v5081_v1 = vsub.f32 1.0, %v5080_v46  ;;  %v16036_v12 = vadd.f32 %v19390_v35, %v9147_v14  ;;  %v5067_v53 = vmul.f32 %v15928_v4, %v5066_v7  ;;  %v5073_v43 = vand.u32 2147483647, %v15809_v26  ;;  %vm16049_vm11 = vmor %vm5054_vm6, %vm5055_vm10  ;;  %v19397_v35 = vld [vmem:[#allocation93_spill] sm:$0xff] }
 0x5bc   :  { %19389 = vst [vmem:[#allocation85_spill] sm:$0xff] %v16031_v41  ;;  %v5075_v42 = vand.u32 2147483648, %v15809_v26  ;;  %v16043_v38 = vadd.f32 %v15214_v60, %v9155_v48  ;;  %v5096_v19 = vsub.f32 1.0, %v5095_v62  ;;  %8248 = vpow2.f32 %v7278_v37  ;;  %v16067_v37 = vpop.f32.mrf.mxu3  ;;  %v19399_v41 = vld [vmem:[#allocation94_spill] sm:$0xff] }
 0x5bd   :  { %v7280_v24 = vmul.f32 -1.442695, %v16020_v52  ;;  %v16056_v46 = vadd.f32 %v19394_v0, %v9160_v31  ;;  %v5057_v60 = vsel %vm16049_vm11, %v15845_v10, %v5053_v17  ;;  %v5110_v6 = vmul.f32 %v16022_v34, %v15922_v44  ;;  %19395 = vst [vmem:[#allocation45_spill] sm:$0xff] %v16067_v37  ;;  %v16075_v17 = vpop.f32.mrf.mxu0 }
 0x5be   :  { %v16063_v29 = vadd.f32 1.0, %v8247_v61  ;;  %8250 = vpow2.f32 %v7279_v11  ;;  %v5082_v7 = vmul.f32 %v15959_v18, %v5081_v1  ;;  %v7281_v62 = vmul.f32 -1.442695, %v16036_v12  ;;  %19400 = vst [vmem:[#allocation44_spill] sm:$0xff] %v16075_v17  ;;  %v16077_v61 = vpop.f32.mrf.mxu1  ;;  %v19402_v11 = vld [vmem:[#allocation90_spill] sm:$0xff]  ;;  %v19403_v1 = vld [vmem:[#allocation95_spill] sm:$0xff] }
 0x5bf   :  { %v6061_v0 = vpack.c.bf16 %v19397_v35, %v19396_v13  ;;  %v6062_v9 = vpack.c.bf16 %v19399_v41, %v19398_v23  ;;  %vm5070_vm14 = vweird.f32 %v15928_v4  ;;  %v7282_v10 = vmul.f32 -1.442695, %v16043_v38  ;;  %19401 = vst [vmem:[#allocation46_spill] sm:$0xff] %v16077_v61 }
 0x5c0   :  { %v6063_v57 = vpack.c.bf16 %v19403_v1, %v19402_v11  ;;  %v6064_v37 = vpack.c.bf16 %v19405_v59, %v19404_v5  ;;  %v5068_v32 = vadd.f32 %v15928_v4, %v5067_v53  ;;  %v5097_v13 = vmul.f32 %v15985_v58, %v5096_v19  ;;  %vm16097_vm3 = vmor %vm5069_vm8, %vm5070_vm14  ;;  %v19427_v1 = vld [vmem:[#allocation98_spill] sm:$0xff] }
 0x5c1   :  { %8252 = vpow2.f32 %v7280_v24  ;;  %v7283_v41 = vmul.f32 -1.442695, %v16056_v46  ;;  %6437 = vmatmul.bf16.gmra.mxu0 %v6061_v0  ;;  %6571 = vmatmul.bf16.gmra.mxu1 %v6062_v9  ;;  %v5062_v23 = vsel %vm16011_vm7, %v5061_v20, %v5057_v60  ;;  %vm5084_vm13 = vweird.f32 %v15841_v54 }
 0x5c2   :  { %v5111_v35 = vsub.f32 1.0, %v5110_v6  ;;  %8254 = vrcp.f32 %v16063_v29  ;;  %6705 = vmatmul.bf16.gmra.mxu2 %v6063_v57  ;;  %6839 = vmatmul.bf16.gmra.mxu3 %v6064_v37  ;;  %v8249_v59 = vpop.eup %8248  ;;  %v5083_v5 = vadd.f32 %v15959_v18, %v5082_v7  ;;  %vm5085_vm12 = vweird.f32 %v15959_v18 }
 0x5c3   :  { %v5088_v53 = vand.u32 2147483647, %v15841_v54  ;;  %8256 = vpow2.f32 %v7281_v62  ;;  %v5090_v20 = vand.u32 2147483648, %v15841_v54  ;;  %v5103_v9 = vand.u32 2147483647, %v15861_v27  ;;  %vm16113_vm0 = vmor %vm5084_vm13, %vm5085_vm12 }
 0x5c4   :  { %v8251_v19 = vpop.eup %8250  ;;  %v5105_v24 = vand.u32 2147483648, %v15861_v27  ;;  %8258 = vpow2.f32 %v7282_v10  ;;  %v5072_v60 = vsel %vm16097_vm3, %v15928_v4, %v5068_v32  ;;  %v5098_v6 = vadd.f32 %v15985_v58, %v5097_v13  ;;  %v16120_v4 = vpop.f32.mrf.mxu2 }
 0x5c5   :  { %vm5100_vm4 = vweird.f32 %v15985_v58  ;;  %8260 = vpow2.f32 %v7283_v41  ;;  %vm5074_vm15 = vcmp.eq.f32.partialorder %v5073_v43, 8.507059e+37  ;;  %v5076_v26 = vor.u32 1.1754944e-38, %v5075_v42  ;;  %19410 = vst [vmem:[#allocation17_spill] sm:$0xff] %v16120_v4 }
 0x5c6   :  { %v5112_v62 = vmul.f32 %v16022_v34, %v5111_v35  ;;  %v16118_v37 = vadd.f32 1.0, %v8249_v59  ;;  %v16123_v0 = vmul.f32 %v5062_v23, %v15569_v21  ;;  %v5087_v43 = vsel %vm16113_vm0, %v15959_v18, %v5083_v5  ;;  %v16148_v23 = vpop.f32.mrf.mxu3 }
 0x5c7   :  { %v8253_v32 = vpop.eup %8252  ;;  %vm5099_vm1 = vweird.f32 %v15861_v27  ;;  %v16129_v54 = vadd.f32 1.0, %v8251_v19  ;;  %v5077_v10 = vsel %vm5074_vm15, %v5076_v26, %v5072_v60  ;;  %vm5089_vm2 = vcmp.eq.f32.partialorder %v5088_v53, 8.507059e+37  ;;  %19416 = vst [vmem:[#allocation89_spill] sm:$0xff] %v16148_v23  ;;  %v16153_v53 = vpop.f32.mrf.mxu0  ;;  %v19444_v26 = vld [vmem:[#allocation109_spill] sm:$0xff] }
 0x5c8   :  { %19411 = vst [vmem:[#allocation47_spill] sm:$0xff] %v16123_v0  ;;  %v16131_v42 = vpop.eup %8254  ;;  %v5091_v11 = vor.u32 1.1754944e-38, %v5090_v20  ;;  %vm16135_vm9 = vmor %vm5099_vm1, %vm5100_vm4  ;;  %v5118_v21 = vand.u32 2147483647, %v15922_v44  ;;  %vm16143_vm5 = vcmp.eq.f32.partialorder %v5103_v9, 8.507059e+37  ;;  %v5106_v13 = vor.u32 1.1754944e-38, %v5105_v24 }
 0x5c9   :  { %v8257_v57 = vpop.eup %8256  ;;  %v5102_v27 = vsel %vm16135_vm9, %v15985_v58, %v5098_v6  ;;  %v5120_v41 = vand.u32 2147483648, %v15922_v44  ;;  %v5113_v5 = vadd.f32 %v16022_v34, %v5112_v62  ;;  %vm5115_vm6 = vweird.f32 %v16022_v34  ;;  %19417 = vst [vmem:[#allocation93_spill] sm:$0xff] %v16153_v53  ;;  %v16155_v58 = vpop.f32.mrf.mxu1  ;;  %v19420_v9 = vld [vmem:[#allocation97_spill] sm:$0xff]  ;;  %v19421_v24 = vld [vmem:[#allocation100_spill] sm:$0xff] }
 0x5ca   :  { %v8259_v35 = vpop.eup %8258  ;;  %v5092_v59 = vsel %vm5089_vm2, %v5091_v11, %v5087_v43  ;;  %8262 = vrcp.f32 %v16118_v37  ;;  %19418 = vst [vmem:[#allocation76_spill] sm:$0xff] %v16155_v58  ;;  %v16158_v45 = vmul.f32 %v5077_v10, %v15652_v51  ;;  %v16161_v20 = vadd.f32 1.0, %v8253_v32 }
 0x5cb   :  { %v8261_v19 = vpop.eup %8260  ;;  %8264 = vrcp.f32 %v16129_v54  ;;  %v6065_v60 = vpack.c.bf16 %v19421_v24, %v19420_v9  ;;  %v5107_v6 = vsel %vm16143_vm5, %v5106_v13, %v5102_v27  ;;  %vm5114_vm7 = vweird.f32 %v15922_v44  ;;  %v19430_v27 = vld [vmem:[#allocation103_spill] sm:$0xff] }
 0x5cc   :  { %19419 = vst [vmem:[#allocation94_spill] sm:$0xff] %v16158_v45  ;;  %vm16168_vm10 = vcmp.eq.f32.partialorder %v5118_v21, 8.507059e+37  ;;  %v16172_v7 = vadd.f32 1.0, %v8257_v57  ;;  %v16175_v51 = vmul.f32 %v5092_v59, %v15686_v50  ;;  %vm16177_vm8 = vmor %vm5114_vm7, %vm5115_vm6  ;;  %v5121_v32 = vor.u32 1.1754944e-38, %v5120_v41  ;;  %v19428_v21 = vld [vmem:[#allocation102_spill] sm:$0xff]  ;;  %v19429_v57 = vld [vmem:[#allocation60_spill] sm:$0xff] }
 0x5cd   :  { %v5125_v43 = vmul.f32 %v16131_v42, %v16063_v29  ;;  %v16183_v10 = vadd.f32 1.0, %v8259_v35  ;;  %v5117_v44 = vsel %vm16177_vm8, %v16022_v34, %v5113_v5  ;;  %v16188_v11 = vadd.f32 1.0, %v8261_v19  ;;  %v19432_v35 = vld [vmem:[#allocation99_spill] sm:$0xff]  ;;  %v19433_v59 = vld [vmem:[#allocation104_spill] sm:$0xff]  ;;  %v16204_v34 = vpop.f32.mrf.mxu2  ;;  %v19435_v5 = vld [vmem:[#allocation105_spill] sm:$0xff] }
 0x5ce   :  { %19424 = vst [vmem:[#allocation90_spill] sm:$0xff] %v16175_v51  ;;  %v6066_v50 = vpack.c.bf16 %v19428_v21, %v19427_v1  ;;  %v6067_v18 = vpack.c.bf16 %v19430_v27, %v19429_v57  ;;  %v16195_v13 = vmul.f32 %v5107_v6, %v15705_v47  ;;  %v5135_v41 = vand.u32 2147483648, %v16063_v29  ;;  %v19436_v19 = vld [vmem:[#allocation66_spill] sm:$0xff]  ;;  %v19438_v21 = vld [vmem:[#allocation53_spill] sm:$0xff]  ;;  %v19439_v6 = vld [vmem:[#allocation107_spill] sm:$0xff]  ;;  %v16234_v23 = vpop.f32.mrf.mxu3 }
 0x5cf   :  { %8266 = vrcp.f32 %v16161_v20  ;;  %v6068_v9 = vpack.c.bf16 %v19433_v59, %v19432_v35  ;;  %19434 = vst [vmem:[#allocation91_spill] sm:$0xff] %v16204_v34  ;;  %v19437_v1 = vld [vmem:[#allocation106_spill] sm:$0xff]  ;;  %v19440_v57 = vld [vmem:[#allocation108_spill] sm:$0xff]  ;;  %v5122_v35 = vsel %vm16168_vm10, %v5121_v32, %v5117_v44  ;;  %v5126_v59 = vsub.f32 1.0, %v5125_v43  ;;  %v19441_v47 = vld [vmem:[#allocation19_spill] sm:$0xff] }
 0x5d0   :  { %19431 = vst [vmem:[#allocation95_spill] sm:$0xff] %v16195_v13  ;;  %v16201_v24 = vpop.eup %8262  ;;  %8268 = vrcp.f32 %v16172_v7  ;;  %v5150_v53 = vand.u32 2147483648, %v16118_v37  ;;  %v5165_v62 = vand.u32 2147483648, %v16129_v54  ;;  %v16222_v34 = vadd.f32 %v19441_v47, %v9142_v25  ;;  %v19443_v27 = vld [vmem:[#allocation25_spill] sm:$0xff] }
 0x5d1   :  { %v16212_v58 = vpop.eup %8264  ;;  %8270 = vrcp.f32 %v16183_v10  ;;  %6442 = vmatmul.bf16.gmra.mxu0 %v6065_v60  ;;  %6576 = vmatmul.bf16.gmra.mxu1 %v6066_v50  ;;  %vm5129_vm11 = vweird.f32 %v16063_v29  ;;  %v5133_v43 = vand.u32 2147483647, %v16063_v29  ;;  %v16228_v44 = vor.u32 1.1754944e-38, %v5135_v41  ;;  %v19445_v60 = vld [vmem:[#allocation48_spill] sm:$0xff]  ;;  %19447 = vst [vmem:[#allocation100_spill] sm:$0xff] %v16234_v23  ;;  %v6532_v4 = vpop.f32.mrf.mxu1 }
 0x5d2   :  { %8272 = vrcp.f32 %v16188_v11  ;;  %19442 = vst [vmem:[#allocation96_spill] sm:$0xff] %v16222_v34  ;;  %6710 = vmatmul.bf16.gmra.mxu2 %v6067_v18  ;;  %6844 = vmatmul.bf16.gmra.mxu3 %v6068_v9  ;;  %v16232_v50 = vadd.f32 %v19445_v60, %v9147_v14  ;;  %v16237_v47 = vmul.f32 %v5122_v35, %v15730_v28  ;;  %v16247_v41 = vld [vmem:[%s18229_s6] ss:$0 sm:$0xff]  ;;  %v6398_v60 = vpop.f32.mrf.mxu0  ;;  %vm5130_vm14 = vweird.f32 %v16131_v42 }
 0x5d3   :  { %v5140_v18 = vmul.f32 %v16201_v24, %v16118_v37  ;;  %v5155_v32 = vmul.f32 %v16212_v58, %v16129_v54  ;;  %v5127_v28 = vmul.f32 %v16131_v42, %v5126_v59  ;;  %v16253_v35 = vor.u32 1.1754944e-38, %v5150_v53  ;;  %vm16305_vm15 = vmor %vm5129_vm11, %vm5130_vm14 }
 0x5d4   :  { %19446 = vst [vmem:[#allocation97_spill] sm:$0xff] %v16232_v50  ;;  %v5180_v17 = vand.u32 2147483648, %v16161_v20  ;;  %v7284_v13 = vmul.f32 -1.442695, %v16222_v34  ;;  %v6399_v51 = vadd.f32 %v16247_v41, %v6398_v60  ;;  %vm16265_vm13 = vcmp.eq.f32.partialorder %v5133_v43, 8.507059e+37  ;;  %v19451_v60 = vld [vmem:[#allocation56_spill] sm:$0xff] }
 0x5d5   :  { %19448 = vst [vmem:[#allocation98_spill] sm:$0xff] %v16237_v47  ;;  %v16249_v61 = vpop.eup %8266  ;;  %v16258_v47 = vor.u32 1.1754944e-38, %v5165_v62  ;;  %vm5145_vm12 = vweird.f32 %v16201_v24  ;;  %v7285_v62 = vmul.f32 -1.442695, %v16232_v50  ;;  %v5141_v39 = vsub.f32 1.0, %v5140_v18  ;;  %v6666_v15 = vpop.f32.mrf.mxu2 }
 0x5d6   :  { %v16256_v23 = vpop.eup %8268  ;;  %v5156_v22 = vsub.f32 1.0, %v5155_v32  ;;  %v16277_v16 = vadd.f32 %v19451_v60, %v9155_v48  ;;  %v6533_v43 = vadd.f32 %v6532_v4, %v6399_v51  ;;  %v5128_v33 = vadd.f32 %v16131_v42, %v5127_v28 }
 0x5d7   :  { %v16263_v45 = vpop.eup %8270  ;;  %vm5144_vm3 = vweird.f32 %v16118_v37  ;;  %v5170_v53 = vmul.f32 %v16249_v61, %v16161_v20  ;;  %v5185_v9 = vmul.f32 %v16256_v23, %v16172_v7  ;;  %v16287_v18 = vadd.f32 %v19452_v56, %v9160_v31  ;;  %v6800_v56 = vpop.f32.mrf.mxu3 }
 0x5d8   :  { %v16273_v0 = vpop.eup %8272  ;;  %vm5159_vm4 = vweird.f32 %v16129_v54  ;;  %v16290_v32 = vor.u32 1.1754944e-38, %v5180_v17  ;;  %v5200_v4 = vmul.f32 %v16263_v45, %v16183_v10  ;;  %8274 = vpow2.f32 %v7284_v13  ;;  %vm16365_vm7 = vmor %vm5144_vm3, %vm5145_vm12 }
 0x5d9   :  { %v6667_v51 = vadd.f32 %v6666_v15, %v6533_v43  ;;  %v5195_v28 = vand.u32 2147483648, %v16172_v7  ;;  %v5215_v60 = vmul.f32 %v16273_v0, %v16188_v11  ;;  %8276 = vpow2.f32 %v7285_v62  ;;  %v6534_v30 = vpop.f32.mrf.mxu1 }
 0x5da   :  { %v16299_v50 = vadd.f32 %v19453_v40, %v9142_v25  ;;  %v5142_v15 = vmul.f32 %v16201_v24, %v5141_v39  ;;  %v5157_v13 = vmul.f32 %v16212_v58, %v5156_v22  ;;  %v7286_v43 = vmul.f32 -1.442695, %v16277_v16  ;;  %v6400_v34 = vpop.f32.mrf.mxu0  ;;  %v19456_v22 = vld [vmem:[#allocation32_spill] sm:$0xff] }
 0x5db   :  { %v6801_v62 = vadd.f32 %v6800_v56, %v6667_v51  ;;  %v5132_v40 = vsel %vm16305_vm15, %v16131_v42, %v5128_v33  ;;  %v5171_v8 = vsub.f32 1.0, %v5170_v53  ;;  %v5186_v3 = vsub.f32 1.0, %v5185_v9 }
 0x5dc   :  { %v7287_v29 = vmul.f32 -1.442695, %v16287_v18  ;;  %vm5160_vm0 = vweird.f32 %v16212_v58  ;;  %vm5174_vm1 = vweird.f32 %v16161_v20  ;;  %v5201_v39 = vsub.f32 1.0, %v5200_v4 }
 0x5dd   :  { %v16320_v49 = vadd.f32 %v19456_v22, %v9147_v14  ;;  %6925 = vst [vmem:[#allocation11] sm:$0xff] %v6801_v62  ;;  %v6401_v51 = vadd.f32 %v16247_v41, %v6400_v34  ;;  %vm5189_vm2 = vweird.f32 %v16172_v7  ;;  %v5208_v33 = vand.u32 2147483647, %v16183_v10  ;;  %v6668_v62 = vpop.f32.mrf.mxu2  ;;  %vm16382_vm8 = vmor %vm5159_vm4, %vm5160_vm0 }
 0x5de   :  { %v5216_v9 = vsub.f32 1.0, %v5215_v60  ;;  %v7288_v53 = vmul.f32 -1.442695, %v16299_v50  ;;  %v8275_v56 = vpop.eup %8274  ;;  %v16330_v4 = vsel %vm16265_vm13, %v16228_v44, %v5132_v40  ;;  %v16333_v17 = vadd.f32 %v16201_v24, %v5142_v15 }
 0x5df   :  { %v16336_v34 = vadd.f32 %v16212_v58, %v5157_v13  ;;  %vm5204_vm9 = vweird.f32 %v16183_v10  ;;  %8278 = vpow2.f32 %v7286_v43  ;;  %v8277_v22 = vpop.eup %8276  ;;  %v19457_v60 = vand.u32 2147483647, %v16118_v37 }
 0x5e0   :  { %v19460_v44 = vand.u32 2147483647, %v16129_v54  ;;  %v5172_v15 = vmul.f32 %v16249_v61, %v5171_v8  ;;  %v5187_v13 = vmul.f32 %v16256_v23, %v5186_v3  ;;  %v16353_v40 = vor.u32 1.1754944e-38, %v5195_v28 }
 0x5e1   :  { %vm16341_vm5 = vcmp.eq.f32.partialorder %v19457_v60, 8.507059e+37  ;;  %8280 = vpow2.f32 %v7287_v29  ;;  %v19463_v43 = vpack.c.bf16 %v19436_v19, %v19435_v5  ;;  %v19464_v60 = vpack.c.bf16 %v19438_v21, %v19437_v1 }
 0x5e2   :  { %vm16347_vm6 = vcmp.eq.f32.partialorder %v19460_v44, 8.507059e+37  ;;  %vm5175_vm10 = vweird.f32 %v16249_v61  ;;  %v5202_v3 = vmul.f32 %v16263_v45, %v5201_v39  ;;  %v7289_v8 = vmul.f32 -1.442695, %v16320_v49  ;;  %v6403_v39 = vpop.f32.mrf.mxu0 }
 0x5e3   :  { %6447 = vmatmul.bf16.gmra.mxu0 %v19463_v43  ;;  %6581 = vmatmul.bf16.gmra.mxu1 %v19464_v60  ;;  %v6535_v5 = vadd.f32 %v6534_v30, %v6401_v51  ;;  %v19467_v19 = vpack.c.bf16 %v19440_v57, %v19439_v6  ;;  %v19468_v1 = vpack.c.bf16 %v19444_v26, %v19443_v27  ;;  %vm5190_vm11 = vweird.f32 %v16256_v23  ;;  %v6802_v6 = vpop.f32.mrf.mxu3  ;;  %v6537_v51 = vpop.f32.mrf.mxu1  ;;  %vm16422_vm4 = vmor %vm5174_vm1, %vm5175_vm10  ;;  %v19479_v43 = vld [vmem:[#allocation34_spill] sm:$0xff] }
 0x5e4   :  { %v5217_v30 = vmul.f32 %v16273_v0, %v5216_v9  ;;  %v16388_v21 = vadd.f32 1.0, %v8275_v56  ;;  %8282 = vpow2.f32 %v7288_v53  ;;  %v5147_v57 = vsel %vm16365_vm7, %v16201_v24, %v16333_v17  ;;  %vm16436_vm15 = vmor %vm5189_vm2, %vm5190_vm11  ;;  %v19489_v26 = vld [vmem:[#allocation110_spill] sm:$0xff]  ;;  %v19493_v56 = vld [vmem:[#allocation111_spill] sm:$0xff] }
 0x5e5   :  { %6715 = vmatmul.bf16.gmra.mxu2 %v19467_v19  ;;  %6849 = vmatmul.bf16.gmra.mxu3 %v19468_v1  ;;  %v5162_v54 = vsel %vm16382_vm8, %v16212_v58, %v16336_v34  ;;  %v19471_v27 = vand.u32 2147483647, %v16161_v20  ;;  %v16404_v28 = vadd.f32 1.0, %v8277_v22  ;;  %v6669_v29 = vadd.f32 %v6668_v62, %v6535_v5  ;;  %v8279_v17 = vpop.eup %8278  ;;  %v6671_v19 = vpop.f32.mrf.mxu2  ;;  %v19494_v20 = vld [vmem:[#allocation28_spill] sm:$0xff] }
 0x5e6   :  { %v5173_v9 = vadd.f32 %v16249_v61, %v5172_v15  ;;  %v5188_v24 = vadd.f32 %v16256_v23, %v5187_v13  ;;  %v19474_v53 = vand.u32 2147483647, %v16172_v7  ;;  %vm5205_vm12 = vweird.f32 %v16263_v45 }
 0x5e7   :  { %vm16400_vm14 = vcmp.eq.f32.partialorder %v19471_v27, 8.507059e+37  ;;  %v6404_v58 = vadd.f32 %v16247_v41, %v6403_v39  ;;  %v5203_v34 = vadd.f32 %v16263_v45, %v5202_v3  ;;  %vm5220_vm3 = vweird.f32 %v16273_v0  ;;  %v8281_v22 = vpop.eup %8280  ;;  %vm16451_vm1 = vmor %vm5204_vm9, %vm5205_vm12 }
 0x5e8   :  { %vm16410_vm13 = vcmp.eq.f32.partialorder %v19474_v53, 8.507059e+37  ;;  %8284 = vpow2.f32 %v7289_v8  ;;  %v6803_v62 = vadd.f32 %v6802_v6, %v6669_v29  ;;  %v5218_v13 = vadd.f32 %v16273_v0, %v5217_v30 }
 0x5e9   :  { %8286 = vrcp.f32 %v16388_v21  ;;  %v16430_v60 = vadd.f32 %v19479_v43, %v9155_v48  ;;  %v6538_v44 = vadd.f32 %v6537_v51, %v6404_v58  ;;  %vm16440_vm0 = vcmp.eq.f32.partialorder %v5208_v33, 8.507059e+37  ;;  %v19492_v43 = vld [vmem:[#allocation114_spill] sm:$0xff] }
 0x5ea   :  { %v5223_v8 = vand.u32 2147483647, %v16188_v11  ;;  %v5225_v5 = vand.u32 2147483648, %v16188_v11  ;;  %8288 = vrcp.f32 %v16404_v28  ;;  %6926 = vst [vmem:[#allocation11 + $0x8] sm:$0xff] %v6803_v62  ;;  %v8283_v1 = vpop.eup %8282  ;;  %v19486_v33 = vand.u32 2147483648, %v16183_v10  ;;  %v6405_v53 = vpop.f32.mrf.mxu0 }
 0x5eb   :  { %vm5219_vm2 = vweird.f32 %v16188_v11  ;;  %v16458_v30 = vadd.f32 1.0, %v8279_v17  ;;  %v6672_v6 = vadd.f32 %v6671_v19, %v6538_v44  ;;  %v5152_v27 = vsel %vm16341_vm5, %v16253_v35, %v5147_v57  ;;  %v6805_v59 = vpop.f32.mrf.mxu3  ;;  %v6539_v58 = vpop.f32.mrf.mxu1  ;;  %v19496_v19 = vld [vmem:[#allocation77_spill] sm:$0xff] }
 0x5ec   :  { %v5211_v37 = vor.u32 1.1754944e-38, %v19486_v33  ;;  %v5167_v29 = vsel %vm16347_vm6, %v16258_v47, %v5162_v54  ;;  %v5177_v39 = vsel %vm16422_vm4, %v16249_v61, %v5173_v9  ;;  %vm16471_vm9 = vmor %vm5219_vm2, %vm5220_vm3  ;;  %v16475_v11 = vadd.f32 1.0, %v8281_v22 }
 0x5ed   :  { %v5192_v35 = vsel %vm16436_vm15, %v16256_v23, %v5188_v24  ;;  %v5207_v47 = vsel %vm16451_vm1, %v16263_v45, %v5203_v34  ;;  %v5222_v61 = vsel %vm16471_vm9, %v16273_v0, %v5218_v13  ;;  %v7290_v42 = vmul.f32 -1.442695, %v16430_v60  ;;  %v19491_v13 = vld [vmem:[#allocation67_spill] sm:$0xff] }
 0x5ee   :  { %v8285_v57 = vpop.eup %8284  ;;  %vm5224_vm5 = vcmp.eq.f32.partialorder %v5223_v8, 8.507059e+37  ;;  %v5226_v54 = vor.u32 1.1754944e-38, %v5225_v5  ;;  %v16487_v51 = vadd.f32 1.0, %v8283_v1  ;;  %v6806_v9 = vadd.f32 %v6805_v59, %v6672_v6  ;;  %v19495_v5 = vld [vmem:[#allocation112_spill] sm:$0xff] }
 0x5ef   :  { %v16489_v23 = vpop.eup %8286  ;;  %v5182_v45 = vsel %vm16400_vm14, %v16290_v32, %v5177_v39  ;;  %8290 = vrcp.f32 %v16458_v30  ;;  %v16497_v0 = vadd.f32 %v15469_v36, %v9160_v31  ;;  %v6406_v24 = vadd.f32 %v16247_v41, %v6405_v53  ;;  %v19490_v36 = vld [vmem:[#allocation113_spill] sm:$0xff] }
 0x5f0   :  { %v16500_v17 = vpop.eup %8288  ;;  %v5197_v34 = vsel %vm16410_vm13, %v16353_v40, %v5192_v35  ;;  %v5212_v62 = vsel %vm16440_vm0, %v5211_v37, %v5207_v47  ;;  %v5227_v22 = vsel %vm5224_vm5, %v5226_v54, %v5222_v61  ;;  %8292 = vrcp.f32 %v16475_v11  ;;  %6927 = vst [vmem:[#allocation11 + $0x10] sm:$0xff] %v6806_v9  ;;  %v6673_v40 = vpop.f32.mrf.mxu2 }
 0x5f1   :  { %8294 = vpow2.f32 %v7290_v42  ;;  %v6540_v32 = vadd.f32 %v6539_v58, %v6406_v24  ;;  %v6073_v15 = vpack.c.bf16 %v19490_v36, %v19489_v26  ;;  %v6074_v44 = vpack.c.bf16 %v19492_v43, %v19491_v13  ;;  %v19508_v13 = vld [vmem:[#allocation116_spill] sm:$0xff] }
 0x5f2   :  { %8296 = vrcp.f32 %v16487_v51  ;;  %v16513_v3 = vadd.f32 1.0, %v8285_v57  ;;  %v6075_v8 = vpack.c.bf16 %v19494_v20, %v19493_v56  ;;  %v6076_v1 = vpack.c.bf16 %v19496_v19, %v19495_v5  ;;  %v6408_v57 = vpop.f32.mrf.mxu0 }
 0x5f3   :  { %v5230_v7 = vmul.f32 %v16489_v23, %v16388_v21  ;;  %v5245_v33 = vmul.f32 %v16500_v17, %v16404_v28  ;;  %v7291_v37 = vmul.f32 -1.442695, %v16497_v0  ;;  %v6674_v6 = vadd.f32 %v6673_v40, %v6540_v32  ;;  %6452 = vmatmul.bf16.gmra.mxu0 %v6073_v15  ;;  %6586 = vmatmul.bf16.gmra.mxu1 %v6074_v44  ;;  %v6542_v54 = vpop.f32.mrf.mxu1  ;;  %v19500_v32 = vld [vmem:[#allocation33_spill] sm:$0xff]  ;;  %v19501_v44 = vld [vmem:[#allocation132_spill] sm:$0xff] }
 0x5f4   :  { %v16526_v39 = vmul.f32 %v16330_v4, %v15882_v63  ;;  %v16529_v10 = vmul.f32 %v5152_v27, %v15981_v55  ;;  %v16532_v35 = vmul.f32 %v5167_v29, %v15993_v2  ;;  %v5240_v47 = vand.u32 2147483648, %v16388_v21  ;;  %v6807_v4 = vpop.f32.mrf.mxu3 }
 0x5f5   :  { %6720 = vmatmul.bf16.gmra.mxu2 %v6075_v8  ;;  %6854 = vmatmul.bf16.gmra.mxu3 %v6076_v1  ;;  %v16535_v61 = vpop.eup %8290  ;;  %v16538_v42 = vmul.f32 %v5182_v45, %v16020_v52  ;;  %v16541_v59 = vmul.f32 %v5197_v34, %v16036_v12  ;;  %v16544_v63 = vmul.f32 %v5212_v62, %v16043_v38  ;;  %v5255_v55 = vand.u32 2147483648, %v16404_v28 }
 0x5f6   :  { %19497 = vst [vmem:[#allocation102_spill] sm:$0xff] %v16532_v35  ;;  %v16547_v2 = vpop.eup %8292  ;;  %v16550_v27 = vmul.f32 %v5227_v22, %v16056_v46  ;;  %v5238_v29 = vand.u32 2147483647, %v16388_v21  ;;  %8298 = vrcp.f32 %v16513_v3  ;;  %v6808_v52 = vadd.f32 %v6807_v4, %v6674_v6 }
 0x5f7   :  { %19498 = vst [vmem:[#allocation60_spill] sm:$0xff] %v16544_v63  ;;  %v8295_v12 = vpop.eup %8294  ;;  %v5231_v9 = vsub.f32 1.0, %v5230_v7  ;;  %v5246_v53 = vsub.f32 1.0, %v5245_v33  ;;  %8300 = vpow2.f32 %v7291_v37  ;;  %v6409_v38 = vadd.f32 %v16247_v41, %v6408_v57 }
 0x5f8   :  { %19499 = vst [vmem:[#allocation103_spill] sm:$0xff] %v16550_v27  ;;  %v16555_v58 = vpop.eup %8296  ;;  %v16557_v45 = vor.u32 1.1754944e-38, %v5240_v47  ;;  %v5253_v46 = vand.u32 2147483647, %v16404_v28  ;;  %v5260_v24 = vmul.f32 %v16535_v61, %v16458_v30  ;;  %v5270_v34 = vand.u32 2147483648, %v16458_v30  ;;  %v6676_v56 = vpop.f32.mrf.mxu2  ;;  %v19509_v27 = vld [vmem:[#allocation120_spill] sm:$0xff] }
 0x5f9   :  { %6928 = vst [vmem:[#allocation11 + $0x18] sm:$0xff] %v6808_v52  ;;  %v16563_v62 = vor.u32 1.1754944e-38, %v5255_v55  ;;  %v5285_v22 = vand.u32 2147483648, %v16475_v11  ;;  %v16568_v26 = vadd.f32 %v19500_v32, %v9142_v25  ;;  %v6543_v36 = vadd.f32 %v6542_v54, %v6409_v38 }
 0x5fa   :  { %vm5234_vm6 = vweird.f32 %v16388_v21  ;;  %v5268_v15 = vand.u32 2147483647, %v16458_v30  ;;  %v16573_v43 = vadd.f32 1.0, %v8295_v12  ;;  %v16577_v40 = vadd.f32 %v19501_v44, %v9147_v14 }
 0x5fb   :  { %v5232_v20 = vmul.f32 %v16489_v23, %v5231_v9  ;;  %v5247_v8 = vmul.f32 %v16500_v17, %v5246_v53  ;;  %vm5249_vm7 = vweird.f32 %v16404_v28  ;;  %v5275_v5 = vmul.f32 %v16547_v2, %v16475_v11  ;;  %v6410_v53 = vpop.f32.mrf.mxu0  ;;  %v6544_v38 = vpop.f32.mrf.mxu1  ;;  %v19521_v28 = vld [vmem:[#allocation58_spill] sm:$0xff] }
 0x5fc   :  { %v6677_v19 = vadd.f32 %v6676_v56, %v6543_v36  ;;  %v16584_v1 = vpop.eup %8298  ;;  %vm5235_vm10 = vweird.f32 %v16489_v23  ;;  %v5261_v7 = vsub.f32 1.0, %v5260_v24  ;;  %v16587_v33 = vor.u32 1.1754944e-38, %v5270_v34  ;;  %v6810_v52 = vpop.f32.mrf.mxu3 }
 0x5fd   :  { %v5290_v37 = vmul.f32 %v16555_v58, %v16487_v51  ;;  %v8301_v6 = vpop.eup %8300  ;;  %vm5250_vm8 = vweird.f32 %v16500_v17  ;;  %v16592_v47 = vor.u32 1.1754944e-38, %v5285_v22  ;;  %v5298_v55 = vand.u32 2147483647, %v16487_v51  ;;  %vm16633_vm3 = vmor %vm5234_vm6, %vm5235_vm10 }
 0x5fe   :  { %v7292_v4 = vmul.f32 -1.442695, %v16568_v26  ;;  %vm16596_vm11 = vcmp.eq.f32.partialorder %v5238_v29, 8.507059e+37  ;;  %vm5264_vm14 = vweird.f32 %v16458_v30  ;;  %v5300_v54 = vand.u32 2147483648, %v16487_v51  ;;  %vm16655_vm2 = vmor %vm5249_vm7, %vm5250_vm8  ;;  %v19530_v29 = vld [vmem:[#allocation96_spill] sm:$0xff] }
 0x5ff   :  { %8302 = vrcp.f32 %v16573_v43  ;;  %v7293_v12 = vmul.f32 -1.442695, %v16577_v40  ;;  %v6811_v9 = vadd.f32 %v6810_v52, %v6677_v19  ;;  %v5233_v24 = vadd.f32 %v16489_v23, %v5232_v20  ;;  %v19506_v52 = vld [vmem:[#allocation115_spill] sm:$0xff] }
 0x600   :  { %v5248_v34 = vadd.f32 %v16500_v17, %v5247_v8  ;;  %vm16606_vm13 = vcmp.eq.f32.partialorder %v5253_v46, 8.507059e+37  ;;  %v5276_v22 = vsub.f32 1.0, %v5275_v5  ;;  %v6411_v32 = vadd.f32 %v16247_v41, %v6410_v53  ;;  %v19507_v8 = vld [vmem:[#allocation119_spill] sm:$0xff]  ;;  %v19510_v5 = vld [vmem:[#allocation62_spill] sm:$0xff]  ;;  %v19511_v53 = vld [vmem:[#allocation117_spill] sm:$0xff] }
 0x601   :  { %v5262_v36 = vmul.f32 %v16535_v61, %v5261_v7  ;;  %v5291_v44 = vsub.f32 1.0, %v5290_v37  ;;  %v5305_v56 = vmul.f32 %v16584_v1, %v16513_v3  ;;  %v16614_v19 = vadd.f32 1.0, %v8301_v6  ;;  %6929 = vst [vmem:[#allocation11 + $0x20] sm:$0xff] %v6811_v9  ;;  %v6678_v37 = vpop.f32.mrf.mxu2  ;;  %v19512_v6 = vld [vmem:[#allocation121_spill] sm:$0xff]  ;;  %v19513_v9 = vld [vmem:[#allocation118_spill] sm:$0xff] }
 0x602   :  { %8304 = vpow2.f32 %v7292_v4  ;;  %v6545_v20 = vadd.f32 %v6544_v38, %v6411_v32  ;;  %v6077_v46 = vpack.c.bf16 %v19507_v8, %v19506_v52  ;;  %v6078_v35 = vpack.c.bf16 %v19509_v27, %v19508_v13  ;;  %v19514_v4 = vld [vmem:[#allocation36_spill] sm:$0xff] }
 0x603   :  { %vm5279_vm12 = vweird.f32 %v16475_v11  ;;  %8306 = vpow2.f32 %v7293_v12  ;;  %v16623_v7 = vadd.f32 %v19510_v5, %v9155_v48  ;;  %v6079_v63 = vpack.c.bf16 %v19512_v6, %v19511_v53  ;;  %v6547_v5 = vpop.f32.mrf.mxu1 }
 0x604   :  { %v6080_v38 = vpack.c.bf16 %v19514_v4, %v19513_v9  ;;  %vm5265_vm4 = vweird.f32 %v16535_v61  ;;  %vm16638_vm15 = vcmp.eq.f32.partialorder %v5268_v15, 8.507059e+37  ;;  %vm5280_vm0 = vweird.f32 %v16547_v2  ;;  %6457 = vmatmul.bf16.gmra.mxu0 %v6077_v46  ;;  %6591 = vmatmul.bf16.gmra.mxu1 %v6078_v35  ;;  %v6812_v46 = vpop.f32.mrf.mxu3  ;;  %v19529_v15 = vld [vmem:[#allocation63_spill] sm:$0xff] }
 0x605   :  { %vm5294_vm1 = vweird.f32 %v16487_v51  ;;  %v16644_v12 = vor.u32 1.1754944e-38, %v5300_v54  ;;  %v6679_v32 = vadd.f32 %v6678_v37, %v6545_v20  ;;  %v16646_v21 = vpop.eup %8302  ;;  %v5237_v52 = vsel %vm16633_vm3, %v16489_v23, %v5233_v24  ;;  %6725 = vmatmul.bf16.gmra.mxu2 %v6079_v63  ;;  %vm16680_vm5 = vmor %vm5264_vm14, %vm5265_vm4 }
 0x606   :  { %v5263_v54 = vadd.f32 %v16535_v61, %v5262_v36  ;;  %v5277_v20 = vmul.f32 %v16547_v2, %v5276_v22  ;;  %v5306_v8 = vsub.f32 1.0, %v5305_v56  ;;  %6859 = vmatmul.bf16.gmra.mxu3 %v6080_v38  ;;  %v5252_v35 = vsel %vm16655_vm2, %v16500_v17, %v5248_v34  ;;  %v6413_v56 = vpop.f32.mrf.mxu0  ;;  %vm16727_vm8 = vmor %vm5279_vm12, %vm5280_vm0 }
 0x607   :  { %v5292_v23 = vmul.f32 %v16555_v58, %v5291_v44  ;;  %8308 = vrcp.f32 %v16614_v19  ;;  %v16668_v24 = vadd.f32 %v19521_v28, %v9160_v31  ;;  %vm5295_vm9 = vweird.f32 %v16555_v58 }
 0x608   :  { %v5313_v22 = vand.u32 2147483647, %v16513_v3  ;;  %v7294_v63 = vmul.f32 -1.442695, %v16623_v7  ;;  %v6813_v36 = vadd.f32 %v6812_v46, %v6679_v32  ;;  %v8305_v37 = vpop.eup %8304  ;;  %v5242_v17 = vsel %vm16596_vm11, %v16557_v45, %v5237_v52  ;;  %vm16740_vm11 = vmor %vm5294_vm1, %vm5295_vm9 }
 0x609   :  { %v19524_v44 = vand.u32 2147483647, %v16475_v11  ;;  %vm16690_vm7 = vcmp.eq.f32.partialorder %v5298_v55, 8.507059e+37  ;;  %v5315_v45 = vand.u32 2147483648, %v16513_v3  ;;  %v5320_v57 = vmul.f32 %v16646_v21, %v16573_v43  ;;  %v8307_v9 = vpop.eup %8306 }
 0x60a   :  { %v6414_v30 = vadd.f32 %v16247_v41, %v6413_v56  ;;  %v5257_v4 = vsel %vm16606_vm13, %v16563_v62, %v5252_v35  ;;  %v5267_v38 = vsel %vm16680_vm5, %v16535_v61, %v5263_v54  ;;  %v5278_v55 = vadd.f32 %v16547_v2, %v5277_v20  ;;  %6930 = vst [vmem:[#allocation11 + $0x28] sm:$0xff] %v6813_v36  ;;  %v6681_v54 = vpop.f32.mrf.mxu2 }
 0x60b   :  { %vm16686_vm6 = vcmp.eq.f32.partialorder %v19524_v44, 8.507059e+37  ;;  %v5307_v27 = vmul.f32 %v16584_v1, %v5306_v8  ;;  %v5293_v32 = vadd.f32 %v16555_v58, %v5292_v23  ;;  %v7295_v52 = vmul.f32 -1.442695, %v16668_v24  ;;  %v19531_v8 = vld [vmem:[#allocation97_spill] sm:$0xff]  ;;  %v19545_v23 = vld [vmem:[#allocation126_spill] sm:$0xff] }
 0x60c   :  { %v16710_v28 = vadd.f32 %v19529_v15, %v9142_v25  ;;  %v6548_v46 = vadd.f32 %v6547_v5, %v6414_v30  ;;  %v16713_v62 = vmul.f32 %v5242_v17, %v19530_v29  ;;  %vm5309_vm10 = vweird.f32 %v16513_v3  ;;  %v6815_v44 = vpop.f32.mrf.mxu3  ;;  %v19543_v29 = vld [vmem:[#allocation125_spill] sm:$0xff] }
 0x60d   :  { %v16716_v61 = vadd.f32 1.0, %v8305_v37  ;;  %8310 = vpow2.f32 %v7294_v63  ;;  %v16718_v20 = vpop.eup %8308  ;;  %v16721_v35 = vmul.f32 %v5257_v4, %v19531_v8  ;;  %v5321_v36 = vsub.f32 1.0, %v5320_v57  ;;  %v19544_v8 = vld [vmem:[#allocation122_spill] sm:$0xff]  ;;  %v19548_v37 = vld [vmem:[#allocation124_spill] sm:$0xff] }
 0x60e   :  { %v16731_v56 = vadd.f32 1.0, %v8307_v9  ;;  %v6682_v5 = vadd.f32 %v6681_v54, %v6548_v46  ;;  %v5272_v63 = vsel %vm16638_vm15, %v16587_v33, %v5267_v38  ;;  %v5308_v11 = vadd.f32 %v16584_v1, %v5307_v27  ;;  %v6415_v9 = vpop.f32.mrf.mxu0  ;;  %v19542_v46 = vld [vmem:[#allocation92_spill] sm:$0xff] }
 0x60f   :  { %vm5310_vm14 = vweird.f32 %v16584_v1  ;;  %vm16746_vm13 = vcmp.eq.f32.partialorder %v5313_v22, 8.507059e+37  ;;  %v5316_v34 = vor.u32 1.1754944e-38, %v5315_v45  ;;  %v5282_v33 = vsel %vm16727_vm8, %v16547_v2, %v5278_v55  ;;  %v19538_v22 = vld [vmem:[#allocation59_spill] sm:$0xff]  ;;  %v6549_v2 = vpop.f32.mrf.mxu1 }
 0x610   :  { %v5297_v51 = vsel %vm16740_vm11, %v16555_v58, %v5293_v32  ;;  %8312 = vpow2.f32 %v7295_v52  ;;  %v7296_v13 = vmul.f32 -1.442695, %v16710_v28  ;;  %v5335_v57 = vmul.f32 %v16718_v20, %v16614_v19  ;;  %vm16771_vm12 = vmor %vm5309_vm10, %vm5310_vm14 }
 0x611   :  { %8314 = vrcp.f32 %v16716_v61  ;;  %v16762_v45 = vadd.f32 %v19538_v22, %v9147_v14  ;;  %v6816_v30 = vadd.f32 %v6815_v44, %v6682_v5  ;;  %v16765_v4 = vmul.f32 %v5272_v63, %v16277_v16  ;;  %v19547_v5 = vld [vmem:[#allocation127_spill] sm:$0xff] }
 0x612   :  { %v5322_v38 = vmul.f32 %v16646_v21, %v5321_v36  ;;  %8316 = vrcp.f32 %v16731_v56  ;;  %v6416_v55 = vadd.f32 %v16247_v41, %v6415_v9  ;;  %v5287_v16 = vsel %vm16686_vm6, %v16592_v47, %v5282_v33  ;;  %v6683_v6 = vpop.f32.mrf.mxu2  ;;  %v19551_v9 = vld [vmem:[#allocation133_spill] sm:$0xff] }
 0x613   :  { %19539 = vst [vmem:[#allocation99_spill] sm:$0xff] %v16765_v4  ;;  %v8311_v27 = vpop.eup %8310  ;;  %v5302_v32 = vsel %vm16690_vm7, %v16644_v12, %v5297_v51  ;;  %v5312_v3 = vsel %vm16771_vm12, %v16584_v1, %v5308_v11  ;;  %v5330_v52 = vand.u32 2147483648, %v16573_v43  ;;  %8318 = vpow2.f32 %v7296_v13  ;;  %v19546_v12 = vld [vmem:[#allocation123_spill] sm:$0xff]  ;;  %v19549_v1 = vld [vmem:[#allocation20_spill] sm:$0xff]  ;;  %v19597_v4 = vld [vmem:[#allocation49_spill] sm:$0xff] }
 0x614   :  { %6931 = vst [vmem:[#allocation11 + $0x30] sm:$0xff] %v6816_v30  ;;  %v6550_v15 = vadd.f32 %v6549_v2, %v6416_v55  ;;  %v6081_v54 = vpack.c.bf16 %v19543_v29, %v19542_v46  ;;  %v6082_v53 = vpack.c.bf16 %v19545_v23, %v19544_v8  ;;  %v5336_v47 = vsub.f32 1.0, %v5335_v57 }
 0x615   :  { %v7297_v36 = vmul.f32 -1.442695, %v16762_v45  ;;  %v6083_v63 = vpack.c.bf16 %v19547_v5, %v19546_v12  ;;  %v6084_v11 = vpack.c.bf16 %v19549_v1, %v19548_v37  ;;  %v5323_v51 = vadd.f32 %v16646_v21, %v5322_v38 }
 0x616   :  { %v8313_v33 = vpop.eup %8312  ;;  %vm5325_vm3 = vweird.f32 %v16646_v21  ;;  %v16799_v13 = vadd.f32 1.0, %v8311_v27  ;;  %v6684_v44 = vadd.f32 %v6683_v6, %v6550_v15  ;;  %6462 = vmatmul.bf16.gmra.mxu0 %v6081_v54  ;;  %6596 = vmatmul.bf16.gmra.mxu1 %v6082_v53  ;;  %v16804_v22 = vmul.f32 %v5287_v16, %v16287_v18  ;;  %v6418_v17 = vpop.f32.mrf.mxu0  ;;  %v19554_v53 = vld [vmem:[#allocation65_spill] sm:$0xff] }
 0x617   :  { %v16801_v57 = vpop.eup %8314  ;;  %v16807_v30 = vmul.f32 %v5302_v32, %v16299_v50  ;;  %vm5324_vm4 = vweird.f32 %v16573_v43  ;;  %v16812_v2 = vadd.f32 %v19551_v9, %v9155_v48  ;;  %6730 = vmatmul.bf16.gmra.mxu2 %v6083_v63  ;;  %6864 = vmatmul.bf16.gmra.mxu3 %v6084_v11  ;;  %v5317_v38 = vsel %vm16746_vm13, %v5316_v34, %v5312_v3  ;;  %v6817_v50 = vpop.f32.mrf.mxu3 }
 0x618   :  { %19550 = vst [vmem:[#allocation104_spill] sm:$0xff] %v16804_v22  ;;  %v16814_v58 = vpop.eup %8316  ;;  %v5328_v55 = vand.u32 2147483647, %v16573_v43  ;;  %v5331_v18 = vor.u32 1.1754944e-38, %v5330_v52  ;;  %v5343_v27 = vand.u32 2147483647, %v16614_v19  ;;  %vm16822_vm15 = vmor %vm5324_vm4, %vm5325_vm3  ;;  %v5337_v32 = vmul.f32 %v16718_v20, %v5336_v47  ;;  %v6552_v34 = vpop.f32.mrf.mxu1 }
 0x619   :  { %v16827_v15 = vadd.f32 1.0, %v8313_v33  ;;  %8320 = vpow2.f32 %v7297_v36  ;;  %v6818_v46 = vadd.f32 %v6817_v50, %v6684_v44  ;;  %v8319_v3 = vpop.eup %8318  ;;  %v5327_v43 = vsel %vm16822_vm15, %v16646_v21, %v5323_v51 }
 0x61a   :  { %v5350_v52 = vmul.f32 %v16801_v57, %v16716_v61  ;;  %8322 = vrcp.f32 %v16799_v13  ;;  %v6419_v29 = vadd.f32 %v16247_v41, %v6418_v17  ;;  %v5345_v54 = vand.u32 2147483648, %v16614_v19  ;;  %v6686_v5 = vpop.f32.mrf.mxu2 }
 0x61b   :  { %v5365_v8 = vmul.f32 %v16814_v58, %v16731_v56  ;;  %v7298_v23 = vmul.f32 -1.442695, %v16812_v2  ;;  %v16842_v47 = vadd.f32 %v19554_v53, %v9160_v31  ;;  %6932 = vst [vmem:[#allocation11 + $0x38] sm:$0xff] %v6818_v46  ;;  %v16845_v21 = vmul.f32 %v5317_v38, %v16320_v49  ;;  %v19562_v53 = vld [vmem:[#allocation101_spill] sm:$0xff] }
 0x61c   :  { %vm5329_vm0 = vcmp.eq.f32.partialorder %v5328_v55, 8.507059e+37  ;;  %vm5339_vm1 = vweird.f32 %v16614_v19  ;;  %v6553_v36 = vadd.f32 %v6552_v34, %v6419_v29  ;;  %v5338_v12 = vadd.f32 %v16718_v20, %v5337_v32 }
 0x61d   :  { %v5332_v6 = vsel %vm5329_vm0, %v5331_v18, %v5327_v43  ;;  %vm5340_vm2 = vweird.f32 %v16718_v20  ;;  %8324 = vrcp.f32 %v16827_v15  ;;  %vm16851_vm9 = vcmp.eq.f32.partialorder %v5343_v27, 8.507059e+37 }
 0x61e   :  { %v5351_v37 = vsub.f32 1.0, %v5350_v52  ;;  %v16855_v1 = vadd.f32 1.0, %v8319_v3  ;;  %v6687_v49 = vadd.f32 %v6686_v5, %v6553_v36  ;;  %v5346_v33 = vor.u32 1.1754944e-38, %v5345_v54  ;;  %vm16865_vm5 = vmor %vm5339_vm1, %vm5340_vm2  ;;  %v6420_v46 = vpop.f32.mrf.mxu0  ;;  %v19563_v36 = vld [vmem:[#allocation131_spill] sm:$0xff]  ;;  %v19565_v5 = vld [vmem:[#allocation30_spill] sm:$0xff] }
 0x61f   :  { %v8321_v11 = vpop.eup %8320  ;;  %v5366_v51 = vsub.f32 1.0, %v5365_v8  ;;  %8326 = vpow2.f32 %v7298_v23  ;;  %v7299_v44 = vmul.f32 -1.442695, %v16842_v47  ;;  %v16861_v38 = vmul.f32 %v5332_v6, %v16430_v60  ;;  %v6820_v50 = vpop.f32.mrf.mxu3 }
 0x620   :  { %v16858_v9 = vpop.eup %8322  ;;  %vm5354_vm6 = vweird.f32 %v16716_v61  ;;  %v5358_v18 = vand.u32 2147483647, %v16716_v61  ;;  %v5360_v27 = vand.u32 2147483648, %v16716_v61  ;;  %v5342_v16 = vsel %vm16865_vm5, %v16718_v20, %v5338_v12  ;;  %v6554_v17 = vpop.f32.mrf.mxu1  ;;  %v19564_v12 = vld [vmem:[#allocation128_spill] sm:$0xff] }
 0x621   :  { %19557 = vst [vmem:[#allocation105_spill] sm:$0xff] %v16861_v38  ;;  %vm5369_vm7 = vweird.f32 %v16731_v56  ;;  %v5373_v60 = vand.u32 2147483647, %v16731_v56  ;;  %v5375_v19 = vand.u32 2147483648, %v16731_v56  ;;  %v6821_v32 = vadd.f32 %v6820_v50, %v6687_v49  ;;  %v19568_v50 = vld [vmem:[#allocation31_spill] sm:$0xff] }
 0x622   :  { %v5352_v34 = vmul.f32 %v16801_v57, %v5351_v37  ;;  %8328 = vrcp.f32 %v16855_v1  ;;  %v16880_v3 = vadd.f32 1.0, %v8321_v11  ;;  %v6421_v43 = vadd.f32 %v16247_v41, %v6420_v46  ;;  %v6688_v55 = vpop.f32.mrf.mxu2  ;;  %v19569_v46 = vld [vmem:[#allocation130_spill] sm:$0xff] }
 0x623   :  { %v16883_v52 = vpop.eup %8324  ;;  %vm5355_vm10 = vweird.f32 %v16801_v57  ;;  %v5367_v20 = vmul.f32 %v16814_v58, %v5366_v51  ;;  %v5380_v29 = vmul.f32 %v16858_v9, %v16799_v13  ;;  %8330 = vpow2.f32 %v7299_v44  ;;  %6933 = vst [vmem:[#allocation11 + $0x40] sm:$0xff] %v6821_v32  ;;  %v19566_v51 = vld [vmem:[#allocation73_spill] sm:$0xff] }
 0x624   :  { %vm16889_vm8 = vcmp.eq.f32.partialorder %v5358_v18, 8.507059e+37  ;;  %v5390_v8 = vand.u32 2147483648, %v16799_v13  ;;  %v6555_v23 = vadd.f32 %v6554_v17, %v6421_v43  ;;  %v6085_v6 = vpack.c.bf16 %v19563_v36, %v19562_v53  ;;  %v19567_v18 = vld [vmem:[#allocation129_spill] sm:$0xff]  ;;  %v19570_v17 = vld [vmem:[#allocation35_spill] sm:$0xff]  ;;  %vm16930_vm13 = vmor %vm5354_vm6, %vm5355_vm10 }
 0x625   :  { %v6086_v37 = vpack.c.bf16 %v19565_v5, %v19564_v12  ;;  %v8327_v49 = vpop.eup %8326  ;;  %v5347_v11 = vsel %vm16851_vm9, %v5346_v33, %v5342_v16  ;;  %v16902_v44 = vadd.f32 %v19566_v51, %v9142_v25  ;;  %v6087_v32 = vpack.c.bf16 %v19568_v50, %v19567_v18 }
 0x626   :  { %v6088_v43 = vpack.c.bf16 %v19570_v17, %v19569_v46  ;;  %v5353_v53 = vadd.f32 %v16801_v57, %v5352_v34  ;;  %v5395_v36 = vmul.f32 %v16883_v52, %v16827_v15  ;;  %8332 = vrcp.f32 %v16880_v3  ;;  %6467 = vmatmul.bf16.gmra.mxu0 %v6085_v6  ;;  %v19582_v34 = vld [vmem:[#allocation134_spill] sm:$0xff] }
 0x627   :  { %v6689_v63 = vadd.f32 %v6688_v55, %v6555_v23  ;;  %6601 = vmatmul.bf16.gmra.mxu1 %v6086_v37  ;;  %v5361_v33 = vor.u32 1.1754944e-38, %v5360_v27  ;;  %v5368_v16 = vadd.f32 %v16814_v58, %v5367_v20  ;;  %vm5370_vm11 = vweird.f32 %v16814_v58  ;;  %6735 = vmatmul.bf16.gmra.mxu2 %v6087_v32  ;;  %v6822_v6 = vpop.f32.mrf.mxu3 }
 0x628   :  { %v5381_v12 = vsub.f32 1.0, %v5380_v29  ;;  %6869 = vmatmul.bf16.gmra.mxu3 %v6088_v43  ;;  %v16914_v5 = vpop.eup %8328  ;;  %vm16916_vm14 = vcmp.eq.f32.partialorder %v5373_v60, 8.507059e+37  ;;  %v5376_v51 = vor.u32 1.1754944e-38, %v5375_v19  ;;  %v5388_v18 = vand.u32 2147483647, %v16799_v13  ;;  %v6557_v55 = vpop.f32.mrf.mxu1  ;;  %vm16944_vm3 = vmor %vm5369_vm7, %vm5370_vm11 }
 0x629   :  { %v16921_v23 = vadd.f32 1.0, %v8327_v49  ;;  %v8331_v27 = vpop.eup %8330  ;;  %v16924_v20 = vmul.f32 %v5347_v11, %v16497_v0  ;;  %vm5384_vm12 = vweird.f32 %v16799_v13  ;;  %v5403_v60 = vand.u32 2147483647, %v16827_v15  ;;  %v6423_v49 = vpop.f32.mrf.mxu0 }
 0x62a   :  { %v7300_v19 = vmul.f32 -1.442695, %v16902_v44  ;;  %v6823_v37 = vadd.f32 %v6822_v6, %v6689_v63  ;;  %v5357_v0 = vsel %vm16930_vm13, %v16801_v57, %v5353_v53  ;;  %v16948_v11 = vor.u32 1.1754944e-38, %v5390_v8  ;;  %v19579_v63 = vld [vmem:[#allocation70_spill] sm:$0xff] }
 0x62b   :  { %19573 = vst [vmem:[#allocation66_spill] sm:$0xff] %v16924_v20  ;;  %v5396_v50 = vsub.f32 1.0, %v5395_v36  ;;  %v6424_v32 = vadd.f32 %v16247_v41, %v6423_v49  ;;  %v5372_v46 = vsel %vm16944_vm3, %v16814_v58, %v5368_v16  ;;  %v5382_v17 = vmul.f32 %v16858_v9, %v5381_v12  ;;  %v19578_v41 = vld [vmem:[#allocation68_spill] sm:$0xff]  ;;  %v6691_v12 = vpop.f32.mrf.mxu2  ;;  %v19592_v20 = vld [vmem:[#allocation27_spill] sm:$0xff] }
 0x62c   :  { %v5405_v57 = vand.u32 2147483648, %v16827_v15  ;;  %v5410_v56 = vmul.f32 %v16914_v5, %v16855_v1  ;;  %6934 = vst [vmem:[#allocation11 + $0x48] sm:$0xff] %v6823_v37  ;;  %v16958_v43 = vpop.eup %8332  ;;  %8334 = vrcp.f32 %v16921_v23  ;;  %v16961_v8 = vadd.f32 1.0, %v8331_v27 }
 0x62d   :  { %v16965_v53 = vadd.f32 %v19578_v41, %v9147_v14  ;;  %v6558_v36 = vadd.f32 %v6557_v55, %v6424_v32  ;;  %v5362_v58 = vsel %vm16889_vm8, %v5361_v33, %v5357_v0  ;;  %vm5385_vm4 = vweird.f32 %v16858_v9 }
 0x62e   :  { %8336 = vpow2.f32 %v7300_v19  ;;  %v16972_v16 = vadd.f32 %v19579_v63, %v9155_v48  ;;  %v5377_v6 = vsel %vm16916_vm14, %v5376_v51, %v5372_v46  ;;  %vm16976_vm15 = vcmp.eq.f32.partialorder %v5388_v18, 8.507059e+37  ;;  %vm17010_vm9 = vmor %vm5384_vm12, %vm5385_vm4 }
 0x62f   :  { %v5397_v29 = vmul.f32 %v16883_v52, %v5396_v50  ;;  %vm5399_vm0 = vweird.f32 %v16827_v15  ;;  %v5420_v54 = vand.u32 2147483648, %v16855_v1  ;;  %v6692_v33 = vadd.f32 %v6691_v12, %v6558_v36  ;;  %v6825_v0 = vpop.f32.mrf.mxu3  ;;  %v19602_v15 = vld [vmem:[#allocation83_spill] sm:$0xff] }
 0x630   :  { %v5383_v19 = vadd.f32 %v16858_v9, %v5382_v17  ;;  %v5411_v37 = vsub.f32 1.0, %v5410_v56  ;;  %v5425_v49 = vmul.f32 %v16958_v43, %v16880_v3  ;;  %v16988_v51 = vadd.f32 %v19582_v34, %v9160_v31  ;;  %v6559_v56 = vpop.f32.mrf.mxu1  ;;  %v19589_v34 = vld [vmem:[#allocation40_spill] sm:$0xff] }
 0x631   :  { %vm5400_vm1 = vweird.f32 %v16883_v52  ;;  %v16991_v18 = vor.u32 1.1754944e-38, %v5405_v57  ;;  %8338 = vrcp.f32 %v16961_v8  ;;  %v7301_v55 = vmul.f32 -1.442695, %v16965_v53  ;;  %v6425_v17 = vpop.f32.mrf.mxu0 }
 0x632   :  { %v16996_v61 = vmul.f32 %v5362_v58, %v16568_v26  ;;  %vm5414_vm2 = vweird.f32 %v16855_v1  ;;  %v5418_v50 = vand.u32 2147483647, %v16855_v1  ;;  %v7302_v32 = vmul.f32 -1.442695, %v16972_v16  ;;  %v17001_v41 = vpop.eup %8334  ;;  %v19596_v26 = vld [vmem:[#allocation26_spill] sm:$0xff]  ;;  %vm17062_vm7 = vmor %vm5399_vm0, %vm5400_vm1 }
 0x633   :  { %v6826_v46 = vadd.f32 %v6825_v0, %v6692_v33  ;;  %v17004_v57 = vmul.f32 %v5377_v6, %v16577_v40  ;;  %v5398_v36 = vadd.f32 %v16883_v52, %v5397_v29  ;;  %vm17015_vm5 = vcmp.eq.f32.partialorder %v5403_v60, 8.507059e+37  ;;  %v17024_v40 = vld [vmem:[%s18229_s6] ss:$0 sm:$0xff]  ;;  %v19590_v0 = vld [vmem:[#allocation42_spill] sm:$0xff] }
 0x634   :  { %19583 = vst [vmem:[#allocation106_spill] sm:$0xff] %v16996_v61  ;;  %v17019_v63 = vor.u32 1.1754944e-38, %v5420_v54  ;;  %v6426_v12 = vadd.f32 %v17024_v40, %v6425_v17  ;;  %v8337_v13 = vpop.eup %8336  ;;  %v5387_v6 = vsel %vm17010_vm9, %v16858_v9, %v5383_v19  ;;  %v5412_v29 = vmul.f32 %v16914_v5, %v5411_v37  ;;  %v19591_v61 = vld [vmem:[#allocation24_spill] sm:$0xff]  ;;  %v19593_v17 = vld [vmem:[#allocation43_spill] sm:$0xff]  ;;  %v6693_v9 = vpop.f32.mrf.mxu2  ;;  %v19595_v37 = vld [vmem:[#allocation21_spill] sm:$0xff] }
 0x635   :  { %19584 = vst [vmem:[#allocation53_spill] sm:$0xff] %v17004_v57  ;;  %v5426_v60 = vsub.f32 1.0, %v5425_v49  ;;  %v7303_v33 = vmul.f32 -1.442695, %v16988_v51  ;;  %8340 = vpow2.f32 %v7301_v55  ;;  %v6089_v57 = vpack.c.bf16 %v19590_v0, %v19589_v34  ;;  %v19594_v19 = vld [vmem:[#allocation16_spill] sm:$0xff] }
 0x636   :  { %6935 = vst [vmem:[#allocation11 + $0x50] sm:$0xff] %v6826_v46  ;;  %v6560_v54 = vadd.f32 %v6559_v56, %v6426_v12  ;;  %v6090_v22 = vpack.c.bf16 %v19592_v20, %v19591_v61  ;;  %8342 = vpow2.f32 %v7302_v32  ;;  %v17038_v38 = vadd.f32 %v19593_v17, %v9142_v25 }
 0x637   :  { %v6091_v49 = vpack.c.bf16 %v19595_v37, %v19594_v19  ;;  %v6092_v46 = vpack.c.bf16 %v19597_v4, %v19596_v26  ;;  %v17044_v55 = vpop.eup %8338  ;;  %vm17046_vm6 = vcmp.eq.f32.partialorder %v5418_v50, 8.507059e+37  ;;  %v5433_v20 = vand.u32 2147483647, %v16880_v3  ;;  %6472 = vmatmul.bf16.gmra.mxu0 %v6089_v57  ;;  %v6827_v57 = vpop.f32.mrf.mxu3 }
 0x638   :  { %v5440_v61 = vmul.f32 %v17001_v41, %v16921_v23  ;;  %v17053_v32 = vadd.f32 1.0, %v8337_v13  ;;  %v6694_v12 = vadd.f32 %v6693_v9, %v6560_v54  ;;  %6606 = vmatmul.bf16.gmra.mxu1 %v6090_v22  ;;  %v5392_v4 = vsel %vm16976_vm15, %v16948_v11, %v5387_v6  ;;  %v6562_v17 = vpop.f32.mrf.mxu1 }
 0x639   :  { %v5413_v34 = vadd.f32 %v16914_v5, %v5412_v29  ;;  %vm5415_vm10 = vweird.f32 %v16914_v5  ;;  %vm5429_vm8 = vweird.f32 %v16880_v3  ;;  %6740 = vmatmul.bf16.gmra.mxu2 %v6091_v49  ;;  %6874 = vmatmul.bf16.gmra.mxu3 %v6092_v46  ;;  %v5402_v22 = vsel %vm17062_vm7, %v16883_v52, %v5398_v36  ;;  %v6428_v0 = vpop.f32.mrf.mxu0 }
 0x63a   :  { %v5427_v11 = vmul.f32 %v16958_v43, %v5426_v60  ;;  %8344 = vpow2.f32 %v7303_v33  ;;  %v17075_v27 = vadd.f32 %v19602_v15, %v9147_v14  ;;  %v5435_v13 = vand.u32 2147483648, %v16880_v3  ;;  %vm17088_vm11 = vmor %vm5414_vm2, %vm5415_vm10 }
 0x63b   :  { %v5455_v6 = vmul.f32 %v17044_v55, %v16961_v8  ;;  %v7304_v29 = vmul.f32 -1.442695, %v17038_v38  ;;  %v6828_v54 = vadd.f32 %v6827_v57, %v6694_v12  ;;  %v8341_v9 = vpop.eup %8340  ;;  %v17082_v52 = vmul.f32 %v5392_v4, %v16623_v7 }
 0x63c   :  { %vm17092_vm14 = vcmp.eq.f32.partialorder %v5433_v20, 8.507059e+37  ;;  %v5441_v33 = vsub.f32 1.0, %v5440_v61  ;;  %8346 = vrcp.f32 %v17053_v32  ;;  %v6429_v19 = vadd.f32 %v17024_v40, %v6428_v0  ;;  %v8343_v37 = vpop.eup %8342  ;;  %v19608_v20 = vld [vmem:[#allocation79_spill] sm:$0xff] }
 0x63d   :  { %19603 = vst [vmem:[#allocation107_spill] sm:$0xff] %v17082_v52  ;;  %v5407_v7 = vsel %vm17015_vm5, %v16991_v18, %v5402_v22  ;;  %v5417_v1 = vsel %vm17088_vm11, %v16914_v5, %v5413_v34  ;;  %vm5430_vm13 = vweird.f32 %v16958_v43  ;;  %v5448_v49 = vand.u32 2147483647, %v16921_v23  ;;  %v6696_v5 = vpop.f32.mrf.mxu2  ;;  %v19649_v52 = vld [vmem:[#allocation37_spill] sm:$0xff] }
 0x63e   :  { %6936 = vst [vmem:[#allocation11 + $0x58] sm:$0xff] %v6828_v54  ;;  %v5428_v26 = vadd.f32 %v16958_v43, %v5427_v11  ;;  %v7305_v46 = vmul.f32 -1.442695, %v17075_v27  ;;  %v17110_v61 = vadd.f32 %v19608_v20, %v9155_v48  ;;  %v6563_v12 = vadd.f32 %v6562_v17, %v6429_v19  ;;  %vm17127_vm12 = vmor %vm5429_vm8, %vm5430_vm13  ;;  %v19615_v20 = vld [vmem:[#allocation54_spill] sm:$0xff] }
 0x63f   :  { %v5436_v58 = vor.u32 1.1754944e-38, %v5435_v13  ;;  %v5456_v18 = vsub.f32 1.0, %v5455_v6  ;;  %v17112_v4 = vadd.f32 1.0, %v8341_v9  ;;  %8348 = vpow2.f32 %v7304_v29  ;;  %v6830_v0 = vpop.f32.mrf.mxu3  ;;  %v19621_v13 = vld [vmem:[#allocation55_spill] sm:$0xff] }
 0x640   :  { %19609 = vst [vmem:[#allocation108_spill] sm:$0xff] %v17110_v61  ;;  %v8345_v50 = vpop.eup %8344  ;;  %v17115_v34 = vmul.f32 %v5407_v7, %v16668_v24  ;;  %v5442_v22 = vmul.f32 %v17001_v41, %v5441_v33  ;;  %v17118_v11 = vadd.f32 1.0, %v8343_v37  ;;  %v6697_v15 = vadd.f32 %v6696_v5, %v6563_v12  ;;  %v6564_v19 = vpop.f32.mrf.mxu1  ;;  %v19616_v12 = vld [vmem:[#allocation23_spill] sm:$0xff]  ;;  %v19617_v5 = vld [vmem:[#allocation50_spill] sm:$0xff] }
 0x641   :  { %v5422_v57 = vsel %vm17046_vm6, %v17019_v63, %v5417_v1  ;;  %vm5444_vm3 = vweird.f32 %v16921_v23  ;;  %v5450_v24 = vand.u32 2147483648, %v16921_v23  ;;  %v5463_v6 = vand.u32 2147483647, %v16961_v8  ;;  %v6430_v33 = vpop.f32.mrf.mxu0 }
 0x642   :  { %19610 = vst [vmem:[#allocation19_spill] sm:$0xff] %v17115_v34  ;;  %v17134_v29 = vpop.eup %8346  ;;  %v5432_v63 = vsel %vm17127_vm12, %v16958_v43, %v5428_v26  ;;  %vm17139_vm4 = vcmp.eq.f32.partialorder %v5448_v49, 8.507059e+37  ;;  %v5465_v3 = vand.u32 2147483648, %v16961_v8  ;;  %8350 = vpow2.f32 %v7305_v46 }
 0x643   :  { %v7306_v54 = vmul.f32 -1.442695, %v17110_v61  ;;  %v5457_v17 = vmul.f32 %v17044_v55, %v5456_v18  ;;  %8352 = vrcp.f32 %v17112_v4  ;;  %v17147_v9 = vadd.f32 1.0, %v8345_v50  ;;  %v19618_v50 = vld [vmem:[#allocation22_spill] sm:$0xff] }
 0x644   :  { %v6831_v36 = vadd.f32 %v6830_v0, %v6697_v15  ;;  %v5443_v43 = vadd.f32 %v17001_v41, %v5442_v22  ;;  %vm5445_vm15 = vweird.f32 %v17001_v41  ;;  %8354 = vrcp.f32 %v17118_v11  ;;  %v19623_v0 = vld [vmem:[#allocation51_spill] sm:$0xff]  ;;  %v19652_v61 = vld [vmem:[#allocation74_spill] sm:$0xff] }
 0x645   :  { %v6431_v37 = vadd.f32 %v17024_v40, %v6430_v33  ;;  %v8349_v7 = vpop.eup %8348  ;;  %v5437_v1 = vsel %vm17092_vm14, %v5436_v58, %v5432_v63  ;;  %vm5460_vm0 = vweird.f32 %v17044_v55  ;;  %v5470_v49 = vmul.f32 %v17134_v29, %v17053_v32  ;;  %vm17165_vm1 = vmor %vm5444_vm3, %vm5445_vm15  ;;  %v6698_v15 = vpop.f32.mrf.mxu2  ;;  %v19622_v63 = vld [vmem:[#allocation57_spill] sm:$0xff] }
 0x646   :  { %v5480_v26 = vand.u32 2147483648, %v17053_v32  ;;  %6937 = vst [vmem:[#allocation11 + $0x60] sm:$0xff] %v6831_v36  ;;  %8356 = vpow2.f32 %v7306_v54  ;;  %v6093_v18 = vpack.c.bf16 %v19616_v12, %v19615_v20  ;;  %v6094_v22 = vpack.c.bf16 %v19618_v50, %v19617_v5  ;;  %v19624_v36 = vld [vmem:[#allocation64_spill] sm:$0xff] }
 0x647   :  { %v6565_v46 = vadd.f32 %v6564_v19, %v6431_v37  ;;  %v5458_v58 = vadd.f32 %v17044_v55, %v5457_v17  ;;  %8358 = vrcp.f32 %v17147_v9  ;;  %v6095_v54 = vpack.c.bf16 %v19622_v63, %v19621_v13  ;;  %v19631_v63 = vld [vmem:[#allocation81_spill] sm:$0xff] }
 0x648   :  { %v6096_v33 = vpack.c.bf16 %v19624_v36, %v19623_v0  ;;  %v8351_v19 = vpop.eup %8350  ;;  %v5447_v23 = vsel %vm17165_vm1, %v17001_v41, %v5443_v43  ;;  %v5451_v37 = vor.u32 1.1754944e-38, %v5450_v24  ;;  %v17178_v20 = vadd.f32 1.0, %v8349_v7  ;;  %6477 = vmatmul.bf16.gmra.mxu0 %v6093_v18  ;;  %6611 = vmatmul.bf16.gmra.mxu1 %v6094_v22  ;;  %v6567_v18 = vpop.f32.mrf.mxu1 }
 0x649   :  { %v6699_v12 = vadd.f32 %v6698_v15, %v6565_v46  ;;  %v17180_v17 = vpop.eup %8352  ;;  %v17183_v5 = vmul.f32 %v5422_v57, %v16710_v28  ;;  %vm5459_vm2 = vweird.f32 %v16961_v8  ;;  %vm17186_vm9 = vcmp.eq.f32.partialorder %v5463_v6, 8.507059e+37  ;;  %6745 = vmatmul.bf16.gmra.mxu2 %v6095_v54  ;;  %v6832_v6 = vpop.f32.mrf.mxu3 }
 0x64a   :  { %v5471_v13 = vsub.f32 1.0, %v5470_v49  ;;  %6879 = vmatmul.bf16.gmra.mxu3 %v6096_v33  ;;  %v17190_v41 = vpop.eup %8354  ;;  %v17193_v24 = vmul.f32 %v5437_v1, %v16762_v45  ;;  %vm17197_vm5 = vmor %vm5459_vm2, %vm5460_vm0  ;;  %v5466_v28 = vor.u32 1.1754944e-38, %v5465_v3  ;;  %v5478_v8 = vand.u32 2147483647, %v17053_v32  ;;  %v6433_v46 = vpop.f32.mrf.mxu0 }
 0x64b   :  { %19625 = vst [vmem:[#allocation25_spill] sm:$0xff] %v17183_v5  ;;  %v5495_v57 = vand.u32 2147483648, %v17112_v4  ;;  %v5452_v7 = vsel %vm17139_vm4, %v5451_v37, %v5447_v23  ;;  %v5462_v45 = vsel %vm17197_vm5, %v17044_v55, %v5458_v58  ;;  %vm5474_vm6 = vweird.f32 %v17053_v32 }
 0x64c   :  { %19628 = vst [vmem:[#allocation109_spill] sm:$0xff] %v17193_v24  ;;  %v17209_v1 = vor.u32 1.1754944e-38, %v5480_v26  ;;  %v6833_v49 = vadd.f32 %v6832_v6, %v6699_v12  ;;  %v8357_v3 = vpop.eup %8356  ;;  %v5485_v22 = vmul.f32 %v17180_v17, %v17112_v4  ;;  %8360 = vrcp.f32 %v17178_v20  ;;  %v19650_v24 = vld [vmem:[#allocation72_spill] sm:$0xff] }
 0x64d   :  { %v17214_v60 = vadd.f32 1.0, %v8351_v19  ;;  %v6434_v56 = vadd.f32 %v17024_v40, %v6433_v46  ;;  %v17217_v15 = vpop.eup %8358  ;;  %v5472_v55 = vmul.f32 %v17134_v29, %v5471_v13  ;;  %v5493_v26 = vand.u32 2147483647, %v17112_v4  ;;  %v6701_v13 = vpop.f32.mrf.mxu2 }
 0x64e   :  { %v5500_v58 = vmul.f32 %v17190_v41, %v17118_v11  ;;  %v17225_v54 = vadd.f32 %v19631_v63, %v9160_v31  ;;  %6938 = vst [vmem:[#allocation11 + $0x68] sm:$0xff] %v6833_v49  ;;  %v17228_v0 = vmul.f32 %v5452_v7, %v16812_v2  ;;  %v17230_v36 = vor.u32 1.1754944e-38, %v5495_v57  ;;  %v19659_v7 = vld [vmem:[#allocation38_spill] sm:$0xff] }
 0x64f   :  { %v5510_v33 = vand.u32 2147483648, %v17118_v11  ;;  %v6568_v19 = vadd.f32 %v6567_v18, %v6434_v56  ;;  %v5467_v23 = vsel %vm17186_vm9, %v5466_v28, %v5462_v45  ;;  %vm5475_vm7 = vweird.f32 %v17134_v29 }
 0x650   :  { %19632 = vst [vmem:[#allocation48_spill] sm:$0xff] %v17225_v54  ;;  %v5508_v37 = vand.u32 2147483647, %v17118_v11  ;;  %v17237_v12 = vadd.f32 1.0, %v8357_v3  ;;  %v5486_v43 = vsub.f32 1.0, %v5485_v22  ;;  %v5515_v2 = vmul.f32 %v17217_v15, %v17147_v9  ;;  %vm17272_vm14 = vmor %vm5474_vm6, %vm5475_vm7 }
 0x651   :  { %19633 = vst [vmem:[#allocation56_spill] sm:$0xff] %v17228_v0  ;;  %8362 = vrcp.f32 %v17214_v60  ;;  %v6702_v57 = vadd.f32 %v6701_v13, %v6568_v19  ;;  %v5473_v6 = vadd.f32 %v17134_v29, %v5472_v55  ;;  %vm17243_vm10 = vcmp.eq.f32.partialorder %v5478_v8, 8.507059e+37  ;;  %v19637_v8 = vld [vmem:[#allocation80_spill] sm:$0xff]  ;;  %v6835_v22 = vpop.f32.mrf.mxu3  ;;  %v19639_v55 = vld [vmem:[#allocation41_spill] sm:$0xff]  ;;  %v6569_v19 = vpop.f32.mrf.mxu1 }
 0x652   :  { %v5501_v50 = vsub.f32 1.0, %v5500_v58  ;;  %v5523_v28 = vand.u32 2147483647, %v17147_v9  ;;  %v7307_v45 = vmul.f32 -1.442695, %v17225_v54  ;;  %v17249_v49 = vpop.eup %8360  ;;  %v17252_v46 = vmul.f32 %v5467_v23, %v16842_v47  ;;  %v6435_v63 = vpop.f32.mrf.mxu0  ;;  %v19651_v54 = vld [vmem:[#allocation69_spill] sm:$0xff] }
 0x653   :  { %vm5489_vm8 = vweird.f32 %v17112_v4  ;;  %vm5490_vm11 = vweird.f32 %v17180_v17  ;;  %v17256_v18 = vor.u32 1.1754944e-38, %v5510_v33  ;;  %v17260_v3 = vadd.f32 %v19637_v8, %v9142_v25  ;;  %v19646_v33 = vld [vmem:[#allocation71_spill] sm:$0xff]  ;;  %v19647_v8 = vld [vmem:[#allocation84_spill] sm:$0xff] }
 0x654   :  { %19636 = vst [vmem:[#allocation52_spill] sm:$0xff] %v17252_v46  ;;  %v5525_v56 = vand.u32 2147483648, %v17147_v9  ;;  %8364 = vrcp.f32 %v17237_v12  ;;  %v17266_v58 = vadd.f32 %v19639_v55, %v9147_v14  ;;  %v6836_v47 = vadd.f32 %v6835_v22, %v6702_v57  ;;  %vm17332_vm2 = vmor %vm5489_vm8, %vm5490_vm11 }
 0x655   :  { %19638 = vst [vmem:[#allocation29_spill] sm:$0xff] %v17260_v3  ;;  %v5487_v23 = vmul.f32 %v17180_v17, %v5486_v43  ;;  %v5516_v13 = vsub.f32 1.0, %v5515_v2  ;;  %v6436_v46 = vadd.f32 %v17024_v40, %v6435_v63  ;;  %v5477_v57 = vsel %vm17272_vm14, %v17134_v29, %v5473_v6  ;;  %v19644_v6 = vld [vmem:[#allocation61_spill] sm:$0xff] }
 0x656   :  { %v5502_v22 = vmul.f32 %v17190_v41, %v5501_v50  ;;  %vm5504_vm13 = vweird.f32 %v17118_v11  ;;  %v5530_v32 = vmul.f32 %v17249_v49, %v17178_v20  ;;  %8366 = vpow2.f32 %v7307_v45  ;;  %6939 = vst [vmem:[#allocation11 + $0x70] sm:$0xff] %v6836_v47  ;;  %v19645_v50 = vld [vmem:[#allocation78_spill] sm:$0xff] }
 0x657   :  { %v17286_v55 = vpop.eup %8362  ;;  %vm17288_vm12 = vcmp.eq.f32.partialorder %v5493_v26, 8.507059e+37  ;;  %vm5519_vm3 = vweird.f32 %v17147_v9  ;;  %v7308_v2 = vmul.f32 -1.442695, %v17260_v3  ;;  %v6570_v29 = vadd.f32 %v6569_v19, %v6436_v46  ;;  %v19648_v47 = vld [vmem:[#allocation82_spill] sm:$0xff]  ;;  %v6703_v26 = vpop.f32.mrf.mxu2 }
 0x658   :  { %v6097_v63 = vpack.c.bf16 %v19645_v50, %v19644_v6  ;;  %v6098_v34 = vpack.c.bf16 %v19647_v8, %v19646_v33  ;;  %v7309_v45 = vmul.f32 -1.442695, %v17266_v58  ;;  %v17301_v0 = vadd.f32 %v19648_v47, %v9155_v48  ;;  %v19660_v47 = vld [vmem:[#allocation18_spill] sm:$0xff] }
 0x659   :  { %v6099_v5 = vpack.c.bf16 %v19650_v24, %v19649_v52  ;;  %v6100_v3 = vpack.c.bf16 %v19652_v61, %v19651_v54  ;;  %v5488_v46 = vadd.f32 %v17180_v17, %v5487_v23  ;;  %v5517_v19 = vmul.f32 %v17217_v15, %v5516_v13  ;;  %v19671_v11 = vld [vmem:[#allocation86_spill] sm:$0xff] }
 0x65a   :  { %v5540_v6 = vand.u32 2147483648, %v17178_v20  ;;  %v6704_v8 = vadd.f32 %v6703_v26, %v6570_v29  ;;  %6482 = vmatmul.bf16.gmra.mxu0 %v6097_v63  ;;  %6616 = vmatmul.bf16.gmra.mxu1 %v6098_v34  ;;  %v17310_v50 = vpop.eup %8364  ;;  %vm5505_vm4 = vweird.f32 %v17190_v41  ;;  %vm17313_vm15 = vcmp.eq.f32.partialorder %v5508_v37, 8.507059e+37  ;;  %v6438_v13 = vpop.f32.mrf.mxu0 }
 0x65b   :  { %v5526_v52 = vor.u32 1.1754944e-38, %v5525_v56  ;;  %v5531_v24 = vsub.f32 1.0, %v5530_v32  ;;  %v5545_v61 = vmul.f32 %v17286_v55, %v17214_v60  ;;  %6750 = vmatmul.bf16.gmra.mxu2 %v6099_v5  ;;  %6884 = vmatmul.bf16.gmra.mxu3 %v6100_v3  ;;  %v5482_v54 = vsel %vm17243_vm10, %v17209_v1, %v5477_v57  ;;  %v6837_v56 = vpop.f32.mrf.mxu3  ;;  %v6572_v57 = vpop.f32.mrf.mxu1  ;;  %vm17363_vm5 = vmor %vm5504_vm13, %vm5505_vm4 }
 0x65c   :  { %v5503_v34 = vadd.f32 %v17190_v41, %v5502_v22  ;;  %vm5520_vm0 = vweird.f32 %v17217_v15  ;;  %vm17324_vm1 = vcmp.eq.f32.partialorder %v5523_v28, 8.507059e+37  ;;  %8368 = vpow2.f32 %v7308_v2  ;;  %v8367_v23 = vpop.eup %8366 }
 0x65d   :  { %vm5534_vm9 = vweird.f32 %v17178_v20  ;;  %8370 = vpow2.f32 %v7309_v45  ;;  %v7310_v1 = vmul.f32 -1.442695, %v17301_v0  ;;  %v17340_v28 = vadd.f32 %v19659_v7, %v9160_v31  ;;  %vm17382_vm6 = vmor %vm5519_vm3, %vm5520_vm0 }
 0x65e   :  { %v6838_v3 = vadd.f32 %v6837_v56, %v6704_v8  ;;  %v5492_v4 = vsel %vm17332_vm2, %v17180_v17, %v5488_v46  ;;  %v5518_v22 = vadd.f32 %v17217_v15, %v5517_v19  ;;  %v5560_v32 = vmul.f32 %v17310_v50, %v17237_v12  ;;  %v19663_v19 = vld [vmem:[#allocation75_spill] sm:$0xff] }
 0x65f   :  { %v6439_v2 = vadd.f32 %v17024_v40, %v6438_v13  ;;  %v5532_v29 = vmul.f32 %v17249_v49, %v5531_v24  ;;  %v17350_v63 = vor.u32 1.1754944e-38, %v5540_v6  ;;  %v5546_v45 = vsub.f32 1.0, %v5545_v61  ;;  %v6706_v56 = vpop.f32.mrf.mxu2 }
 0x660   :  { %v17354_v26 = vadd.f32 %v19660_v47, %v9142_v25  ;;  %6940 = vst [vmem:[#allocation11 + $0x78] sm:$0xff] %v6838_v3  ;;  %v17357_v8 = vmul.f32 %v5482_v54, %v16902_v44  ;;  %v5553_v46 = vand.u32 2147483647, %v17214_v60  ;;  %v17370_v6 = vadd.f32 %v19663_v19, %v9147_v14 }
 0x661   :  { %v6573_v24 = vadd.f32 %v6572_v57, %v6439_v2  ;;  %v5497_v44 = vsel %vm17288_vm12, %v17230_v36, %v5492_v4  ;;  %v5507_v61 = vsel %vm17363_vm5, %v17190_v41, %v5503_v34  ;;  %8372 = vpow2.f32 %v7310_v1 }
 0x662   :  { %v7311_v54 = vmul.f32 -1.442695, %v17340_v28  ;;  %v8369_v5 = vpop.eup %8368  ;;  %v5522_v36 = vsel %vm17382_vm6, %v17217_v15, %v5518_v22  ;;  %v5561_v43 = vsub.f32 1.0, %v5560_v32  ;;  %v17390_v7 = vadd.f32 1.0, %v8367_v23 }
 0x663   :  { %v6707_v41 = vadd.f32 %v6706_v56, %v6573_v24  ;;  %v8371_v34 = vpop.eup %8370  ;;  %v5533_v9 = vadd.f32 %v17249_v49, %v5532_v29  ;;  %vm5535_vm7 = vweird.f32 %v17249_v49  ;;  %v19666_v3 = vand.u32 2147483647, %v17178_v20  ;;  %v6840_v22 = vpop.f32.mrf.mxu3 }
 0x664   :  { %v5547_v13 = vmul.f32 %v17286_v55, %v5546_v45  ;;  %v7312_v57 = vmul.f32 -1.442695, %v17354_v26  ;;  %v5512_v15 = vsel %vm17313_vm15, %v17256_v18, %v5507_v61  ;;  %vm5550_vm8 = vweird.f32 %v17286_v55  ;;  %v6440_v45 = vpop.f32.mrf.mxu0  ;;  %v6574_v47 = vpop.f32.mrf.mxu1  ;;  %vm17416_vm11 = vmor %vm5534_vm9, %vm5535_vm7 }
 0x665   :  { %vm17396_vm10 = vcmp.eq.f32.partialorder %v19666_v3, 8.507059e+37  ;;  %v5555_v23 = vand.u32 2147483648, %v17214_v60  ;;  %v7313_v4 = vmul.f32 -1.442695, %v17370_v6  ;;  %v5527_v32 = vsel %vm17324_vm1, %v5526_v52, %v5522_v36  ;;  %v19674_v36 = vld [vmem:[#allocation94_spill] sm:$0xff]  ;;  %v19677_v3 = vld [vmem:[#allocation85_spill] sm:$0xff] }
 0x666   :  { %v17410_v2 = vadd.f32 1.0, %v8369_v5  ;;  %8374 = vpow2.f32 %v7311_v54  ;;  %v6841_v29 = vadd.f32 %v6840_v22, %v6707_v41  ;;  %v5562_v33 = vmul.f32 %v17310_v50, %v5561_v43  ;;  %v19672_v54 = vld [vmem:[#allocation47_spill] sm:$0xff] }
 0x667   :  { %8376 = vrcp.f32 %v17390_v7  ;;  %v17422_v37 = vadd.f32 1.0, %v8371_v34  ;;  %v6441_v52 = vadd.f32 %v17024_v40, %v6440_v45  ;;  %v8373_v17 = vpop.eup %8372  ;;  %v5537_v19 = vsel %vm17416_vm11, %v17249_v49, %v5533_v9  ;;  %v19673_v5 = vld [vmem:[#allocation39_spill] sm:$0xff]  ;;  %v6708_v41 = vpop.f32.mrf.mxu2  ;;  %v19676_v34 = vld [vmem:[#allocation90_spill] sm:$0xff] }
 0x668   :  { %v5548_v24 = vadd.f32 %v17286_v55, %v5547_v13  ;;  %v5568_v20 = vand.u32 2147483647, %v17237_v12  ;;  %8378 = vpow2.f32 %v7312_v57  ;;  %6941 = vst [vmem:[#allocation11 + $0x80] sm:$0xff] %v6841_v29  ;;  %v6101_v56 = vpack.c.bf16 %v19672_v54, %v19671_v11  ;;  %v19675_v49 = vld [vmem:[#allocation87_spill] sm:$0xff] }
 0x669   :  { %8380 = vpow2.f32 %v7313_v4  ;;  %v6575_v61 = vadd.f32 %v6574_v47, %v6441_v52  ;;  %v6102_v43 = vpack.c.bf16 %v19674_v36, %v19673_v5  ;;  %vm5565_vm14 = vweird.f32 %v17310_v50  ;;  %v19678_v13 = vld [vmem:[#allocation95_spill] sm:$0xff] }
 0x66a   :  { %8382 = vrcp.f32 %v17410_v2  ;;  %v6103_v9 = vpack.c.bf16 %v19676_v34, %v19675_v49  ;;  %v6104_v57 = vpack.c.bf16 %v19678_v13, %v19677_v3  ;;  %v5563_v4 = vadd.f32 %v17310_v50, %v5562_v33  ;;  %6487 = vmatmul.bf16.gmra.mxu0 %v6101_v56 }
 0x66b   :  { %8384 = vrcp.f32 %v17422_v37  ;;  %v17442_v22 = vadd.f32 1.0, %v8373_v17  ;;  %v6709_v29 = vadd.f32 %v6708_v41, %v6575_v61  ;;  %6621 = vmatmul.bf16.gmra.mxu1 %v6102_v43  ;;  %v17445_v47 = vmul.f32 %v5497_v44, %v16965_v53  ;;  %v6842_v44 = vpop.f32.mrf.mxu3 }
 0x66c   :  { %v8375_v45 = vpop.eup %8374  ;;  %vm5549_vm13 = vweird.f32 %v17214_v60  ;;  %vm17448_vm12 = vcmp.eq.f32.partialorder %v5553_v46, 8.507059e+37  ;;  %v5570_v52 = vand.u32 2147483648, %v17237_v12  ;;  %6755 = vmatmul.bf16.gmra.mxu2 %v6103_v9  ;;  %6889 = vmatmul.bf16.gmra.mxu3 %v6104_v57  ;;  %v17456_v17 = vmul.f32 %v5512_v15, %v16972_v16  ;;  %v6443_v15 = vpop.f32.mrf.mxu0 }
 0x66d   :  { %19679 = vst [vmem:[#allocation32_spill] sm:$0xff] %v17445_v47  ;;  %v17453_v33 = vpop.eup %8376  ;;  %v5542_v53 = vsel %vm17396_vm10, %v17350_v63, %v5537_v19  ;;  %vm17463_vm3 = vmor %vm5549_vm13, %vm5550_vm8  ;;  %v5556_v46 = vor.u32 1.1754944e-38, %v5555_v23  ;;  %vm5564_vm4 = vweird.f32 %v17237_v12  ;;  %v17469_v11 = vmul.f32 %v5527_v32, %v16988_v51  ;;  %v6577_v23 = vpop.f32.mrf.mxu1 }
 0x66e   :  { %19682 = vst [vmem:[#allocation34_spill] sm:$0xff] %v17456_v17  ;;  %v8379_v61 = vpop.eup %8378  ;;  %v5552_v16 = vsel %vm17463_vm3, %v17286_v55, %v5548_v24  ;;  %vm17476_vm15 = vmor %vm5564_vm4, %vm5565_vm14  ;;  %vm17480_vm0 = vcmp.eq.f32.partialorder %v5568_v20, 8.507059e+37  ;;  %v6843_v12 = vadd.f32 %v6842_v44, %v6709_v29  ;;  %v5585_v55 = vand.u32 2147483648, %v17390_v7  ;;  %v19690_v29 = vld [vmem:[#allocation88_spill] sm:$0xff] }
 0x66f   :  { %19685 = vst [vmem:[#allocation110_spill] sm:$0xff] %v17469_v11  ;;  %v8381_v19 = vpop.eup %8380  ;;  %v5567_v51 = vsel %vm17476_vm15, %v17310_v50, %v5563_v4  ;;  %8386 = vrcp.f32 %v17442_v22  ;;  %v6444_v32 = vadd.f32 %v17024_v40, %v6443_v15  ;;  %v17493_v20 = vmul.f32 %v5542_v53, %v17038_v38  ;;  %v6711_v13 = vpop.f32.mrf.mxu2 }
 0x670   :  { %v17490_v24 = vpop.eup %8382  ;;  %v5571_v54 = vor.u32 1.1754944e-38, %v5570_v52  ;;  %v5575_v56 = vmul.f32 %v17453_v33, %v17390_v7  ;;  %v17497_v5 = vadd.f32 1.0, %v8375_v45  ;;  %6942 = vst [vmem:[#allocation11 + $0x88] sm:$0xff] %v6843_v12  ;;  %v17503_v50 = vsel %vm17448_vm12, %v5556_v46, %v5552_v16 }
 0x671   :  { %v17499_v36 = vpop.eup %8384  ;;  %v5600_v43 = vand.u32 2147483648, %v17410_v2  ;;  %v17506_v41 = vadd.f32 1.0, %v8379_v61  ;;  %v6578_v49 = vadd.f32 %v6577_v23, %v6444_v32  ;;  %v5583_v34 = vand.u32 2147483647, %v17390_v7  ;;  %v19698_v61 = vld [vmem:[#allocation102_spill] sm:$0xff] }
 0x672   :  { %v17510_v38 = vsel %vm17480_vm0, %v5571_v54, %v5567_v51  ;;  %v5615_v9 = vand.u32 2147483648, %v17422_v37  ;;  %v17514_v3 = vadd.f32 1.0, %v8381_v19  ;;  %v17516_v57 = vor.u32 1.1754944e-38, %v5585_v55  ;;  %v19692_v55 = vld [vmem:[#allocation45_spill] sm:$0xff] }
 0x673   :  { %v17521_v45 = vadd.f32 %v19690_v29, %v9155_v48  ;;  %v6712_v18 = vadd.f32 %v6711_v13, %v6578_v49  ;;  %v5576_v52 = vsub.f32 1.0, %v5575_v56  ;;  %v5590_v53 = vmul.f32 %v17490_v24, %v17410_v2  ;;  %v6845_v16 = vpop.f32.mrf.mxu3  ;;  %v19694_v13 = vld [vmem:[#allocation44_spill] sm:$0xff] }
 0x674   :  { %v5605_v60 = vmul.f32 %v17499_v36, %v17422_v37  ;;  %8388 = vrcp.f32 %v17497_v5  ;;  %vm5580_vm1 = vweird.f32 %v17453_v33  ;;  %v17531_v44 = vor.u32 1.1754944e-38, %v5600_v43  ;;  %v6445_v15 = vpop.f32.mrf.mxu0 }
 0x675   :  { %19691 = vst [vmem:[#allocation113_spill] sm:$0xff] %v17521_v45  ;;  %v17528_v46 = vpop.eup %8386  ;;  %8390 = vrcp.f32 %v17506_v41  ;;  %vm5579_vm2 = vweird.f32 %v17390_v7  ;;  %v17536_v63 = vor.u32 1.1754944e-38, %v5615_v9  ;;  %v6846_v12 = vadd.f32 %v6845_v16, %v6712_v18  ;;  %v6579_v23 = vpop.f32.mrf.mxu1  ;;  %v19696_v16 = vld [vmem:[#allocation98_spill] sm:$0xff] }
 0x676   :  { %8392 = vrcp.f32 %v17514_v3  ;;  %v5630_v19 = vand.u32 2147483648, %v17442_v22  ;;  %v7314_v51 = vmul.f32 -1.442695, %v17521_v45  ;;  %v17544_v32 = vadd.f32 %v19692_v55, %v9160_v31  ;;  %vm17599_vm8 = vmor %vm5579_vm2, %vm5580_vm1 }
 0x677   :  { %v6446_v54 = vadd.f32 %v17024_v40, %v6445_v15  ;;  %v5577_v56 = vmul.f32 %v17453_v33, %v5576_v52  ;;  %v5591_v43 = vsub.f32 1.0, %v5590_v53  ;;  %v5606_v49 = vsub.f32 1.0, %v5605_v60  ;;  %6943 = vst [vmem:[#allocation11 + $0x90] sm:$0xff] %v6846_v12  ;;  %v6713_v60 = vpop.f32.mrf.mxu2  ;;  %v19697_v12 = vld [vmem:[#allocation60_spill] sm:$0xff] }
 0x678   :  { %19693 = vst [vmem:[#allocation67_spill] sm:$0xff] %v17544_v32  ;;  %v5620_v9 = vmul.f32 %v17528_v46, %v17442_v22  ;;  %v17552_v29 = vadd.f32 %v19694_v13, %v9142_v25  ;;  %v6105_v1 = vpack.c.bf16 %v16538_v42, %v19696_v16  ;;  %v6106_v55 = vpack.c.bf16 %v16541_v59, %v16526_v39 }
 0x679   :  { %v6580_v18 = vadd.f32 %v6579_v23, %v6446_v54  ;;  %vm5594_vm9 = vweird.f32 %v17410_v2  ;;  %v5645_v53 = vand.u32 2147483648, %v17497_v5  ;;  %v6107_v13 = vpack.c.bf16 %v19697_v12, %v16529_v10  ;;  %v19699_v23 = vld [vmem:[#allocation103_spill] sm:$0xff] }
 0x67a   :  { %19695 = vst [vmem:[#allocation114_spill] sm:$0xff] %v17552_v29  ;;  %v17558_v15 = vpop.eup %8388  ;;  %v6108_v54 = vpack.c.bf16 %v19699_v23, %v19698_v61  ;;  %vm17569_vm5 = vcmp.eq.f32.partialorder %v5583_v34, 8.507059e+37  ;;  %vm5595_vm6 = vweird.f32 %v17490_v24  ;;  %vm5609_vm7 = vweird.f32 %v17422_v37  ;;  %6492 = vmatmul.bf16.gmra.mxu0 %v6105_v1 }
 0x67b   :  { %v17567_v4 = vpop.eup %8390  ;;  %8394 = vpow2.f32 %v7314_v51  ;;  %v7315_v39 = vmul.f32 -1.442695, %v17544_v32  ;;  %v6714_v59 = vadd.f32 %v6713_v60, %v6580_v18  ;;  %6626 = vmatmul.bf16.gmra.mxu1 %v6106_v55  ;;  %v5578_v61 = vadd.f32 %v17453_v33, %v5577_v56  ;;  %v6847_v55 = vpop.f32.mrf.mxu3  ;;  %vm17629_vm13 = vmor %vm5594_vm9, %vm5595_vm6 }
 0x67c   :  { %v17576_v10 = vpop.eup %8392  ;;  %v5592_v16 = vmul.f32 %v17490_v24, %v5591_v43  ;;  %v5607_v34 = vmul.f32 %v17499_v36, %v5606_v49  ;;  %v17581_v12 = vor.u32 1.1754944e-38, %v5630_v19  ;;  %6760 = vmatmul.bf16.gmra.mxu2 %v6107_v13  ;;  %6894 = vmatmul.bf16.gmra.mxu3 %v6108_v54  ;;  %vm5610_vm10 = vweird.f32 %v17499_v36  ;;  %v19702_v43 = vld [vmem:[#allocation46_spill] sm:$0xff]  ;;  %v6448_v13 = vpop.f32.mrf.mxu0  ;;  %v19706_v54 = vld [vmem:[#allocation17_spill] sm:$0xff] }
 0x67d   :  { %v5621_v51 = vsub.f32 1.0, %v5620_v9  ;;  %v5635_v18 = vmul.f32 %v17558_v15, %v17497_v5  ;;  %v7316_v1 = vmul.f32 -1.442695, %v17552_v29  ;;  %v17587_v60 = vor.u32 1.1754944e-38, %v5645_v53  ;;  %v6582_v23 = vpop.f32.mrf.mxu1  ;;  %vm17644_vm3 = vmor %vm5609_vm7, %vm5610_vm10 }
 0x67e   :  { %v5650_v56 = vmul.f32 %v17567_v4, %v17506_v41  ;;  %v17593_v19 = vadd.f32 %v19702_v43, %v9147_v14  ;;  %v6848_v49 = vadd.f32 %v6847_v55, %v6714_v59  ;;  %v5665_v53 = vmul.f32 %v17576_v10, %v17514_v3 }
 0x67f   :  { %8396 = vpow2.f32 %v7315_v39  ;;  %v17607_v52 = vadd.f32 %v19706_v54, %v9155_v48  ;;  %v6449_v59 = vadd.f32 %v17024_v40, %v6448_v13  ;;  %v5582_v55 = vsel %vm17599_vm8, %v17453_v33, %v5578_v61 }
 0x680   :  { %19703 = vst [vmem:[#allocation111_spill] sm:$0xff] %v17593_v19  ;;  %v17614_v7 = vadd.f32 %v17490_v24, %v5592_v16  ;;  %v17617_v43 = vadd.f32 %v17499_v36, %v5607_v34  ;;  %v5660_v29 = vand.u32 2147483648, %v17506_v41  ;;  %v5622_v32 = vmul.f32 %v17528_v46, %v5621_v51  ;;  %v6716_v34 = vpop.f32.mrf.mxu2 }
 0x681   :  { %19707 = vst [vmem:[#allocation28_spill] sm:$0xff] %v17607_v52  ;;  %v8395_v39 = vpop.eup %8394  ;;  %v5636_v54 = vsub.f32 1.0, %v5635_v18  ;;  %8398 = vpow2.f32 %v7316_v1  ;;  %v6583_v45 = vadd.f32 %v6582_v23, %v6449_v59  ;;  %vm5624_vm11 = vweird.f32 %v17442_v22 }
 0x682   :  { %6944 = vst [vmem:[#allocation11 + $0x98] sm:$0xff] %v6848_v49  ;;  %vm5625_vm14 = vweird.f32 %v17528_v46  ;;  %v5651_v33 = vsub.f32 1.0, %v5650_v56  ;;  %v5658_v61 = vand.u32 2147483647, %v17506_v41  ;;  %v7317_v16 = vmul.f32 -1.442695, %v17593_v19 }
 0x683   :  { %vm5640_vm12 = vweird.f32 %v17558_v15  ;;  %v5666_v51 = vsub.f32 1.0, %v5665_v53  ;;  %v7318_v18 = vmul.f32 -1.442695, %v17607_v52  ;;  %v6717_v1 = vadd.f32 %v6716_v34, %v6583_v45  ;;  %v19712_v53 = vld [vmem:[#allocation89_spill] sm:$0xff]  ;;  %vm17737_vm10 = vmor %vm5624_vm11, %vm5625_vm14 }
 0x684   :  { %v17638_v56 = vsel %vm17569_vm5, %v17516_v57, %v5582_v55  ;;  %v17648_v23 = vor.u32 1.1754944e-38, %v5660_v29  ;;  %v17650_v9 = vadd.f32 1.0, %v8395_v39  ;;  %v17654_v45 = vadd.f32 %v19712_v53, %v9160_v31  ;;  %v6850_v39 = vpop.f32.mrf.mxu3  ;;  %v6450_v42 = vpop.f32.mrf.mxu0  ;;  %v19750_v49 = vld [vmem:[#allocation53_spill] sm:$0xff] }
 0x685   :  { %v8397_v59 = vpop.eup %8396  ;;  %v17665_v29 = vadd.f32 %v17528_v46, %v5622_v32  ;;  %v5637_v55 = vmul.f32 %v17558_v15, %v5636_v54  ;;  %vm5639_vm4 = vweird.f32 %v17497_v5  ;;  %v19713_v34 = vand.u32 2147483647, %v17410_v2  ;;  %v6584_v2 = vpop.f32.mrf.mxu1 }
 0x686   :  { %v19716_v57 = vand.u32 2147483647, %v17422_v37  ;;  %v5652_v32 = vmul.f32 %v17567_v4, %v5651_v33  ;;  %vm5654_vm1 = vweird.f32 %v17506_v41  ;;  %vm5655_vm2 = vweird.f32 %v17567_v4  ;;  %v19722_v33 = vld [vmem:[#allocation93_spill] sm:$0xff]  ;;  %vm17760_vm11 = vmor %vm5639_vm4, %vm5640_vm12 }
 0x687   :  { %vm17671_vm15 = vcmp.eq.f32.partialorder %v19713_v34, 8.507059e+37  ;;  %8400 = vpow2.f32 %v7317_v16  ;;  %v6851_v54 = vadd.f32 %v6850_v39, %v6717_v1  ;;  %v8399_v34 = vpop.eup %8398  ;;  %v19719_v19 = vand.u32 2147483647, %v17442_v22  ;;  %v19723_v39 = vld [vmem:[#allocation76_spill] sm:$0xff]  ;;  %vm17787_vm14 = vmor %vm5654_vm1, %vm5655_vm2 }
 0x688   :  { %vm17677_vm0 = vcmp.eq.f32.partialorder %v19716_v57, 8.507059e+37  ;;  %v5667_v37 = vmul.f32 %v17576_v10, %v5666_v51  ;;  %vm5669_vm5 = vweird.f32 %v17514_v3  ;;  %8402 = vpow2.f32 %v7318_v18  ;;  %v19724_v51 = vld [vmem:[#allocation91_spill] sm:$0xff] }
 0x689   :  { %vm17686_vm9 = vcmp.eq.f32.partialorder %v19719_v19, 8.507059e+37  ;;  %v17694_v57 = vadd.f32 %v19722_v33, %v9142_v25  ;;  %v6451_v16 = vadd.f32 %v17024_v40, %v6450_v42  ;;  %8404 = vrcp.f32 %v17650_v9  ;;  %6945 = vst [vmem:[#allocation11 + $0xa0] sm:$0xff] %v6851_v54 }
 0x68a   :  { %v17698_v1 = vadd.f32 1.0, %v8397_v59  ;;  %v7319_v19 = vmul.f32 -1.442695, %v17654_v45  ;;  %v17703_v17 = vadd.f32 %v19723_v39, %v9147_v14  ;;  %v17707_v18 = vadd.f32 %v19724_v51, %v9155_v48  ;;  %v19730_v48 = vld [vmem:[#allocation100_spill] sm:$0xff]  ;;  %v19734_v39 = vld [vmem:[#allocation66_spill] sm:$0xff] }
 0x68b   :  { %v6585_v47 = vadd.f32 %v6584_v2, %v6451_v16  ;;  %v6109_v25 = vpack.c.bf16 %v16807_v30, %v16713_v62  ;;  %v6110_v42 = vpack.c.bf16 %v16845_v21, %v16721_v35  ;;  %v19725_v59 = vand.u32 2147483647, %v17497_v5  ;;  %v6718_v62 = vpop.f32.mrf.mxu2  ;;  %v19731_v30 = vld [vmem:[#allocation99_spill] sm:$0xff]  ;;  %v19732_v16 = vld [vmem:[#allocation105_spill] sm:$0xff]  ;;  %v19733_v21 = vld [vmem:[#allocation104_spill] sm:$0xff] }
 0x68c   :  { %vm17719_vm7 = vcmp.eq.f32.partialorder %v5658_v61, 8.507059e+37  ;;  %v17723_v54 = vadd.f32 1.0, %v8399_v34  ;;  %v17727_v2 = vadd.f32 %v19730_v48, %v9160_v31  ;;  %v6111_v35 = vpack.c.bf16 %v19732_v16, %v19731_v30 }
 0x68d   :  { %vm17715_vm6 = vcmp.eq.f32.partialorder %v19725_v59, 8.507059e+37  ;;  %v6112_v51 = vpack.c.bf16 %v19734_v39, %v19733_v21  ;;  %v5638_v34 = vadd.f32 %v17558_v15, %v5637_v55  ;;  %v5673_v31 = vand.u32 2147483647, %v17514_v3  ;;  %6497 = vmatmul.bf16.gmra.mxu0 %v6109_v25  ;;  %6631 = vmatmul.bf16.gmra.mxu1 %v6110_v42  ;;  %v8401_v30 = vpop.eup %8400  ;;  %v6852_v25 = vpop.f32.mrf.mxu3 }
 0x68e   :  { %v7320_v59 = vmul.f32 -1.442695, %v17694_v57  ;;  %v6719_v48 = vadd.f32 %v6718_v62, %v6585_v47  ;;  %v5627_v16 = vsel %vm17737_vm10, %v17528_v46, %v17665_v29  ;;  %v5653_v22 = vadd.f32 %v17567_v4, %v5652_v32  ;;  %6765 = vmatmul.bf16.gmra.mxu2 %v6111_v35  ;;  %v8403_v55 = vpop.eup %8402  ;;  %v6587_v62 = vpop.f32.mrf.mxu1 }
 0x68f   :  { %8406 = vpow2.f32 %v7319_v19  ;;  %v7321_v21 = vmul.f32 -1.442695, %v17703_v17  ;;  %6899 = vmatmul.bf16.gmra.mxu3 %v6112_v51  ;;  %v5668_v39 = vadd.f32 %v17576_v10, %v5667_v37  ;;  %vm5670_vm8 = vweird.f32 %v17576_v10  ;;  %v17754_v42 = vpop.eup %8404  ;;  %v6453_v19 = vpop.f32.mrf.mxu0 }
 0x690   :  { %8408 = vrcp.f32 %v17698_v1  ;;  %v7322_v47 = vmul.f32 -1.442695, %v17707_v18  ;;  %v5675_v29 = vand.u32 2147483648, %v17514_v3  ;;  %v7323_v32 = vmul.f32 -1.442695, %v17727_v2 }
 0x691   :  { %8410 = vrcp.f32 %v17723_v54  ;;  %v6853_v37 = vadd.f32 %v6852_v25, %v6719_v48  ;;  %v19739_v35 = vsel %vm17629_vm13, %v17490_v24, %v17614_v7  ;;  %v19740_v51 = vsel %vm17644_vm3, %v17499_v36, %v17617_v43  ;;  %vm17805_vm13 = vmor %vm5669_vm5, %vm5670_vm8 }
 0x692   :  { %v5602_v5 = vsel %vm17671_vm15, %v17531_v44, %v19739_v35  ;;  %v5617_v61 = vsel %vm17677_vm0, %v17536_v63, %v19740_v51  ;;  %8412 = vpow2.f32 %v7320_v59  ;;  %v6454_v24 = vadd.f32 %v17024_v40, %v6453_v19  ;;  %v19745_v59 = vld [vmem:[#allocation108_spill] sm:$0xff]  ;;  %v19749_v51 = vld [vmem:[#allocation25_spill] sm:$0xff] }
 0x693   :  { %v5632_v44 = vsel %vm17686_vm9, %v17581_v12, %v5627_v16  ;;  %v5642_v36 = vsel %vm17760_vm11, %v17558_v15, %v5638_v34  ;;  %v5657_v63 = vsel %vm17787_vm14, %v17567_v4, %v5653_v22  ;;  %8414 = vpow2.f32 %v7321_v21  ;;  %6946 = vst [vmem:[#allocation11 + $0xa8] sm:$0xff] %v6853_v37  ;;  %v6721_v12 = vpop.f32.mrf.mxu2 }
 0x694   :  { %v5672_v40 = vsel %vm17805_vm13, %v17576_v10, %v5668_v39  ;;  %v17812_v11 = vadd.f32 1.0, %v8401_v30  ;;  %8416 = vpow2.f32 %v7322_v47  ;;  %v6588_v15 = vadd.f32 %v6587_v62, %v6454_v24  ;;  %v19746_v30 = vld [vmem:[#allocation48_spill] sm:$0xff]  ;;  %v19751_v24 = vld [vmem:[#allocation109_spill] sm:$0xff] }
 0x695   :  { %v8407_v52 = vpop.eup %8406  ;;  %vm5674_vm12 = vcmp.eq.f32.partialorder %v5673_v31, 8.507059e+37  ;;  %v5676_v4 = vor.u32 1.1754944e-38, %v5675_v29  ;;  %v5680_v3 = vmul.f32 %v17754_v42, %v17650_v9  ;;  %8418 = vpow2.f32 %v7323_v32 }
 0x696   :  { %v17816_v7 = vpop.eup %8408  ;;  %v5647_v43 = vsel %vm17715_vm6, %v17587_v60, %v5642_v36  ;;  %v5662_v10 = vsel %vm17719_vm7, %v17648_v23, %v5657_v63  ;;  %v17824_v13 = vadd.f32 1.0, %v8403_v55  ;;  %v6722_v53 = vadd.f32 %v6721_v12, %v6588_v15  ;;  %v19747_v23 = vld [vmem:[#allocation29_spill] sm:$0xff]  ;;  %v6589_v25 = vpop.f32.mrf.mxu1  ;;  %v19753_v15 = vld [vmem:[#allocation56_spill] sm:$0xff] }
 0x697   :  { %v17826_v34 = vpop.eup %8410  ;;  %v17830_v31 = vmul.f32 %v17503_v50, %v17075_v27  ;;  %v17834_v48 = vmul.f32 %v17510_v38, %v19745_v59  ;;  %v17838_v60 = vmul.f32 %v17638_v56, %v19746_v30  ;;  %v5677_v33 = vsel %vm5674_vm12, %v5676_v4, %v5672_v40  ;;  %v6855_v27 = vpop.f32.mrf.mxu3  ;;  %v19752_v40 = vld [vmem:[#allocation107_spill] sm:$0xff] }
 0x698   :  { %v8413_v14 = vpop.eup %8412  ;;  %v17841_v16 = vmul.f32 %v5602_v5, %v19747_v23  ;;  %v17844_v22 = vmul.f32 %v5617_v61, %v17266_v58  ;;  %v17847_v21 = vmul.f32 %v5632_v44, %v17301_v0  ;;  %8420 = vrcp.f32 %v17812_v11  ;;  %v6455_v47 = vpop.f32.mrf.mxu0  ;;  %v19748_v5 = vld [vmem:[#allocation106_spill] sm:$0xff]  ;;  %v19754_v4 = vld [vmem:[#allocation19_spill] sm:$0xff] }
 0x699   :  { %v8415_v50 = vpop.eup %8414  ;;  %v17851_v38 = vmul.f32 %v5647_v43, %v17340_v28  ;;  %v17854_v56 = vmul.f32 %v5662_v10, %v17354_v26  ;;  %v5681_v55 = vsub.f32 1.0, %v5680_v3  ;;  %v6856_v39 = vadd.f32 %v6855_v27, %v6722_v53  ;;  %v17865_v28 = vld [vmem:[%s18229_s6] ss:$0 sm:$0xff]  ;;  %v19755_v3 = vld [vmem:[#allocation52_spill] sm:$0xff]  ;;  %s8626_s6 = smov [#allocation11]  }
 0x69a   :  { %v8417_v46 = vpop.eup %8416  ;;  %v17857_v58 = vmul.f32 %v5677_v33, %v17370_v6  ;;  %8422 = vrcp.f32 %v17824_v13  ;;  %v17860_v0 = vadd.f32 1.0, %v8407_v52  ;;  %v6456_v26 = vadd.f32 %v17865_v28, %v6455_v47  ;;  %s6979_s22 = sshll.u32 %s8626_s6, 4  ;;  %s6980_s22 = int_to_ptr.vmem [resolvable:$true] %s6979_s22 }
 0x69b   :  { %v8419_v29 = vpop.eup %8418  ;;  %v5688_v32 = vand.u32 2147483647, %v17650_v9  ;;  %v5690_v37 = vand.u32 2147483648, %v17650_v9  ;;  %v5695_v6 = vmul.f32 %v17816_v7, %v17698_v1  ;;  %v17872_v19 = vadd.f32 1.0, %v8413_v14  ;;  %6947 = vst [vmem:[#allocation11 + $0xb0] sm:$0xff] %v6856_v39  ;;  %v6723_v41 = vpop.f32.mrf.mxu2 }
 0x69c   :  { %vm5684_vm3 = vweird.f32 %v17650_v9  ;;  %v17875_v62 = vadd.f32 1.0, %v8415_v50  ;;  %v6590_v35 = vadd.f32 %v6589_v25, %v6456_v26  ;;  %v6113_v61 = vpack.c.bf16 %v19749_v51, %v19748_v5 }
 0x69d   :  { %v6114_v44 = vpack.c.bf16 %v19751_v24, %v19750_v49  ;;  %v5682_v36 = vmul.f32 %v17754_v42, %v5681_v55  ;;  %v17882_v63 = vadd.f32 1.0, %v8417_v46  ;;  %v6115_v52 = vpack.c.bf16 %v19753_v15, %v19752_v40 }
 0x69e   :  { %v6116_v12 = vpack.c.bf16 %v19755_v3, %v19754_v4  ;;  %v17888_v43 = vpop.eup %8420  ;;  %v5710_v10 = vmul.f32 %v17826_v34, %v17723_v54  ;;  %8424 = vrcp.f32 %v17860_v0  ;;  %v17893_v53 = vadd.f32 1.0, %v8419_v29  ;;  %6502 = vmatmul.bf16.gmra.mxu0 %v6113_v61  ;;  %v6592_v29 = vpop.f32.mrf.mxu1 }
 0x69f   :  { %v6724_v59 = vadd.f32 %v6723_v41, %v6590_v35  ;;  %6636 = vmatmul.bf16.gmra.mxu1 %v6114_v44  ;;  %v5691_v30 = vor.u32 1.1754944e-38, %v5690_v37  ;;  %v5696_v33 = vsub.f32 1.0, %v5695_v6  ;;  %v5703_v14 = vand.u32 2147483647, %v17698_v1  ;;  %6770 = vmatmul.bf16.gmra.mxu2 %v6115_v52  ;;  %v6857_v39 = vpop.f32.mrf.mxu3 }
 0x6a0   :  { %8426 = vrcp.f32 %v17872_v19  ;;  %6904 = vmatmul.bf16.gmra.mxu3 %v6116_v12  ;;  %v17897_v23 = vpop.eup %8422  ;;  %vm5685_vm4 = vweird.f32 %v17754_v42  ;;  %vm17900_vm15 = vcmp.eq.f32.partialorder %v5688_v32, 8.507059e+37  ;;  %v5705_v50 = vand.u32 2147483648, %v17698_v1  ;;  %v6458_v26 = vpop.f32.mrf.mxu0 }
 0x6a1   :  { %v5720_v55 = vand.u32 2147483648, %v17723_v54  ;;  %8428 = vrcp.f32 %v17875_v62  ;;  %v5725_v47 = vmul.f32 %v17888_v43, %v17812_v11  ;;  %v5735_v25 = vand.u32 2147483648, %v17812_v11  ;;  %vm17930_vm1 = vmor %vm5684_vm3, %vm5685_vm4 }
 0x6a2   :  { %8430 = vrcp.f32 %v17882_v63  ;;  %v6858_v46 = vadd.f32 %v6857_v39, %v6724_v59  ;;  %v5683_v32 = vadd.f32 %v17754_v42, %v5682_v36  ;;  %v5711_v37 = vsub.f32 1.0, %v5710_v10 }
 0x6a3   :  { %8432 = vrcp.f32 %v17893_v53  ;;  %v6459_v6 = vadd.f32 %v17865_v28, %v6458_v26  ;;  %v5697_v35 = vmul.f32 %v17816_v7, %v5696_v33  ;;  %vm5699_vm0 = vweird.f32 %v17698_v1  ;;  %v6726_v12 = vpop.f32.mrf.mxu2  ;;  %v19764_v26 = vld [vmem:[#allocation32_spill] sm:$0xff] }
 0x6a4   :  { %v5718_v5 = vand.u32 2147483647, %v17723_v54  ;;  %v5740_v51 = vmul.f32 %v17897_v23, %v17824_v13  ;;  %6948 = vst [vmem:[#allocation11 + $0xb8] sm:$0xff] %v6858_v46  ;;  %v17919_v61 = vpop.eup %8424  ;;  %v5706_v49 = vor.u32 1.1754944e-38, %v5705_v50  ;;  %v17921_v24 = vor.u32 1.1754944e-38, %v5720_v55 }
 0x6a5   :  { %v5750_v44 = vand.u32 2147483648, %v17824_v13  ;;  %v6593_v36 = vadd.f32 %v6592_v29, %v6459_v6  ;;  %vm5700_vm2 = vweird.f32 %v17816_v7  ;;  %vm17935_vm9 = vcmp.eq.f32.partialorder %v5703_v14, 8.507059e+37 }
 0x6a6   :  { %v17924_v41 = vpop.eup %8426  ;;  %v5726_v52 = vsub.f32 1.0, %v5725_v47  ;;  %v5733_v4 = vand.u32 2147483647, %v17812_v11  ;;  %v5687_v9 = vsel %vm17930_vm1, %v17754_v42, %v5683_v32  ;;  %v5712_v59 = vmul.f32 %v17826_v34, %v5711_v37  ;;  %vm17974_vm11 = vmor %vm5699_vm0, %vm5700_vm2 }
 0x6a7   :  { %v17941_v10 = vpop.eup %8428  ;;  %vm5714_vm5 = vweird.f32 %v17723_v54  ;;  %v17948_v33 = vor.u32 1.1754944e-38, %v5735_v25  ;;  %v6727_v14 = vadd.f32 %v6726_v12, %v6593_v36  ;;  %v5698_v55 = vadd.f32 %v17816_v7, %v5697_v35  ;;  %v6860_v32 = vpop.f32.mrf.mxu3 }
 0x6a8   :  { %v17950_v50 = vpop.eup %8430  ;;  %vm5715_vm6 = vweird.f32 %v17826_v34  ;;  %vm5729_vm7 = vweird.f32 %v17812_v11  ;;  %v5741_v39 = vsub.f32 1.0, %v5740_v51  ;;  %v5755_v47 = vmul.f32 %v17919_v61, %v17860_v0  ;;  %v6460_v51 = vpop.f32.mrf.mxu0 }
 0x6a9   :  { %v17957_v42 = vpop.eup %8432  ;;  %v17959_v46 = vor.u32 1.1754944e-38, %v5750_v44  ;;  %v5770_v29 = vmul.f32 %v17924_v41, %v17872_v19  ;;  %v5692_v37 = vsel %vm17900_vm15, %v5691_v30, %v5687_v9  ;;  %v5727_v6 = vmul.f32 %v17888_v43, %v5726_v52  ;;  %v6594_v44 = vpop.f32.mrf.mxu1  ;;  %vm18014_vm12 = vmor %vm5714_vm5, %vm5715_vm6 }
 0x6aa   :  { %vm5730_vm10 = vweird.f32 %v17888_v43  ;;  %vm5744_vm8 = vweird.f32 %v17824_v13  ;;  %v6861_v35 = vadd.f32 %v6860_v32, %v6727_v14  ;;  %v17979_v27 = vadd.f32 %v17826_v34, %v5712_v59 }
 0x6ab   :  { %v5785_v30 = vmul.f32 %v17941_v10, %v17875_v62  ;;  %v5800_v40 = vmul.f32 %v17950_v50, %v17882_v63  ;;  %v6461_v52 = vadd.f32 %v17865_v28, %v6460_v51  ;;  %v5702_v12 = vsel %vm17974_vm11, %v17816_v7, %v5698_v55  ;;  %v6728_v7 = vpop.f32.mrf.mxu2  ;;  %v19765_v55 = vld [vmem:[#allocation34_spill] sm:$0xff]  ;;  %vm18030_vm3 = vmor %vm5729_vm7, %vm5730_vm10 }
 0x6ac   :  { %v5742_v1 = vmul.f32 %v17897_v23, %v5741_v39  ;;  %v5756_v9 = vsub.f32 1.0, %v5755_v47  ;;  %v5815_v14 = vmul.f32 %v17957_v42, %v17893_v53  ;;  %6949 = vst [vmem:[#allocation11 + $0xc0] sm:$0xff] %v6861_v35  ;;  %v5771_v59 = vsub.f32 1.0, %v5770_v29  ;;  %v19766_v47 = vld [vmem:[#allocation110_spill] sm:$0xff] }
 0x6ad   :  { %v6595_v32 = vadd.f32 %v6594_v44, %v6461_v52  ;;  %v6117_v25 = vpack.c.bf16 %v17493_v20, %v17357_v8  ;;  %v6118_v3 = vpack.c.bf16 %v17830_v31, %v19764_v26  ;;  %v17997_v51 = vadd.f32 %v17888_v43, %v5727_v6  ;;  %v19767_v26 = vld [vmem:[#allocation113_spill] sm:$0xff] }
 0x6ae   :  { %vm5745_vm14 = vweird.f32 %v17897_v23  ;;  %vm5759_vm13 = vweird.f32 %v17860_v0  ;;  %v6119_v39 = vpack.c.bf16 %v17834_v48, %v19765_v55  ;;  %v6120_v29 = vpack.c.bf16 %v17838_v60, %v19766_v47 }
 0x6af   :  { %v5707_v8 = vsel %vm17935_vm9, %v5706_v49, %v5702_v12  ;;  %v5786_v20 = vsub.f32 1.0, %v5785_v30  ;;  %v5801_v35 = vsub.f32 1.0, %v5800_v40  ;;  %v6729_v31 = vadd.f32 %v6728_v7, %v6595_v32  ;;  %6507 = vmatmul.bf16.gmra.mxu0 %v6117_v25  ;;  %6641 = vmatmul.bf16.gmra.mxu1 %v6118_v3  ;;  %v6862_v36 = vpop.f32.mrf.mxu3  ;;  %v19772_v30 = vld [vmem:[#allocation67_spill] sm:$0xff]  ;;  %vm18049_vm0 = vmor %vm5744_vm8, %vm5745_vm14  ;;  %v19796_v25 = vld [vmem:[#allocation28_spill] sm:$0xff] }
 0x6b0   :  { %v18008_v6 = vmul.f32 %v5692_v37, %v19767_v26  ;;  %v18019_v60 = vadd.f32 %v17897_v23, %v5742_v1  ;;  %v5757_v49 = vmul.f32 %v17919_v61, %v5756_v9  ;;  %v5816_v15 = vsub.f32 1.0, %v5815_v14  ;;  %6775 = vmatmul.bf16.gmra.mxu2 %v6119_v39  ;;  %6909 = vmatmul.bf16.gmra.mxu3 %v6120_v29  ;;  %v6463_v1 = vpop.f32.mrf.mxu0 }
 0x6b1   :  { %v5717_v3 = vsel %vm18014_vm12, %v17826_v34, %v17979_v27  ;;  %v5772_v37 = vmul.f32 %v17924_v41, %v5771_v59  ;;  %vm5774_vm4 = vweird.f32 %v17872_v19  ;;  %v5778_v44 = vand.u32 2147483647, %v17872_v19  ;;  %v6597_v9 = vpop.f32.mrf.mxu1 }
 0x6b2   :  { %v18038_v40 = vmul.f32 %v5707_v8, %v19772_v30  ;;  %v5732_v52 = vsel %vm18030_vm3, %v17888_v43, %v17997_v51  ;;  %vm5760_vm15 = vweird.f32 %v17919_v61  ;;  %v6863_v12 = vadd.f32 %v6862_v36, %v6729_v31 }
 0x6b3   :  { %v5780_v59 = vand.u32 2147483648, %v17872_v19  ;;  %v5787_v32 = vmul.f32 %v17941_v10, %v5786_v20  ;;  %v5802_v7 = vmul.f32 %v17950_v50, %v5801_v35  ;;  %v6464_v55 = vadd.f32 %v17865_v28, %v6463_v1  ;;  %vm18095_vm10 = vmor %vm5759_vm13, %vm5760_vm15 }
 0x6b4   :  { %v5747_v39 = vsel %vm18049_vm0, %v17897_v23, %v18019_v60  ;;  %v18062_v47 = vadd.f32 %v17919_v61, %v5757_v49  ;;  %vm5775_vm1 = vweird.f32 %v17924_v41  ;;  %v5817_v29 = vmul.f32 %v17957_v42, %v5816_v15  ;;  %6950 = vst [vmem:[#allocation11 + $0xc8] sm:$0xff] %v6863_v12  ;;  %v6731_v15 = vpop.f32.mrf.mxu2  ;;  %v19794_v60 = vld [vmem:[#allocation114_spill] sm:$0xff] }
 0x6b5   :  { %v5773_v8 = vadd.f32 %v17924_v41, %v5772_v37  ;;  %vm18067_vm2 = vcmp.eq.f32.partialorder %v5778_v44, 8.507059e+37  ;;  %vm5789_vm9 = vweird.f32 %v17875_v62  ;;  %v6598_v35 = vadd.f32 %v6597_v9, %v6464_v55  ;;  %vm18106_vm11 = vmor %vm5774_vm4, %vm5775_vm1 }
 0x6b6   :  { %v6123_v31 = vpack.c.bf16 %v18008_v6, %v17847_v21  ;;  %vm5790_vm5 = vweird.f32 %v17941_v10  ;;  %v5793_v26 = vand.u32 2147483647, %v17875_v62  ;;  %v5795_v49 = vand.u32 2147483648, %v17875_v62 }
 0x6b7   :  { %v6124_v37 = vpack.c.bf16 %v18038_v40, %v17851_v38  ;;  %vm18081_vm6 = vcmp.eq.f32.partialorder %v5718_v5, 8.507059e+37  ;;  %vm18087_vm7 = vcmp.eq.f32.partialorder %v5733_v4, 8.507059e+37  ;;  %v5788_v54 = vadd.f32 %v17941_v10, %v5787_v32  ;;  %vm18122_vm13 = vmor %vm5789_vm9, %vm5790_vm5  ;;  %v6865_v9 = vpop.f32.mrf.mxu3 }
 0x6b8   :  { %v5803_v38 = vadd.f32 %v17950_v50, %v5802_v7  ;;  %vm5805_vm8 = vweird.f32 %v17950_v50  ;;  %v6732_v5 = vadd.f32 %v6731_v15, %v6598_v35  ;;  %v5808_v4 = vand.u32 2147483647, %v17882_v63  ;;  %v6465_v7 = vpop.f32.mrf.mxu0 }
 0x6b9   :  { %v5810_v36 = vand.u32 2147483648, %v17882_v63  ;;  %v5818_v30 = vadd.f32 %v17957_v42, %v5817_v29  ;;  %vm5820_vm14 = vweird.f32 %v17957_v42  ;;  %v5762_v40 = vsel %vm18095_vm10, %v17919_v61, %v18062_v47  ;;  %v6599_v55 = vpop.f32.mrf.mxu1 }
 0x6ba   :  { %v5781_v12 = vor.u32 1.1754944e-38, %v5780_v59  ;;  %vm5804_vm4 = vweird.f32 %v17882_v63  ;;  %v5825_v1 = vand.u32 2147483648, %v17893_v53  ;;  %v5777_v32 = vsel %vm18106_vm11, %v17924_v41, %v5773_v8 }
 0x6bb   :  { %vm18131_vm15 = vmor %vm5804_vm4, %vm5805_vm8  ;;  %vm5819_vm1 = vweird.f32 %v17893_v53  ;;  %v5823_v62 = vand.u32 2147483647, %v17893_v53  ;;  %v6866_v59 = vadd.f32 %v6865_v9, %v6732_v5  ;;  %v5792_v63 = vsel %vm18122_vm13, %v17941_v10, %v5788_v54 }
 0x6bc   :  { %vm5794_vm9 = vcmp.eq.f32.partialorder %v5793_v26, 8.507059e+37  ;;  %v5807_v41 = vsel %vm18131_vm15, %v17950_v50, %v5803_v38  ;;  %vm18145_vm5 = vmor %vm5819_vm1, %vm5820_vm14  ;;  %v6466_v53 = vadd.f32 %v17865_v28, %v6465_v7  ;;  %v5796_v29 = vor.u32 1.1754944e-38, %v5795_v49  ;;  %v6733_v38 = vpop.f32.mrf.mxu2 }
 0x6bd   :  { %vm5809_vm10 = vcmp.eq.f32.partialorder %v5808_v4, 8.507059e+37  ;;  %v5811_v8 = vor.u32 1.1754944e-38, %v5810_v36  ;;  %v5822_v10 = vsel %vm18145_vm5, %v17957_v42, %v5818_v30  ;;  %6951 = vst [vmem:[#allocation11 + $0xd0] sm:$0xff] %v6866_v59  ;;  %v5826_v35 = vor.u32 1.1754944e-38, %v5825_v1 }
 0x6be   :  { %v6600_v26 = vadd.f32 %v6599_v55, %v6466_v53  ;;  %v6121_v50 = vpack.c.bf16 %v17854_v56, %v17841_v16  ;;  %v6122_v15 = vpack.c.bf16 %v17857_v58, %v17844_v22  ;;  %v5782_v6 = vsel %vm18067_vm2, %v5781_v12, %v5777_v32 }
 0x6bf   :  { %v5797_v54 = vsel %vm5794_vm9, %v5796_v29, %v5792_v63  ;;  %v5812_v49 = vsel %vm5809_vm10, %v5811_v8, %v5807_v41  ;;  %vm5824_vm8 = vcmp.eq.f32.partialorder %v5823_v62, 8.507059e+37  ;;  %v19791_v5 = vand.u32 2147483647, %v17824_v13 }
 0x6c0   :  { %v19792_v42 = vand.u32 2147483648, %v17860_v0  ;;  %v5827_v4 = vsel %vm5824_vm8, %v5826_v35, %v5822_v10  ;;  %v6734_v36 = vadd.f32 %v6733_v38, %v6600_v26  ;;  %6512 = vmatmul.bf16.gmra.mxu0 %v6121_v50  ;;  %6646 = vmatmul.bf16.gmra.mxu1 %v6122_v15  ;;  %v5722_v16 = vsel %vm18081_vm6, %v17921_v24, %v5717_v3  ;;  %v6468_v48 = vpop.f32.mrf.mxu0  ;;  %v19795_v3 = vld [vmem:[#allocation111_spill] sm:$0xff] }
 0x6c1   :  { %vm5749_vm11 = vcmp.eq.f32.partialorder %v19791_v5, 8.507059e+37  ;;  %v5737_v13 = vsel %vm18087_vm7, %v17948_v33, %v5732_v52  ;;  %v19793_v22 = vand.u32 2147483647, %v17860_v0  ;;  %6780 = vmatmul.bf16.gmra.mxu2 %v6123_v31  ;;  %6914 = vmatmul.bf16.gmra.mxu3 %v6124_v37  ;;  %v6025_v58 = vmul.f32 %v5782_v6, %v17694_v57  ;;  %v6867_v33 = vpop.f32.mrf.mxu3  ;;  %v6602_v23 = vpop.f32.mrf.mxu1 }
 0x6c2   :  { %v5766_v11 = vor.u32 1.1754944e-38, %v19792_v42  ;;  %v5752_v34 = vsel %vm5749_vm11, %v17959_v46, %v5747_v39  ;;  %v6026_v43 = vmul.f32 %v5797_v54, %v17703_v17  ;;  %v6027_v24 = vmul.f32 %v5812_v49, %v17707_v18 }
 0x6c3   :  { %vm5764_vm12 = vcmp.eq.f32.partialorder %v19793_v22, 8.507059e+37  ;;  %v6028_v27 = vmul.f32 %v5827_v4, %v17727_v2  ;;  %v6868_v51 = vadd.f32 %v6867_v33, %v6734_v36  ;;  %v6021_v46 = vmul.f32 %v5722_v16, %v19794_v60 }
 0x6c4   :  { %v5767_v56 = vsel %vm5764_vm12, %v5766_v11, %v5762_v40  ;;  %v6022_v0 = vmul.f32 %v5737_v13, %v19795_v3  ;;  %v6023_v52 = vmul.f32 %v5752_v34, %v19796_v25  ;;  %v6469_v14 = vadd.f32 %v17865_v28, %v6468_v48  ;;  %v6736_v31 = vpop.f32.mrf.mxu2 }
 0x6c5   :  { %v6024_v57 = vmul.f32 %v5767_v56, %v17654_v45  ;;  %6952 = vst [vmem:[#allocation11 + $0xd8] sm:$0xff] %v6868_v51  ;;  %v6125_v39 = vpack.c.bf16 %v6025_v58, %v6021_v46 }
 0x6c6   :  { %v6603_v17 = vadd.f32 %v6602_v23, %v6469_v14  ;;  %v6126_v18 = vpack.c.bf16 %v6026_v43, %v6022_v0  ;;  %v6127_v20 = vpack.c.bf16 %v6027_v24, %v6023_v52 }
 0x6c7   :  { %v6128_v2 = vpack.c.bf16 %v6028_v27, %v6024_v57 }
 0x6c8   :  { %v6737_v37 = vadd.f32 %v6736_v31, %v6603_v17  ;;  %v6470_v30 = vpop.f32.mrf.mxu0 }
 0x6c9   :  { %v6870_v44 = vpop.f32.mrf.mxu3  ;;  %v6604_v40 = vpop.f32.mrf.mxu1  ;;  %v6471_v12 = vadd.f32 %v17865_v28, %v6470_v30 }
 0x6ca   :  { %v6871_v21 = vadd.f32 %v6870_v44, %v6737_v37 }
 0x6cb   :  { %v6605_v19 = vadd.f32 %v6604_v40, %v6471_v12 }
 0x6cc   :  { %6953 = vst [vmem:[#allocation11 + $0xe0] sm:$0xff] %v6871_v21  ;;  %v6738_v1 = vpop.f32.mrf.mxu2 }
 0x6cd   :  { %v6739_v9 = vadd.f32 %v6738_v1, %v6605_v19 }
 0x6d0   :  { %6517 = vmatmul.bf16.gmra.mxu0 %v6125_v39  ;;  %6651 = vmatmul.bf16.gmra.mxu1 %v6126_v18  ;;  %v6473_v61 = vpop.f32.mrf.mxu0 }
 0x6d1   :  { %6785 = vmatmul.bf16.gmra.mxu2 %v6127_v20  ;;  %6919 = vmatmul.bf16.gmra.mxu3 %v6128_v2  ;;  %v6872_v45 = vpop.f32.mrf.mxu3  ;;  %v6607_v62 = vpop.f32.mrf.mxu1  ;;  %v6474_v59 = vadd.f32 %v17865_v28, %v6473_v61 }
 0x6d2   :  { %v6873_v32 = vadd.f32 %v6872_v45, %v6739_v9 }
 0x6d3   :  { %v6608_v7 = vadd.f32 %v6607_v62, %v6474_v59 }
 0x6d4   :  { %6954 = vst [vmem:[#allocation11 + $0xe8] sm:$0xff] %v6873_v32  ;;  %v6741_v55 = vpop.f32.mrf.mxu2 }
 0x6d5   :  { %v6742_v63 = vadd.f32 %v6741_v55, %v6608_v7 }
 0x6d8   :  { %v6475_v53 = vpop.f32.mrf.mxu0 }
 0x6d9   :  { %v6875_v41 = vpop.f32.mrf.mxu3  ;;  %v6609_v29 = vpop.f32.mrf.mxu1  ;;  %v6476_v8 = vadd.f32 %v17865_v28, %v6475_v53 }
 0x6da   :  { %v6876_v47 = vadd.f32 %v6875_v41, %v6742_v63 }
 0x6db   :  { %v6610_v10 = vadd.f32 %v6609_v29, %v6476_v8 }
 0x6dc   :  { %6955 = vst [vmem:[#allocation11 + $0xf0] sm:$0xff] %v6876_v47  ;;  %v6743_v35 = vpop.f32.mrf.mxu2 }
 0x6dd   :  { %v6744_v26 = vadd.f32 %v6743_v35, %v6610_v10 }
 0x6e0   :  { %v6478_v6 = vpop.f32.mrf.mxu0 }
 0x6e1   :  { %v6877_v50 = vpop.f32.mrf.mxu3  ;;  %v6612_v54 = vpop.f32.mrf.mxu1  ;;  %v6479_v49 = vadd.f32 %v17865_v28, %v6478_v6 }
 0x6e2   :  { %v6878_v15 = vadd.f32 %v6877_v50, %v6744_v26 }
 0x6e3   :  { %v6613_v38 = vadd.f32 %v6612_v54, %v6479_v49 }
 0x6e4   :  { %6956 = vst [vmem:[#allocation11 + $0xf8] sm:$0xff] %v6878_v15  ;;  %v6746_v5 = vpop.f32.mrf.mxu2 }
 0x6e5   :  { %v6747_v42 = vadd.f32 %v6746_v5, %v6613_v38 }
 0x6e8   :  { %v6480_v36 = vpop.f32.mrf.mxu0 }
 0x6e9   :  { %v6880_v11 = vpop.f32.mrf.mxu3  ;;  %v6614_v16 = vpop.f32.mrf.mxu1  ;;  %v6481_v13 = vadd.f32 %v17865_v28, %v6480_v36 }
 0x6ea   :  { %v6881_v4 = vadd.f32 %v6880_v11, %v6747_v42 }
 0x6eb   :  { %v6615_v34 = vadd.f32 %v6614_v16, %v6481_v13 }
 0x6ec   :  { %6957 = vst [vmem:[#allocation11 + $0x100] sm:$0xff] %v6881_v4  ;;  %v6748_v22 = vpop.f32.mrf.mxu2 }
 0x6ed   :  { %v6749_v56 = vadd.f32 %v6748_v22, %v6615_v34 }
 0x6f0   :  { %v6483_v24 = vpop.f32.mrf.mxu0 }
 0x6f1   :  { %v6882_v58 = vpop.f32.mrf.mxu3  ;;  %v6617_v33 = vpop.f32.mrf.mxu1  ;;  %v6484_v27 = vadd.f32 %v17865_v28, %v6483_v24 }
 0x6f2   :  { %v6883_v43 = vadd.f32 %v6882_v58, %v6749_v56 }
 0x6f3   :  { %v6618_v51 = vadd.f32 %v6617_v33, %v6484_v27 }
 0x6f4   :  { %6958 = vst [vmem:[#allocation11 + $0x108] sm:$0xff] %v6883_v43  ;;  %v6751_v48 = vpop.f32.mrf.mxu2 }
 0x6f5   :  { %v6752_v23 = vadd.f32 %v6751_v48, %v6618_v51 }
 0x6f8   :  { %v6485_v3 = vpop.f32.mrf.mxu0 }
 0x6f9   :  { %v6885_v60 = vpop.f32.mrf.mxu3  ;;  %v6619_v0 = vpop.f32.mrf.mxu1  ;;  %v6486_v25 = vadd.f32 %v17865_v28, %v6485_v3 }
 0x6fa   :  { %v6886_v46 = vadd.f32 %v6885_v60, %v6752_v23 }
 0x6fb   :  { %v6620_v52 = vadd.f32 %v6619_v0, %v6486_v25 }
 0x6fc   :  { %6959 = vst [vmem:[#allocation11 + $0x110] sm:$0xff] %v6886_v46  ;;  %v6753_v14 = vpop.f32.mrf.mxu2 }
 0x6fd   :  { %v6754_v57 = vadd.f32 %v6753_v14, %v6620_v52 }
 0x700   :  { %v6488_v18 = vpop.f32.mrf.mxu0 }
 0x701   :  { %v6887_v17 = vpop.f32.mrf.mxu3  ;;  %v6622_v20 = vpop.f32.mrf.mxu1  ;;  %v6489_v31 = vadd.f32 %v17865_v28, %v6488_v18 }
 0x702   :  { %v6888_v39 = vadd.f32 %v6887_v17, %v6754_v57 }
 0x703   :  { %v6623_v2 = vadd.f32 %v6622_v20, %v6489_v31 }
 0x704   :  { %6960 = vst [vmem:[#allocation11 + $0x118] sm:$0xff] %v6888_v39  ;;  %v6756_v37 = vpop.f32.mrf.mxu2 }
 0x705   :  { %v6757_v44 = vadd.f32 %v6756_v37, %v6623_v2 }
 0x708   :  { %v6490_v40 = vpop.f32.mrf.mxu0 }
 0x709   :  { %v6890_v21 = vpop.f32.mrf.mxu3  ;;  %v6624_v12 = vpop.f32.mrf.mxu1  ;;  %v6491_v19 = vadd.f32 %v17865_v28, %v6490_v40 }
 0x70a   :  { %v6891_v30 = vadd.f32 %v6890_v21, %v6757_v44 }
 0x70b   :  { %v6625_v1 = vadd.f32 %v6624_v12, %v6491_v19 }
 0x70c   :  { %6961 = vst [vmem:[#allocation11 + $0x120] sm:$0xff] %v6891_v30  ;;  %v6758_v9 = vpop.f32.mrf.mxu2 }
 0x70d   :  { %v6759_v45 = vadd.f32 %v6758_v9, %v6625_v1 }
 0x710   :  { %v6493_v62 = vpop.f32.mrf.mxu0 }
 0x711   :  { %v6892_v32 = vpop.f32.mrf.mxu3  ;;  %v6627_v59 = vpop.f32.mrf.mxu1  ;;  %v6494_v7 = vadd.f32 %v17865_v28, %v6493_v62 }
 0x712   :  { %v6893_v61 = vadd.f32 %v6892_v32, %v6759_v45 }
 0x713   :  { %v6628_v55 = vadd.f32 %v6627_v59, %v6494_v7 }
 0x714   :  { %6962 = vst [vmem:[#allocation11 + $0x128] sm:$0xff] %v6893_v61  ;;  %v6761_v63 = vpop.f32.mrf.mxu2 }
 0x715   :  { %v6762_v41 = vadd.f32 %v6761_v63, %v6628_v55 }
 0x718   :  { %v6495_v29 = vpop.f32.mrf.mxu0 }
 0x719   :  { %v6895_v47 = vpop.f32.mrf.mxu3  ;;  %v6629_v8 = vpop.f32.mrf.mxu1  ;;  %v6496_v10 = vadd.f32 %v17865_v28, %v6495_v29 }
 0x71a   :  { %v6896_v53 = vadd.f32 %v6895_v47, %v6762_v41 }
 0x71b   :  { %v6630_v35 = vadd.f32 %v6629_v8, %v6496_v10 }
 0x71c   :  { %6963 = vst [vmem:[#allocation11 + $0x130] sm:$0xff] %v6896_v53  ;;  %v6763_v26 = vpop.f32.mrf.mxu2 }
 0x71d   :  { %v6764_v50 = vadd.f32 %v6763_v26, %v6630_v35 }
 0x720   :  { %v6498_v54 = vpop.f32.mrf.mxu0 }
 0x721   :  { %v6897_v15 = vpop.f32.mrf.mxu3  ;;  %v6632_v49 = vpop.f32.mrf.mxu1  ;;  %v6499_v38 = vadd.f32 %v17865_v28, %v6498_v54 }
 0x722   :  { %v6898_v6 = vadd.f32 %v6897_v15, %v6764_v50 }
 0x723   :  { %v6633_v5 = vadd.f32 %v6632_v49, %v6499_v38 }
 0x724   :  { %6964 = vst [vmem:[#allocation11 + $0x138] sm:$0xff] %v6898_v6  ;;  %v6766_v42 = vpop.f32.mrf.mxu2 }
 0x725   :  { %v6767_v11 = vadd.f32 %v6766_v42, %v6633_v5 }
 0x728   :  { %v6500_v16 = vpop.f32.mrf.mxu0 }
 0x729   :  { %v6900_v4 = vpop.f32.mrf.mxu3  ;;  %v6634_v13 = vpop.f32.mrf.mxu1  ;;  %v6501_v34 = vadd.f32 %v17865_v28, %v6500_v16 }
 0x72a   :  { %v6901_v36 = vadd.f32 %v6900_v4, %v6767_v11 }
 0x72b   :  { %v6635_v22 = vadd.f32 %v6634_v13, %v6501_v34 }
 0x72c   :  { %6965 = vst [vmem:[#allocation11 + $0x140] sm:$0xff] %v6901_v36  ;;  %v6768_v56 = vpop.f32.mrf.mxu2 }
 0x72d   :  { %v6769_v58 = vadd.f32 %v6768_v56, %v6635_v22 }
 0x730   :  { %v6503_v33 = vpop.f32.mrf.mxu0 }
 0x731   :  { %v6902_v43 = vpop.f32.mrf.mxu3  ;;  %v6637_v27 = vpop.f32.mrf.mxu1  ;;  %v6504_v51 = vadd.f32 %v17865_v28, %v6503_v33 }
 0x732   :  { %v6903_v24 = vadd.f32 %v6902_v43, %v6769_v58 }
 0x733   :  { %v6638_v48 = vadd.f32 %v6637_v27, %v6504_v51 }
 0x734   :  { %6966 = vst [vmem:[#allocation11 + $0x148] sm:$0xff] %v6903_v24  ;;  %v6771_v23 = vpop.f32.mrf.mxu2 }
 0x735   :  { %v6772_v60 = vadd.f32 %v6771_v23, %v6638_v48 }
 0x738   :  { %v6505_v0 = vpop.f32.mrf.mxu0 }
 0x739   :  { %v6905_v46 = vpop.f32.mrf.mxu3  ;;  %v6639_v25 = vpop.f32.mrf.mxu1  ;;  %v6506_v52 = vadd.f32 %v17865_v28, %v6505_v0 }
 0x73a   :  { %v6906_v3 = vadd.f32 %v6905_v46, %v6772_v60 }
 0x73b   :  { %v6640_v14 = vadd.f32 %v6639_v25, %v6506_v52 }
 0x73c   :  { %6967 = vst [vmem:[#allocation11 + $0x150] sm:$0xff] %v6906_v3  ;;  %v6773_v57 = vpop.f32.mrf.mxu2 }
 0x73d   :  { %v6774_v17 = vadd.f32 %v6773_v57, %v6640_v14 }
 0x740   :  { %v6508_v20 = vpop.f32.mrf.mxu0 }
 0x741   :  { %v6907_v39 = vpop.f32.mrf.mxu3  ;;  %v6642_v31 = vpop.f32.mrf.mxu1  ;;  %v6509_v2 = vadd.f32 %v17865_v28, %v6508_v20 }
 0x742   :  { %v6908_v18 = vadd.f32 %v6907_v39, %v6774_v17 }
 0x743   :  { %v6643_v37 = vadd.f32 %v6642_v31, %v6509_v2 }
 0x744   :  { %6968 = vst [vmem:[#allocation11 + $0x158] sm:$0xff] %v6908_v18  ;;  %v6776_v44 = vpop.f32.mrf.mxu2 }
 0x745   :  { %v6777_v21 = vadd.f32 %v6776_v44, %v6643_v37 }
 0x748   :  { %v6510_v12 = vpop.f32.mrf.mxu0 }
 0x749   :  { %v6910_v30 = vpop.f32.mrf.mxu3  ;;  %v6644_v19 = vpop.f32.mrf.mxu1  ;;  %v6511_v1 = vadd.f32 %v17865_v28, %v6510_v12 }
 0x74a   :  { %v6911_v40 = vadd.f32 %v6910_v30, %v6777_v21 }
 0x74b   :  { %v6645_v9 = vadd.f32 %v6644_v19, %v6511_v1 }
 0x74c   :  { %6969 = vst [vmem:[#allocation11 + $0x160] sm:$0xff] %v6911_v40  ;;  %v6778_v45 = vpop.f32.mrf.mxu2 }
 0x74d   :  { %v6779_v32 = vadd.f32 %v6778_v45, %v6645_v9 }
 0x750   :  { %v6513_v59 = vpop.f32.mrf.mxu0 }
 0x751   :  { %v6912_v61 = vpop.f32.mrf.mxu3  ;;  %v6647_v7 = vpop.f32.mrf.mxu1  ;;  %v6514_v55 = vadd.f32 %v17865_v28, %v6513_v59 }
 0x752   :  { %v6913_v62 = vadd.f32 %v6912_v61, %v6779_v32 }
 0x753   :  { %v6648_v63 = vadd.f32 %v6647_v7, %v6514_v55 }
 0x754   :  { %6970 = vst [vmem:[#allocation11 + $0x168] sm:$0xff] %v6913_v62  ;;  %v6781_v41 = vpop.f32.mrf.mxu2 }
 0x755   :  { %v6782_v47 = vadd.f32 %v6781_v41, %v6648_v63 }
 0x758   :  { %v6515_v8 = vpop.f32.mrf.mxu0 }
 0x759   :  { %v6915_v53 = vpop.f32.mrf.mxu3  ;;  %v6649_v10 = vpop.f32.mrf.mxu1  ;;  %v6516_v35 = vadd.f32 %v17865_v28, %v6515_v8 }
 0x75a   :  { %v6916_v29 = vadd.f32 %v6915_v53, %v6782_v47 }
 0x75b   :  { %v6650_v26 = vadd.f32 %v6649_v10, %v6516_v35 }
 0x75c   :  { %6971 = vst [vmem:[#allocation11 + $0x170] sm:$0xff] %v6916_v29  ;;  %v6783_v50 = vpop.f32.mrf.mxu2 }
 0x75d   :  { %v6784_v15 = vadd.f32 %v6783_v50, %v6650_v26 }
 0x760   :  { %v6518_v49 = vpop.f32.mrf.mxu0 }
 0x761   :  { %v6917_v6 = vpop.f32.mrf.mxu3  ;;  %v6652_v38 = vpop.f32.mrf.mxu1  ;;  %v6519_v5 = vadd.f32 %v17865_v28, %v6518_v49 }
 0x762   :  { %v6918_v54 = vadd.f32 %v6917_v6, %v6784_v15 }
 0x763   :  { %v6653_v42 = vadd.f32 %v6652_v38, %v6519_v5 }
 0x764   :  { %6972 = vst [vmem:[#allocation11 + $0x178] sm:$0xff] %v6918_v54  ;;  %v6786_v11 = vpop.f32.mrf.mxu2 }
 0x765   :  { %v6787_v4 = vadd.f32 %v6786_v11, %v6653_v42 }
 0x768   :  { %v6520_v13 = vpop.f32.mrf.mxu0 }
 0x769   :  { %v6920_v36 = vpop.f32.mrf.mxu3  ;;  %v6521_v34 = vadd.f32 %v17865_v28, %v6520_v13  ;;  %v6654_v22 = vpop.f32.mrf.mxu1 }
 0x76a   :  { %v6921_v16 = vadd.f32 %v6920_v36, %v6787_v4 }
 0x76b   :  { %v6655_v56 = vadd.f32 %v6654_v22, %v6521_v34 }
 0x76c   :  { %6973 = vst [vmem:[#allocation11 + $0x180] sm:$0xff] %v6921_v16  ;;  %v6788_v58 = vpop.f32.mrf.mxu2 }
 0x76d   :  { %v6789_v43 = vadd.f32 %v6788_v58, %v6655_v56 }
 0x771   :  { %v6922_v24 = vpop.f32.mrf.mxu3 }
 0x772   :  { %v6923_v33 = vadd.f32 %v6922_v24, %v6789_v43 }
 0x774   :  { %6974 = vst [vmem:[#allocation11 + $0x188] sm:$0xff] %v6923_v33 }
 0x775   :  { %6987 = dma.vmem_to_hbm [thread:$0]  %s6980_s22, 6400, %s6982_s25, [#allocation4], %s8617_s18, %s8617_s18, %s8618_s4  }
 0x776   :  { %8612 = dma.done.wait [#allocation4], 6400  }
 0x777   :  { %8613 = vsyncadd [#allocation4], 4294960896 }
 0x778   :  { %6992 = vsyncpa [#allocation3], 1 }
 0x779   :  { %6993 = vsyncpa [#allocation6], 1 }
 0x77a   :  { %6994 = vsyncpa [#allocation9], 1 }
 0x77b   :  { %6995 = vsyncpa [#allocation4], 1 }

</bundles_post_ra>
